<compile_context>
chip_gen: v5e
topology: v5e:2x2
jax: 0.10.0
libtpu: 0.0.40
codegen_flags: <defaults>
</compile_context>

<pallas_src>
import functools

import jax
import jax.numpy as jnp
from jax.experimental import pallas as pl
from jax.experimental.pallas import tpu as pltpu


LANE = 128      # lane width -> last-dim padding target
SUBLANE = 8     # sublane width -> batch-tile padding target


def _round_up(x, m):
    return ((x + m - 1) // m) * m


def _cdiv(a, b):
    return -(-a // b)


def _sigmoid(y):
    # sigmoid(y) == 0.5 * (tanh(y/2) + 1).  tanh goes to the EUP (separate
    # VLIW slot); the remaining mul/add are cheap VALU ops (no f32 divide).
    return 0.5 * (jnp.tanh(0.5 * y) + 1.0)


# ----------------------------------------------------------------------------
# Fused Pallas kernel: the whole encoder+decoder stack in one body.
# ----------------------------------------------------------------------------
def _make_fused_ae_kernel(n_enc, n_dec):
    n_layers = n_enc + n_dec

    def kernel(x_ref, *refs):
        w_refs = refs[:n_layers]                        # bf16 (in_pad, out_pad)
        b_refs = refs[n_layers:2 * n_layers]            # f32  (1, out_pad)
        recon_ref = refs[2 * n_layers]
        latent_ref = refs[2 * n_layers + 1]

        # bf16 operands feed the MXU's native path; accumulation stays f32.
        h = x_ref[...].astype(jnp.bfloat16)             # (TB, in_pad)

        a = None
        for li in range(n_layers):
            y = jnp.dot(h, w_refs[li][...],
                        preferred_element_type=jnp.float32)
            a = _sigmoid(y + b_refs[li][...])           # f32 bias add + sigmoid
            if li == n_enc - 1:
                # NOTE: padded latent lanes (and padded batch rows) hold
                # sigmoid(0)=0.5; the wrapper slices them off.
                latent_ref[...] = a.astype(latent_ref.dtype)
            if li < n_layers - 1:
                h = a.astype(jnp.bfloat16)              # next MXU operand
        recon_ref[...] = a.astype(recon_ref.dtype)

    return kernel


# ----------------------------------------------------------------------------
# Tiling / VMEM budget helpers
# ----------------------------------------------------------------------------
def _choose_batch_tile(B, batch_tile):
    """Cover B with roughly-equal tiles of at most `batch_tile` rows.

    Pad waste is bounded by SUBLANE-1 rows per tile (instead of up to tb-1
    rows with a naive round_up(B, batch_tile)).  The grid is forced to >= 2
    steps when there is more than one sublane of real rows so v7x's second
    TensorCore gets work; on single-TC chips the extra grid step only costs
    ~0.35 us.  (We prefer minimal pad waste over snapping tb to a 128-row
    MXU block: a partial final M block is far cheaper than whole garbage
    rows of MXU+EUP work.)
    """
    n_tiles = max(1, _cdiv(B, batch_tile))
    if n_tiles == 1 and B > SUBLANE:
        n_tiles = 2
    return _round_up(_cdiv(B, n_tiles), SUBLANE)


def _vmem_budget_bytes(tb, w_pads, b_pads, in_pad, out_pad, lat_pad):
    # Weights/biases (budget 2 buffers even when single-buffered - cheap slack).
    const_bytes = 2 * (sum(int(w.size) * w.dtype.itemsize for w in w_pads)
                       + sum(int(b.size) * b.dtype.itemsize for b in b_pads))
    # Double-buffered activation tiles at the pallas_call boundary (f32).
    io_bytes = 2 * tb * (in_pad + out_pad + lat_pad) * 4
    # Headroom for in-kernel intermediates (f32 matmul accumulator, bf16 copy
    # of the widest activation, a few live values) + compiler scratch.
    scratch_bytes = 8 * tb * max(in_pad, out_pad) * 4 + (4 << 20)
    budget = const_bytes + io_bytes + scratch_bytes
    # Clamp: floor well above v5e's small default scoped limit, ceiling inside
    # v7x's 64 MiB physical VMEM (v5e/v6e have 128 MiB).
    return int(min(max(budget, 32 << 20), 60 << 20))


# ----------------------------------------------------------------------------
# Forward pass (mirrors ContractiveAutoencoder.forward)
# ----------------------------------------------------------------------------
@functools.partial(jax.jit,
                   static_argnames=("batch_tile", "single_buffer_consts"))
def _forward_impl(x, enc_params, dec_params, *, batch_tile,
                  single_buffer_consts):
    # Flatten anything with rank > 2, exactly like x.view(x.size(0), -1).
    if x.ndim > 2:
        x = x.reshape(x.shape[0], -1)
    B, in_dim = x.shape
    latent_dim = enc_params[-1][0].shape[1]
    out_dim = dec_params[-1][0].shape[1]

    n_enc, n_dec = len(enc_params), len(dec_params)
    params = list(enc_params) + list(dec_params)

    # ---- lane-pad every feature dim to a multiple of 128; zero padding of
    #      weight rows/cols and biases keeps the math exact.  Weights go to
    #      bf16 (native MXU operand dtype); biases stay f32 (exact add onto
    #      the f32 accumulator).
    w_pads, b_pads = [], []
    for w, b in params:
        k, n = w.shape
        kp, np_ = _round_up(k, LANE), _round_up(n, LANE)
        w_pads.append(
            jnp.pad(w, ((0, kp - k), (0, np_ - n))).astype(jnp.bfloat16))
        b_pads.append(
            jnp.pad(b, (0, np_ - n)).reshape(1, np_).astype(jnp.float32))

    in_pad = _round_up(in_dim, LANE)
    out_pad = _round_up(out_dim, LANE)
    lat_pad = _round_up(latent_dim, LANE)

    # ---- batch tiling: the (only) grid axis.  Weights use a constant
    #      index_map so they are DMA'd once and stay VMEM-resident.
    tb = _choose_batch_tile(B, batch_tile)
    b_pad = _round_up(B, tb)
    x_p = jnp.pad(x, ((0, b_pad - B), (0, in_pad - in_dim)))

    grid = (b_pad // tb,)

    if single_buffer_consts:
        # Grid-invariant blocks are fetched once -> single-buffer them to
        # halve their VMEM footprint.
        def _const_spec(shape):
            return pl.BlockSpec(shape, lambda i: (0, 0),
                                pipeline_mode=pl.Buffered(1))
    else:
        def _const_spec(shape):
            return pl.BlockSpec(shape, lambda i: (0, 0))

    in_specs = [pl.BlockSpec((tb, in_pad), lambda i: (i, 0))]
    in_specs += [_const_spec(w.shape) for w in w_pads]
    in_specs += [_const_spec(b.shape) for b in b_pads]

    out_shape = (jax.ShapeDtypeStruct((b_pad, out_pad), x.dtype),
                 jax.ShapeDtypeStruct((b_pad, lat_pad), x.dtype))
    out_specs = (pl.BlockSpec((tb, out_pad), lambda i: (i, 0)),
                 pl.BlockSpec((tb, lat_pad), lambda i: (i, 0)))

    vmem_limit = _vmem_budget_bytes(tb, w_pads, b_pads,
                                    in_pad, out_pad, lat_pad)

    recon_p, latent_p = pl.pallas_call(
        _make_fused_ae_kernel(n_enc, n_dec),
        grid=grid,
        in_specs=in_specs,
        out_specs=out_specs,
        out_shape=out_shape,
        compiler_params=pltpu.CompilerParams(
            # batch tiles are independent -> shard across TCs on v7x
            dimension_semantics=("parallel",),
            vmem_limit_bytes=vmem_limit,
        ),
    )(x_p, *w_pads, *b_pads)

    reconstructed = recon_p[:B, :out_dim]
    latent = latent_p[:B, :latent_dim]
    return reconstructed, latent


def contractive_autoencoder_forward(x, enc_params, dec_params, *,
                                    batch_tile=512):
    """Forward pass of the contractive autoencoder -> (reconstructed, latent)."""
    try:
        return _forward_impl(x, enc_params, dec_params,
                             batch_tile=batch_tile, single_buffer_consts=True)
    except Exception:
        # pl.Buffered(1) on grid-invariant inputs is a pure VMEM optimization;
        # if this jax version rejects it, fall back to default double-buffering.
        return _forward_impl(x, enc_params, dec_params,
                             batch_tile=batch_tile, single_buffer_consts=False)


# ----------------------------------------------------------------------------
# Parameter initialization (deterministic, PyTorch nn.Linear-style uniform)
# ----------------------------------------------------------------------------
def init_linear_params(key, in_dim, out_dim, dtype=jnp.float32):
    kw, kb = jax.random.split(key)
    bound = 1.0 / jnp.sqrt(jnp.asarray(in_dim, dtype))
    # Stored as (in_dim, out_dim) == PyTorch weight (out, in) transposed.
    w = jax.random.uniform(kw, (in_dim, out_dim), dtype, -bound, bound)
    b = jax.random.uniform(kb, (out_dim,), dtype, -bound, bound)
    return w, b


def init_autoencoder_params(key, input_dim, hidden_dims, latent_dim):
    dims = [input_dim] + list(hidden_dims) + [latent_dim]
    enc_pairs = list(zip(dims[:-1], dims[1:]))
    dims_rev = dims[::-1]
    dec_pairs = list(zip(dims_rev[:-1], dims_rev[1:]))

    keys = jax.random.split(key, len(enc_pairs) + len(dec_pairs))
    enc_params = [init_linear_params(k, i, o)
                  for k, (i, o) in zip(keys[:len(enc_pairs)], enc_pairs)]
    dec_params = [init_linear_params(k, i, o)
                  for k, (i, o) in zip(keys[len(enc_pairs):], dec_pairs)]
    return enc_params, dec_params


# ----------------------------------------------------------------------------
# Pure-JAX reference (for correctness checking only; full f32 math)
# ----------------------------------------------------------------------------
def reference_forward(x, enc_params, dec_params):
    if x.ndim > 2:
        x = x.reshape(x.shape[0], -1)
    h = x
    for w, b in enc_params:
        h = jax.nn.sigmoid(
            jnp.dot(h, w, precision=jax.lax.Precision.HIGHEST) + b)
    latent = h
    for w, b in dec_params:
        h = jax.nn.sigmoid(
            jnp.dot(h, w, precision=jax.lax.Precision.HIGHEST) + b)
    return h, latent


# ----------------------------------------------------------------------------
# Demo
# ----------------------------------------------------------------------------
if __name__ == "__main__":
    INPUT_DIM = 784            # 28 * 28
    HIDDEN_DIMS = [512, 256, 128]
    LATENT_DIM = 64
    BATCH = 2

    root = jax.random.PRNGKey(0)
    k_params, k_data = jax.random.split(root)

    enc_params, dec_params = init_autoencoder_params(
        k_params, INPUT_DIM, HIDDEN_DIMS, LATENT_DIM)

    # Image-like input (B, C, H, W) that forward() flattens to (B, 784).
    x = jax.random.uniform(k_data, (BATCH, 1, 28, 28), jnp.float32)

    reconstructed, latent = contractive_autoencoder_forward(
        x, enc_params, dec_params)
    jax.block_until_ready((reconstructed, latent))

    assert reconstructed.shape == (BATCH, INPUT_DIM), reconstructed.shape
    assert latent.shape == (BATCH, LATENT_DIM), latent.shape
    assert reconstructed.dtype == jnp.float32

    # Sigmoid output range sanity check (closed interval: f32 tanh/exp can
    # saturate exactly at the bounds for large pre-activations).
    assert bool(jnp.all((reconstructed >= 0.0) & (reconstructed <= 1.0)))
    assert bool(jnp.all((latent >= 0.0) & (latent <= 1.0)))

    # Numerical check against a full-f32 pure-JAX reference.  The kernel uses
    # bf16 MXU operands with f32 accumulation, so tolerances are loosened
    # slightly vs. the previous all-f32 kernel (outputs are sigmoid-bounded,
    # so absolute error dominates).
    r_ref, l_ref = reference_forward(x, enc_params, dec_params)
    assert jnp.allclose(reconstructed, r_ref, atol=2e-2, rtol=2e-2), (
        float(jnp.max(jnp.abs(reconstructed - r_ref))))
    assert jnp.allclose(latent, l_ref, atol=2e-2, rtol=2e-2), (
        float(jnp.max(jnp.abs(latent - l_ref))))

    print("KERNEL_OK")
</pallas_src>

<mosaic_0001>
module attributes {stable_mosaic.version = 11 : i64} {
  func.func @kernel(%arg0: i32, %arg1: memref<8x896xf32, #tpu.memory_space<vmem>>, %arg2: memref<896x512xbf16, #tpu.memory_space<vmem>>, %arg3: memref<512x256xbf16, #tpu.memory_space<vmem>>, %arg4: memref<256x128xbf16, #tpu.memory_space<vmem>>, %arg5: memref<128x128xbf16, #tpu.memory_space<vmem>>, %arg6: memref<128x128xbf16, #tpu.memory_space<vmem>>, %arg7: memref<128x256xbf16, #tpu.memory_space<vmem>>, %arg8: memref<256x512xbf16, #tpu.memory_space<vmem>>, %arg9: memref<512x896xbf16, #tpu.memory_space<vmem>>, %arg10: memref<1x512xf32, #tpu.memory_space<vmem>>, %arg11: memref<1x256xf32, #tpu.memory_space<vmem>>, %arg12: memref<1x128xf32, #tpu.memory_space<vmem>>, %arg13: memref<1x128xf32, #tpu.memory_space<vmem>>, %arg14: memref<1x128xf32, #tpu.memory_space<vmem>>, %arg15: memref<1x256xf32, #tpu.memory_space<vmem>>, %arg16: memref<1x512xf32, #tpu.memory_space<vmem>>, %arg17: memref<1x896xf32, #tpu.memory_space<vmem>>, %arg18: memref<8x896xf32, #tpu.memory_space<vmem>>, %arg19: memref<8x128xf32, #tpu.memory_space<vmem>>) attributes {dimension_semantics = [#tpu.dimension_semantics<parallel>], iteration_bounds = array<i64: 1>, scalar_prefetch = 0 : i64, scratch_operands = 0 : i64, tpu.core_type = #tpu.core_type<tc>, window_params = [{transform_indices = @transform_0, window_bounds = array<i64: 8, 896>}, {pipeline_mode = #tpu.pipeline_mode<synchronous>, transform_indices = @transform_1, window_bounds = array<i64: 896, 512>}, {pipeline_mode = #tpu.pipeline_mode<synchronous>, transform_indices = @transform_2, window_bounds = array<i64: 512, 256>}, {pipeline_mode = #tpu.pipeline_mode<synchronous>, transform_indices = @transform_3, window_bounds = array<i64: 256, 128>}, {pipeline_mode = #tpu.pipeline_mode<synchronous>, transform_indices = @transform_4, window_bounds = array<i64: 128, 128>}, {pipeline_mode = #tpu.pipeline_mode<synchronous>, transform_indices = @transform_5, window_bounds = array<i64: 128, 128>}, {pipeline_mode = #tpu.pipeline_mode<synchronous>, transform_indices = @transform_6, window_bounds = array<i64: 128, 256>}, {pipeline_mode = #tpu.pipeline_mode<synchronous>, transform_indices = @transform_7, window_bounds = array<i64: 256, 512>}, {pipeline_mode = #tpu.pipeline_mode<synchronous>, transform_indices = @transform_8, window_bounds = array<i64: 512, 896>}, {pipeline_mode = #tpu.pipeline_mode<synchronous>, transform_indices = @transform_9, window_bounds = array<i64: 1, 512>}, {pipeline_mode = #tpu.pipeline_mode<synchronous>, transform_indices = @transform_10, window_bounds = array<i64: 1, 256>}, {pipeline_mode = #tpu.pipeline_mode<synchronous>, transform_indices = @transform_11, window_bounds = array<i64: 1, 128>}, {pipeline_mode = #tpu.pipeline_mode<synchronous>, transform_indices = @transform_12, window_bounds = array<i64: 1, 128>}, {pipeline_mode = #tpu.pipeline_mode<synchronous>, transform_indices = @transform_13, window_bounds = array<i64: 1, 128>}, {pipeline_mode = #tpu.pipeline_mode<synchronous>, transform_indices = @transform_14, window_bounds = array<i64: 1, 256>}, {pipeline_mode = #tpu.pipeline_mode<synchronous>, transform_indices = @transform_15, window_bounds = array<i64: 1, 512>}, {pipeline_mode = #tpu.pipeline_mode<synchronous>, transform_indices = @transform_16, window_bounds = array<i64: 1, 896>}, {transform_indices = @transform_17, window_bounds = array<i64: 8, 896>}, {transform_indices = @transform_18, window_bounds = array<i64: 8, 128>}]} {
    %c0 = arith.constant 0 : index
    %c0_0 = arith.constant 0 : index
    %0 = vector.load %arg1[%c0, %c0_0] : memref<8x896xf32, #tpu.memory_space<vmem>>, vector<8x896xf32>
    %1 = arith.truncf %0 : vector<8x896xf32> to vector<8x896xbf16>
    %c0_1 = arith.constant 0 : index
    %c0_2 = arith.constant 0 : index
    %2 = vector.load %arg2[%c0_1, %c0_2] : memref<896x512xbf16, #tpu.memory_space<vmem>>, vector<896x512xbf16>
    %cst = arith.constant dense<0.000000e+00> : vector<8x512xf32>
    %3 = tpu.matmul %1, %2, %cst {dimension_numbers = #tpu.dot_dimension_numbers<[1], [0], [0], [1], [0, 0, 1, 1], [], []>} : vector<8x896xbf16>, vector<896x512xbf16>, vector<8x512xf32> -> vector<8x512xf32>
    %c0_3 = arith.constant 0 : index
    %c0_4 = arith.constant 0 : index
    %4 = vector.load %arg10[%c0_3, %c0_4] : memref<1x512xf32, #tpu.memory_space<vmem>>, vector<1x512xf32>
    %5 = vector.broadcast %4 : vector<1x512xf32> to vector<8x512xf32>
    %6 = arith.addf %3, %5 : vector<8x512xf32>
    %cst_5 = arith.constant 5.000000e-01 : f32
    %7 = vector.broadcast %cst_5 : f32 to vector<8x512xf32>
    %8 = arith.mulf %7, %6 : vector<8x512xf32>
    %9 = math.tanh %8 : vector<8x512xf32>
    %cst_6 = arith.constant 1.000000e+00 : f32
    %10 = vector.broadcast %cst_6 : f32 to vector<8x512xf32>
    %11 = arith.addf %9, %10 : vector<8x512xf32>
    %cst_7 = arith.constant 5.000000e-01 : f32
    %12 = vector.broadcast %cst_7 : f32 to vector<8x512xf32>
    %13 = arith.mulf %12, %11 : vector<8x512xf32>
    %14 = arith.truncf %13 : vector<8x512xf32> to vector<8x512xbf16>
    %c0_8 = arith.constant 0 : index
    %c0_9 = arith.constant 0 : index
    %15 = vector.load %arg3[%c0_8, %c0_9] : memref<512x256xbf16, #tpu.memory_space<vmem>>, vector<512x256xbf16>
    %cst_10 = arith.constant dense<0.000000e+00> : vector<8x256xf32>
    %16 = tpu.matmul %14, %15, %cst_10 {dimension_numbers = #tpu.dot_dimension_numbers<[1], [0], [0], [1], [0, 0, 1, 1], [], []>} : vector<8x512xbf16>, vector<512x256xbf16>, vector<8x256xf32> -> vector<8x256xf32>
    %c0_11 = arith.constant 0 : index
    %c0_12 = arith.constant 0 : index
    %17 = vector.load %arg11[%c0_11, %c0_12] : memref<1x256xf32, #tpu.memory_space<vmem>>, vector<1x256xf32>
    %18 = vector.broadcast %17 : vector<1x256xf32> to vector<8x256xf32>
    %19 = arith.addf %16, %18 : vector<8x256xf32>
    %cst_13 = arith.constant 5.000000e-01 : f32
    %20 = vector.broadcast %cst_13 : f32 to vector<8x256xf32>
    %21 = arith.mulf %20, %19 : vector<8x256xf32>
    %22 = math.tanh %21 : vector<8x256xf32>
    %cst_14 = arith.constant 1.000000e+00 : f32
    %23 = vector.broadcast %cst_14 : f32 to vector<8x256xf32>
    %24 = arith.addf %22, %23 : vector<8x256xf32>
    %cst_15 = arith.constant 5.000000e-01 : f32
    %25 = vector.broadcast %cst_15 : f32 to vector<8x256xf32>
    %26 = arith.mulf %25, %24 : vector<8x256xf32>
    %27 = arith.truncf %26 : vector<8x256xf32> to vector<8x256xbf16>
    %c0_16 = arith.constant 0 : index
    %c0_17 = arith.constant 0 : index
    %28 = vector.load %arg4[%c0_16, %c0_17] : memref<256x128xbf16, #tpu.memory_space<vmem>>, vector<256x128xbf16>
    %cst_18 = arith.constant dense<0.000000e+00> : vector<8x128xf32>
    %29 = tpu.matmul %27, %28, %cst_18 {dimension_numbers = #tpu.dot_dimension_numbers<[1], [0], [0], [1], [0, 0, 1, 1], [], []>} : vector<8x256xbf16>, vector<256x128xbf16>, vector<8x128xf32> -> vector<8x128xf32>
    %c0_19 = arith.constant 0 : index
    %c0_20 = arith.constant 0 : index
    %30 = vector.load %arg12[%c0_19, %c0_20] : memref<1x128xf32, #tpu.memory_space<vmem>>, vector<1x128xf32>
    %31 = vector.broadcast %30 : vector<1x128xf32> to vector<8x128xf32>
    %32 = arith.addf %29, %31 : vector<8x128xf32>
    %cst_21 = arith.constant 5.000000e-01 : f32
    %33 = vector.broadcast %cst_21 : f32 to vector<8x128xf32>
    %34 = arith.mulf %33, %32 : vector<8x128xf32>
    %35 = math.tanh %34 : vector<8x128xf32>
    %cst_22 = arith.constant 1.000000e+00 : f32
    %36 = vector.broadcast %cst_22 : f32 to vector<8x128xf32>
    %37 = arith.addf %35, %36 : vector<8x128xf32>
    %cst_23 = arith.constant 5.000000e-01 : f32
    %38 = vector.broadcast %cst_23 : f32 to vector<8x128xf32>
    %39 = arith.mulf %38, %37 : vector<8x128xf32>
    %40 = arith.truncf %39 : vector<8x128xf32> to vector<8x128xbf16>
    %c0_24 = arith.constant 0 : index
    %c0_25 = arith.constant 0 : index
    %41 = vector.load %arg5[%c0_24, %c0_25] : memref<128x128xbf16, #tpu.memory_space<vmem>>, vector<128x128xbf16>
    %cst_26 = arith.constant dense<0.000000e+00> : vector<8x128xf32>
    %42 = tpu.matmul %40, %41, %cst_26 {dimension_numbers = #tpu.dot_dimension_numbers<[1], [0], [0], [1], [0, 0, 1, 1], [], []>} : vector<8x128xbf16>, vector<128x128xbf16>, vector<8x128xf32> -> vector<8x128xf32>
    %c0_27 = arith.constant 0 : index
    %c0_28 = arith.constant 0 : index
    %43 = vector.load %arg13[%c0_27, %c0_28] : memref<1x128xf32, #tpu.memory_space<vmem>>, vector<1x128xf32>
    %44 = vector.broadcast %43 : vector<1x128xf32> to vector<8x128xf32>
    %45 = arith.addf %42, %44 : vector<8x128xf32>
    %cst_29 = arith.constant 5.000000e-01 : f32
    %46 = vector.broadcast %cst_29 : f32 to vector<8x128xf32>
    %47 = arith.mulf %46, %45 : vector<8x128xf32>
    %48 = math.tanh %47 : vector<8x128xf32>
    %cst_30 = arith.constant 1.000000e+00 : f32
    %49 = vector.broadcast %cst_30 : f32 to vector<8x128xf32>
    %50 = arith.addf %48, %49 : vector<8x128xf32>
    %cst_31 = arith.constant 5.000000e-01 : f32
    %51 = vector.broadcast %cst_31 : f32 to vector<8x128xf32>
    %52 = arith.mulf %51, %50 : vector<8x128xf32>
    %c0_32 = arith.constant 0 : index
    %c0_33 = arith.constant 0 : index
    %53 = vector.load %arg19[%c0_32, %c0_33] : memref<8x128xf32, #tpu.memory_space<vmem>>, vector<8x128xf32>
    tpu.vector_store %arg19[%c0_32, %c0_33], %52 {strides = array<i32>} : memref<8x128xf32, #tpu.memory_space<vmem>>, vector<8x128xf32>,
    %54 = arith.truncf %52 : vector<8x128xf32> to vector<8x128xbf16>
    %c0_34 = arith.constant 0 : index
    %c0_35 = arith.constant 0 : index
    %55 = vector.load %arg6[%c0_34, %c0_35] : memref<128x128xbf16, #tpu.memory_space<vmem>>, vector<128x128xbf16>
    %cst_36 = arith.constant dense<0.000000e+00> : vector<8x128xf32>
    %56 = tpu.matmul %54, %55, %cst_36 {dimension_numbers = #tpu.dot_dimension_numbers<[1], [0], [0], [1], [0, 0, 1, 1], [], []>} : vector<8x128xbf16>, vector<128x128xbf16>, vector<8x128xf32> -> vector<8x128xf32>
    %c0_37 = arith.constant 0 : index
    %c0_38 = arith.constant 0 : index
    %57 = vector.load %arg14[%c0_37, %c0_38] : memref<1x128xf32, #tpu.memory_space<vmem>>, vector<1x128xf32>
    %58 = vector.broadcast %57 : vector<1x128xf32> to vector<8x128xf32>
    %59 = arith.addf %56, %58 : vector<8x128xf32>
    %cst_39 = arith.constant 5.000000e-01 : f32
    %60 = vector.broadcast %cst_39 : f32 to vector<8x128xf32>
    %61 = arith.mulf %60, %59 : vector<8x128xf32>
    %62 = math.tanh %61 : vector<8x128xf32>
    %cst_40 = arith.constant 1.000000e+00 : f32
    %63 = vector.broadcast %cst_40 : f32 to vector<8x128xf32>
    %64 = arith.addf %62, %63 : vector<8x128xf32>
    %cst_41 = arith.constant 5.000000e-01 : f32
    %65 = vector.broadcast %cst_41 : f32 to vector<8x128xf32>
    %66 = arith.mulf %65, %64 : vector<8x128xf32>
    %67 = arith.truncf %66 : vector<8x128xf32> to vector<8x128xbf16>
    %c0_42 = arith.constant 0 : index
    %c0_43 = arith.constant 0 : index
    %68 = vector.load %arg7[%c0_42, %c0_43] : memref<128x256xbf16, #tpu.memory_space<vmem>>, vector<128x256xbf16>
    %cst_44 = arith.constant dense<0.000000e+00> : vector<8x256xf32>
    %69 = tpu.matmul %67, %68, %cst_44 {dimension_numbers = #tpu.dot_dimension_numbers<[1], [0], [0], [1], [0, 0, 1, 1], [], []>} : vector<8x128xbf16>, vector<128x256xbf16>, vector<8x256xf32> -> vector<8x256xf32>
    %c0_45 = arith.constant 0 : index
    %c0_46 = arith.constant 0 : index
    %70 = vector.load %arg15[%c0_45, %c0_46] : memref<1x256xf32, #tpu.memory_space<vmem>>, vector<1x256xf32>
    %71 = vector.broadcast %70 : vector<1x256xf32> to vector<8x256xf32>
    %72 = arith.addf %69, %71 : vector<8x256xf32>
    %cst_47 = arith.constant 5.000000e-01 : f32
    %73 = vector.broadcast %cst_47 : f32 to vector<8x256xf32>
    %74 = arith.mulf %73, %72 : vector<8x256xf32>
    %75 = math.tanh %74 : vector<8x256xf32>
    %cst_48 = arith.constant 1.000000e+00 : f32
    %76 = vector.broadcast %cst_48 : f32 to vector<8x256xf32>
    %77 = arith.addf %75, %76 : vector<8x256xf32>
    %cst_49 = arith.constant 5.000000e-01 : f32
    %78 = vector.broadcast %cst_49 : f32 to vector<8x256xf32>
    %79 = arith.mulf %78, %77 : vector<8x256xf32>
    %80 = arith.truncf %79 : vector<8x256xf32> to vector<8x256xbf16>
    %c0_50 = arith.constant 0 : index
    %c0_51 = arith.constant 0 : index
    %81 = vector.load %arg8[%c0_50, %c0_51] : memref<256x512xbf16, #tpu.memory_space<vmem>>, vector<256x512xbf16>
    %cst_52 = arith.constant dense<0.000000e+00> : vector<8x512xf32>
    %82 = tpu.matmul %80, %81, %cst_52 {dimension_numbers = #tpu.dot_dimension_numbers<[1], [0], [0], [1], [0, 0, 1, 1], [], []>} : vector<8x256xbf16>, vector<256x512xbf16>, vector<8x512xf32> -> vector<8x512xf32>
    %c0_53 = arith.constant 0 : index
    %c0_54 = arith.constant 0 : index
    %83 = vector.load %arg16[%c0_53, %c0_54] : memref<1x512xf32, #tpu.memory_space<vmem>>, vector<1x512xf32>
    %84 = vector.broadcast %83 : vector<1x512xf32> to vector<8x512xf32>
    %85 = arith.addf %82, %84 : vector<8x512xf32>
    %cst_55 = arith.constant 5.000000e-01 : f32
    %86 = vector.broadcast %cst_55 : f32 to vector<8x512xf32>
    %87 = arith.mulf %86, %85 : vector<8x512xf32>
    %88 = math.tanh %87 : vector<8x512xf32>
    %cst_56 = arith.constant 1.000000e+00 : f32
    %89 = vector.broadcast %cst_56 : f32 to vector<8x512xf32>
    %90 = arith.addf %88, %89 : vector<8x512xf32>
    %cst_57 = arith.constant 5.000000e-01 : f32
    %91 = vector.broadcast %cst_57 : f32 to vector<8x512xf32>
    %92 = arith.mulf %91, %90 : vector<8x512xf32>
    %93 = arith.truncf %92 : vector<8x512xf32> to vector<8x512xbf16>
    %c0_58 = arith.constant 0 : index
    %c0_59 = arith.constant 0 : index
    %94 = vector.load %arg9[%c0_58, %c0_59] : memref<512x896xbf16, #tpu.memory_space<vmem>>, vector<512x896xbf16>
    %cst_60 = arith.constant dense<0.000000e+00> : vector<8x896xf32>
    %95 = tpu.matmul %93, %94, %cst_60 {dimension_numbers = #tpu.dot_dimension_numbers<[1], [0], [0], [1], [0, 0, 1, 1], [], []>} : vector<8x512xbf16>, vector<512x896xbf16>, vector<8x896xf32> -> vector<8x896xf32>
    %c0_61 = arith.constant 0 : index
    %c0_62 = arith.constant 0 : index
    %96 = vector.load %arg17[%c0_61, %c0_62] : memref<1x896xf32, #tpu.memory_space<vmem>>, vector<1x896xf32>
    %97 = vector.broadcast %96 : vector<1x896xf32> to vector<8x896xf32>
    %98 = arith.addf %95, %97 : vector<8x896xf32>
    %cst_63 = arith.constant 5.000000e-01 : f32
    %99 = vector.broadcast %cst_63 : f32 to vector<8x896xf32>
    %100 = arith.mulf %99, %98 : vector<8x896xf32>
    %101 = math.tanh %100 : vector<8x896xf32>
    %cst_64 = arith.constant 1.000000e+00 : f32
    %102 = vector.broadcast %cst_64 : f32 to vector<8x896xf32>
    %103 = arith.addf %101, %102 : vector<8x896xf32>
    %cst_65 = arith.constant 5.000000e-01 : f32
    %104 = vector.broadcast %cst_65 : f32 to vector<8x896xf32>
    %105 = arith.mulf %104, %103 : vector<8x896xf32>
    %c0_66 = arith.constant 0 : index
    %c0_67 = arith.constant 0 : index
    %106 = vector.load %arg18[%c0_66, %c0_67] : memref<8x896xf32, #tpu.memory_space<vmem>>, vector<8x896xf32>
    tpu.vector_store %arg18[%c0_66, %c0_67], %105 {strides = array<i32>} : memref<8x896xf32, #tpu.memory_space<vmem>>, vector<8x896xf32>,
    return
  }
  func.func @transform_0(%arg0: i32) -> (i32, i32) {
    %c0_i32 = arith.constant 0 : i32
    %c0_i32_0 = arith.constant 0 : i32
    return %arg0, %c0_i32 : i32, i32
  }
  func.func @transform_1(%arg0: i32) -> (i32, i32) {
    %c0_i32 = arith.constant 0 : i32
    %c0_i32_0 = arith.constant 0 : i32
    %c0_i32_1 = arith.constant 0 : i32
    return %c0_i32, %c0_i32_0 : i32, i32
  }
  func.func @transform_2(%arg0: i32) -> (i32, i32) {
    %c0_i32 = arith.constant 0 : i32
    %c0_i32_0 = arith.constant 0 : i32
    %c0_i32_1 = arith.constant 0 : i32
    return %c0_i32, %c0_i32_0 : i32, i32
  }
  func.func @transform_3(%arg0: i32) -> (i32, i32) {
    %c0_i32 = arith.constant 0 : i32
    %c0_i32_0 = arith.constant 0 : i32
    %c0_i32_1 = arith.constant 0 : i32
    return %c0_i32, %c0_i32_0 : i32, i32
  }
  func.func @transform_4(%arg0: i32) -> (i32, i32) {
    %c0_i32 = arith.constant 0 : i32
    %c0_i32_0 = arith.constant 0 : i32
    %c0_i32_1 = arith.constant 0 : i32
    return %c0_i32, %c0_i32_0 : i32, i32
  }
  func.func @transform_5(%arg0: i32) -> (i32, i32) {
    %c0_i32 = arith.constant 0 : i32
    %c0_i32_0 = arith.constant 0 : i32
    %c0_i32_1 = arith.constant 0 : i32
    return %c0_i32, %c0_i32_0 : i32, i32
  }
  func.func @transform_6(%arg0: i32) -> (i32, i32) {
    %c0_i32 = arith.constant 0 : i32
    %c0_i32_0 = arith.constant 0 : i32
    %c0_i32_1 = arith.constant 0 : i32
    return %c0_i32, %c0_i32_0 : i32, i32
  }
  func.func @transform_7(%arg0: i32) -> (i32, i32) {
    %c0_i32 = arith.constant 0 : i32
    %c0_i32_0 = arith.constant 0 : i32
    %c0_i32_1 = arith.constant 0 : i32
    return %c0_i32, %c0_i32_0 : i32, i32
  }
  func.func @transform_8(%arg0: i32) -> (i32, i32) {
    %c0_i32 = arith.constant 0 : i32
    %c0_i32_0 = arith.constant 0 : i32
    %c0_i32_1 = arith.constant 0 : i32
    return %c0_i32, %c0_i32_0 : i32, i32
  }
  func.func @transform_9(%arg0: i32) -> (i32, i32) {
    %c0_i32 = arith.constant 0 : i32
    %c0_i32_0 = arith.constant 0 : i32
    %c0_i32_1 = arith.constant 0 : i32
    return %c0_i32, %c0_i32_0 : i32, i32
  }
  func.func @transform_10(%arg0: i32) -> (i32, i32) {
    %c0_i32 = arith.constant 0 : i32
    %c0_i32_0 = arith.constant 0 : i32
    %c0_i32_1 = arith.constant 0 : i32
    return %c0_i32, %c0_i32_0 : i32, i32
  }
  func.func @transform_11(%arg0: i32) -> (i32, i32) {
    %c0_i32 = arith.constant 0 : i32
    %c0_i32_0 = arith.constant 0 : i32
    %c0_i32_1 = arith.constant 0 : i32
    return %c0_i32, %c0_i32_0 : i32, i32
  }
  func.func @transform_12(%arg0: i32) -> (i32, i32) {
    %c0_i32 = arith.constant 0 : i32
    %c0_i32_0 = arith.constant 0 : i32
    %c0_i32_1 = arith.constant 0 : i32
    return %c0_i32, %c0_i32_0 : i32, i32
  }
  func.func @transform_13(%arg0: i32) -> (i32, i32) {
    %c0_i32 = arith.constant 0 : i32
    %c0_i32_0 = arith.constant 0 : i32
    %c0_i32_1 = arith.constant 0 : i32
    return %c0_i32, %c0_i32_0 : i32, i32
  }
  func.func @transform_14(%arg0: i32) -> (i32, i32) {
    %c0_i32 = arith.constant 0 : i32
    %c0_i32_0 = arith.constant 0 : i32
    %c0_i32_1 = arith.constant 0 : i32
    return %c0_i32, %c0_i32_0 : i32, i32
  }
  func.func @transform_15(%arg0: i32) -> (i32, i32) {
    %c0_i32 = arith.constant 0 : i32
    %c0_i32_0 = arith.constant 0 : i32
    %c0_i32_1 = arith.constant 0 : i32
    return %c0_i32, %c0_i32_0 : i32, i32
  }
  func.func @transform_16(%arg0: i32) -> (i32, i32) {
    %c0_i32 = arith.constant 0 : i32
    %c0_i32_0 = arith.constant 0 : i32
    %c0_i32_1 = arith.constant 0 : i32
    return %c0_i32, %c0_i32_0 : i32, i32
  }
  func.func @transform_17(%arg0: i32) -> (i32, i32) {
    %c0_i32 = arith.constant 0 : i32
    %c0_i32_0 = arith.constant 0 : i32
    return %arg0, %c0_i32 : i32, i32
  }
  func.func @transform_18(%arg0: i32) -> (i32, i32) {
    %c0_i32 = arith.constant 0 : i32
    %c0_i32_0 = arith.constant 0 : i32
    return %arg0, %c0_i32 : i32, i32
  }
}

module attributes {stable_mosaic.version = 11 : i64} {
  func.func @kernel(%arg0: i32, %arg1: memref<8x896xf32, #tpu.memory_space<vmem>>, %arg2: memref<896x512xbf16, #tpu.memory_space<vmem>>, %arg3: memref<512x256xbf16, #tpu.memory_space<vmem>>, %arg4: memref<256x128xbf16, #tpu.memory_space<vmem>>, %arg5: memref<128x128xbf16, #tpu.memory_space<vmem>>, %arg6: memref<128x128xbf16, #tpu.memory_space<vmem>>, %arg7: memref<128x256xbf16, #tpu.memory_space<vmem>>, %arg8: memref<256x512xbf16, #tpu.memory_space<vmem>>, %arg9: memref<512x896xbf16, #tpu.memory_space<vmem>>, %arg10: memref<1x512xf32, #tpu.memory_space<vmem>>, %arg11: memref<1x256xf32, #tpu.memory_space<vmem>>, %arg12: memref<1x128xf32, #tpu.memory_space<vmem>>, %arg13: memref<1x128xf32, #tpu.memory_space<vmem>>, %arg14: memref<1x128xf32, #tpu.memory_space<vmem>>, %arg15: memref<1x256xf32, #tpu.memory_space<vmem>>, %arg16: memref<1x512xf32, #tpu.memory_space<vmem>>, %arg17: memref<1x896xf32, #tpu.memory_space<vmem>>, %arg18: memref<8x896xf32, #tpu.memory_space<vmem>>, %arg19: memref<8x128xf32, #tpu.memory_space<vmem>>) attributes {dimension_semantics = [#tpu.dimension_semantics<parallel>], iteration_bounds = array<i64: 1>, scalar_prefetch = 0 : i64, scratch_operands = 0 : i64, tpu.core_type = #tpu.core_type<tc>, window_params = [{transform_indices = @transform_0, window_bounds = array<i64: 8, 896>}, {pipeline_mode = #tpu.pipeline_mode<synchronous>, transform_indices = @transform_1, window_bounds = array<i64: 896, 512>}, {pipeline_mode = #tpu.pipeline_mode<synchronous>, transform_indices = @transform_2, window_bounds = array<i64: 512, 256>}, {pipeline_mode = #tpu.pipeline_mode<synchronous>, transform_indices = @transform_3, window_bounds = array<i64: 256, 128>}, {pipeline_mode = #tpu.pipeline_mode<synchronous>, transform_indices = @transform_4, window_bounds = array<i64: 128, 128>}, {pipeline_mode = #tpu.pipeline_mode<synchronous>, transform_indices = @transform_5, window_bounds = array<i64: 128, 128>}, {pipeline_mode = #tpu.pipeline_mode<synchronous>, transform_indices = @transform_6, window_bounds = array<i64: 128, 256>}, {pipeline_mode = #tpu.pipeline_mode<synchronous>, transform_indices = @transform_7, window_bounds = array<i64: 256, 512>}, {pipeline_mode = #tpu.pipeline_mode<synchronous>, transform_indices = @transform_8, window_bounds = array<i64: 512, 896>}, {pipeline_mode = #tpu.pipeline_mode<synchronous>, transform_indices = @transform_9, window_bounds = array<i64: 1, 512>}, {pipeline_mode = #tpu.pipeline_mode<synchronous>, transform_indices = @transform_10, window_bounds = array<i64: 1, 256>}, {pipeline_mode = #tpu.pipeline_mode<synchronous>, transform_indices = @transform_11, window_bounds = array<i64: 1, 128>}, {pipeline_mode = #tpu.pipeline_mode<synchronous>, transform_indices = @transform_12, window_bounds = array<i64: 1, 128>}, {pipeline_mode = #tpu.pipeline_mode<synchronous>, transform_indices = @transform_13, window_bounds = array<i64: 1, 128>}, {pipeline_mode = #tpu.pipeline_mode<synchronous>, transform_indices = @transform_14, window_bounds = array<i64: 1, 256>}, {pipeline_mode = #tpu.pipeline_mode<synchronous>, transform_indices = @transform_15, window_bounds = array<i64: 1, 512>}, {pipeline_mode = #tpu.pipeline_mode<synchronous>, transform_indices = @transform_16, window_bounds = array<i64: 1, 896>}, {transform_indices = @transform_17, window_bounds = array<i64: 8, 896>}, {transform_indices = @transform_18, window_bounds = array<i64: 8, 128>}]} {
    %c0 = arith.constant 0 : index
    %c0_0 = arith.constant 0 : index
    %0 = vector.load %arg1[%c0, %c0_0] : memref<8x896xf32, #tpu.memory_space<vmem>>, vector<8x896xf32>
    %1 = arith.truncf %0 : vector<8x896xf32> to vector<8x896xbf16>
    %c0_1 = arith.constant 0 : index
    %c0_2 = arith.constant 0 : index
    %2 = vector.load %arg2[%c0_1, %c0_2] : memref<896x512xbf16, #tpu.memory_space<vmem>>, vector<896x512xbf16>
    %cst = arith.constant dense<0.000000e+00> : vector<8x512xf32>
    %3 = tpu.matmul %1, %2, %cst {dimension_numbers = #tpu.dot_dimension_numbers<[1], [0], [0], [1], [0, 0, 1, 1], [], []>} : vector<8x896xbf16>, vector<896x512xbf16>, vector<8x512xf32> -> vector<8x512xf32>
    %c0_3 = arith.constant 0 : index
    %c0_4 = arith.constant 0 : index
    %4 = vector.load %arg10[%c0_3, %c0_4] : memref<1x512xf32, #tpu.memory_space<vmem>>, vector<1x512xf32>
    %5 = vector.broadcast %4 : vector<1x512xf32> to vector<8x512xf32>
    %6 = arith.addf %3, %5 : vector<8x512xf32>
    %cst_5 = arith.constant 5.000000e-01 : f32
    %7 = vector.broadcast %cst_5 : f32 to vector<8x512xf32>
    %8 = arith.mulf %7, %6 : vector<8x512xf32>
    %9 = math.tanh %8 : vector<8x512xf32>
    %cst_6 = arith.constant 1.000000e+00 : f32
    %10 = vector.broadcast %cst_6 : f32 to vector<8x512xf32>
    %11 = arith.addf %9, %10 : vector<8x512xf32>
    %cst_7 = arith.constant 5.000000e-01 : f32
    %12 = vector.broadcast %cst_7 : f32 to vector<8x512xf32>
    %13 = arith.mulf %12, %11 : vector<8x512xf32>
    %14 = arith.truncf %13 : vector<8x512xf32> to vector<8x512xbf16>
    %c0_8 = arith.constant 0 : index
    %c0_9 = arith.constant 0 : index
    %15 = vector.load %arg3[%c0_8, %c0_9] : memref<512x256xbf16, #tpu.memory_space<vmem>>, vector<512x256xbf16>
    %cst_10 = arith.constant dense<0.000000e+00> : vector<8x256xf32>
    %16 = tpu.matmul %14, %15, %cst_10 {dimension_numbers = #tpu.dot_dimension_numbers<[1], [0], [0], [1], [0, 0, 1, 1], [], []>} : vector<8x512xbf16>, vector<512x256xbf16>, vector<8x256xf32> -> vector<8x256xf32>
    %c0_11 = arith.constant 0 : index
    %c0_12 = arith.constant 0 : index
    %17 = vector.load %arg11[%c0_11, %c0_12] : memref<1x256xf32, #tpu.memory_space<vmem>>, vector<1x256xf32>
    %18 = vector.broadcast %17 : vector<1x256xf32> to vector<8x256xf32>
    %19 = arith.addf %16, %18 : vector<8x256xf32>
    %cst_13 = arith.constant 5.000000e-01 : f32
    %20 = vector.broadcast %cst_13 : f32 to vector<8x256xf32>
    %21 = arith.mulf %20, %19 : vector<8x256xf32>
    %22 = math.tanh %21 : vector<8x256xf32>
    %cst_14 = arith.constant 1.000000e+00 : f32
    %23 = vector.broadcast %cst_14 : f32 to vector<8x256xf32>
    %24 = arith.addf %22, %23 : vector<8x256xf32>
    %cst_15 = arith.constant 5.000000e-01 : f32
    %25 = vector.broadcast %cst_15 : f32 to vector<8x256xf32>
    %26 = arith.mulf %25, %24 : vector<8x256xf32>
    %27 = arith.truncf %26 : vector<8x256xf32> to vector<8x256xbf16>
    %c0_16 = arith.constant 0 : index
    %c0_17 = arith.constant 0 : index
    %28 = vector.load %arg4[%c0_16, %c0_17] : memref<256x128xbf16, #tpu.memory_space<vmem>>, vector<256x128xbf16>
    %cst_18 = arith.constant dense<0.000000e+00> : vector<8x128xf32>
    %29 = tpu.matmul %27, %28, %cst_18 {dimension_numbers = #tpu.dot_dimension_numbers<[1], [0], [0], [1], [0, 0, 1, 1], [], []>} : vector<8x256xbf16>, vector<256x128xbf16>, vector<8x128xf32> -> vector<8x128xf32>
    %c0_19 = arith.constant 0 : index
    %c0_20 = arith.constant 0 : index
    %30 = vector.load %arg12[%c0_19, %c0_20] : memref<1x128xf32, #tpu.memory_space<vmem>>, vector<1x128xf32>
    %31 = vector.broadcast %30 : vector<1x128xf32> to vector<8x128xf32>
    %32 = arith.addf %29, %31 : vector<8x128xf32>
    %cst_21 = arith.constant 5.000000e-01 : f32
    %33 = vector.broadcast %cst_21 : f32 to vector<8x128xf32>
    %34 = arith.mulf %33, %32 : vector<8x128xf32>
    %35 = math.tanh %34 : vector<8x128xf32>
    %cst_22 = arith.constant 1.000000e+00 : f32
    %36 = vector.broadcast %cst_22 : f32 to vector<8x128xf32>
    %37 = arith.addf %35, %36 : vector<8x128xf32>
    %cst_23 = arith.constant 5.000000e-01 : f32
    %38 = vector.broadcast %cst_23 : f32 to vector<8x128xf32>
    %39 = arith.mulf %38, %37 : vector<8x128xf32>
    %40 = arith.truncf %39 : vector<8x128xf32> to vector<8x128xbf16>
    %c0_24 = arith.constant 0 : index
    %c0_25 = arith.constant 0 : index
    %41 = vector.load %arg5[%c0_24, %c0_25] : memref<128x128xbf16, #tpu.memory_space<vmem>>, vector<128x128xbf16>
    %cst_26 = arith.constant dense<0.000000e+00> : vector<8x128xf32>
    %42 = tpu.matmul %40, %41, %cst_26 {dimension_numbers = #tpu.dot_dimension_numbers<[1], [0], [0], [1], [0, 0, 1, 1], [], []>} : vector<8x128xbf16>, vector<128x128xbf16>, vector<8x128xf32> -> vector<8x128xf32>
    %c0_27 = arith.constant 0 : index
    %c0_28 = arith.constant 0 : index
    %43 = vector.load %arg13[%c0_27, %c0_28] : memref<1x128xf32, #tpu.memory_space<vmem>>, vector<1x128xf32>
    %44 = vector.broadcast %43 : vector<1x128xf32> to vector<8x128xf32>
    %45 = arith.addf %42, %44 : vector<8x128xf32>
    %cst_29 = arith.constant 5.000000e-01 : f32
    %46 = vector.broadcast %cst_29 : f32 to vector<8x128xf32>
    %47 = arith.mulf %46, %45 : vector<8x128xf32>
    %48 = math.tanh %47 : vector<8x128xf32>
    %cst_30 = arith.constant 1.000000e+00 : f32
    %49 = vector.broadcast %cst_30 : f32 to vector<8x128xf32>
    %50 = arith.addf %48, %49 : vector<8x128xf32>
    %cst_31 = arith.constant 5.000000e-01 : f32
    %51 = vector.broadcast %cst_31 : f32 to vector<8x128xf32>
    %52 = arith.mulf %51, %50 : vector<8x128xf32>
    %c0_32 = arith.constant 0 : index
    %c0_33 = arith.constant 0 : index
    %53 = vector.load %arg19[%c0_32, %c0_33] : memref<8x128xf32, #tpu.memory_space<vmem>>, vector<8x128xf32>
    tpu.vector_store %arg19[%c0_32, %c0_33], %52 {strides = array<i32>} : memref<8x128xf32, #tpu.memory_space<vmem>>, vector<8x128xf32>,
    %54 = arith.truncf %52 : vector<8x128xf32> to vector<8x128xbf16>
    %c0_34 = arith.constant 0 : index
    %c0_35 = arith.constant 0 : index
    %55 = vector.load %arg6[%c0_34, %c0_35] : memref<128x128xbf16, #tpu.memory_space<vmem>>, vector<128x128xbf16>
    %cst_36 = arith.constant dense<0.000000e+00> : vector<8x128xf32>
    %56 = tpu.matmul %54, %55, %cst_36 {dimension_numbers = #tpu.dot_dimension_numbers<[1], [0], [0], [1], [0, 0, 1, 1], [], []>} : vector<8x128xbf16>, vector<128x128xbf16>, vector<8x128xf32> -> vector<8x128xf32>
    %c0_37 = arith.constant 0 : index
    %c0_38 = arith.constant 0 : index
    %57 = vector.load %arg14[%c0_37, %c0_38] : memref<1x128xf32, #tpu.memory_space<vmem>>, vector<1x128xf32>
    %58 = vector.broadcast %57 : vector<1x128xf32> to vector<8x128xf32>
    %59 = arith.addf %56, %58 : vector<8x128xf32>
    %cst_39 = arith.constant 5.000000e-01 : f32
    %60 = vector.broadcast %cst_39 : f32 to vector<8x128xf32>
    %61 = arith.mulf %60, %59 : vector<8x128xf32>
    %62 = math.tanh %61 : vector<8x128xf32>
    %cst_40 = arith.constant 1.000000e+00 : f32
    %63 = vector.broadcast %cst_40 : f32 to vector<8x128xf32>
    %64 = arith.addf %62, %63 : vector<8x128xf32>
    %cst_41 = arith.constant 5.000000e-01 : f32
    %65 = vector.broadcast %cst_41 : f32 to vector<8x128xf32>
    %66 = arith.mulf %65, %64 : vector<8x128xf32>
    %67 = arith.truncf %66 : vector<8x128xf32> to vector<8x128xbf16>
    %c0_42 = arith.constant 0 : index
    %c0_43 = arith.constant 0 : index
    %68 = vector.load %arg7[%c0_42, %c0_43] : memref<128x256xbf16, #tpu.memory_space<vmem>>, vector<128x256xbf16>
    %cst_44 = arith.constant dense<0.000000e+00> : vector<8x256xf32>
    %69 = tpu.matmul %67, %68, %cst_44 {dimension_numbers = #tpu.dot_dimension_numbers<[1], [0], [0], [1], [0, 0, 1, 1], [], []>} : vector<8x128xbf16>, vector<128x256xbf16>, vector<8x256xf32> -> vector<8x256xf32>
    %c0_45 = arith.constant 0 : index
    %c0_46 = arith.constant 0 : index
    %70 = vector.load %arg15[%c0_45, %c0_46] : memref<1x256xf32, #tpu.memory_space<vmem>>, vector<1x256xf32>
    %71 = vector.broadcast %70 : vector<1x256xf32> to vector<8x256xf32>
    %72 = arith.addf %69, %71 : vector<8x256xf32>
    %cst_47 = arith.constant 5.000000e-01 : f32
    %73 = vector.broadcast %cst_47 : f32 to vector<8x256xf32>
    %74 = arith.mulf %73, %72 : vector<8x256xf32>
    %75 = math.tanh %74 : vector<8x256xf32>
    %cst_48 = arith.constant 1.000000e+00 : f32
    %76 = vector.broadcast %cst_48 : f32 to vector<8x256xf32>
    %77 = arith.addf %75, %76 : vector<8x256xf32>
    %cst_49 = arith.constant 5.000000e-01 : f32
    %78 = vector.broadcast %cst_49 : f32 to vector<8x256xf32>
    %79 = arith.mulf %78, %77 : vector<8x256xf32>
    %80 = arith.truncf %79 : vector<8x256xf32> to vector<8x256xbf16>
    %c0_50 = arith.constant 0 : index
    %c0_51 = arith.constant 0 : index
    %81 = vector.load %arg8[%c0_50, %c0_51] : memref<256x512xbf16, #tpu.memory_space<vmem>>, vector<256x512xbf16>
    %cst_52 = arith.constant dense<0.000000e+00> : vector<8x512xf32>
    %82 = tpu.matmul %80, %81, %cst_52 {dimension_numbers = #tpu.dot_dimension_numbers<[1], [0], [0], [1], [0, 0, 1, 1], [], []>} : vector<8x256xbf16>, vector<256x512xbf16>, vector<8x512xf32> -> vector<8x512xf32>
    %c0_53 = arith.constant 0 : index
    %c0_54 = arith.constant 0 : index
    %83 = vector.load %arg16[%c0_53, %c0_54] : memref<1x512xf32, #tpu.memory_space<vmem>>, vector<1x512xf32>
    %84 = vector.broadcast %83 : vector<1x512xf32> to vector<8x512xf32>
    %85 = arith.addf %82, %84 : vector<8x512xf32>
    %cst_55 = arith.constant 5.000000e-01 : f32
    %86 = vector.broadcast %cst_55 : f32 to vector<8x512xf32>
    %87 = arith.mulf %86, %85 : vector<8x512xf32>
    %88 = math.tanh %87 : vector<8x512xf32>
    %cst_56 = arith.constant 1.000000e+00 : f32
    %89 = vector.broadcast %cst_56 : f32 to vector<8x512xf32>
    %90 = arith.addf %88, %89 : vector<8x512xf32>
    %cst_57 = arith.constant 5.000000e-01 : f32
    %91 = vector.broadcast %cst_57 : f32 to vector<8x512xf32>
    %92 = arith.mulf %91, %90 : vector<8x512xf32>
    %93 = arith.truncf %92 : vector<8x512xf32> to vector<8x512xbf16>
    %c0_58 = arith.constant 0 : index
    %c0_59 = arith.constant 0 : index
    %94 = vector.load %arg9[%c0_58, %c0_59] : memref<512x896xbf16, #tpu.memory_space<vmem>>, vector<512x896xbf16>
    %cst_60 = arith.constant dense<0.000000e+00> : vector<8x896xf32>
    %95 = tpu.matmul %93, %94, %cst_60 {dimension_numbers = #tpu.dot_dimension_numbers<[1], [0], [0], [1], [0, 0, 1, 1], [], []>} : vector<8x512xbf16>, vector<512x896xbf16>, vector<8x896xf32> -> vector<8x896xf32>
    %c0_61 = arith.constant 0 : index
    %c0_62 = arith.constant 0 : index
    %96 = vector.load %arg17[%c0_61, %c0_62] : memref<1x896xf32, #tpu.memory_space<vmem>>, vector<1x896xf32>
    %97 = vector.broadcast %96 : vector<1x896xf32> to vector<8x896xf32>
    %98 = arith.addf %95, %97 : vector<8x896xf32>
    %cst_63 = arith.constant 5.000000e-01 : f32
    %99 = vector.broadcast %cst_63 : f32 to vector<8x896xf32>
    %100 = arith.mulf %99, %98 : vector<8x896xf32>
    %101 = math.tanh %100 : vector<8x896xf32>
    %cst_64 = arith.constant 1.000000e+00 : f32
    %102 = vector.broadcast %cst_64 : f32 to vector<8x896xf32>
    %103 = arith.addf %101, %102 : vector<8x896xf32>
    %cst_65 = arith.constant 5.000000e-01 : f32
    %104 = vector.broadcast %cst_65 : f32 to vector<8x896xf32>
    %105 = arith.mulf %104, %103 : vector<8x896xf32>
    %c0_66 = arith.constant 0 : index
    %c0_67 = arith.constant 0 : index
    %106 = vector.load %arg18[%c0_66, %c0_67] : memref<8x896xf32, #tpu.memory_space<vmem>>, vector<8x896xf32>
    tpu.vector_store %arg18[%c0_66, %c0_67], %105 {strides = array<i32>} : memref<8x896xf32, #tpu.memory_space<vmem>>, vector<8x896xf32>,
    return
  }
  func.func @transform_0(%arg0: i32) -> (i32, i32) {
    %c0_i32 = arith.constant 0 : i32
    %c0_i32_0 = arith.constant 0 : i32
    return %arg0, %c0_i32 : i32, i32
  }
  func.func @transform_1(%arg0: i32) -> (i32, i32) {
    %c0_i32 = arith.constant 0 : i32
    %c0_i32_0 = arith.constant 0 : i32
    %c0_i32_1 = arith.constant 0 : i32
    return %c0_i32, %c0_i32_0 : i32, i32
  }
  func.func @transform_2(%arg0: i32) -> (i32, i32) {
    %c0_i32 = arith.constant 0 : i32
    %c0_i32_0 = arith.constant 0 : i32
    %c0_i32_1 = arith.constant 0 : i32
    return %c0_i32, %c0_i32_0 : i32, i32
  }
  func.func @transform_3(%arg0: i32) -> (i32, i32) {
    %c0_i32 = arith.constant 0 : i32
    %c0_i32_0 = arith.constant 0 : i32
    %c0_i32_1 = arith.constant 0 : i32
    return %c0_i32, %c0_i32_0 : i32, i32
  }
  func.func @transform_4(%arg0: i32) -> (i32, i32) {
    %c0_i32 = arith.constant 0 : i32
    %c0_i32_0 = arith.constant 0 : i32
    %c0_i32_1 = arith.constant 0 : i32
    return %c0_i32, %c0_i32_0 : i32, i32
  }
  func.func @transform_5(%arg0: i32) -> (i32, i32) {
    %c0_i32 = arith.constant 0 : i32
    %c0_i32_0 = arith.constant 0 : i32
    %c0_i32_1 = arith.constant 0 : i32
    return %c0_i32, %c0_i32_0 : i32, i32
  }
  func.func @transform_6(%arg0: i32) -> (i32, i32) {
    %c0_i32 = arith.constant 0 : i32
    %c0_i32_0 = arith.constant 0 : i32
    %c0_i32_1 = arith.constant 0 : i32
    return %c0_i32, %c0_i32_0 : i32, i32
  }
  func.func @transform_7(%arg0: i32) -> (i32, i32) {
    %c0_i32 = arith.constant 0 : i32
    %c0_i32_0 = arith.constant 0 : i32
    %c0_i32_1 = arith.constant 0 : i32
    return %c0_i32, %c0_i32_0 : i32, i32
  }
  func.func @transform_8(%arg0: i32) -> (i32, i32) {
    %c0_i32 = arith.constant 0 : i32
    %c0_i32_0 = arith.constant 0 : i32
    %c0_i32_1 = arith.constant 0 : i32
    return %c0_i32, %c0_i32_0 : i32, i32
  }
  func.func @transform_9(%arg0: i32) -> (i32, i32) {
    %c0_i32 = arith.constant 0 : i32
    %c0_i32_0 = arith.constant 0 : i32
    %c0_i32_1 = arith.constant 0 : i32
    return %c0_i32, %c0_i32_0 : i32, i32
  }
  func.func @transform_10(%arg0: i32) -> (i32, i32) {
    %c0_i32 = arith.constant 0 : i32
    %c0_i32_0 = arith.constant 0 : i32
    %c0_i32_1 = arith.constant 0 : i32
    return %c0_i32, %c0_i32_0 : i32, i32
  }
  func.func @transform_11(%arg0: i32) -> (i32, i32) {
    %c0_i32 = arith.constant 0 : i32
    %c0_i32_0 = arith.constant 0 : i32
    %c0_i32_1 = arith.constant 0 : i32
    return %c0_i32, %c0_i32_0 : i32, i32
  }
  func.func @transform_12(%arg0: i32) -> (i32, i32) {
    %c0_i32 = arith.constant 0 : i32
    %c0_i32_0 = arith.constant 0 : i32
    %c0_i32_1 = arith.constant 0 : i32
    return %c0_i32, %c0_i32_0 : i32, i32
  }
  func.func @transform_13(%arg0: i32) -> (i32, i32) {
    %c0_i32 = arith.constant 0 : i32
    %c0_i32_0 = arith.constant 0 : i32
    %c0_i32_1 = arith.constant 0 : i32
    return %c0_i32, %c0_i32_0 : i32, i32
  }
  func.func @transform_14(%arg0: i32) -> (i32, i32) {
    %c0_i32 = arith.constant 0 : i32
    %c0_i32_0 = arith.constant 0 : i32
    %c0_i32_1 = arith.constant 0 : i32
    return %c0_i32, %c0_i32_0 : i32, i32
  }
  func.func @transform_15(%arg0: i32) -> (i32, i32) {
    %c0_i32 = arith.constant 0 : i32
    %c0_i32_0 = arith.constant 0 : i32
    %c0_i32_1 = arith.constant 0 : i32
    return %c0_i32, %c0_i32_0 : i32, i32
  }
  func.func @transform_16(%arg0: i32) -> (i32, i32) {
    %c0_i32 = arith.constant 0 : i32
    %c0_i32_0 = arith.constant 0 : i32
    %c0_i32_1 = arith.constant 0 : i32
    return %c0_i32, %c0_i32_0 : i32, i32
  }
  func.func @transform_17(%arg0: i32) -> (i32, i32) {
    %c0_i32 = arith.constant 0 : i32
    %c0_i32_0 = arith.constant 0 : i32
    return %arg0, %c0_i32 : i32, i32
  }
  func.func @transform_18(%arg0: i32) -> (i32, i32) {
    %c0_i32 = arith.constant 0 : i32
    %c0_i32_0 = arith.constant 0 : i32
    return %arg0, %c0_i32 : i32, i32
  }
}

</mosaic_0001>

<bundles_post_ra>
// kernel: _forward_impl.1
= control target key start
LH: loop header
LB: loop body
LE: loop exit
PB: predicated region body
PF: predicated region fallthrough
CT: control target
= control target key end

     0   :  { %s12270_s1 = inlined_call_operand.vmem [shape: bf16[896,512], index: 1, kind: input, shape index: {}]   ;;  %s12271_s0 = inlined_call_operand.vmem [shape: f32[8,896], index: 0, kind: input, shape index: {}]   ;;  %s12272_s9 = inlined_call_operand.vmem [shape: f32[1,512], index: 9, kind: input, shape index: {}]   ;;  %s12273_s2 = inlined_call_operand.vmem [shape: bf16[512,256], index: 2, kind: input, shape index: {}]   ;;  %s12274_s10 = inlined_call_operand.vmem [shape: f32[1,256], index: 10, kind: input, shape index: {}]   ;;  %s12275_s11 = inlined_call_operand.vmem [shape: f32[1,128], index: 11, kind: input, shape index: {}]   ;;  %s12276_s3 = inlined_call_operand.vmem [shape: bf16[256,128], index: 3, kind: input, shape index: {}]   ;;  %s12277_s12 = inlined_call_operand.vmem [shape: f32[1,128], index: 12, kind: input, shape index: {}]   ;;  %s12278_s4 = inlined_call_operand.vmem [shape: bf16[128,128], index: 4, kind: input, shape index: {}]   ;;  %s12279_s5 = inlined_call_operand.vmem [shape: bf16[128,128], index: 5, kind: input, shape index: {}]   ;;  %s12280_s13 = inlined_call_operand.vmem [shape: f32[1,128], index: 13, kind: input, shape index: {}]   ;;  %s12281_s6 = inlined_call_operand.vmem [shape: bf16[128,256], index: 6, kind: input, shape index: {}]   ;;  %s12282_s18 = inlined_call_operand.vmem [shape: f32[8,128], index: 18, kind: output, shape index: {1}]   ;;  %s12283_s7 = inlined_call_operand.vmem [shape: bf16[256,512], index: 7, kind: input, shape index: {}]   ;;  %s12284_s14 = inlined_call_operand.vmem [shape: f32[1,256], index: 14, kind: input, shape index: {}]   ;;  %s12285_s8 = inlined_call_operand.vmem [shape: bf16[512,896], index: 8, kind: input, shape index: {}]   ;;  %s12286_s15 = inlined_call_operand.vmem [shape: f32[1,512], index: 15, kind: input, shape index: {}]   ;;  %s12287_s16 = inlined_call_operand.vmem [shape: f32[1,896], index: 16, kind: input, shape index: {}]   ;;  %s12288_s17 = inlined_call_operand.vmem [shape: f32[8,896], index: 17, kind: output, shape index: {0}]  }
   0x1   :  { %12291 = sst [smem:[#allocation2_spill]] %s12270_s1 }
   0x2   :  { %12292 = sst [smem:[#allocation3_spill]] %s12271_s0 }
   0x3   :  { %12293 = sst [smem:[#allocation4_spill]] %s12272_s9 }
   0x4   :  { %s12294_s29 = sld [smem:[#allocation2_spill]] }
   0x5   :  { %s12295_s25 = sld [smem:[#allocation3_spill]] }
   0x6   :  { %s12296_s26 = sld [smem:[#allocation4_spill]] }
   0xa   :  { %v5251_v0 = vld [vmem:[%s12294_s29 + $0xe0] sm:$0xf]  ;;  %v7663_v1 = vld [vmem:[%s12294_s29 + $0xec] sm:$0xf0] }
   0xb   :  { %v5379_v2 = vld [vmem:[%s12294_s29 + $0x1e0] sm:$0xf]  ;;  %v5252_v3 = vor.u32 %v7663_v1, %v5251_v0  ;;  %v7695_v4 = vld [vmem:[%s12294_s29 + $0x1ec] sm:$0xf0] }
   0xc   :  { %v5507_v5 = vld [vmem:[%s12294_s29 + $0x2e0] sm:$0xf]  ;;  %v7727_v6 = vld [vmem:[%s12294_s29 + $0x2ec] sm:$0xf0]  ;;  %v5380_v7 = vor.u32 %v7695_v4, %v5379_v2 }
   0xd   :  { %v5508_v8 = vor.u32 %v7727_v6, %v5507_v5  ;;  %v5635_v9 = vld [vmem:[%s12294_s29 + $0x3e0] sm:$0xf]  ;;  %v7759_v10 = vld [vmem:[%s12294_s29 + $0x3ec] sm:$0xf0]  ;;  %1426 = vmatpush.bf16.msra.mxu0 %v5252_v3 }
   0xe   :  { %v5235_v11 = vld [vmem:[%s12294_s29 + $0xc0] sm:$0xf]  ;;  %v5636_v12 = vor.u32 %v7759_v10, %v5635_v9  ;;  %v7659_v13 = vld [vmem:[%s12294_s29 + $0xcc] sm:$0xf0]  ;;  %1439 = vmatpush.bf16.msra.mxu1 %v5380_v7 }
   0xf   :  { %v5363_v14 = vld [vmem:[%s12294_s29 + $0x1c0] sm:$0xf]  ;;  %v7691_v15 = vld [vmem:[%s12294_s29 + $0x1cc] sm:$0xf0]  ;;  %1452 = vmatpush.bf16.msra.mxu2 %v5508_v8  ;;  %v5236_v16 = vor.u32 %v7659_v13, %v5235_v11 }
  0x10   :  { %v5364_v17 = vor.u32 %v7691_v15, %v5363_v14  ;;  %v5491_v18 = vld [vmem:[%s12294_s29 + $0x2c0] sm:$0xf]  ;;  %v7723_v19 = vld [vmem:[%s12294_s29 + $0x2cc] sm:$0xf0]  ;;  %1465 = vmatpush.bf16.msra.mxu3 %v5636_v12 }
  0x11   :  { %v5619_v20 = vld [vmem:[%s12294_s29 + $0x3c0] sm:$0xf]  ;;  %v5492_v21 = vor.u32 %v7723_v19, %v5491_v18  ;;  %v7755_v22 = vld [vmem:[%s12294_s29 + $0x3cc] sm:$0xf0]  ;;  %1427 = vmatpush.bf16.msra.mxu0 %v5236_v16 }
  0x12   :  { %v5219_v23 = vld [vmem:[%s12294_s29 + $0xa0] sm:$0xf]  ;;  %v7655_v24 = vld [vmem:[%s12294_s29 + $0xac] sm:$0xf0]  ;;  %v5620_v25 = vor.u32 %v7755_v22, %v5619_v20  ;;  %1440 = vmatpush.bf16.msra.mxu1 %v5364_v17 }
  0x13   :  { %v5347_v26 = vld [vmem:[%s12294_s29 + $0x1a0] sm:$0xf]  ;;  %v7687_v27 = vld [vmem:[%s12294_s29 + $0x1ac] sm:$0xf0]  ;;  %v5220_v29 = vor.u32 %v7655_v24, %v5219_v23  ;;  %1453 = vmatpush.bf16.msra.mxu2 %v5492_v21 }
  0x14   :  { %v5475_v28 = vld [vmem:[%s12294_s29 + $0x2a0] sm:$0xf]  ;;  %v7719_v30 = vld [vmem:[%s12294_s29 + $0x2ac] sm:$0xf0]  ;;  %v5348_v33 = vor.u32 %v7687_v27, %v5347_v26  ;;  %1466 = vmatpush.bf16.msra.mxu3 %v5620_v25 }
  0x15   :  { %v5603_v31 = vld [vmem:[%s12294_s29 + $0x3a0] sm:$0xf]  ;;  %v7751_v32 = vld [vmem:[%s12294_s29 + $0x3ac] sm:$0xf0]  ;;  %v5476_v34 = vor.u32 %v7719_v30, %v5475_v28  ;;  %1428 = vmatpush.bf16.msra.mxu0 %v5220_v29 }
  0x16   :  { %v5203_v35 = vld [vmem:[%s12294_s29 + $0x80] sm:$0xf]  ;;  %v7651_v36 = vld [vmem:[%s12294_s29 + $0x8c] sm:$0xf0]  ;;  %v5604_v38 = vor.u32 %v7751_v32, %v5603_v31  ;;  %1441 = vmatpush.bf16.msra.mxu1 %v5348_v33 }
  0x17   :  { %v5331_v37 = vld [vmem:[%s12294_s29 + $0x180] sm:$0xf]  ;;  %v7683_v39 = vld [vmem:[%s12294_s29 + $0x18c] sm:$0xf0]  ;;  %v5204_v44 = vor.u32 %v7651_v36, %v5203_v35  ;;  %1454 = vmatpush.bf16.msra.mxu2 %v5476_v34 }
  0x18   :  { %v5459_v40 = vld [vmem:[%s12294_s29 + $0x280] sm:$0xf]  ;;  %v7715_v41 = vld [vmem:[%s12294_s29 + $0x28c] sm:$0xf0]  ;;  %v5332_v45 = vor.u32 %v7683_v39, %v5331_v37  ;;  %1467 = vmatpush.bf16.msra.mxu3 %v5604_v38  ;;  %v7661_v37 = vld [vmem:[%s12294_s29 + $0xe4] sm:$0xf] }
  0x19   :  { %v5587_v42 = vld [vmem:[%s12294_s29 + $0x380] sm:$0xf]  ;;  %v7747_v43 = vld [vmem:[%s12294_s29 + $0x38c] sm:$0xf0]  ;;  %v5460_v46 = vor.u32 %v7715_v41, %v5459_v40  ;;  %1429 = vmatpush.bf16.msra.mxu0 %v5204_v44  ;;  %v5253_v38 = vld [vmem:[%s12294_s29 + $0xf0] sm:$0xf0] }
  0x1a   :  { %v5187_v47 = vld [vmem:[%s12294_s29 + $0x60] sm:$0xf]  ;;  %v7647_v48 = vld [vmem:[%s12294_s29 + $0x6c] sm:$0xf0]  ;;  %v5588_v50 = vor.u32 %v7747_v43, %v5587_v42  ;;  %1442 = vmatpush.bf16.msra.mxu1 %v5332_v45 }
  0x1b   :  { %v5315_v49 = vld [vmem:[%s12294_s29 + $0x160] sm:$0xf]  ;;  %v7679_v51 = vld [vmem:[%s12294_s29 + $0x16c] sm:$0xf0]  ;;  %v5188_v56 = vor.u32 %v7647_v48, %v5187_v47  ;;  %1455 = vmatpush.bf16.msra.mxu2 %v5460_v46  ;;  %v5256_v46 = vor.u32 %v7661_v37, %v5253_v38 }
  0x1c   :  { %v5443_v52 = vld [vmem:[%s12294_s29 + $0x260] sm:$0xf]  ;;  %v7711_v53 = vld [vmem:[%s12294_s29 + $0x26c] sm:$0xf0]  ;;  %v5316_v57 = vor.u32 %v7679_v51, %v5315_v49  ;;  %1468 = vmatpush.bf16.msra.mxu3 %v5588_v50  ;;  %v7657_v50 = vld [vmem:[%s12294_s29 + $0xc4] sm:$0xf] }
  0x1d   :  { %v5571_v54 = vld [vmem:[%s12294_s29 + $0x360] sm:$0xf]  ;;  %v7743_v55 = vld [vmem:[%s12294_s29 + $0x36c] sm:$0xf0]  ;;  %v5444_v58 = vor.u32 %v7711_v53, %v5443_v52  ;;  %1430 = vmatpush.bf16.msra.mxu0 %v5188_v56  ;;  %v5237_v51 = vld [vmem:[%s12294_s29 + $0xd0] sm:$0xf0] }
  0x1e   :  { %v5171_v59 = vld [vmem:[%s12294_s29 + $0x40] sm:$0xf]  ;;  %v7643_v60 = vld [vmem:[%s12294_s29 + $0x4c] sm:$0xf0]  ;;  %v5572_v62 = vor.u32 %v7743_v55, %v5571_v54  ;;  %1443 = vmatpush.bf16.msra.mxu1 %v5316_v57 }
  0x1f   :  { %v5299_v61 = vld [vmem:[%s12294_s29 + $0x140] sm:$0xf]  ;;  %v7675_v63 = vld [vmem:[%s12294_s29 + $0x14c] sm:$0xf0]  ;;  %v5172_v4 = vor.u32 %v7643_v60, %v5171_v59  ;;  %1456 = vmatpush.bf16.msra.mxu2 %v5444_v58  ;;  %v5240_v59 = vor.u32 %v7657_v50, %v5237_v51 }
  0x20   :  { %v5427_v0 = vld [vmem:[%s12294_s29 + $0x240] sm:$0xf]  ;;  %v7707_v1 = vld [vmem:[%s12294_s29 + $0x24c] sm:$0xf0]  ;;  %v5300_v5 = vor.u32 %v7675_v63, %v5299_v61  ;;  %1469 = vmatpush.bf16.msra.mxu3 %v5572_v62  ;;  %v7653_v62 = vld [vmem:[%s12294_s29 + $0xa4] sm:$0xf] }
  0x21   :  { %v5555_v2 = vld [vmem:[%s12294_s29 + $0x340] sm:$0xf]  ;;  %v7739_v3 = vld [vmem:[%s12294_s29 + $0x34c] sm:$0xf0]  ;;  %v5428_v6 = vor.u32 %v7707_v1, %v5427_v0  ;;  %1431 = vmatpush.bf16.msra.mxu0 %v5172_v4  ;;  %v5221_v63 = vld [vmem:[%s12294_s29 + $0xb0] sm:$0xf0] }
  0x22   :  { %v5155_v7 = vld [vmem:[%s12294_s29 + $0x20] sm:$0xf]  ;;  %v7639_v8 = vld [vmem:[%s12294_s29 + $0x2c] sm:$0xf0]  ;;  %v5556_v10 = vor.u32 %v7739_v3, %v5555_v2  ;;  %1444 = vmatpush.bf16.msra.mxu1 %v5300_v5 }
  0x23   :  { %v5283_v9 = vld [vmem:[%s12294_s29 + $0x120] sm:$0xf]  ;;  %v7671_v11 = vld [vmem:[%s12294_s29 + $0x12c] sm:$0xf0]  ;;  %v5156_v16 = vor.u32 %v7639_v8, %v5155_v7  ;;  %1457 = vmatpush.bf16.msra.mxu2 %v5428_v6 }
  0x24   :  { %v5411_v12 = vld [vmem:[%s12294_s29 + $0x220] sm:$0xf]  ;;  %v7703_v13 = vld [vmem:[%s12294_s29 + $0x22c] sm:$0xf0]  ;;  %v5284_v19 = vor.u32 %v7671_v11, %v5283_v9  ;;  %1470 = vmatpush.bf16.msra.mxu3 %v5556_v10  ;;  %v61_v10 = vld [vmem:[%s12295_s25 + $0x18] sm:$0xff]  ;;  %v5224_v11 = vor.u32 %v7653_v62, %v5221_v63 }
  0x25   :  { %v5539_v14 = vld [vmem:[%s12294_s29 + $0x320] sm:$0xf]  ;;  %v7735_v15 = vld [vmem:[%s12294_s29 + $0x32c] sm:$0xf0]  ;;  %v5412_v20 = vor.u32 %v7703_v13, %v5411_v12  ;;  %1432 = vmatpush.bf16.msra.mxu0 %v5156_v16  ;;  %v7649_v16 = vld [vmem:[%s12294_s29 + $0x84] sm:$0xf] }
  0x26   :  { %v5139_v17 = vld [vmem:[%s12294_s29] sm:$0xf]  ;;  %v7635_v18 = vld [vmem:[%s12294_s29 + $0xc] sm:$0xf0]  ;;  %v5540_v24 = vor.u32 %v7735_v15, %v5539_v14  ;;  %1445 = vmatpush.bf16.msra.mxu1 %v5284_v19  ;;  %v8694_v15 = vpack.c.bf16 %v61_v10, %v61_v10  ;;  %v59_v19 = vld [vmem:[%s12295_s25 + $0x8] sm:$0xff] }
  0x27   :  { %v5267_v21 = vld [vmem:[%s12294_s29 + $0x100] sm:$0xf]  ;;  %v7667_v22 = vld [vmem:[%s12294_s29 + $0x10c] sm:$0xf0]  ;;  %v5140_v31 = vor.u32 %v7635_v18, %v5139_v17  ;;  %1458 = vmatpush.bf16.msra.mxu2 %v5412_v20  ;;  %v5205_v17 = vld [vmem:[%s12294_s29 + $0x90] sm:$0xf0] }
  0x28   :  { %v5395_v23 = vld [vmem:[%s12294_s29 + $0x200] sm:$0xf]  ;;  %v7699_v25 = vld [vmem:[%s12294_s29 + $0x20c] sm:$0xf0]  ;;  %v5268_v35 = vor.u32 %v7667_v22, %v5267_v21  ;;  %1471 = vmatpush.bf16.msra.mxu3 %v5540_v24  ;;  %v5509_v10 = vld [vmem:[%s12294_s29 + $0x2f0] sm:$0xf0] }
  0x29   :  { %v5523_v26 = vld [vmem:[%s12294_s29 + $0x300] sm:$0xf]  ;;  %v7731_v27 = vld [vmem:[%s12294_s29 + $0x30c] sm:$0xf0]  ;;  %v5396_v36 = vor.u32 %v7699_v25, %v5395_v23  ;;  %1433 = vmatpush.bf16.msra.mxu0 %v5140_v31  ;;  %v8717_v25 = vpack.c.bf16 %v59_v19, %v59_v19  ;;  %v5189_v31 = vld [vmem:[%s12294_s29 + $0x70] sm:$0xf0] }
  0x2a   :  { %v5763_v28 = vld [vmem:[%s12294_s29 + $0x4e0] sm:$0xf]  ;;  %v7791_v29 = vld [vmem:[%s12294_s29 + $0x4ec] sm:$0xf0]  ;;  %v5524_v39 = vor.u32 %v7731_v27, %v5523_v26  ;;  %1446 = vmatpush.bf16.msra.mxu1 %v5268_v35  ;;  %v5208_v26 = vor.u32 %v7649_v16, %v5205_v17  ;;  %v7789_v16 = vld [vmem:[%s12294_s29 + $0x4e4] sm:$0xf] }
  0x2b   :  { %v5891_v30 = vld [vmem:[%s12294_s29 + $0x5e0] sm:$0xf]  ;;  %v7823_v32 = vld [vmem:[%s12294_s29 + $0x5ec] sm:$0xf0]  ;;  %v5764_v40 = vor.u32 %v7791_v29, %v5763_v28  ;;  %1459 = vmatpush.bf16.msra.mxu2 %v5396_v36  ;;  %v5765_v17 = vld [vmem:[%s12294_s29 + $0x4f0] sm:$0xf0] }
  0x2c   :  { %v6019_v33 = vld [vmem:[%s12294_s29 + $0x6e0] sm:$0xf]  ;;  %v7855_v34 = vld [vmem:[%s12294_s29 + $0x6ec] sm:$0xf0]  ;;  %v5892_v41 = vor.u32 %v7823_v32, %v5891_v30  ;;  %1472 = vmatpush.bf16.msra.mxu3 %v5524_v39  ;;  %v7645_v30 = vld [vmem:[%s12294_s29 + $0x64] sm:$0xf] }
  0x2d   :  { %v6020_v42 = vor.u32 %v7855_v34, %v6019_v33  ;;  %v5747_v43 = vld [vmem:[%s12294_s29 + $0x4c0] sm:$0xf]  ;;  %v7787_v44 = vld [vmem:[%s12294_s29 + $0x4cc] sm:$0xf0]  ;;  %1478 = vmatpush.bf16.msrb.mxu0 %v5764_v40  ;;  %1447 = vmatmul.bf16.vlgmr.msra.gmra.mxu1 %v8717_v25  ;;  %v5192_v38 = vor.u32 %v7645_v30, %v5189_v31  ;;  %v5493_v30 = vld [vmem:[%s12294_s29 + $0x2d0] sm:$0xf0] }
  0x2e   :  { %v5875_v45 = vld [vmem:[%s12294_s29 + $0x5c0] sm:$0xf]  ;;  %v7819_v47 = vld [vmem:[%s12294_s29 + $0x5cc] sm:$0xf0]  ;;  %v5748_v52 = vor.u32 %v7787_v44, %v5747_v43  ;;  %1491 = vmatpush.bf16.msrb.mxu1 %v5892_v41  ;;  %v5173_v43 = vld [vmem:[%s12294_s29 + $0x50] sm:$0xf0] }
  0x2f   :  { %v6003_v48 = vld [vmem:[%s12294_s29 + $0x6c0] sm:$0xf]  ;;  %v7851_v49 = vld [vmem:[%s12294_s29 + $0x6cc] sm:$0xf0]  ;;  %1504 = vmatpush.bf16.msrb.mxu2 %v6020_v42  ;;  %v5876_v54 = vor.u32 %v7819_v47, %v5875_v45  ;;  %1473 = vmatmul.bf16.vlgmr.msra.gmra.mxu3 %v8694_v15  ;;  %v7641_v42 = vld [vmem:[%s12294_s29 + $0x44] sm:$0xf] }
  0x30   :  { %v5731_v53 = vld [vmem:[%s12294_s29 + $0x4a0] sm:$0xf]  ;;  %v6004_v55 = vor.u32 %v7851_v49, %v6003_v48  ;;  %v7783_v56 = vld [vmem:[%s12294_s29 + $0x4ac] sm:$0xf0]  ;;  %1517 = vmatpush.bf16.msrb.mxu3 %v5256_v46  ;;  %v5176_v50 = vor.u32 %v7641_v42, %v5173_v43  ;;  %v7753_v31 = vld [vmem:[%s12294_s29 + $0x3c4] sm:$0xf] }
  0x31   :  { %v5859_v57 = vld [vmem:[%s12294_s29 + $0x5a0] sm:$0xf]  ;;  %v7815_v58 = vld [vmem:[%s12294_s29 + $0x5ac] sm:$0xf0]  ;;  %1479 = vmatpush.bf16.msrb.mxu0 %v5748_v52  ;;  %v5732_v0 = vor.u32 %v7783_v56, %v5731_v53  ;;  %v5349_v42 = vld [vmem:[%s12294_s29 + $0x1b0] sm:$0xf0] }
  0x32   :  { %v5987_v60 = vld [vmem:[%s12294_s29 + $0x6a0] sm:$0xf]  ;;  %v7847_v61 = vld [vmem:[%s12294_s29 + $0x6ac] sm:$0xf0]  ;;  %v5860_v1 = vor.u32 %v7815_v58, %v5859_v57  ;;  %1492 = vmatpush.bf16.msrb.mxu1 %v5876_v54  ;;  %v7637_v54 = vld [vmem:[%s12294_s29 + $0x24] sm:$0xf] }
  0x33   :  { %v5715_v2 = vld [vmem:[%s12294_s29 + $0x480] sm:$0xf]  ;;  %v60_v3 = vld [vmem:[%s12295_s25 + $0x10] sm:$0xff]  ;;  %1505 = vmatpush.bf16.msrb.mxu2 %v6004_v55  ;;  %v5988_v5 = vor.u32 %v7847_v61, %v5987_v60  ;;  %v7717_v43 = vld [vmem:[%s12294_s29 + $0x2a4] sm:$0xf] }
  0x34   :  { %v58_v4 = vld [vmem:[%s12295_s25] sm:$0xff]  ;;  %v7779_v6 = vld [vmem:[%s12294_s29 + $0x48c] sm:$0xf0]  ;;  %v8678_v8 = vpack.c.bf16 %v60_v3, %v60_v3  ;;  %1518 = vmatpush.bf16.msrb.mxu3 %v5240_v59  ;;  %v5157_v55 = vld [vmem:[%s12294_s29 + $0x30] sm:$0xf0] }
  0x35   :  { %v5843_v7 = vld [vmem:[%s12294_s29 + $0x580] sm:$0xf]  ;;  %v8680_v9 = vpack.c.bf16 %v58_v4, %v58_v4  ;;  %v7811_v12 = vld [vmem:[%s12294_s29 + $0x58c] sm:$0xf0]  ;;  %1480 = vmatpush.bf16.msrb.mxu0 %v5732_v0  ;;  %v5716_v18 = vor.u32 %v7779_v6, %v5715_v2  ;;  %v5160_v0 = vor.u32 %v7637_v54, %v5157_v55  ;;  %v7633_v2 = vld [vmem:[%s12294_s29 + $0x4] sm:$0xf] }
  0x36   :  { %v5971_v13 = vld [vmem:[%s12294_s29 + $0x680] sm:$0xf]  ;;  %v7843_v14 = vld [vmem:[%s12294_s29 + $0x68c] sm:$0xf0]  ;;  %1460 = vmatmul.bf16.vlgmr.msra.gmra.mxu2 %v8678_v8  ;;  %1493 = vmatpush.bf16.msrb.mxu1 %v5860_v1  ;;  %v5844_v20 = vor.u32 %v7811_v12, %v5843_v7  ;;  %v5141_v3 = vld [vmem:[%s12294_s29 + $0x10] sm:$0xf0] }
  0x37   :  { %1434 = vmatmul.bf16.vlgmr.msra.gmra.mxu0 %v8680_v9  ;;  %1506 = vmatpush.bf16.msrb.mxu2 %v5988_v5  ;;  %v5972_v21 = vor.u32 %v7843_v14, %v5971_v13  ;;  %v5699_v22 = vld [vmem:[%s12294_s29 + $0x460] sm:$0xf]  ;;  %v7775_v23 = vld [vmem:[%s12294_s29 + $0x46c] sm:$0xf0]  ;;  %v7693_v4 = vld [vmem:[%s12294_s29 + $0x1e4] sm:$0xf]  ;;  %v5144_v19 = vor.u32 %v7633_v2, %v5141_v3 }
  0x38   :  { %v5827_v24 = vld [vmem:[%s12294_s29 + $0x560] sm:$0xf]  ;;  %1519 = vmatpush.bf16.msrb.mxu3 %v5224_v11  ;;  %v7807_v27 = vld [vmem:[%s12294_s29 + $0x56c] sm:$0xf0]  ;;  %v5700_v32 = vor.u32 %v7775_v23, %v5699_v22  ;;  %v5381_v5 = vld [vmem:[%s12294_s29 + $0x1f0] sm:$0xf0] }
  0x39   :  { %v5955_v28 = vld [vmem:[%s12294_s29 + $0x660] sm:$0xf]  ;;  %v7839_v29 = vld [vmem:[%s12294_s29 + $0x66c] sm:$0xf0]  ;;  %1481 = vmatpush.bf16.msrb.mxu0 %v5716_v18  ;;  %v5828_v33 = vor.u32 %v7807_v27, %v5827_v24  ;;  %v7725_v6 = vld [vmem:[%s12294_s29 + $0x2e4] sm:$0xf] }
  0x3a   :  { %1494 = vmatpush.bf16.msrb.mxu1 %v5844_v20  ;;  %v5956_v34 = vor.u32 %v7839_v29, %v5955_v28  ;;  %v5683_v35 = vld [vmem:[%s12294_s29 + $0x440] sm:$0xf]  ;;  %v7771_v36 = vld [vmem:[%s12294_s29 + $0x44c] sm:$0xf0]  ;;  %v7757_v11 = vld [vmem:[%s12294_s29 + $0x3e4] sm:$0xf]  ;;  %v5384_v20 = vor.u32 %v7693_v4, %v5381_v5  ;;  %v5512_v23 = vor.u32 %v7725_v6, %v5509_v10  ;;  %v5768_v29 = vor.u32 %v7789_v16, %v5765_v17 }
  0x3b   :  { %1507 = vmatpush.bf16.msrb.mxu2 %v5972_v21  ;;  %v5811_v37 = vld [vmem:[%s12294_s29 + $0x540] sm:$0xf]  ;;  %v7803_v39 = vld [vmem:[%s12294_s29 + $0x54c] sm:$0xf0]  ;;  %v5684_v44 = vor.u32 %v7771_v36, %v5683_v35  ;;  %v5637_v12 = vld [vmem:[%s12294_s29 + $0x3f0] sm:$0xf0] }
  0x3c   :  { %1520 = vmatpush.bf16.msrb.mxu3 %v5208_v26  ;;  %v5939_v40 = vld [vmem:[%s12294_s29 + $0x640] sm:$0xf]  ;;  %v7835_v41 = vld [vmem:[%s12294_s29 + $0x64c] sm:$0xf0]  ;;  %v5812_v45 = vor.u32 %v7803_v39, %v5811_v37  ;;  %v63_v22 = vld [vmem:[%s12295_s25 + $0x28] sm:$0xff]  ;;  %v5640_v24 = vor.u32 %v7757_v11, %v5637_v12 }
  0x3d   :  { %1482 = vmatpush.bf16.msrb.mxu0 %v5700_v32  ;;  %v5940_v46 = vor.u32 %v7835_v41, %v5939_v40  ;;  %v5667_v47 = vld [vmem:[%s12294_s29 + $0x420] sm:$0xf]  ;;  %v7767_v48 = vld [vmem:[%s12294_s29 + $0x42c] sm:$0xf0]  ;;  %v7689_v26 = vld [vmem:[%s12294_s29 + $0x1c4] sm:$0xf]  ;;  %v8868_v37 = vpack.c.bf16 %v63_v22, %v63_v22 }
  0x3e   :  { %1495 = vmatpush.bf16.msrb.mxu1 %v5828_v33  ;;  %v5795_v49 = vld [vmem:[%s12294_s29 + $0x520] sm:$0xf]  ;;  %v7799_v51 = vld [vmem:[%s12294_s29 + $0x52c] sm:$0xf0]  ;;  %v5668_v56 = vor.u32 %v7767_v48, %v5667_v47  ;;  %v5365_v27 = vld [vmem:[%s12294_s29 + $0x1d0] sm:$0xf0] }
  0x3f   :  { %1508 = vmatpush.bf16.msrb.mxu2 %v5956_v34  ;;  %v5923_v52 = vld [vmem:[%s12294_s29 + $0x620] sm:$0xf]  ;;  %v7831_v53 = vld [vmem:[%s12294_s29 + $0x62c] sm:$0xf0]  ;;  %v5796_v59 = vor.u32 %v7799_v51, %v5795_v49  ;;  %v7721_v28 = vld [vmem:[%s12294_s29 + $0x2c4] sm:$0xf] }
  0x40   :  { %1521 = vmatpush.bf16.msrb.mxu3 %v5192_v38  ;;  %v5651_v57 = vld [vmem:[%s12294_s29 + $0x400] sm:$0xf]  ;;  %v7763_v58 = vld [vmem:[%s12294_s29 + $0x40c] sm:$0xf0]  ;;  %v5924_v60 = vor.u32 %v7831_v53, %v5923_v52  ;;  %v5621_v32 = vld [vmem:[%s12294_s29 + $0x3d0] sm:$0xf0]  ;;  %v5368_v38 = vor.u32 %v7689_v26, %v5365_v27  ;;  %v5496_v39 = vor.u32 %v7721_v28, %v5493_v30 }
  0x41   :  { %1483 = vmatpush.bf16.msrb.mxu0 %v5684_v44  ;;  %v5779_v61 = vld [vmem:[%s12294_s29 + $0x500] sm:$0xf]  ;;  %v7795_v62 = vld [vmem:[%s12294_s29 + $0x50c] sm:$0xf0]  ;;  %v5652_v7 = vor.u32 %v7763_v58, %v5651_v57  ;;  %v7785_v34 = vld [vmem:[%s12294_s29 + $0x4c4] sm:$0xf]  ;;  %v5624_v40 = vor.u32 %v7753_v31, %v5621_v32 }
  0x42   :  { %1496 = vmatpush.bf16.msrb.mxu1 %v5812_v45  ;;  %v5907_v63 = vld [vmem:[%s12294_s29 + $0x600] sm:$0xf]  ;;  %v7827_v1 = vld [vmem:[%s12294_s29 + $0x60c] sm:$0xf0]  ;;  %v5780_v13 = vor.u32 %v7795_v62, %v5779_v61  ;;  %v5749_v35 = vld [vmem:[%s12294_s29 + $0x4d0] sm:$0xf0] }
  0x43   :  { %1509 = vmatpush.bf16.msrb.mxu2 %v5940_v46  ;;  %v5908_v14 = vor.u32 %v7827_v1, %v5907_v63  ;;  %v64_v18 = vld [vmem:[%s12295_s25 + $0x30] sm:$0xff]  ;;  %v62_v21 = vld [vmem:[%s12295_s25 + $0x20] sm:$0xff]  ;;  %v5752_v44 = vor.u32 %v7785_v34, %v5749_v35 }
  0x44   :  { %1522 = vmatpush.bf16.msrb.mxu3 %v5176_v50  ;;  %v8858_v33 = vpack.c.bf16 %v64_v18, %v64_v18  ;;  %v8866_v36 = vpack.c.bf16 %v62_v21, %v62_v21  ;;  %v7685_v41 = vld [vmem:[%s12294_s29 + $0x1a4] sm:$0xf]  ;;  %v5477_v45 = vld [vmem:[%s12294_s29 + $0x2b0] sm:$0xf0] }
  0x45   :  { %1484 = vmatpush.bf16.msrb.mxu0 %v5668_v56  ;;  %v7749_v46 = vld [vmem:[%s12294_s29 + $0x3a4] sm:$0xf]  ;;  %v5605_v47 = vld [vmem:[%s12294_s29 + $0x3b0] sm:$0xf0]  ;;  %v5352_v50 = vor.u32 %v7685_v41, %v5349_v42  ;;  %v5480_v51 = vor.u32 %v7717_v43, %v5477_v45 }
  0x46   :  { %1497 = vmatpush.bf16.msrb.mxu1 %v5796_v59  ;;  %v7781_v48 = vld [vmem:[%s12294_s29 + $0x4a4] sm:$0xf]  ;;  %v5733_v49 = vld [vmem:[%s12294_s29 + $0x4b0] sm:$0xf0]  ;;  %v5608_v52 = vor.u32 %v7749_v46, %v5605_v47 }
  0x47   :  { %1510 = vmatpush.bf16.msrb.mxu2 %v5924_v60  ;;  %v7681_v53 = vld [vmem:[%s12294_s29 + $0x184] sm:$0xf]  ;;  %v5333_v54 = vld [vmem:[%s12294_s29 + $0x190] sm:$0xf0]  ;;  %v5736_v56 = vor.u32 %v7781_v48, %v5733_v49 }
  0x48   :  { %1523 = vmatpush.bf16.msrb.mxu3 %v5160_v0  ;;  %v7713_v55 = vld [vmem:[%s12294_s29 + $0x284] sm:$0xf]  ;;  %v5461_v57 = vld [vmem:[%s12294_s29 + $0x290] sm:$0xf0]  ;;  %v5336_v62 = vor.u32 %v7681_v53, %v5333_v54 }
  0x49   :  { %1485 = vmatpush.bf16.msrb.mxu0 %v5652_v7  ;;  %v7745_v58 = vld [vmem:[%s12294_s29 + $0x384] sm:$0xf]  ;;  %v5589_v59 = vld [vmem:[%s12294_s29 + $0x390] sm:$0xf0]  ;;  %v5464_v63 = vor.u32 %v7713_v55, %v5461_v57 }
  0x4a   :  { %1498 = vmatpush.bf16.msrb.mxu1 %v5780_v13  ;;  %v7777_v60 = vld [vmem:[%s12294_s29 + $0x484] sm:$0xf]  ;;  %v5717_v61 = vld [vmem:[%s12294_s29 + $0x490] sm:$0xf0]  ;;  %v5592_v0 = vor.u32 %v7745_v58, %v5589_v59  ;;  %v5259_v58 = vld [vmem:[%s12294_s29 + $0xe8] sm:$0xf] }
  0x4b   :  { %1511 = vmatpush.bf16.msrb.mxu2 %v5908_v14  ;;  %v7677_v1 = vld [vmem:[%s12294_s29 + $0x164] sm:$0xf]  ;;  %v5317_v2 = vld [vmem:[%s12294_s29 + $0x170] sm:$0xf0]  ;;  %v5720_v4 = vor.u32 %v7777_v60, %v5717_v61  ;;  %v7664_v59 = vld [vmem:[%s12294_s29 + $0xf4] sm:$0xf0] }
  0x4c   :  { %1524 = vmatpush.bf16.msrb.mxu3 %v5144_v19  ;;  %1486 = vmatmul.bf16.vlgmr.msrb.gmra.mxu0 %v8866_v36  ;;  %v7709_v3 = vld [vmem:[%s12294_s29 + $0x264] sm:$0xf]  ;;  %v5445_v5 = vld [vmem:[%s12294_s29 + $0x270] sm:$0xf0]  ;;  %v5320_v12 = vor.u32 %v7677_v1, %v5317_v2 }
  0x4d   :  { %1530 = vmatpush.bf16.msra.mxu0 %v5384_v20  ;;  %1499 = vmatmul.bf16.vlgmr.msrb.gmra.mxu1 %v8868_v37  ;;  %v7741_v6 = vld [vmem:[%s12294_s29 + $0x364] sm:$0xf]  ;;  %v5573_v7 = vld [vmem:[%s12294_s29 + $0x370] sm:$0xf0]  ;;  %v5448_v13 = vor.u32 %v7709_v3, %v5445_v5  ;;  %v5260_v3 = vor.u32 %v7664_v59, %v5259_v58 }
  0x4e   :  { %1543 = vmatpush.bf16.msra.mxu1 %v5512_v23  ;;  %1512 = vmatmul.bf16.vlgmr.msrb.gmra.mxu2 %v8858_v33  ;;  %v7773_v10 = vld [vmem:[%s12294_s29 + $0x464] sm:$0xf]  ;;  %v5701_v11 = vld [vmem:[%s12294_s29 + $0x470] sm:$0xf0]  ;;  %v5576_v14 = vor.u32 %v7741_v6, %v5573_v7 }
  0x4f   :  { %1556 = vmatpush.bf16.msra.mxu2 %v5640_v24  ;;  %1525 = vmatmul.bf16.vlgmr.msrb.gmra.mxu3 %v8680_v9  ;;  %v7673_v16 = vld [vmem:[%s12294_s29 + $0x144] sm:$0xf]  ;;  %v5301_v17 = vld [vmem:[%s12294_s29 + $0x150] sm:$0xf0]  ;;  %v5704_v19 = vor.u32 %v7773_v10, %v5701_v11  ;;  %v5243_v11 = vld [vmem:[%s12294_s29 + $0xc8] sm:$0xf] }
  0x50   :  { %1569 = vmatpush.bf16.msra.mxu3 %v5768_v29  ;;  %v7705_v18 = vld [vmem:[%s12294_s29 + $0x244] sm:$0xf]  ;;  %v5429_v20 = vld [vmem:[%s12294_s29 + $0x250] sm:$0xf0]  ;;  %v5304_v26 = vor.u32 %v7673_v16, %v5301_v17 }
  0x51   :  { %1531 = vmatpush.bf16.msra.mxu0 %v5368_v38  ;;  %v7737_v21 = vld [vmem:[%s12294_s29 + $0x344] sm:$0xf]  ;;  %v5557_v22 = vld [vmem:[%s12294_s29 + $0x350] sm:$0xf0]  ;;  %v5432_v27 = vor.u32 %v7705_v18, %v5429_v20 }
  0x52   :  { %1544 = vmatpush.bf16.msra.mxu1 %v5496_v39  ;;  %v7769_v23 = vld [vmem:[%s12294_s29 + $0x444] sm:$0xf]  ;;  %v5685_v24 = vld [vmem:[%s12294_s29 + $0x450] sm:$0xf0]  ;;  %v5560_v28 = vor.u32 %v7737_v21, %v5557_v22 }
  0x53   :  { %1557 = vmatpush.bf16.msra.mxu2 %v5624_v40  ;;  %v7669_v29 = vld [vmem:[%s12294_s29 + $0x124] sm:$0xf]  ;;  %v5285_v30 = vld [vmem:[%s12294_s29 + $0x130] sm:$0xf0]  ;;  %v5688_v32 = vor.u32 %v7769_v23, %v5685_v24  ;;  %v5227_v24 = vld [vmem:[%s12294_s29 + $0xa8] sm:$0xf] }
  0x54   :  { %1570 = vmatpush.bf16.msra.mxu3 %v5752_v44  ;;  %v7701_v31 = vld [vmem:[%s12294_s29 + $0x224] sm:$0xf]  ;;  %v5413_v34 = vld [vmem:[%s12294_s29 + $0x230] sm:$0xf0]  ;;  %v5288_v41 = vor.u32 %v7669_v29, %v5285_v30 }
  0x55   :  { %1532 = vmatpush.bf16.msra.mxu0 %v5352_v50  ;;  %v7733_v35 = vld [vmem:[%s12294_s29 + $0x324] sm:$0xf]  ;;  %v5541_v38 = vld [vmem:[%s12294_s29 + $0x330] sm:$0xf0]  ;;  %v5416_v44 = vor.u32 %v7701_v31, %v5413_v34 }
  0x56   :  { %1545 = vmatpush.bf16.msra.mxu1 %v5480_v51  ;;  %v7765_v39 = vld [vmem:[%s12294_s29 + $0x424] sm:$0xf]  ;;  %v5669_v40 = vld [vmem:[%s12294_s29 + $0x430] sm:$0xf0]  ;;  %v5544_v45 = vor.u32 %v7733_v35, %v5541_v38 }
  0x57   :  { %1558 = vmatpush.bf16.msra.mxu2 %v5608_v52  ;;  %v7665_v42 = vld [vmem:[%s12294_s29 + $0x104] sm:$0xf]  ;;  %v5269_v43 = vld [vmem:[%s12294_s29 + $0x110] sm:$0xf0]  ;;  %v5672_v49 = vor.u32 %v7765_v39, %v5669_v40  ;;  %v5211_v40 = vld [vmem:[%s12294_s29 + $0x88] sm:$0xf] }
  0x58   :  { %1571 = vmatpush.bf16.msra.mxu3 %v5736_v56  ;;  %v7697_v46 = vld [vmem:[%s12294_s29 + $0x204] sm:$0xf]  ;;  %v5397_v47 = vld [vmem:[%s12294_s29 + $0x210] sm:$0xf0]  ;;  %v5272_v56 = vor.u32 %v7665_v42, %v5269_v43  ;;  %v5339_v42 = vld [vmem:[%s12294_s29 + $0x188] sm:$0xf] }
  0x59   :  { %1533 = vmatpush.bf16.msra.mxu0 %v5336_v62  ;;  %v7729_v48 = vld [vmem:[%s12294_s29 + $0x304] sm:$0xf]  ;;  %v5525_v50 = vld [vmem:[%s12294_s29 + $0x310] sm:$0xf0]  ;;  %v5400_v60 = vor.u32 %v7697_v46, %v5397_v47  ;;  %v5387_v62 = vld [vmem:[%s12294_s29 + $0x1e8] sm:$0xf] }
  0x5a   :  { %1546 = vmatpush.bf16.msra.mxu1 %v5464_v63  ;;  %v7761_v51 = vld [vmem:[%s12294_s29 + $0x404] sm:$0xf]  ;;  %v5653_v52 = vld [vmem:[%s12294_s29 + $0x410] sm:$0xf0]  ;;  %v5528_v61 = vor.u32 %v7729_v48, %v5525_v50  ;;  %v7696_v63 = vld [vmem:[%s12294_s29 + $0x1f4] sm:$0xf0] }
  0x5b   :  { %1559 = vmatpush.bf16.msra.mxu2 %v5592_v0  ;;  %v7821_v53 = vld [vmem:[%s12294_s29 + $0x5e4] sm:$0xf]  ;;  %v5893_v54 = vld [vmem:[%s12294_s29 + $0x5f0] sm:$0xf0]  ;;  %v5656_v0 = vor.u32 %v7761_v51, %v5653_v52  ;;  %v5388_v7 = vor.u32 %v7696_v63, %v5387_v62  ;;  %v7684_v43 = vld [vmem:[%s12294_s29 + $0x194] sm:$0xf0] }
  0x5c   :  { %1572 = vmatpush.bf16.msra.mxu3 %v5720_v4  ;;  %v7853_v55 = vld [vmem:[%s12294_s29 + $0x6e4] sm:$0xf]  ;;  %v6021_v57 = vld [vmem:[%s12294_s29 + $0x6f0] sm:$0xf0]  ;;  %v5896_v1 = vor.u32 %v7821_v53, %v5893_v54  ;;  %v5340_v50 = vor.u32 %v7684_v43, %v5339_v42  ;;  %v5195_v52 = vld [vmem:[%s12294_s29 + $0x68] sm:$0xf] }
  0x5d   :  { %1534 = vmatpush.bf16.msra.mxu0 %v5320_v12  ;;  %v6024_v2 = vor.u32 %v7853_v55, %v6021_v57  ;;  %v7817_v4 = vld [vmem:[%s12294_s29 + $0x5c4] sm:$0xf]  ;;  %v5877_v5 = vld [vmem:[%s12294_s29 + $0x5d0] sm:$0xf0]  ;;  %v7660_v12 = vld [vmem:[%s12294_s29 + $0xd4] sm:$0xf0] }
  0x5e   :  { %1547 = vmatpush.bf16.msra.mxu1 %v5448_v13  ;;  %v7849_v6 = vld [vmem:[%s12294_s29 + $0x6c4] sm:$0xf]  ;;  %v6005_v10 = vld [vmem:[%s12294_s29 + $0x6d0] sm:$0xf0]  ;;  %v5371_v13 = vld [vmem:[%s12294_s29 + $0x1c8] sm:$0xf]  ;;  %v5880_v16 = vor.u32 %v7817_v4, %v5877_v5  ;;  %v5244_v18 = vor.u32 %v7660_v12, %v5243_v11 }
  0x5f   :  { %1560 = vmatpush.bf16.msra.mxu2 %v5576_v14  ;;  %v7692_v14 = vld [vmem:[%s12294_s29 + $0x1d4] sm:$0xf0]  ;;  %v6008_v17 = vor.u32 %v7849_v6, %v6005_v10  ;;  %v5861_v20 = vld [vmem:[%s12294_s29 + $0x5b0] sm:$0xf0]  ;;  %v7845_v21 = vld [vmem:[%s12294_s29 + $0x6a4] sm:$0xf] }
  0x60   :  { %1573 = vmatpush.bf16.msra.mxu3 %v5704_v19  ;;  %v7813_v19 = vld [vmem:[%s12294_s29 + $0x5a4] sm:$0xf]  ;;  %v5372_v22 = vor.u32 %v7692_v14, %v5371_v13  ;;  %v5989_v23 = vld [vmem:[%s12294_s29 + $0x6b0] sm:$0xf0]  ;;  %v7648_v53 = vld [vmem:[%s12294_s29 + $0x74] sm:$0xf0] }
  0x61   :  { %1535 = vmatpush.bf16.msra.mxu0 %v5304_v26  ;;  %v7656_v26 = vld [vmem:[%s12294_s29 + $0xb4] sm:$0xf0]  ;;  %v5864_v29 = vor.u32 %v7813_v19, %v5861_v20  ;;  %v5992_v30 = vor.u32 %v7845_v21, %v5989_v23  ;;  %v5845_v34 = vld [vmem:[%s12294_s29 + $0x590] sm:$0xf0]  ;;  %v7841_v35 = vld [vmem:[%s12294_s29 + $0x684] sm:$0xf]  ;;  %v5196_v58 = vor.u32 %v7648_v53, %v5195_v52 }
  0x62   :  { %1548 = vmatpush.bf16.msra.mxu1 %v5432_v27  ;;  %v5355_v27 = vld [vmem:[%s12294_s29 + $0x1a8] sm:$0xf]  ;;  %v5228_v31 = vor.u32 %v7656_v26, %v5227_v24  ;;  %v5973_v39 = vld [vmem:[%s12294_s29 + $0x690] sm:$0xf0]  ;;  %v7805_v47 = vld [vmem:[%s12294_s29 + $0x564] sm:$0xf] }
  0x63   :  { %1561 = vmatpush.bf16.msra.mxu2 %v5560_v28  ;;  %v7688_v28 = vld [vmem:[%s12294_s29 + $0x1b4] sm:$0xf0]  ;;  %v5829_v48 = vld [vmem:[%s12294_s29 + $0x570] sm:$0xf0]  ;;  %v5323_v54 = vld [vmem:[%s12294_s29 + $0x168] sm:$0xf] }
  0x64   :  { %1574 = vmatpush.bf16.msra.mxu3 %v5688_v32  ;;  %v7809_v32 = vld [vmem:[%s12294_s29 + $0x584] sm:$0xf]  ;;  %v5356_v38 = vor.u32 %v7688_v28, %v5355_v27  ;;  %v5957_v51 = vld [vmem:[%s12294_s29 + $0x670] sm:$0xf0]  ;;  %v7680_v55 = vld [vmem:[%s12294_s29 + $0x174] sm:$0xf0] }
  0x65   :  { %1536 = vmatpush.bf16.msra.mxu0 %v5288_v41  ;;  %v7652_v41 = vld [vmem:[%s12294_s29 + $0x94] sm:$0xf0]  ;;  %v7801_v59 = vld [vmem:[%s12294_s29 + $0x544] sm:$0xf]  ;;  %v5324_v62 = vor.u32 %v7680_v55, %v5323_v54  ;;  %v5941_v63 = vld [vmem:[%s12294_s29 + $0x650] sm:$0xf0] }
  0x66   :  { %1549 = vmatpush.bf16.msra.mxu1 %v5416_v44  ;;  %v5848_v44 = vor.u32 %v7809_v32, %v5845_v34  ;;  %v5212_v46 = vor.u32 %v7652_v41, %v5211_v40  ;;  %v5797_v10 = vld [vmem:[%s12294_s29 + $0x530] sm:$0xf0]  ;;  %v7829_v11 = vld [vmem:[%s12294_s29 + $0x624] sm:$0xf]  ;;  %v5163_v14 = vld [vmem:[%s12294_s29 + $0x28] sm:$0xf] }
  0x67   :  { %1562 = vmatpush.bf16.msra.mxu2 %v5544_v45  ;;  %v5976_v45 = vor.u32 %v7841_v35, %v5973_v39  ;;  %v5925_v13 = vld [vmem:[%s12294_s29 + $0x630] sm:$0xf0]  ;;  %v7793_v20 = vld [vmem:[%s12294_s29 + $0x504] sm:$0xf]  ;;  %v5147_v27 = vld [vmem:[%s12294_s29 + $0x8] sm:$0xf] }
  0x68   :  { %1575 = vmatpush.bf16.msra.mxu3 %v5672_v49  ;;  %v7837_v49 = vld [vmem:[%s12294_s29 + $0x664] sm:$0xf]  ;;  %v5781_v21 = vld [vmem:[%s12294_s29 + $0x510] sm:$0xf0]  ;;  %v5515_v32 = vld [vmem:[%s12294_s29 + $0x2e8] sm:$0xf] }
  0x69   :  { %1537 = vmatpush.bf16.msra.mxu0 %v5272_v56  ;;  %v5832_v56 = vor.u32 %v7805_v47, %v5829_v48  ;;  %v5960_v57 = vor.u32 %v7837_v49, %v5957_v51  ;;  %v7825_v24 = vld [vmem:[%s12294_s29 + $0x604] sm:$0xf]  ;;  %v5909_v26 = vld [vmem:[%s12294_s29 + $0x610] sm:$0xf0]  ;;  %v7728_v34 = vld [vmem:[%s12294_s29 + $0x2f4] sm:$0xf0] }
  0x6a   :  { %1550 = vmatpush.bf16.msra.mxu1 %v5400_v60  ;;  %v5813_v60 = vld [vmem:[%s12294_s29 + $0x550] sm:$0xf0]  ;;  %v5643_v35 = vld [vmem:[%s12294_s29 + $0x3e8] sm:$0xf]  ;;  %v7760_v39 = vld [vmem:[%s12294_s29 + $0x3f4] sm:$0xf0]  ;;  %v5912_v42 = vor.u32 %v7825_v24, %v5909_v26  ;;  %v5516_v47 = vor.u32 %v7728_v34, %v5515_v32 }
  0x6b   :  { %1563 = vmatpush.bf16.msra.mxu2 %v5528_v61  ;;  %v7833_v61 = vld [vmem:[%s12294_s29 + $0x644] sm:$0xf]  ;;  %v5816_v4 = vor.u32 %v7801_v59, %v5813_v60  ;;  %v5771_v40 = vld [vmem:[%s12294_s29 + $0x4e8] sm:$0xf]  ;;  %v7792_v41 = vld [vmem:[%s12294_s29 + $0x4f4] sm:$0xf0]  ;;  %v5644_v48 = vor.u32 %v7760_v39, %v5643_v35 }
  0x6c   :  { %1576 = vmatpush.bf16.msra.mxu3 %v5656_v0  ;;  %1538 = vmatmul.bf16.vlgmr.msra.gmra.mxu0 %v8717_v25  ;;  %v5179_v0 = vld [vmem:[%s12294_s29 + $0x48] sm:$0xf]  ;;  %v5944_v5 = vor.u32 %v7833_v61, %v5941_v63  ;;  %v5772_v49 = vor.u32 %v7792_v41, %v5771_v40  ;;  %v7724_v51 = vld [vmem:[%s12294_s29 + $0x2d4] sm:$0xf0] }
  0x6d   :  { %1582 = vmatpush.bf16.msrb.mxu0 %v5896_v1  ;;  %1551 = vmatmul.bf16.vlgmr.msra.gmra.mxu1 %v8678_v8  ;;  %v7644_v1 = vld [vmem:[%s12294_s29 + $0x54] sm:$0xf0]  ;;  %v5627_v52 = vld [vmem:[%s12294_s29 + $0x3c8] sm:$0xf] }
  0x6e   :  { %1595 = vmatpush.bf16.msrb.mxu1 %v6024_v2  ;;  %1564 = vmatmul.bf16.vlgmr.msra.gmra.mxu2 %v8694_v15  ;;  %v5307_v2 = vld [vmem:[%s12294_s29 + $0x148] sm:$0xf]  ;;  %v5180_v6 = vor.u32 %v7644_v1, %v5179_v0  ;;  %v7756_v54 = vld [vmem:[%s12294_s29 + $0x3d4] sm:$0xf0] }
  0x6f   :  { %1608 = vmatpush.bf16.msrb.mxu2 %v5260_v3  ;;  %1577 = vmatmul.bf16.vlgmr.msra.gmra.mxu3 %v8866_v36  ;;  %v7676_v3 = vld [vmem:[%s12294_s29 + $0x154] sm:$0xf0]  ;;  %v5755_v55 = vld [vmem:[%s12294_s29 + $0x4c8] sm:$0xf]  ;;  %v5628_v60 = vor.u32 %v7756_v54, %v5627_v52 }
  0x70   :  { %1621 = vmatpush.bf16.msrb.mxu3 %v5388_v7  ;;  %v7797_v7 = vld [vmem:[%s12294_s29 + $0x524] sm:$0xf]  ;;  %v5308_v12 = vor.u32 %v7676_v3, %v5307_v2  ;;  %v7720_v63 = vld [vmem:[%s12294_s29 + $0x2b4] sm:$0xf0]  ;;  %v5611_v0 = vld [vmem:[%s12294_s29 + $0x3a8] sm:$0xf] }
  0x71   :  { %1583 = vmatpush.bf16.msrb.mxu0 %v5880_v16  ;;  %v7640_v16 = vld [vmem:[%s12294_s29 + $0x34] sm:$0xf0]  ;;  %v5800_v19 = vor.u32 %v7797_v7, %v5797_v10  ;;  %v5739_v3 = vld [vmem:[%s12294_s29 + $0x4a8] sm:$0xf] }
  0x72   :  { %1596 = vmatpush.bf16.msrb.mxu1 %v6008_v17  ;;  %v5291_v17 = vld [vmem:[%s12294_s29 + $0x128] sm:$0xf]  ;;  %v5164_v23 = vor.u32 %v7640_v16, %v5163_v14  ;;  %v7752_v2 = vld [vmem:[%s12294_s29 + $0x3b4] sm:$0xf0] }
  0x73   :  { %1609 = vmatpush.bf16.msrb.mxu2 %v5244_v18  ;;  %v7672_v18 = vld [vmem:[%s12294_s29 + $0x134] sm:$0xf0]  ;;  %v5612_v10 = vor.u32 %v7752_v2, %v5611_v0  ;;  %v5595_v14 = vld [vmem:[%s12294_s29 + $0x388] sm:$0xf] }
  0x74   :  { %1622 = vmatpush.bf16.msrb.mxu3 %v5372_v22  ;;  %v5928_v22 = vor.u32 %v7829_v11, %v5925_v13  ;;  %v5292_v28 = vor.u32 %v7672_v18, %v5291_v17  ;;  %v7716_v13 = vld [vmem:[%s12294_s29 + $0x294] sm:$0xf0]  ;;  %v5723_v18 = vld [vmem:[%s12294_s29 + $0x488] sm:$0xf] }
  0x75   :  { %1584 = vmatpush.bf16.msrb.mxu0 %v5864_v29  ;;  %v7636_v29 = vld [vmem:[%s12294_s29 + $0x14] sm:$0xf0]  ;;  %v5451_v26 = vld [vmem:[%s12294_s29 + $0x268] sm:$0xf] }
  0x76   :  { %1597 = vmatpush.bf16.msrb.mxu1 %v5992_v30  ;;  %v5275_v30 = vld [vmem:[%s12294_s29 + $0x108] sm:$0xf]  ;;  %v5148_v43 = vor.u32 %v7636_v29, %v5147_v27  ;;  %v7748_v17 = vld [vmem:[%s12294_s29 + $0x394] sm:$0xf0] }
  0x77   :  { %1610 = vmatpush.bf16.msrb.mxu2 %v5228_v31  ;;  %v7668_v31 = vld [vmem:[%s12294_s29 + $0x114] sm:$0xf0]  ;;  %v5835_v34 = vld [vmem:[%s12294_s29 + $0x568] sm:$0xf] }
  0x78   :  { %1623 = vmatpush.bf16.msrb.mxu3 %v5356_v38  ;;  %v5784_v38 = vor.u32 %v7793_v20, %v5781_v21  ;;  %v5851_v20 = vld [vmem:[%s12294_s29 + $0x588] sm:$0xf]  ;;  %v7812_v21 = vld [vmem:[%s12294_s29 + $0x594] sm:$0xf0] }
  0x79   :  { %1585 = vmatpush.bf16.msrb.mxu0 %v5848_v44  ;;  %v5899_v44 = vld [vmem:[%s12294_s29 + $0x5e8] sm:$0xf]  ;;  %v7712_v27 = vld [vmem:[%s12294_s29 + $0x274] sm:$0xf0]  ;;  %v5852_v29 = vor.u32 %v7812_v21, %v5851_v20 }
  0x7a   :  { %1598 = vmatpush.bf16.msrb.mxu1 %v5976_v45  ;;  %v7824_v45 = vld [vmem:[%s12294_s29 + $0x5f4] sm:$0xf0]  ;;  %v5435_v41 = vld [vmem:[%s12294_s29 + $0x248] sm:$0xf] }
  0x7b   :  { %1611 = vmatpush.bf16.msrb.mxu2 %v5212_v46  ;;  %v5276_v46 = vor.u32 %v7668_v31, %v5275_v30  ;;  %v5900_v53 = vor.u32 %v7824_v45, %v5899_v44  ;;  %v7744_v30 = vld [vmem:[%s12294_s29 + $0x374] sm:$0xf0]  ;;  %v5707_v31 = vld [vmem:[%s12294_s29 + $0x468] sm:$0xf] }
  0x7c   :  { %1624 = vmatpush.bf16.msrb.mxu3 %v5340_v50  ;;  %v5499_v50 = vld [vmem:[%s12294_s29 + $0x2c8] sm:$0xf]  ;;  %v7776_v32 = vld [vmem:[%s12294_s29 + $0x474] sm:$0xf0] }
  0x7d   :  { %1586 = vmatpush.bf16.msrb.mxu0 %v5832_v56  ;;  %v7788_v56 = vld [vmem:[%s12294_s29 + $0x4d4] sm:$0xf0]  ;;  %v5500_v59 = vor.u32 %v7724_v51, %v5499_v50  ;;  %v5708_v40 = vor.u32 %v7776_v32, %v5707_v31  ;;  %v7658_v31 = vld [vmem:[%s12294_s29 + $0xcc] sm:$0xf] }
  0x7e   :  { %1599 = vmatpush.bf16.msrb.mxu1 %v5960_v57  ;;  %v5883_v57 = vld [vmem:[%s12294_s29 + $0x5c8] sm:$0xf]  ;;  %v5756_v61 = vor.u32 %v7788_v56, %v5755_v55  ;;  %v7808_v35 = vld [vmem:[%s12294_s29 + $0x574] sm:$0xf0] }
  0x7f   :  { %1612 = vmatpush.bf16.msrb.mxu2 %v5196_v58  ;;  %v7820_v58 = vld [vmem:[%s12294_s29 + $0x5d4] sm:$0xf0]  ;;  %v5836_v44 = vor.u32 %v7808_v35, %v5835_v34  ;;  %v5547_v55 = vld [vmem:[%s12294_s29 + $0x328] sm:$0xf]  ;;  %v5245_v34 = vld [vmem:[%s12294_s29 + $0xd8] sm:$0xf0] }
  0x80   :  { %1625 = vmatpush.bf16.msrb.mxu3 %v5324_v62  ;;  %v5483_v62 = vld [vmem:[%s12294_s29 + $0x2a8] sm:$0xf]  ;;  %v5884_v1 = vor.u32 %v7820_v58, %v5883_v57  ;;  %v7740_v45 = vld [vmem:[%s12294_s29 + $0x354] sm:$0xf0]  ;;  %v7690_v35 = vld [vmem:[%s12294_s29 + $0x1cc] sm:$0xf] }
  0x81   :  { %1587 = vmatpush.bf16.msrb.mxu0 %v5816_v4  ;;  %v7784_v4 = vld [vmem:[%s12294_s29 + $0x4b4] sm:$0xf0]  ;;  %v5484_v7 = vor.u32 %v7720_v63, %v5483_v62  ;;  %v5675_v58 = vld [vmem:[%s12294_s29 + $0x428] sm:$0xf] }
  0x82   :  { %1600 = vmatpush.bf16.msrb.mxu1 %v5944_v5  ;;  %v5867_v5 = vld [vmem:[%s12294_s29 + $0x5a8] sm:$0xf]  ;;  %v5740_v11 = vor.u32 %v7784_v4, %v5739_v3  ;;  %v7704_v54 = vld [vmem:[%s12294_s29 + $0x234] sm:$0xf0] }
  0x83   :  { %1613 = vmatpush.bf16.msrb.mxu2 %v5180_v6  ;;  %v7816_v6 = vld [vmem:[%s12294_s29 + $0x5b4] sm:$0xf0]  ;;  %v5403_v63 = vld [vmem:[%s12294_s29 + $0x208] sm:$0xf] }
  0x84   :  { %1626 = vmatpush.bf16.msrb.mxu3 %v5308_v12  ;;  %v5467_v12 = vld [vmem:[%s12294_s29 + $0x288] sm:$0xf]  ;;  %v5868_v16 = vor.u32 %v7816_v6, %v5867_v5  ;;  %v7736_v57 = vld [vmem:[%s12294_s29 + $0x334] sm:$0xf0] }
  0x85   :  { %1588 = vmatpush.bf16.msrb.mxu0 %v5800_v19  ;;  %v7780_v19 = vld [vmem:[%s12294_s29 + $0x494] sm:$0xf0]  ;;  %v5531_v3 = vld [vmem:[%s12294_s29 + $0x308] sm:$0xf] }
  0x86   :  { %1601 = vmatpush.bf16.msrb.mxu1 %v5928_v22  ;;  %v5468_v22 = vor.u32 %v7716_v13, %v5467_v12  ;;  %v5724_v24 = vor.u32 %v7780_v19, %v5723_v18  ;;  %v7700_v0 = vld [vmem:[%s12294_s29 + $0x214] sm:$0xf0]  ;;  %v5659_v5 = vld [vmem:[%s12294_s29 + $0x408] sm:$0xf]  ;;  %v7694_v18 = vld [vmem:[%s12294_s29 + $0x1ec] sm:$0xf] }
  0x87   :  { %1614 = vmatpush.bf16.msrb.mxu2 %v5164_v23  ;;  %v5596_v23 = vor.u32 %v7748_v17, %v5595_v14  ;;  %v7732_v4 = vld [vmem:[%s12294_s29 + $0x314] sm:$0xf0]  ;;  %v6027_v12 = vld [vmem:[%s12294_s29 + $0x6e8] sm:$0xf]  ;;  %v7662_v14 = vld [vmem:[%s12294_s29 + $0xec] sm:$0xf] }
  0x88   :  { %1627 = vmatpush.bf16.msrb.mxu3 %v5292_v28  ;;  %v5579_v28 = vld [vmem:[%s12294_s29 + $0x368] sm:$0xf]  ;;  %v7856_v13 = vld [vmem:[%s12294_s29 + $0x6f4] sm:$0xf0]  ;;  %v5261_v17 = vld [vmem:[%s12294_s29 + $0xf8] sm:$0xf0]  ;;  %v5532_v20 = vor.u32 %v7732_v4, %v5531_v3 }
  0x89   :  { %1589 = vmatpush.bf16.msrb.mxu0 %v5784_v38  ;;  %v5452_v38 = vor.u32 %v7712_v27, %v5451_v26  ;;  %v5580_v39 = vor.u32 %v7744_v30, %v5579_v28  ;;  %v5389_v19 = vld [vmem:[%s12294_s29 + $0x1f8] sm:$0xf0]  ;;  %v6028_v26 = vor.u32 %v7856_v13, %v6027_v12  ;;  %v5264_v27 = vor.u32 %v7662_v14, %v5261_v17  ;;  %v7852_v30 = vld [vmem:[%s12294_s29 + $0x6d4] sm:$0xf0]  ;;  %v5963_v4 = vld [vmem:[%s12294_s29 + $0x668] sm:$0xf] }
  0x8a   :  { %1602 = vmatpush.bf16.msrb.mxu1 %v5912_v42  ;;  %v7708_v42 = vld [vmem:[%s12294_s29 + $0x254] sm:$0xf0]  ;;  %v5392_v28 = vor.u32 %v7694_v18, %v5389_v19  ;;  %v5325_v12 = vld [vmem:[%s12294_s29 + $0x178] sm:$0xf0]  ;;  %v7710_v13 = vld [vmem:[%s12294_s29 + $0x26c] sm:$0xf] }
  0x8b   :  { %1615 = vmatpush.bf16.msrb.mxu2 %v5148_v43  ;;  %v5563_v43 = vld [vmem:[%s12294_s29 + $0x348] sm:$0xf]  ;;  %v5436_v50 = vor.u32 %v7708_v42, %v5435_v41  ;;  %v5248_v42 = vor.u32 %v7658_v31, %v5245_v34  ;;  %v5453_v14 = vld [vmem:[%s12294_s29 + $0x278] sm:$0xf0] }
  0x8c   :  { %1628 = vmatpush.bf16.msrb.mxu3 %v5276_v46  ;;  %1590 = vmatmul.bf16.vlgmr.msrb.gmra.mxu0 %v8868_v37  ;;  %v5691_v46 = vld [vmem:[%s12294_s29 + $0x448] sm:$0xf]  ;;  %v5564_v51 = vor.u32 %v7740_v45, %v5563_v43  ;;  %v7848_v45 = vld [vmem:[%s12294_s29 + $0x6b4] sm:$0xf0] }
  0x8d   :  { %1634 = vmatpush.bf16.msra.mxu0 %v5516_v47  ;;  %1603 = vmatmul.bf16.vlgmr.msrb.gmra.mxu1 %v8858_v33  ;;  %v7772_v47 = vld [vmem:[%s12294_s29 + $0x454] sm:$0xf0] }
  0x8e   :  { %1647 = vmatpush.bf16.msra.mxu1 %v5644_v48  ;;  %1616 = vmatmul.bf16.vlgmr.msrb.gmra.mxu2 %v8680_v9  ;;  %v5819_v48 = vld [vmem:[%s12294_s29 + $0x548] sm:$0xf]  ;;  %v5692_v52 = vor.u32 %v7772_v47, %v5691_v46  ;;  %v7654_v46 = vld [vmem:[%s12294_s29 + $0xac] sm:$0xf] }
  0x8f   :  { %1660 = vmatpush.bf16.msra.mxu2 %v5772_v49  ;;  %1629 = vmatmul.bf16.vlgmr.msrb.gmra.mxu3 %v8717_v25  ;;  %v7804_v49 = vld [vmem:[%s12294_s29 + $0x554] sm:$0xf0] }
  0x90   :  { %1673 = vmatpush.bf16.msra.mxu3 %v5900_v53  ;;  %v5419_v53 = vld [vmem:[%s12294_s29 + $0x228] sm:$0xf]  ;;  %v5820_v56 = vor.u32 %v7804_v49, %v5819_v48  ;;  %v5229_v48 = vld [vmem:[%s12294_s29 + $0xb8] sm:$0xf0]  ;;  %v7686_v49 = vld [vmem:[%s12294_s29 + $0x1ac] sm:$0xf] }
  0x91   :  { %1635 = vmatpush.bf16.msra.mxu0 %v5500_v59  ;;  %v7768_v59 = vld [vmem:[%s12294_s29 + $0x434] sm:$0xf0]  ;;  %v5420_v62 = vor.u32 %v7704_v54, %v5419_v53  ;;  %v5232_v54 = vor.u32 %v7654_v46, %v5229_v48  ;;  %v5421_v46 = vld [vmem:[%s12294_s29 + $0x238] sm:$0xf0] }
  0x92   :  { %1648 = vmatpush.bf16.msra.mxu1 %v5628_v60  ;;  %v5803_v60 = vld [vmem:[%s12294_s29 + $0x528] sm:$0xf]  ;;  %v5676_v2 = vor.u32 %v7768_v59, %v5675_v58  ;;  %v7650_v58 = vld [vmem:[%s12294_s29 + $0x8c] sm:$0xf] }
  0x93   :  { %1661 = vmatpush.bf16.msra.mxu2 %v5756_v61  ;;  %v7800_v61 = vld [vmem:[%s12294_s29 + $0x534] sm:$0xf0] }
  0x94   :  { %1674 = vmatpush.bf16.msra.mxu3 %v5884_v1  ;;  %v5548_v1 = vor.u32 %v7736_v57, %v5547_v55  ;;  %v5804_v6 = vor.u32 %v7800_v61, %v5803_v60  ;;  %v7844_v57 = vld [vmem:[%s12294_s29 + $0x694] sm:$0xf0]  ;;  %v5213_v60 = vld [vmem:[%s12294_s29 + $0x98] sm:$0xf0]  ;;  %v7682_v61 = vld [vmem:[%s12294_s29 + $0x18c] sm:$0xf] }
  0x95   :  { %1636 = vmatpush.bf16.msra.mxu0 %v5484_v7  ;;  %v7764_v7 = vld [vmem:[%s12294_s29 + $0x414] sm:$0xf0] }
  0x96   :  { %1649 = vmatpush.bf16.msra.mxu1 %v5612_v10  ;;  %v5787_v10 = vld [vmem:[%s12294_s29 + $0x508] sm:$0xf]  ;;  %v5660_v21 = vor.u32 %v7764_v7, %v5659_v5  ;;  %v7840_v5 = vld [vmem:[%s12294_s29 + $0x674] sm:$0xf0] }
  0x97   :  { %1662 = vmatpush.bf16.msra.mxu2 %v5740_v11  ;;  %v7796_v11 = vld [vmem:[%s12294_s29 + $0x514] sm:$0xf0] }
  0x98   :  { %1675 = vmatpush.bf16.msra.mxu3 %v5868_v16  ;;  %v5404_v16 = vor.u32 %v7700_v0, %v5403_v63  ;;  %v7714_v63 = vld [vmem:[%s12294_s29 + $0x28c] sm:$0xf]  ;;  %v5469_v0 = vld [vmem:[%s12294_s29 + $0x298] sm:$0xf0] }
  0x99   :  { %1637 = vmatpush.bf16.msra.mxu0 %v5468_v22  ;;  %v7726_v22 = vld [vmem:[%s12294_s29 + $0x2ec] sm:$0xf]  ;;  %v5472_v7 = vor.u32 %v7714_v63, %v5469_v0 }
  0x9a   :  { %1650 = vmatpush.bf16.msra.mxu1 %v5596_v23  ;;  %v5517_v23 = vld [vmem:[%s12294_s29 + $0x2f8] sm:$0xf0]  ;;  %v7790_v63 = vld [vmem:[%s12294_s29 + $0x4ec] sm:$0xf] }
  0x9b   :  { %1663 = vmatpush.bf16.msra.mxu2 %v5724_v24  ;;  %v5788_v24 = vor.u32 %v7796_v11, %v5787_v10  ;;  %v5520_v32 = vor.u32 %v7726_v22, %v5517_v23  ;;  %v5197_v10 = vld [vmem:[%s12294_s29 + $0x78] sm:$0xf0]  ;;  %v7678_v11 = vld [vmem:[%s12294_s29 + $0x16c] sm:$0xf]  ;;  %v5456_v23 = vor.u32 %v7710_v13, %v5453_v14 }
  0x9c   :  { %1676 = vmatpush.bf16.msra.mxu3 %v5852_v29  ;;  %v6011_v29 = vld [vmem:[%s12294_s29 + $0x6c8] sm:$0xf]  ;;  %v5328_v19 = vor.u32 %v7678_v11, %v5325_v12  ;;  %v7642_v22 = vld [vmem:[%s12294_s29 + $0x4c] sm:$0xf] }
  0x9d   :  { %1638 = vmatpush.bf16.msra.mxu0 %v5452_v38  ;;  %v5373_v38 = vld [vmem:[%s12294_s29 + $0x1d8] sm:$0xf0]  ;;  %v6012_v41 = vor.u32 %v7852_v30, %v6011_v29 }
  0x9e   :  { %1651 = vmatpush.bf16.msra.mxu1 %v5580_v39  ;;  %v7722_v39 = vld [vmem:[%s12294_s29 + $0x2cc] sm:$0xf]  ;;  %v5376_v43 = vor.u32 %v7690_v35, %v5373_v38  ;;  %v5437_v29 = vld [vmem:[%s12294_s29 + $0x258] sm:$0xf0]  ;;  %v5931_v35 = vld [vmem:[%s12294_s29 + $0x628] sm:$0xf] }
  0x9f   :  { %1664 = vmatpush.bf16.msra.mxu2 %v5708_v40  ;;  %v5501_v40 = vld [vmem:[%s12294_s29 + $0x2d8] sm:$0xf0]  ;;  %v7832_v38 = vld [vmem:[%s12294_s29 + $0x634] sm:$0xf0] }
  0xa0   :  { %1677 = vmatpush.bf16.msra.mxu3 %v5836_v44  ;;  %v5995_v44 = vld [vmem:[%s12294_s29 + $0x6a8] sm:$0xf]  ;;  %v5504_v47 = vor.u32 %v7722_v39, %v5501_v40  ;;  %v7638_v39 = vld [vmem:[%s12294_s29 + $0x2c] sm:$0xf]  ;;  %v5932_v48 = vor.u32 %v7832_v38, %v5931_v35  ;;  %v5613_v38 = vld [vmem:[%s12294_s29 + $0x3b8] sm:$0xf0] }
  0xa1   :  { %1639 = vmatpush.bf16.msra.mxu0 %v5436_v50  ;;  %v5357_v50 = vld [vmem:[%s12294_s29 + $0x1b8] sm:$0xf0]  ;;  %v5996_v53 = vor.u32 %v7848_v45, %v5995_v44  ;;  %v7702_v45 = vld [vmem:[%s12294_s29 + $0x22c] sm:$0xf] }
  0xa2   :  { %1652 = vmatpush.bf16.msra.mxu1 %v5564_v51  ;;  %v7718_v51 = vld [vmem:[%s12294_s29 + $0x2ac] sm:$0xf]  ;;  %v5360_v55 = vor.u32 %v7686_v49, %v5357_v50  ;;  %v5915_v49 = vld [vmem:[%s12294_s29 + $0x608] sm:$0xf]  ;;  %v7828_v50 = vld [vmem:[%s12294_s29 + $0x614] sm:$0xf0] }
  0xa3   :  { %1665 = vmatpush.bf16.msra.mxu2 %v5692_v52  ;;  %v5485_v52 = vld [vmem:[%s12294_s29 + $0x2b8] sm:$0xf0]  ;;  %v5916_v0 = vor.u32 %v7828_v50, %v5915_v49  ;;  %v7750_v35 = vld [vmem:[%s12294_s29 + $0x3ac] sm:$0xf] }
  0xa4   :  { %1678 = vmatpush.bf16.msra.mxu3 %v5820_v56  ;;  %v5979_v56 = vld [vmem:[%s12294_s29 + $0x688] sm:$0xf]  ;;  %v5488_v59 = vor.u32 %v7718_v51, %v5485_v52  ;;  %v5616_v49 = vor.u32 %v7750_v35, %v5613_v38  ;;  %v7734_v35 = vld [vmem:[%s12294_s29 + $0x32c] sm:$0xf]  ;;  %v5549_v38 = vld [vmem:[%s12294_s29 + $0x338] sm:$0xf0] }
  0xa5   :  { %1640 = vmatpush.bf16.msra.mxu0 %v5420_v62  ;;  %v5341_v62 = vld [vmem:[%s12294_s29 + $0x198] sm:$0xf0] }
  0xa6   :  { %1653 = vmatpush.bf16.msra.mxu1 %v5548_v1  ;;  %v5980_v1 = vor.u32 %v7844_v57, %v5979_v56  ;;  %v5344_v3 = vor.u32 %v7682_v61, %v5341_v62  ;;  %v7666_v56 = vld [vmem:[%s12294_s29 + $0x10c] sm:$0xf]  ;;  %v5424_v57 = vor.u32 %v7702_v45, %v5421_v46  ;;  %v5645_v62 = vld [vmem:[%s12294_s29 + $0x3f8] sm:$0xf0] }
  0xa7   :  { %1666 = vmatpush.bf16.msra.mxu2 %v5676_v2  ;;  %v5216_v2 = vor.u32 %v7650_v58, %v5213_v60  ;;  %v5277_v58 = vld [vmem:[%s12294_s29 + $0x118] sm:$0xf0]  ;;  %v7758_v61 = vld [vmem:[%s12294_s29 + $0x3ec] sm:$0xf] }
  0xa8   :  { %1679 = vmatpush.bf16.msra.mxu3 %v5804_v6  ;;  %v7646_v6 = vld [vmem:[%s12294_s29 + $0x6c] sm:$0xf]  ;;  %v5405_v60 = vld [vmem:[%s12294_s29 + $0x218] sm:$0xf0]  ;;  %v5648_v12 = vor.u32 %v7758_v61, %v5645_v62 }
  0xa9   :  { %1641 = vmatpush.bf16.msra.mxu0 %v5404_v16  ;;  %v5964_v16 = vor.u32 %v7840_v5, %v5963_v4  ;;  %v5200_v18 = vor.u32 %v7646_v6, %v5197_v10  ;;  %v5280_v6 = vor.u32 %v7666_v56, %v5277_v58  ;;  %v6029_v10 = vld [vmem:[%s12294_s29 + $0x6f8] sm:$0xf0]  ;;  %v7846_v45 = vld [vmem:[%s12294_s29 + $0x6ac] sm:$0xf] }
  0xaa   :  { %1654 = vmatpush.bf16.msra.mxu1 %v5532_v20  ;;  %v5947_v20 = vld [vmem:[%s12294_s29 + $0x648] sm:$0xf]  ;;  %v9560_v31 = vpop.f32.mrf.mxu1  ;;  %v5997_v46 = vld [vmem:[%s12294_s29 + $0x6b8] sm:$0xf0]  ;;  %v7842_v56 = vld [vmem:[%s12294_s29 + $0x68c] sm:$0xf] }
  0xab   :  { %1667 = vmatpush.bf16.msra.mxu2 %v5660_v21  ;;  %v7836_v21 = vld [vmem:[%s12294_s29 + $0x654] sm:$0xf0] }
  0xac   :  { %1680 = vmatpush.bf16.msra.mxu3 %v5788_v24  ;;  %1642 = vmatmul.bf16.vlgmr.msra.gmra.mxu0 %v8678_v8  ;;  %v5181_v24 = vld [vmem:[%s12294_s29 + $0x58] sm:$0xf0]  ;;  %v5948_v30 = vor.u32 %v7836_v21, %v5947_v20  ;;  %v7786_v20 = vld [vmem:[%s12294_s29 + $0x4cc] sm:$0xf] }
  0xad   :  { %1686 = vmatpush.bf16.msrb.mxu0 %v6028_v26  ;;  %1655 = vmatmul.bf16.vlgmr.msra.gmra.mxu1 %v8694_v15  ;;  %v7674_v26 = vld [vmem:[%s12294_s29 + $0x14c] sm:$0xf] }
  0xae   :  { %1699 = vmatpush.bf16.msrb.mxu1 %v5264_v27  ;;  %1668 = vmatmul.bf16.vlgmr.msra.gmra.mxu2 %v8866_v36  ;;  %v5309_v27 = vld [vmem:[%s12294_s29 + $0x158] sm:$0xf0] }
  0xaf   :  { %1712 = vmatpush.bf16.msrb.mxu2 %v5392_v28  ;;  %1681 = vmatmul.bf16.vlgmr.msra.gmra.mxu3 %v8868_v37  ;;  %v7706_v28 = vld [vmem:[%s12294_s29 + $0x24c] sm:$0xf]  ;;  %v5312_v34 = vor.u32 %v7674_v26, %v5309_v27  ;;  %v5885_v26 = vld [vmem:[%s12294_s29 + $0x5d8] sm:$0xf0] }
  0xb0   :  { %1725 = vmatpush.bf16.msrb.mxu3 %v5520_v32  ;;  %v5184_v32 = vor.u32 %v7642_v22, %v5181_v24  ;;  %v5440_v40 = vor.u32 %v7706_v28, %v5437_v29  ;;  %v7818_v24 = vld [vmem:[%s12294_s29 + $0x5cc] sm:$0xf]  ;;  %v6013_v28 = vld [vmem:[%s12294_s29 + $0x6d8] sm:$0xf0]  ;;  %v9665_v29 = vld [vmem:[%s12296_s26] sm:$0xf] }
  0xb1   :  { %1687 = vmatpush.bf16.msrb.mxu0 %v6012_v41  ;;  %v5165_v41 = vld [vmem:[%s12294_s29 + $0x38] sm:$0xf0]  ;;  %v7850_v27 = vld [vmem:[%s12294_s29 + $0x6cc] sm:$0xf] }
  0xb2   :  { %1700 = vmatpush.bf16.msrb.mxu1 %v5248_v42  ;;  %v7670_v42 = vld [vmem:[%s12294_s29 + $0x12c] sm:$0xf]  ;;  %v5168_v52 = vor.u32 %v7638_v39, %v5165_v41  ;;  %v1450_v4 = vpop.f32.mrf.mxu1  ;;  %v5741_v41 = vld [vmem:[%s12294_s29 + $0x4b8] sm:$0xf0] }
  0xb3   :  { %1713 = vmatpush.bf16.msrb.mxu2 %v5376_v43  ;;  %v5293_v43 = vld [vmem:[%s12294_s29 + $0x138] sm:$0xf0]  ;;  %v7782_v39 = vld [vmem:[%s12294_s29 + $0x4ac] sm:$0xf] }
  0xb4   :  { %1726 = vmatpush.bf16.msrb.mxu3 %v5504_v47  ;;  %v9534_v17 = vpop.f32.mrf.mxu0  ;;  %v9588_v47 = vpop.f32.mrf.mxu3  ;;  %v5744_v50 = vor.u32 %v7782_v39, %v5741_v41  ;;  %v5709_v4 = vld [vmem:[%s12294_s29 + $0x478] sm:$0xf0]  ;;  %v7766_v39 = vld [vmem:[%s12294_s29 + $0x42c] sm:$0xf] }
  0xb5   :  { %1688 = vmatpush.bf16.msrb.mxu0 %v5996_v53  ;;  %v5296_v53 = vor.u32 %v7670_v42, %v5293_v43  ;;  %v7814_v42 = vld [vmem:[%s12294_s29 + $0x5ac] sm:$0xf]  ;;  %v5869_v43 = vld [vmem:[%s12294_s29 + $0x5b8] sm:$0xf0] }
  0xb6   :  { %1701 = vmatpush.bf16.msrb.mxu1 %v5232_v54  ;;  %v7634_v54 = vld [vmem:[%s12294_s29 + $0xc] sm:$0xf] }
  0xb7   :  { %1714 = vmatpush.bf16.msrb.mxu2 %v5360_v55  ;;  %v5149_v55 = vld [vmem:[%s12294_s29 + $0x18] sm:$0xf0] }
  0xb8   :  { %1727 = vmatpush.bf16.msrb.mxu3 %v5488_v59  ;;  %v7698_v59 = vld [vmem:[%s12294_s29 + $0x20c] sm:$0xf]  ;;  %v5152_v5 = vor.u32 %v7634_v54, %v5149_v55  ;;  %v5853_v55 = vld [vmem:[%s12294_s29 + $0x598] sm:$0xf0] }
  0xb9   :  { %1689 = vmatpush.bf16.msrb.mxu0 %v5980_v1  ;;  %v9580_v44 = vpop.f32.mrf.mxu2  ;;  %v5773_v1 = vld [vmem:[%s12294_s29 + $0x4f8] sm:$0xf0]  ;;  %v5408_v11 = vor.u32 %v7698_v59, %v5405_v60  ;;  %v7810_v54 = vld [vmem:[%s12294_s29 + $0x58c] sm:$0xf] }
  0xba   :  { %1702 = vmatpush.bf16.msrb.mxu1 %v5216_v2  ;;  %v7822_v2 = vld [vmem:[%s12294_s29 + $0x5ec] sm:$0xf]  ;;  %v5776_v14 = vor.u32 %v7790_v63, %v5773_v1  ;;  %v5856_v62 = vor.u32 %v7810_v54, %v5853_v55 }
  0xbb   :  { %1715 = vmatpush.bf16.msrb.mxu2 %v5344_v3  ;;  %v5901_v3 = vld [vmem:[%s12294_s29 + $0x5f8] sm:$0xf0]  ;;  %v7742_v63 = vld [vmem:[%s12294_s29 + $0x36c] sm:$0xf] }
  0xbc   :  { %1728 = vmatpush.bf16.msrb.mxu3 %v5472_v7  ;;  %v1437_v51 = vpop.f32.mrf.mxu0  ;;  %v7854_v7 = vld [vmem:[%s12294_s29 + $0x6ec] sm:$0xf]  ;;  %v1476_v21 = vpop.f32.mrf.mxu3 }
  0xbd   :  { %1690 = vmatpush.bf16.msrb.mxu0 %v5964_v16  ;;  %v5904_v16 = vor.u32 %v7822_v2, %v5901_v3  ;;  %v6032_v22 = vor.u32 %v7854_v7, %v6029_v10  ;;  %v7746_v51 = vld [vmem:[%s12294_s29 + $0x38c] sm:$0xf]  ;;  %v5693_v21 = vld [vmem:[%s12294_s29 + $0x458] sm:$0xf0] }
  0xbe   :  { %1703 = vmatpush.bf16.msrb.mxu1 %v5200_v18  ;;  %v7754_v18 = vld [vmem:[%s12294_s29 + $0x3cc] sm:$0xf] }
  0xbf   :  { %1716 = vmatpush.bf16.msrb.mxu2 %v5328_v19  ;;  %v5629_v19 = vld [vmem:[%s12294_s29 + $0x3d8] sm:$0xf0]  ;;  %v7774_v1 = vld [vmem:[%s12294_s29 + $0x46c] sm:$0xf] }
  0xc0   :  { %1729 = vmatpush.bf16.msrb.mxu3 %v5456_v23  ;;  %v5757_v23 = vld [vmem:[%s12294_s29 + $0x4d8] sm:$0xf0]  ;;  %v7838_v7 = vld [vmem:[%s12294_s29 + $0x66c] sm:$0xf] }
  0xc1   :  { %1691 = vmatpush.bf16.msrb.mxu0 %v5948_v30  ;;  %v1463_v13 = vpop.f32.mrf.mxu2  ;;  %v5632_v30 = vor.u32 %v7754_v18, %v5629_v19  ;;  %v7794_v55 = vld [vmem:[%s12294_s29 + $0x50c] sm:$0xf] }
  0xc2   :  { %1704 = vmatpush.bf16.msrb.mxu1 %v5184_v32  ;;  %v5760_v32 = vor.u32 %v7786_v20, %v5757_v23  ;;  %v7738_v13 = vld [vmem:[%s12294_s29 + $0x34c] sm:$0xf]  ;;  %v5821_v23 = vld [vmem:[%s12294_s29 + $0x558] sm:$0xf0] }
  0xc3   :  { %1717 = vmatpush.bf16.msrb.mxu2 %v5312_v34  ;;  %v5888_v34 = vor.u32 %v7818_v24, %v5885_v26  ;;  %v7834_v24 = vld [vmem:[%s12294_s29 + $0x64c] sm:$0xf] }
  0xc4   :  { %1730 = vmatpush.bf16.msrb.mxu3 %v5440_v40  ;;  %v6016_v40 = vor.u32 %v7850_v27, %v6013_v28 }
  0xc5   :  { %1692 = vmatpush.bf16.msrb.mxu0 %v5932_v48  ;;  %v298_v48 = vperm.slane %v9665_v29, 0 }
  0xc6   :  { %1705 = vmatpush.bf16.msrb.mxu1 %v5168_v52  ;;  %v5597_v52 = vld [vmem:[%s12294_s29 + $0x398] sm:$0xf0] }
  0xc7   :  { %1718 = vmatpush.bf16.msrb.mxu2 %v5296_v53  ;;  %v6000_v53 = vor.u32 %v7846_v45, %v5997_v46  ;;  %v5600_v58 = vor.u32 %v7746_v51, %v5597_v52  ;;  %v1436_v2 = vadd.f32 %v9534_v17, %v298_v48  ;;  %v5965_v17 = vld [vmem:[%s12294_s29 + $0x678] sm:$0xf0]  ;;  %v7830_v46 = vld [vmem:[%s12294_s29 + $0x62c] sm:$0xf]  ;;  %v5552_v48 = vor.u32 %v7734_v35, %v5549_v38  ;;  %v7880_v35 = vld [vmem:[%s12273_s2 + $0xb4] sm:$0xf0] }
  0xc8   :  { %1731 = vmatpush.bf16.msrb.mxu3 %v5424_v57  ;;  %v5981_v57 = vld [vmem:[%s12294_s29 + $0x698] sm:$0xf0]  ;;  %v5968_v20 = vor.u32 %v7838_v7, %v5965_v17  ;;  %v7762_v52 = vld [vmem:[%s12294_s29 + $0x40c] sm:$0xf]  ;;  %v6083_v7 = vld [vmem:[%s12273_s2 + $0x60] sm:$0xf] }
  0xc9   :  { %1693 = vmatpush.bf16.msrb.mxu0 %v5916_v0  ;;  %v9720_v59 = vpop.f32.mrf.mxu0  ;;  %v5581_v0 = vld [vmem:[%s12294_s29 + $0x378] sm:$0xf0]  ;;  %v5984_v3 = vor.u32 %v7842_v56, %v5981_v57  ;;  %v1449_v19 = vadd.f32 %v9560_v31, %v1436_v2  ;;  %v7826_v57 = vld [vmem:[%s12294_s29 + $0x60c] sm:$0xf]  ;;  %v7870_v17 = vld [vmem:[%s12273_s2 + $0x64] sm:$0xf0] }
  0xca   :  { %1706 = vmatpush.bf16.msrb.mxu1 %v5152_v5  ;;  %v9722_v60 = vpop.f32.mrf.mxu1  ;;  %v7806_v5 = vld [vmem:[%s12294_s29 + $0x56c] sm:$0xf]  ;;  %v5584_v10 = vor.u32 %v7742_v63, %v5581_v0  ;;  %v5949_v31 = vld [vmem:[%s12294_s29 + $0x658] sm:$0xf0]  ;;  %v6155_v0 = vld [vmem:[%s12273_s2 + $0xf0] sm:$0xf] }
  0xcb   :  { %1719 = vmatpush.bf16.msrb.mxu2 %v5280_v6  ;;  %v5837_v6 = vld [vmem:[%s12294_s29 + $0x578] sm:$0xf0]  ;;  %v5952_v41 = vor.u32 %v7834_v24, %v5949_v31 }
  0xcc   :  { %1732 = vmatpush.bf16.msrb.mxu3 %v5408_v11  ;;  %1694 = vmatmul.bf16.vlgmr.msrb.gmra.mxu0 %v8858_v33  ;;  %v5712_v11 = vor.u32 %v7774_v1, %v5709_v4  ;;  %v5805_v45 = vld [vmem:[%s12294_s29 + $0x538] sm:$0xf0]  ;;  %v7888_v1 = vld [vmem:[%s12273_s2 + $0xf4] sm:$0xf0] }
  0xcd   :  { %1738 = vmatpush.bf16.msra.mxu0 %v5648_v12  ;;  %1707 = vmatmul.bf16.vlgmr.msrb.gmra.mxu1 %v8680_v9  ;;  %v5725_v9 = vld [vmem:[%s12294_s29 + $0x498] sm:$0xf0]  ;;  %v5840_v12 = vor.u32 %v7806_v5, %v5837_v6 }
  0xce   :  { %1751 = vmatpush.bf16.msra.mxu1 %v5776_v14  ;;  %1720 = vmatmul.bf16.vlgmr.msrb.gmra.mxu2 %v8717_v25  ;;  %v5872_v25 = vor.u32 %v7814_v42, %v5869_v43  ;;  %v5565_v14 = vld [vmem:[%s12294_s29 + $0x358] sm:$0xf0]  ;;  %v7798_v43 = vld [vmem:[%s12294_s29 + $0x52c] sm:$0xf] }
  0xcf   :  { %1764 = vmatpush.bf16.msra.mxu2 %v5904_v16  ;;  %1733 = vmatmul.bf16.vlgmr.msrb.gmra.mxu3 %v8678_v8  ;;  %v7778_v8 = vld [vmem:[%s12294_s29 + $0x48c] sm:$0xf]  ;;  %v5568_v27 = vor.u32 %v7738_v13, %v5565_v14  ;;  %v5677_v42 = vld [vmem:[%s12294_s29 + $0x438] sm:$0xf0]  ;;  %v6084_v13 = vor.u32 %v7870_v17, %v6083_v7  ;;  %v6075_v14 = vld [vmem:[%s12273_s2 + $0x50] sm:$0xf] }
  0xd0   :  { %1777 = vmatpush.bf16.msra.mxu3 %v6032_v22  ;;  %v5728_v61 = vor.u32 %v7778_v8, %v5725_v9  ;;  %v7770_v16 = vld [vmem:[%s12294_s29 + $0x44c] sm:$0xf]  ;;  %v5533_v51 = vld [vmem:[%s12294_s29 + $0x318] sm:$0xf0] }
  0xd1   :  { %1739 = vmatpush.bf16.msra.mxu0 %v5632_v30  ;;  %v9758_v18 = vpop.f32.mrf.mxu2  ;;  %v7802_v22 = vld [vmem:[%s12294_s29 + $0x54c] sm:$0xf]  ;;  %v1489_v28 = vpop.f32.mrf.mxu0  ;;  %v5661_v8 = vld [vmem:[%s12294_s29 + $0x418] sm:$0xf0] }
  0xd2   :  { %1752 = vmatpush.bf16.msra.mxu1 %v5760_v32  ;;  %v9776_v26 = vpop.f32.mrf.mxu3  ;;  %v1502_v30 = vpop.f32.mrf.mxu1  ;;  %v5696_v32 = vor.u32 %v7770_v16, %v5693_v21  ;;  %v5789_v56 = vld [vmem:[%s12294_s29 + $0x518] sm:$0xf0]  ;;  %v5664_v2 = vor.u32 %v7762_v52, %v5661_v8  ;;  %v7868_v16 = vld [vmem:[%s12273_s2 + $0x54] sm:$0xf0] }
  0xd3   :  { %1765 = vmatpush.bf16.msra.mxu2 %v5888_v34  ;;  %v5824_v34 = vor.u32 %v7802_v22, %v5821_v23  ;;  %v6076_v21 = vor.u32 %v7868_v16, %v6075_v14  ;;  %v6131_v23 = vld [vmem:[%s12273_s2 + $0xc0] sm:$0xf]  ;;  %v7864_v28 = vld [vmem:[%s12273_s2 + $0x34] sm:$0xf0] }
  0xd4   :  { %1778 = vmatpush.bf16.msra.mxu3 %v6016_v40  ;;  %v1462_v40 = vadd.f32 %v9580_v44, %v1449_v19  ;;  %v5933_v44 = vld [vmem:[%s12294_s29 + $0x638] sm:$0xf0] }
  0xd5   :  { %1740 = vmatpush.bf16.msra.mxu0 %v5616_v49  ;;  %v7730_v49 = vld [vmem:[%s12294_s29 + $0x30c] sm:$0xf]  ;;  %v5936_v54 = vor.u32 %v7830_v46, %v5933_v44  ;;  %v7878_v46 = vld [vmem:[%s12273_s2 + $0xa4] sm:$0xf0]  ;;  %v299_v44 = vperm.slane %v9665_v29, 1 }
  0xd6   :  { %1753 = vmatpush.bf16.msra.mxu1 %v5744_v50  ;;  %v5680_v50 = vor.u32 %v7766_v39, %v5677_v42  ;;  %v1475_v9 = vadd.f32 %v9588_v47, %v1462_v40  ;;  %v6091_v47 = vld [vmem:[%s12273_s2 + $0x70] sm:$0xf]  ;;  %v5536_v63 = vor.u32 %v7730_v49, %v5533_v51  ;;  %v6051_v39 = vld [vmem:[%s12273_s2 + $0x20] sm:$0xf]  ;;  %v7862_v40 = vld [vmem:[%s12273_s2 + $0x24] sm:$0xf0] }
  0xd7   :  { %1766 = vmatpush.bf16.msra.mxu2 %v5872_v25  ;;  %v5808_v25 = vor.u32 %v7798_v43, %v5805_v45  ;;  %v6115_v45 = vld [vmem:[%s12273_s2 + $0xa0] sm:$0xf] }
  0xd8   :  { %1779 = vmatpush.bf16.msra.mxu3 %v6000_v53  ;;  %v1488_v4 = vadd.f32 %v9720_v59, %v1475_v9  ;;  %v7886_v59 = vld [vmem:[%s12273_s2 + $0xe4] sm:$0xf0]  ;;  %v6116_v52 = vor.u32 %v7878_v46, %v6115_v45  ;;  %v7876_v9 = vld [vmem:[%s12273_s2 + $0x94] sm:$0xf0]  ;;  %v7863_v45 = vld [vmem:[%s12273_s2 + $0x34] sm:$0xf] }
  0xd9   :  { %1741 = vmatpush.bf16.msra.mxu0 %v5600_v58  ;;  %v1515_v53 = vpop.f32.mrf.mxu2  ;;  %v5917_v58 = vld [vmem:[%s12294_s29 + $0x618] sm:$0xf0] }
  0xda   :  { %1754 = vmatpush.bf16.msra.mxu1 %v5728_v61  ;;  %v7872_v61 = vld [vmem:[%s12273_s2 + $0x74] sm:$0xf0]  ;;  %v5920_v5 = vor.u32 %v7826_v57, %v5917_v58  ;;  %v6107_v53 = vld [vmem:[%s12273_s2 + $0x90] sm:$0xf]  ;;  %v7858_v58 = vld [vmem:[%s12273_s2 + $0x4] sm:$0xf0] }
  0xdb   :  { %1767 = vmatpush.bf16.msra.mxu2 %v5856_v62  ;;  %v1528_v62 = vpop.f32.mrf.mxu3  ;;  %v6092_v6 = vor.u32 %v7872_v61, %v6091_v47  ;;  %v7871_v47 = vld [vmem:[%s12273_s2 + $0x74] sm:$0xf]  ;;  %v6108_v61 = vor.u32 %v7876_v9, %v6107_v53  ;;  %v6061_v46 = vld [vmem:[%s12273_s2 + $0x38] sm:$0xf0]  ;;  %v6053_v53 = vld [vmem:[%s12273_s2 + $0x28] sm:$0xf0] }
  0xdc   :  { %1780 = vmatpush.bf16.msra.mxu3 %v5984_v3  ;;  %v5792_v3 = vor.u32 %v7794_v55, %v5789_v56  ;;  %v6035_v56 = vld [vmem:[%s12273_s2] sm:$0xf] }
  0xdd   :  { %1742 = vmatpush.bf16.msra.mxu0 %v5584_v10  ;;  %v6156_v10 = vor.u32 %v7888_v1, %v6155_v0  ;;  %v7874_v0 = vld [vmem:[%s12273_s2 + $0x84] sm:$0xf0] }
  0xde   :  { %1755 = vmatpush.bf16.msra.mxu1 %v5712_v11  ;;  %v6147_v11 = vld [vmem:[%s12273_s2 + $0xe0] sm:$0xf] }
  0xdf   :  { %1768 = vmatpush.bf16.msra.mxu2 %v5840_v12  ;;  %v1501_v12 = vadd.f32 %v9722_v60, %v1488_v4  ;;  %v6148_v19 = vor.u32 %v7886_v59, %v6147_v11  ;;  %v6139_v60 = vld [vmem:[%s12273_s2 + $0xd0] sm:$0xf]  ;;  %v6085_v11 = vld [vmem:[%s12273_s2 + $0x68] sm:$0xf0] }
  0xe0   :  { %1781 = vmatpush.bf16.msra.mxu3 %v5968_v20 }
  0xe1   :  { %1743 = vmatpush.bf16.msra.mxu0 %v5568_v27  ;;  %v1514_v20 = vadd.f32 %v9758_v18, %v1501_v12  ;;  %v6059_v27 = vld [vmem:[%s12273_s2 + $0x30] sm:$0xf]  ;;  %v7885_v12 = vld [vmem:[%s12273_s2 + $0xe4] sm:$0xf] }
  0xe2   :  { %1756 = vmatpush.bf16.msra.mxu1 %v5696_v32  ;;  %v6060_v38 = vor.u32 %v7864_v28, %v6059_v27  ;;  %v7865_v28 = vld [vmem:[%s12273_s2 + $0x44] sm:$0xf] }
  0xe3   :  { %1769 = vmatpush.bf16.msra.mxu2 %v5824_v34  ;;  %v1790_v18 = vmul.f32 0.5, %v1514_v20  ;;  %v6123_v34 = vld [vmem:[%s12273_s2 + $0xb0] sm:$0xf]  ;;  %v6077_v20 = vld [vmem:[%s12273_s2 + $0x58] sm:$0xf0] }
  0xe4   :  { %1782 = vmatpush.bf16.msra.mxu3 %v5952_v41  ;;  %v6124_v42 = vor.u32 %v7880_v35, %v6123_v34  ;;  %v7881_v34 = vld [vmem:[%s12273_s2 + $0xc4] sm:$0xf]  ;;  %v6133_v35 = vld [vmem:[%s12273_s2 + $0xc8] sm:$0xf0] }
  0xe5   :  { %1744 = vmatpush.bf16.msra.mxu0 %v5552_v48  ;;  %8260 = vtanh.f32 %v1790_v18  ;;  %v6052_v48 = vor.u32 %v7862_v40, %v6051_v39  ;;  %v7902_v18 = vld [vmem:[%s12273_s2 + $0x164] sm:$0xf0] }
  0xe6   :  { %1757 = vmatpush.bf16.msra.mxu1 %v5680_v50  ;;  %v6043_v50 = vld [vmem:[%s12273_s2 + $0x10] sm:$0xf] }
  0xe7   :  { %1770 = vmatpush.bf16.msra.mxu2 %v5808_v25  ;;  %v7860_v25 = vld [vmem:[%s12273_s2 + $0x14] sm:$0xf0] }
  0xe8   :  { %1783 = vmatpush.bf16.msra.mxu3 %v5936_v54  ;;  %v1527_v54 = vadd.f32 %v9776_v26, %v299_v44  ;;  %v6044_v55 = vor.u32 %v7860_v25, %v6043_v50  ;;  %v6093_v26 = vld [vmem:[%s12273_s2 + $0x78] sm:$0xf0]  ;;  %v6136_v44 = vor.u32 %v7881_v34, %v6133_v35  ;;  %v6064_v50 = vor.u32 %v7863_v45, %v6061_v46  ;;  %v6203_v25 = vld [vmem:[%s12273_s2 + $0x150] sm:$0xf]  ;;  %v7903_v34 = vld [vmem:[%s12273_s2 + $0x174] sm:$0xf] }
  0xe9   :  { %1745 = vmatpush.bf16.msra.mxu0 %v5536_v63  ;;  %v1539_v31 = vpop.f32.mrf.mxu0  ;;  %v6099_v63 = vld [vmem:[%s12273_s2 + $0x80] sm:$0xf]  ;;  %v6096_v7 = vor.u32 %v7871_v47, %v6093_v26  ;;  %v7898_v47 = vld [vmem:[%s12273_s2 + $0x144] sm:$0xf0]  ;;  %v6221_v35 = vld [vmem:[%s12273_s2 + $0x178] sm:$0xf0] }
  0xea   :  { %1758 = vmatpush.bf16.msra.mxu1 %v5664_v2  ;;  %v1552_v30 = vpop.f32.mrf.mxu1  ;;  %v7887_v2 = vld [vmem:[%s12273_s2 + $0xf4] sm:$0xf]  ;;  %v1540_v4 = vadd.f32 %v1539_v31, %v1527_v54  ;;  %v6100_v17 = vor.u32 %v7874_v0, %v6099_v63  ;;  %v6187_v0 = vld [vmem:[%s12273_s2 + $0x130] sm:$0xf] }
  0xeb   :  { %1771 = vmatpush.bf16.msra.mxu2 %v5792_v3  ;;  %v8261_v8 = vpop.eup %8260  ;;  %v6157_v3 = vld [vmem:[%s12273_s2 + $0xf8] sm:$0xf0] }
  0xec   :  { %1784 = vmatpush.bf16.msra.mxu3 %v5920_v5  ;;  %1746 = vmatmul.bf16.vlgmr.msra.gmra.mxu0 %v8694_v15  ;;  %v7884_v15 = vld [vmem:[%s12273_s2 + $0xd4] sm:$0xf0]  ;;  %v1798_v57 = vadd.f32 1.0, %v8261_v8  ;;  %v6036_v5 = vor.u32 %v7858_v58, %v6035_v56  ;;  %v6160_v59 = vor.u32 %v7887_v2, %v6157_v3  ;;  %v1553_v14 = vadd.f32 %v1552_v30, %v1540_v4  ;;  %v6069_v30 = vld [vmem:[%s12273_s2 + $0x48] sm:$0xf0] }
  0xed   :  { %2200 = vmatpush.bf16.msrb.mxu0 %v6092_v6  ;;  %1759 = vmatmul.bf16.vlgmr.msra.gmra.mxu1 %v8866_v36  ;;  %v6067_v36 = vld [vmem:[%s12273_s2 + $0x40] sm:$0xf]  ;;  %v6140_v22 = vor.u32 %v7884_v15, %v6139_v60  ;;  %v7867_v60 = vld [vmem:[%s12273_s2 + $0x54] sm:$0xf]  ;;  %v6219_v15 = vld [vmem:[%s12273_s2 + $0x170] sm:$0xf]  ;;  %v6072_v40 = vor.u32 %v7865_v28, %v6069_v30 }
  0xee   :  { %2213 = vmatpush.bf16.msrb.mxu1 %v6156_v10  ;;  %1772 = vmatmul.bf16.vlgmr.msra.gmra.mxu2 %v8868_v37  ;;  %v7866_v37 = vld [vmem:[%s12273_s2 + $0x44] sm:$0xf0]  ;;  %v1802_v6 = vmul.f32 0.5, %v1798_v57  ;;  %v7869_v10 = vld [vmem:[%s12273_s2 + $0x64] sm:$0xf]  ;;  %v6080_v31 = vor.u32 %v7867_v60, %v6077_v20 }
  0xef   :  { %1785 = vmatmul.bf16.vlgmr.msra.gmra.mxu3 %v8858_v33  ;;  %v7882_v33 = vld [vmem:[%s12273_s2 + $0xc4] sm:$0xf0]  ;;  %v6068_v24 = vor.u32 %v7866_v37, %v6067_v36  ;;  %v7883_v36 = vld [vmem:[%s12273_s2 + $0xd4] sm:$0xf]  ;;  %v7904_v37 = vld [vmem:[%s12273_s2 + $0x174] sm:$0xf0] }
  0xf0   :  { %v6132_v32 = vor.u32 %v7882_v33, %v6131_v23  ;;  %v9961_v16 = vpack.c.bf16 %v1802_v6, %v1802_v6  ;;  %v6220_v23 = vor.u32 %v7904_v37, %v6219_v15  ;;  %v6211_v33 = vld [vmem:[%s12273_s2 + $0x160] sm:$0xf]  ;;  %v7861_v8 = vld [vmem:[%s12273_s2 + $0x24] sm:$0xf]  ;;  %v6117_v56 = vld [vmem:[%s12273_s2 + $0xa8] sm:$0xf0] }
  0xf1   :  { %2201 = vmatpush.bf16.msrb.mxu0 %v6084_v13  ;;  %v9901_v41 = vpop.f32.mrf.mxu2  ;;  %v1541_v49 = vpop.f32.mrf.mxu0  ;;  %v6149_v13 = vld [vmem:[%s12273_s2 + $0xe8] sm:$0xf0]  ;;  %v6212_v27 = vor.u32 %v7902_v18, %v6211_v33  ;;  %v6195_v58 = vld [vmem:[%s12273_s2 + $0x140] sm:$0xf]  ;;  %v7859_v2 = vld [vmem:[%s12273_s2 + $0x14] sm:$0xf] }
  0xf2   :  { %2214 = vmatpush.bf16.msrb.mxu1 %v6148_v19  ;;  %v9903_v43 = vpop.f32.mrf.mxu3  ;;  %v1554_v51 = vpop.f32.mrf.mxu1  ;;  %v6088_v19 = vor.u32 %v7869_v10, %v6085_v11  ;;  %2226 = vmatpush.bf16.msrb.mxu2 %v6220_v23  ;;  %v6196_v63 = vor.u32 %v7898_v47, %v6195_v58  ;;  %v6045_v3 = vld [vmem:[%s12273_s2 + $0x18] sm:$0xf0]  ;;  %v7875_v6 = vld [vmem:[%s12273_s2 + $0x94] sm:$0xf]  ;;  %v6179_v11 = vld [vmem:[%s12273_s2 + $0x120] sm:$0xf] }
  0xf3   :  { %v7900_v51 = vld [vmem:[%s12273_s2 + $0x154] sm:$0xf0]  ;;  %v6048_v10 = vor.u32 %v7859_v2, %v6045_v3  ;;  %v7873_v15 = vld [vmem:[%s12273_s2 + $0x84] sm:$0xf]  ;;  %v6101_v20 = vld [vmem:[%s12273_s2 + $0x88] sm:$0xf0] }
  0xf4   :  { %v6204_v54 = vor.u32 %v7900_v51, %v6203_v25  ;;  %v6171_v33 = vld [vmem:[%s12273_s2 + $0x110] sm:$0xf]  ;;  %v7892_v18 = vld [vmem:[%s12273_s2 + $0x114] sm:$0xf0]  ;;  %v6163_v28 = vld [vmem:[%s12273_s2 + $0x100] sm:$0xf] }
  0xf5   :  { %2202 = vmatpush.bf16.msrb.mxu0 %v6076_v21  ;;  %v6152_v21 = vor.u32 %v7885_v12, %v6149_v13  ;;  %v7857_v13 = vld [vmem:[%s12273_s2 + $0x4] sm:$0xf]  ;;  %v7890_v30 = vld [vmem:[%s12273_s2 + $0x104] sm:$0xf0]  ;;  %v6197_v58 = vld [vmem:[%s12273_s2 + $0x148] sm:$0xf0] }
  0xf6   :  { %2215 = vmatpush.bf16.msrb.mxu1 %v6140_v22  ;;  %v6141_v22 = vld [vmem:[%s12273_s2 + $0xd8] sm:$0xf0]  ;;  %2227 = vmatpush.bf16.msrb.mxu2 %v6212_v27  ;;  %v6172_v27 = vor.u32 %v7892_v18, %v6171_v33  ;;  %v6165_v33 = vld [vmem:[%s12273_s2 + $0x108] sm:$0xf0] }
  0xf7   :  { %v6189_v3 = vld [vmem:[%s12273_s2 + $0x138] sm:$0xf0] }
  0xf9   :  { %2203 = vmatpush.bf16.msrb.mxu0 %v6068_v24  ;;  %v1567_v62 = vpop.f32.mrf.mxu2  ;;  %v1566_v24 = vadd.f32 %v9901_v41, %v1553_v14  ;;  %v6037_v14 = vld [vmem:[%s12273_s2 + $0x8] sm:$0xf0] }
  0xfa   :  { %2216 = vmatpush.bf16.msrb.mxu1 %v6132_v32  ;;  %v1580_v1 = vpop.f32.mrf.mxu3  ;;  %v6144_v32 = vor.u32 %v7883_v36, %v6141_v22  ;;  %2228 = vmatpush.bf16.msrb.mxu2 %v6204_v54  ;;  %v6040_v22 = vor.u32 %v7857_v13, %v6037_v14  ;;  %v7918_v54 = vld [vmem:[%s12273_s2 + $0x1e4] sm:$0xf0]  ;;  %v7891_v14 = vld [vmem:[%s12273_s2 + $0x114] sm:$0xf] }
  0xfb   :  { %v7896_v1 = vld [vmem:[%s12273_s2 + $0x134] sm:$0xf0] }
  0xfd   :  { %2204 = vmatpush.bf16.msrb.mxu0 %v6060_v38  ;;  %v1579_v38 = vadd.f32 %v9903_v43, %v1566_v24  ;;  %v7879_v43 = vld [vmem:[%s12273_s2 + $0xb4] sm:$0xf]  ;;  %v6104_v24 = vor.u32 %v7873_v15, %v6101_v20 }
  0xfe   :  { %2217 = vmatpush.bf16.msrb.mxu1 %v6124_v42  ;;  %2229 = vmatpush.bf16.msrb.mxu2 %v6196_v63  ;;  %v6267_v63 = vld [vmem:[%s12273_s2 + $0x1d0] sm:$0xf] }
 0x101   :  { %2205 = vmatpush.bf16.msrb.mxu0 %v6052_v48  ;;  %v6125_v48 = vld [vmem:[%s12273_s2 + $0xb8] sm:$0xf0] }
 0x102   :  { %2218 = vmatpush.bf16.msrb.mxu1 %v6116_v52  ;;  %v6128_v9 = vor.u32 %v7879_v43, %v6125_v48  ;;  %v6283_v43 = vld [vmem:[%s12273_s2 + $0x1f0] sm:$0xf]  ;;  %v7920_v48 = vld [vmem:[%s12273_s2 + $0x1f4] sm:$0xf0] }
 0x103   :  { %v6284_v51 = vor.u32 %v7920_v48, %v6283_v43  ;;  %v7917_v48 = vld [vmem:[%s12273_s2 + $0x1e4] sm:$0xf] }
 0x105   :  { %2206 = vmatpush.bf16.msrb.mxu0 %v6044_v55  ;;  %v7877_v55 = vld [vmem:[%s12273_s2 + $0xa4] sm:$0xf]  ;;  %2239 = vmatpush.bf16.msrb.mxu3 %v6284_v51 }
 0x106   :  { %2219 = vmatpush.bf16.msrb.mxu1 %v6108_v61  ;;  %v6056_v61 = vor.u32 %v7861_v8, %v6053_v53  ;;  %v6120_v4 = vor.u32 %v7877_v55, %v6117_v56  ;;  %v7897_v55 = vld [vmem:[%s12273_s2 + $0x144] sm:$0xf] }
 0x109   :  { %2207 = vmatpush.bf16.msrb.mxu0 %v6036_v5  ;;  %v1591_v39 = vpop.f32.mrf.mxu0 }
 0x10a   :  { %2220 = vmatpush.bf16.msrb.mxu1 %v6100_v17  ;;  %v1592_v41 = vadd.f32 %v1591_v39, %v1579_v38  ;;  %v1604_v42 = vpop.f32.mrf.mxu1  ;;  %v6188_v17 = vor.u32 %v7896_v1, %v6187_v0  ;;  %v7916_v0 = vld [vmem:[%s12273_s2 + $0x1d4] sm:$0xf0] }
 0x10b   :  { %v6268_v2 = vor.u32 %v7916_v0, %v6267_v63 }
 0x10c   :  { %2208 = vmatmul.bf16.vlgmr.msrb.gmra.mxu0 %v9961_v16  ;;  %v1605_v49 = vadd.f32 %v1604_v42, %v1592_v41  ;;  %2230 = vmatpush.bf16.msrb.mxu2 %v6188_v17  ;;  %v6213_v41 = vld [vmem:[%s12273_s2 + $0x168] sm:$0xf0]  ;;  %v300_v42 = vperm.slane %v9665_v29, 2 }
 0x10d   :  { %2252 = vmatpush.bf16.msra.mxu0 %v6096_v7  ;;  %v6109_v7 = vld [vmem:[%s12273_s2 + $0x98] sm:$0xf0]  ;;  %v6181_v17 = vld [vmem:[%s12273_s2 + $0x128] sm:$0xf0] }
 0x10e   :  { %2265 = vmatpush.bf16.msra.mxu1 %v6160_v59  ;;  %v1791_v52 = vmul.f32 0.5, %v1605_v49  ;;  %v7894_v59 = vld [vmem:[%s12273_s2 + $0x124] sm:$0xf0]  ;;  %v7899_v49 = vld [vmem:[%s12273_s2 + $0x154] sm:$0xf] }
 0x10f   :  { %v6180_v36 = vor.u32 %v7894_v59, %v6179_v11  ;;  %v6251_v59 = vld [vmem:[%s12273_s2 + $0x1b0] sm:$0xf] }
 0x110   :  { %8262 = vtanh.f32 %v1791_v52  ;;  %v6205_v52 = vld [vmem:[%s12273_s2 + $0x158] sm:$0xf0] }
 0x111   :  { %2253 = vmatpush.bf16.msra.mxu0 %v6088_v19  ;;  %v10032_v57 = vpop.f32.mrf.mxu2  ;;  %v1593_v26 = vpop.f32.mrf.mxu0  ;;  %v6112_v19 = vor.u32 %v7875_v6, %v6109_v7  ;;  %2231 = vmatpush.bf16.msrb.mxu2 %v6180_v36  ;;  %v6208_v53 = vor.u32 %v7899_v49, %v6205_v52  ;;  %v7893_v7 = vld [vmem:[%s12273_s2 + $0x124] sm:$0xf]  ;;  %v7910_v36 = vld [vmem:[%s12273_s2 + $0x1a4] sm:$0xf0]  ;;  %v6277_v49 = vld [vmem:[%s12273_s2 + $0x1e8] sm:$0xf0] }
 0x112   :  { %2266 = vmatpush.bf16.msra.mxu1 %v6152_v21  ;;  %v10040_v62 = vpop.f32.mrf.mxu3  ;;  %v1606_v5 = vpop.f32.mrf.mxu1  ;;  %v6184_v11 = vor.u32 %v7893_v7, %v6181_v17 }
 0x113   :  { %v7914_v5 = vld [vmem:[%s12273_s2 + $0x1c4] sm:$0xf0] }
 0x115   :  { %2254 = vmatpush.bf16.msra.mxu0 %v6080_v31  ;;  %2232 = vmatpush.bf16.msrb.mxu2 %v6172_v27 }
 0x116   :  { %2267 = vmatpush.bf16.msra.mxu1 %v6144_v32  ;;  %v8263_v12 = vpop.eup %8262  ;;  %v6164_v32 = vor.u32 %v7890_v30, %v6163_v28  ;;  %v6235_v28 = vld [vmem:[%s12273_s2 + $0x190] sm:$0xf]  ;;  %v7908_v30 = vld [vmem:[%s12273_s2 + $0x194] sm:$0xf0] }
 0x117   :  { %v1799_v60 = vadd.f32 1.0, %v8263_v12  ;;  %v7912_v12 = vld [vmem:[%s12273_s2 + $0x1b4] sm:$0xf0] }
 0x119   :  { %2255 = vmatpush.bf16.msra.mxu0 %v6072_v40  ;;  %v1619_v21 = vpop.f32.mrf.mxu2  ;;  %v1803_v37 = vmul.f32 0.5, %v1799_v60  ;;  %2233 = vmatpush.bf16.msrb.mxu2 %v6164_v32  ;;  %v7901_v40 = vld [vmem:[%s12273_s2 + $0x164] sm:$0xf]  ;;  %v6252_v60 = vor.u32 %v7912_v12, %v6251_v59  ;;  %v6229_v12 = vld [vmem:[%s12273_s2 + $0x188] sm:$0xf0] }
 0x11a   :  { %2268 = vmatpush.bf16.msra.mxu1 %v6136_v44  ;;  %v1632_v23 = vpop.f32.mrf.mxu3  ;;  %v6216_v45 = vor.u32 %v7901_v40, %v6213_v41  ;;  %v6243_v21 = vld [vmem:[%s12273_s2 + $0x1a0] sm:$0xf]  ;;  %v7919_v41 = vld [vmem:[%s12273_s2 + $0x1f4] sm:$0xf]  ;;  %v7905_v59 = vld [vmem:[%s12273_s2 + $0x184] sm:$0xf] }
 0x11b   :  { %v1807_v31 = vpack.c.bf16 %v1803_v37, %v1803_v37  ;;  %v7889_v37 = vld [vmem:[%s12273_s2 + $0x104] sm:$0xf]  ;;  %v6244_v23 = vor.u32 %v7910_v36, %v6243_v21 }
 0x11d   :  { %2256 = vmatpush.bf16.msra.mxu0 %v6064_v50  ;;  %2221 = vmatmul.bf16.vlgmr.msrb.gmra.mxu1 %v1807_v31  ;;  %v1618_v50 = vadd.f32 %v10032_v57, %v300_v42  ;;  %v6285_v42 = vld [vmem:[%s12273_s2 + $0x1f8] sm:$0xf0] }
 0x11e   :  { %2269 = vmatpush.bf16.msra.mxu1 %v6128_v9  ;;  %v6275_v9 = vld [vmem:[%s12273_s2 + $0x1e0] sm:$0xf] }
 0x11f   :  { %v1631_v56 = vadd.f32 %v10040_v62, %v1618_v50  ;;  %v6276_v57 = vor.u32 %v7918_v54, %v6275_v9  ;;  %v7895_v62 = vld [vmem:[%s12273_s2 + $0x134] sm:$0xf]  ;;  %v6269_v9 = vld [vmem:[%s12273_s2 + $0x1d8] sm:$0xf0] }
 0x120   :  { %v6192_v6 = vor.u32 %v7895_v62, %v6189_v3  ;;  %v7909_v62 = vld [vmem:[%s12273_s2 + $0x1a4] sm:$0xf]  ;;  %v7907_v3 = vld [vmem:[%s12273_s2 + $0x194] sm:$0xf] }
 0x121   :  { %2257 = vmatpush.bf16.msra.mxu0 %v6056_v61  ;;  %v6200_v61 = vor.u32 %v7897_v55, %v6197_v58  ;;  %2240 = vmatpush.bf16.msrb.mxu3 %v6276_v57  ;;  %v7913_v57 = vld [vmem:[%s12273_s2 + $0x1c4] sm:$0xf]  ;;  %v6261_v58 = vld [vmem:[%s12273_s2 + $0x1c8] sm:$0xf0] }
 0x122   :  { %2270 = vmatpush.bf16.msra.mxu1 %v6120_v4  ;;  %v6259_v4 = vld [vmem:[%s12273_s2 + $0x1c0] sm:$0xf] }
 0x125   :  { %2258 = vmatpush.bf16.msra.mxu0 %v6048_v10  ;;  %2241 = vmatpush.bf16.msrb.mxu3 %v6268_v2  ;;  %v6260_v10 = vor.u32 %v7914_v5, %v6259_v4  ;;  %v6237_v4 = vld [vmem:[%s12273_s2 + $0x198] sm:$0xf0] }
 0x126   :  { %2271 = vmatpush.bf16.msra.mxu1 %v6112_v19  ;;  %v6173_v19 = vld [vmem:[%s12273_s2 + $0x118] sm:$0xf0]  ;;  %v6240_v17 = vor.u32 %v7907_v3, %v6237_v4 }
 0x127   :  { %v6176_v15 = vor.u32 %v7891_v14, %v6173_v19  ;;  %v6232_v14 = vor.u32 %v7905_v59, %v6229_v12 }
 0x129   :  { %2259 = vmatpush.bf16.msra.mxu0 %v6040_v22  ;;  %v1643_v38 = vpop.f32.mrf.mxu0  ;;  %2242 = vmatpush.bf16.msrb.mxu3 %v6260_v10 }
 0x12a   :  { %2272 = vmatpush.bf16.msra.mxu1 %v6104_v24  ;;  %v1656_v39 = vpop.f32.mrf.mxu1  ;;  %v1644_v1 = vadd.f32 %v1643_v38, %v1631_v56  ;;  %v6168_v24 = vor.u32 %v7889_v37, %v6165_v33  ;;  %v7906_v38 = vld [vmem:[%s12273_s2 + $0x184] sm:$0xf0]  ;;  %v301_v56 = vperm.slane %v9665_v29, 3  ;;  %v6253_v29 = vld [vmem:[%s12273_s2 + $0x1b8] sm:$0xf0] }
 0x12c   :  { %2260 = vmatmul.bf16.vlgmr.msra.gmra.mxu0 %v9961_v16  ;;  %v6224_v16 = vor.u32 %v7903_v34, %v6221_v35  ;;  %v1657_v13 = vadd.f32 %v1656_v39, %v1644_v1  ;;  %v6236_v34 = vor.u32 %v7908_v30, %v6235_v28  ;;  %v6227_v35 = vld [vmem:[%s12273_s2 + $0x180] sm:$0xf]  ;;  %v6245_v1 = vld [vmem:[%s12273_s2 + $0x1a8] sm:$0xf0] }
 0x12d   :  { %2273 = vmatmul.bf16.vlgmr.msra.gmra.mxu1 %v1807_v31  ;;  %2243 = vmatpush.bf16.msrb.mxu3 %v6252_v60  ;;  %v6228_v40 = vor.u32 %v7906_v38, %v6227_v35  ;;  %v6248_v2 = vor.u32 %v7909_v62, %v6245_v1  ;;  %v1874_v28 = vld [vmem:[%s12274_s10] sm:$0x3] }
 0x12e   :  { %2278 = vmatpush.bf16.msra.mxu2 %v6224_v16  ;;  %v1876_v30 = vperm.slane %v1874_v28, 0 }
 0x131   :  { %v1669_v46 = vpop.f32.mrf.mxu2  ;;  %v1645_v25 = vpop.f32.mrf.mxu0  ;;  %2244 = vmatpush.bf16.msrb.mxu3 %v6244_v23 }
 0x132   :  { %v1682_v44 = vpop.f32.mrf.mxu3  ;;  %2279 = vmatpush.bf16.msra.mxu2 %v6216_v45  ;;  %v1658_v8 = vpop.f32.mrf.mxu1  ;;  %v1670_v20 = vadd.f32 %v1669_v46, %v1657_v13  ;;  %v6288_v46 = vor.u32 %v7919_v41, %v6285_v42  ;;  %v6280_v25 = vor.u32 %v7917_v48, %v6277_v49  ;;  %v7926_v48 = vld [vmem:[%s12276_s3 + $0x28] sm:$0xff] }
 0x134   :  { %v1683_v22 = vadd.f32 %v1682_v44, %v1670_v20 }
 0x135   :  { %2245 = vmatpush.bf16.msrb.mxu3 %v6236_v34 }
 0x136   :  { %2280 = vmatpush.bf16.msra.mxu2 %v6208_v53  ;;  %v7915_v53 = vld [vmem:[%s12273_s2 + $0x1d4] sm:$0xf] }
 0x137   :  { %v6272_v55 = vor.u32 %v7915_v53, %v6269_v9  ;;  %v7935_v53 = vld [vmem:[%s12276_s3 + $0x70] sm:$0xff] }
 0x139   :  { %v1671_v47 = vpop.f32.mrf.mxu2  ;;  %2246 = vmatpush.bf16.msrb.mxu3 %v6228_v40 }
 0x13a   :  { %v1684_v26 = vpop.f32.mrf.mxu3  ;;  %2281 = vmatpush.bf16.msra.mxu2 %v6200_v61  ;;  %v6264_v47 = vor.u32 %v7913_v57, %v6261_v58  ;;  %v7933_v57 = vld [vmem:[%s12276_s3 + $0x60] sm:$0xff] }
 0x13b   :  { %v7911_v26 = vld [vmem:[%s12273_s2 + $0x1b4] sm:$0xf] }
 0x13c   :  { %v6256_v63 = vor.u32 %v7911_v26, %v6253_v29  ;;  %v7930_v26 = vld [vmem:[%s12276_s3 + $0x48] sm:$0xff]  ;;  %v7929_v29 = vld [vmem:[%s12276_s3 + $0x40] sm:$0xff] }
 0x13d   :  { %2291 = vmatpush.bf16.msra.mxu3 %v6288_v46 }
 0x13e   :  { %2282 = vmatpush.bf16.msra.mxu2 %v6192_v6 }
 0x141   :  { %2292 = vmatpush.bf16.msra.mxu3 %v6280_v25 }
 0x142   :  { %2283 = vmatpush.bf16.msra.mxu2 %v6184_v11 }
 0x145   :  { %2293 = vmatpush.bf16.msra.mxu3 %v6272_v55  ;;  %v7934_v55 = vld [vmem:[%s12276_s3 + $0x68] sm:$0xff] }
 0x146   :  { %2284 = vmatpush.bf16.msra.mxu2 %v6176_v15 }
 0x149   :  { %v1695_v18 = vpop.f32.mrf.mxu0  ;;  %2294 = vmatpush.bf16.msra.mxu3 %v6264_v47  ;;  %v7932_v47 = vld [vmem:[%s12276_s3 + $0x58] sm:$0xff] }
 0x14a   :  { %v1696_v31 = vadd.f32 %v1695_v18, %v1683_v22  ;;  %v1708_v27 = vpop.f32.mrf.mxu1  ;;  %2285 = vmatpush.bf16.msra.mxu2 %v6168_v24 }
 0x14b   :  { %v1709_v61 = vadd.f32 %v1708_v27, %v301_v56  ;;  %v7921_v56 = vld [vmem:[%s12276_s3] sm:$0xff] }
 0x14c   :  { %v1792_v32 = vmul.f32 0.5, %v1696_v31 }
 0x14d   :  { %2295 = vmatpush.bf16.msra.mxu3 %v6256_v63 }
 0x14e   :  { %8264 = vtanh.f32 %v1792_v32 }
 0x151   :  { %v1721_v16 = vpop.f32.mrf.mxu2  ;;  %v1697_v45 = vpop.f32.mrf.mxu0  ;;  %2296 = vmatpush.bf16.msra.mxu3 %v6248_v2 }
 0x152   :  { %v1734_v39 = vpop.f32.mrf.mxu3  ;;  %v1710_v44 = vpop.f32.mrf.mxu1  ;;  %v1722_v0 = vadd.f32 %v1721_v16, %v1709_v61  ;;  %v7931_v61 = vld [vmem:[%s12276_s3 + $0x50] sm:$0xff] }
 0x153   :  { %v7928_v44 = vld [vmem:[%s12276_s3 + $0x38] sm:$0xff] }
 0x154   :  { %v8265_v43 = vpop.eup %8264  ;;  %v1735_v5 = vadd.f32 %v1734_v39, %v1722_v0  ;;  %v1877_v39 = vperm.slane %v1874_v28, 1  ;;  %2446 = vmatpush.bf16.msrb.mxu0 %v7928_v44  ;;  %v8257_v28 = vld [vmem:[%s12275_s11] ss:$0 sm:$0xff]  ;;  %v7946_v44 = vld [vmem:[%s12279_s5 + $0x8] sm:$0xff] }
 0x155   :  { %v1800_v50 = vadd.f32 1.0, %v8265_v43  ;;  %2297 = vmatpush.bf16.msra.mxu3 %v6240_v17  ;;  %v7927_v43 = vld [vmem:[%s12276_s3 + $0x30] sm:$0xff] }
 0x157   :  { %v1804_v51 = vmul.f32 0.5, %v1800_v50  ;;  %v7925_v50 = vld [vmem:[%s12276_s3 + $0x20] sm:$0xff] }
 0x158   :  { %2447 = vmatpush.bf16.msrb.mxu0 %v7927_v43  ;;  %v7945_v43 = vld [vmem:[%s12279_s5] sm:$0xff] }
 0x159   :  { %v1723_v52 = vpop.f32.mrf.mxu2  ;;  %v1808_v54 = vpack.c.bf16 %v1804_v51, %v1804_v51  ;;  %2298 = vmatpush.bf16.msra.mxu3 %v6232_v14  ;;  %v7924_v51 = vld [vmem:[%s12276_s3 + $0x18] sm:$0xff] }
 0x15a   :  { %v1736_v8 = vpop.f32.mrf.mxu3  ;;  %v7936_v52 = vld [vmem:[%s12276_s3 + $0x78] sm:$0xff] }
 0x15b   :  { %2234 = vmatmul.bf16.vlgmr.msrb.gmra.mxu2 %v1808_v54  ;;  %2459 = vmatpush.bf16.msrb.mxu1 %v7936_v52  ;;  %v7923_v8 = vld [vmem:[%s12276_s3 + $0x10] sm:$0xff]  ;;  %v6467_v52 = vld [vmem:[%s12281_s6 + $0x60] sm:$0xf] }
 0x15c   :  { %2448 = vmatpush.bf16.msrb.mxu0 %v7926_v48  ;;  %v6475_v48 = vld [vmem:[%s12281_s6 + $0x70] sm:$0xf] }
 0x15f   :  { %2460 = vmatpush.bf16.msrb.mxu1 %v7935_v53 }
 0x160   :  { %2449 = vmatpush.bf16.msrb.mxu0 %v7925_v50  ;;  %v7967_v50 = vld [vmem:[%s12281_s6 + $0x74] sm:$0xf] }
 0x163   :  { %2461 = vmatpush.bf16.msrb.mxu1 %v7934_v55 }
 0x164   :  { %2450 = vmatpush.bf16.msrb.mxu0 %v7924_v51  ;;  %v6477_v51 = vld [vmem:[%s12281_s6 + $0x78] sm:$0xf0] }
 0x165   :  { %v6480_v53 = vor.u32 %v7967_v50, %v6477_v51  ;;  %v8029_v50 = vld [vmem:[%s12283_s7 + $0x1e4] sm:$0xf]  ;;  %v6579_v51 = vld [vmem:[%s12283_s7 + $0xc0] sm:$0xf] }
 0x167   :  { %2462 = vmatpush.bf16.msrb.mxu1 %v7933_v57  ;;  %v6459_v57 = vld [vmem:[%s12281_s6 + $0x50] sm:$0xf] }
 0x168   :  { %2451 = vmatpush.bf16.msrb.mxu0 %v7923_v8  ;;  %v7966_v8 = vld [vmem:[%s12281_s6 + $0x64] sm:$0xf0] }
 0x169   :  { %v1747_v6 = vpop.f32.mrf.mxu0  ;;  %v6468_v55 = vor.u32 %v7966_v8, %v6467_v52  ;;  %v7995_v8 = vld [vmem:[%s12283_s7 + $0xcc] sm:$0xf0] }
 0x16a   :  { %v1760_v7 = vpop.f32.mrf.mxu1  ;;  %v1748_v10 = vadd.f32 %v1747_v6, %v1735_v5 }
 0x16b   :  { %2286 = vmatmul.bf16.vlgmr.msra.gmra.mxu2 %v1808_v54  ;;  %v7922_v54 = vld [vmem:[%s12276_s3 + $0x8] sm:$0xff]  ;;  %2463 = vmatpush.bf16.msrb.mxu1 %v7932_v47  ;;  %v7963_v47 = vld [vmem:[%s12281_s6 + $0x54] sm:$0xf] }
 0x16c   :  { %v1761_v11 = vadd.f32 %v1760_v7, %v1748_v10  ;;  %2452 = vmatpush.bf16.msrb.mxu0 %v7922_v54  ;;  %v6469_v54 = vld [vmem:[%s12281_s6 + $0x68] sm:$0xf0] }
 0x16f   :  { %2464 = vmatpush.bf16.msrb.mxu1 %v7931_v61  ;;  %v6461_v61 = vld [vmem:[%s12281_s6 + $0x58] sm:$0xf0] }
 0x170   :  { %2453 = vmatpush.bf16.msrb.mxu0 %v7921_v56 }
 0x171   :  { %v1773_v13 = vpop.f32.mrf.mxu2  ;;  %v1749_v15 = vpop.f32.mrf.mxu0 }
 0x172   :  { %v1774_v19 = vadd.f32 %v1773_v13, %v1761_v11  ;;  %v1786_v60 = vpop.f32.mrf.mxu3  ;;  %v1762_v20 = vpop.f32.mrf.mxu1  ;;  %v7943_v15 = vld [vmem:[%s12278_s4 + $0x30] sm:$0xff] }
 0x173   :  { %2465 = vmatpush.bf16.msrb.mxu1 %v7930_v26  ;;  %v7942_v20 = vld [vmem:[%s12278_s4 + $0x28] sm:$0xff] }
 0x174   :  { %v1787_v21 = vadd.f32 %v1786_v60, %v1774_v19  ;;  %v7944_v60 = vld [vmem:[%s12278_s4 + $0x38] sm:$0xff] }
 0x175   :  { %2545 = vmatpush.bf16.msrb.mxu2 %v7944_v60 }
 0x176   :  { %v1793_v36 = vmul.f32 0.5, %v1787_v21  ;;  %v7941_v21 = vld [vmem:[%s12278_s4 + $0x20] sm:$0xff] }
 0x177   :  { %2466 = vmatpush.bf16.msrb.mxu1 %v7929_v29  ;;  %v6464_v29 = vor.u32 %v7963_v47, %v6461_v61  ;;  %v6709_v61 = vld [vmem:[%s12283_s7 + $0x1d0] sm:$0xf0] }
 0x178   :  { %8266 = vtanh.f32 %v1793_v36  ;;  %v7940_v36 = vld [vmem:[%s12278_s4 + $0x18] sm:$0xff] }
 0x179   :  { %v1775_v37 = vpop.f32.mrf.mxu2  ;;  %2546 = vmatpush.bf16.msrb.mxu2 %v7943_v15  ;;  %v6445_v15 = vld [vmem:[%s12281_s6 + $0x38] sm:$0xf0] }
 0x17a   :  { %v1788_v22 = vpop.f32.mrf.mxu3  ;;  %v7939_v37 = vld [vmem:[%s12278_s4 + $0x10] sm:$0xff] }
 0x17b   :  { %v7938_v22 = vld [vmem:[%s12278_s4 + $0x8] sm:$0xff]  ;;  %2765 = vmatpush.bf16.msra.mxu1 %v6480_v53  ;;  %v6707_v53 = vld [vmem:[%s12283_s7 + $0x1c0] sm:$0xf] }
 0x17d   :  { %2547 = vmatpush.bf16.msrb.mxu2 %v7942_v20 }
 0x17e   :  { %v8267_v23 = vpop.eup %8266 }
 0x17f   :  { %v1801_v33 = vadd.f32 1.0, %v8267_v23  ;;  %v7937_v23 = vld [vmem:[%s12278_s4] sm:$0xff] }
 0x181   :  { %v1805_v18 = vmul.f32 0.5, %v1801_v33  ;;  %2548 = vmatpush.bf16.msrb.mxu2 %v7941_v21  ;;  %v6435_v21 = vld [vmem:[%s12281_s6 + $0x20] sm:$0xf] }
 0x183   :  { %v1809_v24 = vpack.c.bf16 %v1805_v18, %v1805_v18  ;;  %v7952_v18 = vld [vmem:[%s12279_s5 + $0x38] sm:$0xff] }
 0x185   :  { %2247 = vmatmul.bf16.vlgmr.msrb.gmra.mxu3 %v1809_v24  ;;  %2549 = vmatpush.bf16.msrb.mxu2 %v7940_v36  ;;  %v7958_v36 = vld [vmem:[%s12281_s6 + $0x24] sm:$0xf0] }
 0x186   :  { %2632 = vmatpush.bf16.msrb.mxu3 %v7952_v18  ;;  %v6427_v18 = vld [vmem:[%s12281_s6 + $0x10] sm:$0xf] }
 0x189   :  { %v2209_v31 = vpop.f32.mrf.mxu0  ;;  %2550 = vmatpush.bf16.msrb.mxu2 %v7939_v37  ;;  %v7957_v37 = vld [vmem:[%s12281_s6 + $0x24] sm:$0xf] }
 0x18a   :  { %v2210_v32 = vadd.f32 %v2209_v31, %v1876_v30  ;;  %v7949_v30 = vld [vmem:[%s12279_s5 + $0x20] sm:$0xff] }
 0x18d   :  { %2551 = vmatpush.bf16.msrb.mxu2 %v7938_v22  ;;  %v6436_v22 = vor.u32 %v7958_v36, %v6435_v21 }
 0x191   :  { %v2211_v27 = vpop.f32.mrf.mxu0  ;;  %2552 = vmatpush.bf16.msrb.mxu2 %v7937_v23  ;;  %v6437_v23 = vld [vmem:[%s12281_s6 + $0x28] sm:$0xf0] }
 0x192   :  { %v7950_v27 = vld [vmem:[%s12279_s5 + $0x28] sm:$0xff] }
 0x195   :  { %2299 = vmatmul.bf16.vlgmr.msra.gmra.mxu3 %v1809_v24  ;;  %v7951_v24 = vld [vmem:[%s12279_s5 + $0x30] sm:$0xff] }
 0x196   :  { %2633 = vmatpush.bf16.msrb.mxu3 %v7951_v24  ;;  %v7956_v24 = vld [vmem:[%s12281_s6 + $0x14] sm:$0xf0] }
 0x19a   :  { %v2222_v34 = vpop.f32.mrf.mxu1  ;;  %2634 = vmatpush.bf16.msrb.mxu3 %v7950_v27  ;;  %v6428_v27 = vor.u32 %v7956_v24, %v6427_v18  ;;  %v8015_v18 = vld [vmem:[%s12283_s7 + $0x16c] sm:$0xf0]  ;;  %v7981_v24 = vld [vmem:[%s12283_s7 + $0x64] sm:$0xf] }
 0x19b   :  { %v2223_v35 = vadd.f32 %v2222_v34, %v2210_v32 }
 0x19e   :  { %2635 = vmatpush.bf16.msrb.mxu3 %v7949_v30 }
 0x1a2   :  { %v2224_v16 = vpop.f32.mrf.mxu1 }
 0x1a9   :  { %v2261_v38 = vpop.f32.mrf.mxu0 }
 0x1aa   :  { %v2262_v41 = vadd.f32 %v2261_v38, %v1877_v39  ;;  %v2274_v42 = vpop.f32.mrf.mxu1 }
 0x1ac   :  { %v2275_v45 = vadd.f32 %v2274_v42, %v2262_v41 }
 0x1b1   :  { %v2263_v40 = vpop.f32.mrf.mxu0 }
 0x1b2   :  { %v2276_v46 = vpop.f32.mrf.mxu1 }
 0x1b3   :  { %v7947_v46 = vld [vmem:[%s12279_s5 + $0x10] sm:$0xff] }
 0x1de   :  { %v2235_v49 = vpop.f32.mrf.mxu2 }
 0x1df   :  { %v2236_v63 = vadd.f32 %v2235_v49, %v2223_v35  ;;  %v7968_v49 = vld [vmem:[%s12281_s6 + $0x74] sm:$0xf0] }
 0x1e6   :  { %v2237_v25 = vpop.f32.mrf.mxu2 }
 0x1e7   :  { %v6476_v25 = vor.u32 %v7968_v49, %v6475_v48 }
 0x1e9   :  { %2752 = vmatpush.bf16.msra.mxu0 %v6476_v25  ;;  %v6725_v25 = vld [vmem:[%s12283_s7 + $0x1f0] sm:$0xf0] }
 0x1ea   :  { %v6728_v52 = vor.u32 %v8029_v50, %v6725_v25 }
 0x1ed   :  { %2753 = vmatpush.bf16.msra.mxu0 %v6468_v55 }
 0x1ee   :  { %v2287_v9 = vpop.f32.mrf.mxu2 }
 0x1ef   :  { %v2288_v6 = vadd.f32 %v2287_v9, %v2275_v45  ;;  %v7948_v45 = vld [vmem:[%s12279_s5 + $0x18] sm:$0xff]  ;;  %v7965_v9 = vld [vmem:[%s12281_s6 + $0x64] sm:$0xf] }
 0x1f0   :  { %2636 = vmatpush.bf16.msrb.mxu3 %v7948_v45  ;;  %v6472_v56 = vor.u32 %v7965_v9, %v6469_v54  ;;  %v8027_v9 = vld [vmem:[%s12283_s7 + $0x1cc] sm:$0xf0]  ;;  %v6580_v54 = vor.u32 %v7995_v8, %v6579_v51  ;;  %v6499_v51 = vld [vmem:[%s12283_s7 + $0x20] sm:$0xf] }
 0x1f1   :  { %v6708_v55 = vor.u32 %v8027_v9, %v6707_v53  ;;  %v6627_v8 = vld [vmem:[%s12283_s7 + $0x120] sm:$0xf]  ;;  %v8007_v9 = vld [vmem:[%s12283_s7 + $0x12c] sm:$0xf0] }
 0x1f2   :  { %2766 = vmatpush.bf16.msra.mxu1 %v6472_v56  ;;  %v7993_v56 = vld [vmem:[%s12283_s7 + $0xc4] sm:$0xf] }
 0x1f4   :  { %2637 = vmatpush.bf16.msrb.mxu3 %v7947_v46  ;;  %v8031_v46 = vld [vmem:[%s12283_s7 + $0x1ec] sm:$0xf0] }
 0x1f6   :  { %v2289_v58 = vpop.f32.mrf.mxu2  ;;  %2767 = vmatpush.bf16.msra.mxu1 %v6464_v29  ;;  %v7991_v29 = vld [vmem:[%s12283_s7 + $0xac] sm:$0xf0] }
 0x1f7   :  { %v7964_v58 = vld [vmem:[%s12281_s6 + $0x54] sm:$0xf0] }
 0x1f8   :  { %2638 = vmatpush.bf16.msrb.mxu3 %v7946_v44  ;;  %v6460_v26 = vor.u32 %v7964_v58, %v6459_v57  ;;  %v7997_v44 = vld [vmem:[%s12283_s7 + $0xe4] sm:$0xf]  ;;  %v6581_v57 = vld [vmem:[%s12283_s7 + $0xd0] sm:$0xf0] }
 0x1f9   :  { %v8025_v58 = vld [vmem:[%s12283_s7 + $0x1c4] sm:$0xf]  ;;  %v6584_v47 = vor.u32 %v7993_v56, %v6581_v57 }
 0x1fa   :  { %2754 = vmatpush.bf16.msra.mxu0 %v6460_v26  ;;  %v6563_v26 = vld [vmem:[%s12283_s7 + $0xa0] sm:$0xf]  ;;  %v8005_v57 = vld [vmem:[%s12283_s7 + $0x124] sm:$0xf] }
 0x1fc   :  { %2639 = vmatpush.bf16.msrb.mxu3 %v7945_v43  ;;  %v6597_v43 = vld [vmem:[%s12283_s7 + $0xf0] sm:$0xf0] }
 0x1fd   :  { %v6600_v49 = vor.u32 %v7997_v44, %v6597_v43  ;;  %v6517_v44 = vld [vmem:[%s12283_s7 + $0x50] sm:$0xf0]  ;;  %v8009_v43 = vld [vmem:[%s12283_s7 + $0x144] sm:$0xf] }
 0x208   :  { %v2248_v0 = vpop.f32.mrf.mxu3 }
 0x209   :  { %v2249_v62 = vadd.f32 %v2248_v0, %v2236_v63  ;;  %v6451_v63 = vld [vmem:[%s12281_s6 + $0x40] sm:$0xf]  ;;  %v7962_v0 = vld [vmem:[%s12281_s6 + $0x44] sm:$0xf0] }
 0x20b   :  { %v2304_v1 = vmul.f32 0.5, %v2249_v62  ;;  %v7961_v62 = vld [vmem:[%s12281_s6 + $0x44] sm:$0xf] }
 0x20d   :  { %8268 = vtanh.f32 %v2304_v1  ;;  %v6453_v1 = vld [vmem:[%s12281_s6 + $0x48] sm:$0xf0] }
 0x210   :  { %v2250_v2 = vpop.f32.mrf.mxu3 }
 0x211   :  { %v8258_v2 = vld [vmem:[%s12277_s12] ss:$0 sm:$0xff] }
 0x213   :  { %v8269_v3 = vpop.eup %8268 }
 0x214   :  { %v2308_v4 = vadd.f32 1.0, %v8269_v3  ;;  %v6452_v3 = vor.u32 %v7962_v0, %v6451_v63  ;;  %v6712_v63 = vor.u32 %v8025_v58, %v6709_v61  ;;  %v6691_v0 = vld [vmem:[%s12283_s7 + $0x1a0] sm:$0xf]  ;;  %v6629_v58 = vld [vmem:[%s12283_s7 + $0x130] sm:$0xf0]  ;;  %v6628_v61 = vor.u32 %v8007_v9, %v6627_v8 }
 0x215   :  { %v6555_v8 = vld [vmem:[%s12283_s7 + $0x88] sm:$0xf] }
 0x216   :  { %v2310_v5 = vmul.f32 0.5, %v2308_v4  ;;  %v6456_v4 = vor.u32 %v7961_v62, %v6453_v1  ;;  %2755 = vmatpush.bf16.msra.mxu0 %v6452_v3  ;;  %v8023_v62 = vld [vmem:[%s12283_s7 + $0x1ac] sm:$0xf0]  ;;  %v7989_v1 = vld [vmem:[%s12283_s7 + $0xa4] sm:$0xf] }
 0x217   :  { %v6565_v3 = vld [vmem:[%s12283_s7 + $0xb0] sm:$0xf0]  ;;  %v6683_v9 = vld [vmem:[%s12283_s7 + $0x188] sm:$0xf] }
 0x218   :  { %v2312_v7 = vpack.c.bf16 %v2310_v5, %v2310_v5  ;;  %v2300_v17 = vpop.f32.mrf.mxu3  ;;  %2768 = vmatpush.bf16.msra.mxu1 %v6456_v4  ;;  %v8021_v4 = vld [vmem:[%s12283_s7 + $0x1a4] sm:$0xf] }
 0x219   :  { %v2301_v10 = vadd.f32 %v2300_v17, %v2288_v6 }
 0x21a   :  { %2454 = vmatmul.bf16.vlgmr.msrb.gmra.mxu0 %v2312_v7 }
 0x21b   :  { %v2305_v11 = vmul.f32 0.5, %v2301_v10 }
 0x21d   :  { %8270 = vtanh.f32 %v2305_v11 }
 0x220   :  { %v2302_v59 = vpop.f32.mrf.mxu3 }
 0x223   :  { %v8271_v12 = vpop.eup %8270 }
 0x224   :  { %v2309_v13 = vadd.f32 1.0, %v8271_v12 }
 0x226   :  { %v2311_v14 = vmul.f32 0.5, %v2309_v13  ;;  %v6443_v13 = vld [vmem:[%s12281_s6 + $0x30] sm:$0xf] }
 0x228   :  { %v2313_v19 = vpack.c.bf16 %v2311_v14, %v2311_v14  ;;  %v7960_v14 = vld [vmem:[%s12281_s6 + $0x34] sm:$0xf0] }
 0x229   :  { %v6444_v60 = vor.u32 %v7960_v14, %v6443_v13  ;;  %v7985_v13 = vld [vmem:[%s12283_s7 + $0x84] sm:$0xf]  ;;  %v6549_v14 = vld [vmem:[%s12283_s7 + $0x90] sm:$0xf0] }
 0x22a   :  { %2467 = vmatmul.bf16.vlgmr.msrb.gmra.mxu1 %v2313_v19  ;;  %v7959_v19 = vld [vmem:[%s12281_s6 + $0x34] sm:$0xf]  ;;  %v6552_v36 = vor.u32 %v7985_v13, %v6549_v14  ;;  %v6603_v14 = vld [vmem:[%s12283_s7 + $0xe8] sm:$0xf] }
 0x22b   :  { %v6448_v20 = vor.u32 %v7959_v19, %v6445_v15  ;;  %2756 = vmatpush.bf16.msra.mxu0 %v6444_v60  ;;  %v8017_v19 = vld [vmem:[%s12283_s7 + $0x184] sm:$0xf]  ;;  %v6677_v60 = vld [vmem:[%s12283_s7 + $0x190] sm:$0xf0]  ;;  %v8259_v15 = vld [vmem:[%s12280_s13] ss:$0 sm:$0xff] }
 0x22d   :  { %2769 = vmatpush.bf16.msra.mxu1 %v6448_v20 }
 0x22f   :  { %2757 = vmatpush.bf16.msra.mxu0 %v6436_v22  ;;  %v7983_v22 = vld [vmem:[%s12283_s7 + $0x6c] sm:$0xf0] }
 0x233   :  { %2758 = vmatpush.bf16.msra.mxu0 %v6428_v27 }
 0x297   :  { %v2455_v33 = vpop.f32.mrf.mxu0 }
 0x298   :  { %v2456_v32 = vadd.f32 %v8257_v28, %v2455_v33  ;;  %v6440_v33 = vor.u32 %v7957_v37, %v6437_v23  ;;  %v6429_v28 = vld [vmem:[%s12281_s6 + $0x18] sm:$0xf0]  ;;  %v6531_v37 = vld [vmem:[%s12283_s7 + $0x60] sm:$0xf] }
 0x299   :  { %v6659_v23 = vld [vmem:[%s12283_s7 + $0x160] sm:$0xf] }
 0x29a   :  { %2770 = vmatpush.bf16.msra.mxu1 %v6440_v33  ;;  %v6680_v33 = vor.u32 %v8017_v19, %v6677_v60  ;;  %v8000_v19 = vld [vmem:[%s12283_s7 + $0xf4] sm:$0xf0]  ;;  %v6731_v60 = vld [vmem:[%s12283_s7 + $0x1e8] sm:$0xf] }
 0x29f   :  { %v2457_v31 = vpop.f32.mrf.mxu0 }
 0x2a0   :  { %v7955_v31 = vld [vmem:[%s12281_s6 + $0x14] sm:$0xf] }
 0x2a1   :  { %v6432_v30 = vor.u32 %v7955_v31, %v6429_v28  ;;  %v6533_v31 = vld [vmem:[%s12283_s7 + $0x70] sm:$0xf0]  ;;  %v8013_v28 = vld [vmem:[%s12283_s7 + $0x164] sm:$0xf] }
 0x2a3   :  { %2771 = vmatpush.bf16.msra.mxu1 %v6432_v30  ;;  %v6661_v30 = vld [vmem:[%s12283_s7 + $0x170] sm:$0xf0] }
 0x2a7   :  { %v2468_v34 = vpop.f32.mrf.mxu1 }
 0x2a8   :  { %v2469_v35 = vadd.f32 %v2468_v34, %v2456_v32  ;;  %v6419_v32 = vld [vmem:[%s12281_s6] sm:$0xf]  ;;  %v7954_v34 = vld [vmem:[%s12281_s6 + $0x4] sm:$0xf0] }
 0x2aa   :  { %v2472_v38 = vmul.f32 0.5, %v2469_v35  ;;  %v7953_v35 = vld [vmem:[%s12281_s6 + $0x4] sm:$0xf] }
 0x2ac   :  { %8272 = vtanh.f32 %v2472_v38  ;;  %v6420_v38 = vor.u32 %v7954_v34, %v6419_v32  ;;  %v6532_v34 = vor.u32 %v7983_v22, %v6531_v37 }
 0x2ae   :  { %2759 = vmatpush.bf16.msra.mxu0 %v6420_v38  ;;  %v6660_v38 = vor.u32 %v8015_v18, %v6659_v23  ;;  %v8030_v23 = vld [vmem:[%s12283_s7 + $0x1ec] sm:$0xf]  ;;  %v6587_v18 = vld [vmem:[%s12283_s7 + $0xc8] sm:$0xf] }
 0x2af   :  { %v2470_v16 = vpop.f32.mrf.mxu1 }
 0x2b0   :  { %v6421_v16 = vld [vmem:[%s12281_s6 + $0x8] sm:$0xf0] }
 0x2b2   :  { %v8273_v39 = vpop.eup %8272  ;;  %3208 = vmatpush.bf16.msrb.mxu0 %v6600_v49 }
 0x2b3   :  { %v2474_v40 = vadd.f32 1.0, %v8273_v39  ;;  %v6424_v39 = vor.u32 %v7953_v35, %v6421_v16  ;;  %v6515_v35 = vld [vmem:[%s12283_s7 + $0x40] sm:$0xf]  ;;  %v6536_v16 = vor.u32 %v7981_v24, %v6533_v31  ;;  %v7996_v31 = vld [vmem:[%s12283_s7 + $0xd4] sm:$0xf0] }
 0x2b5   :  { %v2475_v41 = vmul.f32 0.5, %v2474_v40  ;;  %2772 = vmatpush.bf16.msra.mxu1 %v6424_v39  ;;  %v6595_v40 = vld [vmem:[%s12283_s7 + $0xe0] sm:$0xf]  ;;  %v7979_v39 = vld [vmem:[%s12283_s7 + $0x4c] sm:$0xf0] }
 0x2b6   :  { %3209 = vmatpush.bf16.msrb.mxu0 %v6584_v47  ;;  %v6516_v49 = vor.u32 %v7979_v39, %v6515_v35  ;;  %v6589_v35 = vld [vmem:[%s12283_s7 + $0xd8] sm:$0xf0] }
 0x2b7   :  { %v2476_v42 = vpack.c.bf16 %v2475_v41, %v2475_v41  ;;  %v7999_v41 = vld [vmem:[%s12283_s7 + $0xec] sm:$0xf0]  ;;  %v6717_v39 = vld [vmem:[%s12283_s7 + $0x1d8] sm:$0xf0] }
 0x2b8   :  { %v6596_v45 = vor.u32 %v7999_v41, %v6595_v40  ;;  %v6643_v40 = vld [vmem:[%s12283_s7 + $0x140] sm:$0xf]  ;;  %v8011_v41 = vld [vmem:[%s12283_s7 + $0x14c] sm:$0xf0] }
 0x2b9   :  { %2553 = vmatmul.bf16.vlgmr.msrb.gmra.mxu2 %v2476_v42  ;;  %v6723_v42 = vld [vmem:[%s12283_s7 + $0x1e0] sm:$0xf]  ;;  %3221 = vmatpush.bf16.msrb.mxu1 %v6728_v52  ;;  %v6644_v50 = vor.u32 %v8011_v41, %v6643_v40  ;;  %v7975_v52 = vld [vmem:[%s12283_s7 + $0x2c] sm:$0xf0]  ;;  %v6571_v41 = vld [vmem:[%s12283_s7 + $0xa8] sm:$0xf] }
 0x2ba   :  { %v6724_v48 = vor.u32 %v8031_v46, %v6723_v42  ;;  %3182 = vmatpush.bf16.msra.mxu2 %v6596_v45  ;;  %v6664_v45 = vor.u32 %v8013_v28, %v6661_v30  ;;  %v7977_v46 = vld [vmem:[%s12283_s7 + $0x44] sm:$0xf]  ;;  %v6500_v47 = vor.u32 %v7975_v52, %v6499_v51  ;;  %v8028_v28 = vld [vmem:[%s12283_s7 + $0x1d4] sm:$0xf0]  ;;  %v6588_v30 = vor.u32 %v7996_v31, %v6587_v18  ;;  %v6701_v51 = vld [vmem:[%s12283_s7 + $0x1b8] sm:$0xf0] }
 0x2bb   :  { %v6520_v25 = vor.u32 %v7977_v46, %v6517_v44  ;;  %v8024_v44 = vld [vmem:[%s12283_s7 + $0x1b4] sm:$0xf0]  ;;  %v6509_v31 = vld [vmem:[%s12283_s7 + $0x38] sm:$0xf0] }
 0x2bc   :  { %3195 = vmatpush.bf16.msra.mxu3 %v6724_v48  ;;  %v6645_v48 = vld [vmem:[%s12283_s7 + $0x150] sm:$0xf0]  ;;  %v8008_v18 = vld [vmem:[%s12283_s7 + $0x134] sm:$0xf0] }
 0x2bd   :  { %3222 = vmatpush.bf16.msrb.mxu1 %v6712_v63  ;;  %v6648_v53 = vor.u32 %v8009_v43, %v6645_v48  ;;  %v6632_v63 = vor.u32 %v8005_v57, %v6629_v58  ;;  %v7990_v43 = vld [vmem:[%s12283_s7 + $0xac] sm:$0xf]  ;;  %v6573_v48 = vld [vmem:[%s12283_s7 + $0xb8] sm:$0xf0] }
 0x2be   :  { %3183 = vmatpush.bf16.msra.mxu2 %v6580_v54  ;;  %v7973_v54 = vld [vmem:[%s12283_s7 + $0x24] sm:$0xf]  ;;  %v6557_v57 = vld [vmem:[%s12283_s7 + $0x98] sm:$0xf0] }
 0x2c0   :  { %3196 = vmatpush.bf16.msra.mxu3 %v6708_v55  ;;  %v6501_v55 = vld [vmem:[%s12283_s7 + $0x30] sm:$0xf0] }
 0x33c   :  { %v2554_v5 = vpop.f32.mrf.mxu2 }
 0x33d   :  { %v2555_v6 = vadd.f32 %v8258_v2, %v2554_v5  ;;  %v6564_v2 = vor.u32 %v7991_v29, %v6563_v26  ;;  %v6693_v5 = vld [vmem:[%s12283_s7 + $0x1b0] sm:$0xf0]  ;;  %v6504_v26 = vor.u32 %v7973_v54, %v6501_v55  ;;  %v8020_v55 = vld [vmem:[%s12283_s7 + $0x194] sm:$0xf0] }
 0x33e   :  { %v6684_v58 = vor.u32 %v8020_v55, %v6683_v9 }
 0x33f   :  { %v2558_v7 = vmul.f32 0.5, %v2555_v6  ;;  %v6692_v6 = vor.u32 %v8023_v62, %v6691_v0  ;;  %3184 = vmatpush.bf16.msra.mxu2 %v6564_v2  ;;  %v6483_v2 = vld [vmem:[%s12283_s7] sm:$0xf] }
 0x341   :  { %8274 = vtanh.f32 %v2558_v7  ;;  %v6568_v7 = vor.u32 %v7989_v1, %v6565_v3  ;;  %3197 = vmatpush.bf16.msra.mxu3 %v6692_v6  ;;  %v7971_v3 = vld [vmem:[%s12283_s7 + $0xc] sm:$0xf0] }
 0x342   :  { %v8003_v6 = vld [vmem:[%s12283_s7 + $0x10c] sm:$0xf0] }
 0x343   :  { %3210 = vmatpush.bf16.msrb.mxu0 %v6568_v7  ;;  %v7969_v7 = vld [vmem:[%s12283_s7 + $0x4] sm:$0xf] }
 0x344   :  { %v2556_v17 = vpop.f32.mrf.mxu2 }
 0x345   :  { %v6547_v17 = vld [vmem:[%s12283_s7 + $0x80] sm:$0xf] }
 0x347   :  { %v8275_v10 = vpop.eup %8274  ;;  %3211 = vmatpush.bf16.msrb.mxu0 %v6552_v36  ;;  %v6605_v36 = vld [vmem:[%s12283_s7 + $0xf8] sm:$0xf0] }
 0x348   :  { %v2560_v11 = vadd.f32 1.0, %v8275_v10  ;;  %v7987_v10 = vld [vmem:[%s12283_s7 + $0x8c] sm:$0xf0] }
 0x349   :  { %v6548_v20 = vor.u32 %v7987_v10, %v6547_v17  ;;  %v6485_v10 = vld [vmem:[%s12283_s7 + $0x10] sm:$0xf0] }
 0x34a   :  { %v2561_v59 = vmul.f32 0.5, %v2560_v11  ;;  %v6675_v11 = vld [vmem:[%s12283_s7 + $0x180] sm:$0xf] }
 0x34b   :  { %3185 = vmatpush.bf16.msra.mxu2 %v6548_v20  ;;  %3212 = vmatpush.bf16.msrb.mxu0 %v6536_v16  ;;  %v8032_v20 = vld [vmem:[%s12283_s7 + $0x1f4] sm:$0xf0] }
 0x34c   :  { %2562 = vst [vmem:[%s12282_s18] sm:$0xff] %v2561_v59  ;;  %v2563_v12 = vpack.c.bf16 %v2561_v59, %v2561_v59  ;;  %v6696_v59 = vor.u32 %v8021_v4, %v6693_v5  ;;  %v6484_v4 = vor.u32 %v7971_v3, %v6483_v2  ;;  %v6611_v5 = vld [vmem:[%s12283_s7 + $0x100] sm:$0xf]  ;;  %v6732_v37 = vor.u32 %v8032_v20, %v6731_v60  ;;  %v8016_v2 = vld [vmem:[%s12283_s7 + $0x174] sm:$0xf0]  ;;  %v7982_v3 = vld [vmem:[%s12283_s7 + $0x6c] sm:$0xf] }
 0x34d   :  { %v6612_v17 = vor.u32 %v8003_v6, %v6611_v5  ;;  %v8010_v60 = vld [vmem:[%s12283_s7 + $0x14c] sm:$0xf]  ;;  %v6653_v20 = vld [vmem:[%s12283_s7 + $0x158] sm:$0xf0] }
 0x34e   :  { %2640 = vmatmul.bf16.vlgmr.msrb.gmra.mxu3 %v2563_v12  ;;  %v8019_v12 = vld [vmem:[%s12283_s7 + $0x18c] sm:$0xf0]  ;;  %3223 = vmatpush.bf16.msrb.mxu1 %v6696_v59  ;;  %v6613_v59 = vld [vmem:[%s12283_s7 + $0x110] sm:$0xf0] }
 0x34f   :  { %v6676_v21 = vor.u32 %v8019_v12, %v6675_v11  ;;  %3186 = vmatpush.bf16.msra.mxu2 %v6532_v34  ;;  %3213 = vmatpush.bf16.msrb.mxu0 %v6520_v25  ;;  %v8001_v11 = vld [vmem:[%s12283_s7 + $0x104] sm:$0xf]  ;;  %v6488_v12 = vor.u32 %v7969_v7, %v6485_v10  ;;  %v7994_v34 = vld [vmem:[%s12283_s7 + $0xcc] sm:$0xf]  ;;  %v6523_v10 = vld [vmem:[%s12283_s7 + $0x48] sm:$0xf] }
 0x350   :  { %v6616_v13 = vor.u32 %v8001_v11, %v6613_v59  ;;  %v6592_v16 = vor.u32 %v7994_v34, %v6589_v35  ;;  %v8022_v25 = vld [vmem:[%s12283_s7 + $0x1ac] sm:$0xf]  ;;  %v7980_v59 = vld [vmem:[%s12283_s7 + $0x54] sm:$0xf0] }
 0x351   :  { %3198 = vmatpush.bf16.msra.mxu3 %v6676_v21  ;;  %v7998_v21 = vld [vmem:[%s12283_s7 + $0xec] sm:$0xf]  ;;  %v6704_v52 = vor.u32 %v8022_v25, %v6701_v51 }
 0x352   :  { %3224 = vmatpush.bf16.msrb.mxu1 %v6680_v33  ;;  %v6608_v22 = vor.u32 %v7998_v21, %v6605_v36  ;;  %v6733_v33 = vld [vmem:[%s12283_s7 + $0x1f8] sm:$0xf0]  ;;  %v8014_v7 = vld [vmem:[%s12283_s7 + $0x16c] sm:$0xf] }
 0x353   :  { %3187 = vmatpush.bf16.msra.mxu2 %v6516_v49  ;;  %3214 = vmatpush.bf16.msrb.mxu0 %v6504_v26  ;;  %v6736_v24 = vor.u32 %v8030_v23, %v6733_v33  ;;  %v6685_v26 = vld [vmem:[%s12283_s7 + $0x198] sm:$0xf0]  ;;  %v6635_v23 = vld [vmem:[%s12283_s7 + $0x128] sm:$0xf]  ;;  %v6656_v33 = vor.u32 %v8010_v60, %v6653_v20  ;;  %v7579_v60 = vld [vmem:[%s12285_s8 + $0x690] sm:$0xf] }
 0x354   :  { %v6636_v34 = vor.u32 %v8008_v18, %v6635_v23  ;;  %v8246_v20 = vld [vmem:[%s12285_s8 + $0x6a8] sm:$0xf0]  ;;  %v8127_v23 = vld [vmem:[%s12285_s8 + $0x2f0] sm:$0xf0]  ;;  %v6879_v18 = vld [vmem:[%s12285_s8 + $0x118] sm:$0xf] }
 0x355   :  { %3199 = vmatpush.bf16.msra.mxu3 %v6660_v38  ;;  %v8026_v38 = vld [vmem:[%s12283_s7 + $0x1cc] sm:$0xf] }
 0x356   :  { %3225 = vmatpush.bf16.msrb.mxu1 %v6664_v45  ;;  %v6720_v40 = vor.u32 %v8026_v38, %v6717_v39  ;;  %v6699_v45 = vld [vmem:[%s12283_s7 + $0x1a8] sm:$0xf] }
 0x357   :  { %3188 = vmatpush.bf16.msra.mxu2 %v6500_v47  ;;  %3215 = vmatpush.bf16.msrb.mxu0 %v6488_v12  ;;  %v6700_v49 = vor.u32 %v8024_v44, %v6699_v45  ;;  %v6651_v12 = vld [vmem:[%s12283_s7 + $0x148] sm:$0xf]  ;;  %v6493_v45 = vld [vmem:[%s12283_s7 + $0x18] sm:$0xf0] }
 0x358   :  { %v6491_v38 = vld [vmem:[%s12283_s7 + $0x8] sm:$0xf] }
 0x359   :  { %3200 = vmatpush.bf16.msra.mxu3 %v6644_v50  ;;  %v6576_v50 = vor.u32 %v7990_v43, %v6573_v48  ;;  %v6619_v39 = vld [vmem:[%s12283_s7 + $0x108] sm:$0xf]  ;;  %v8002_v43 = vld [vmem:[%s12283_s7 + $0x10c] sm:$0xf]  ;;  %v6621_v48 = vld [vmem:[%s12283_s7 + $0x118] sm:$0xf0] }
 0x35a   :  { %3226 = vmatpush.bf16.msrb.mxu1 %v6648_v53  ;;  %v7988_v53 = vld [vmem:[%s12283_s7 + $0x94] sm:$0xf0] }
 0x35b   :  { %3189 = vmatpush.bf16.msra.mxu2 %v6484_v4  ;;  %v6556_v54 = vor.u32 %v7988_v53, %v6555_v8  ;;  %v6541_v4 = vld [vmem:[%s12283_s7 + $0x78] sm:$0xf0]  ;;  %v6624_v8 = vor.u32 %v8002_v43, %v6621_v48  ;;  %v7299_v43 = vld [vmem:[%s12285_s8 + $0x460] sm:$0xf] }
 0x35c   :  { %v6544_v6 = vor.u32 %v7982_v3, %v6541_v4  ;;  %v7383_v4 = vld [vmem:[%s12285_s8 + $0x508] sm:$0xf]  ;;  %v8176_v48 = vld [vmem:[%s12285_s8 + $0x478] sm:$0xf0] }
 0x35d   :  { %3201 = vmatpush.bf16.msra.mxu3 %v6628_v61  ;;  %v8018_v61 = vld [vmem:[%s12283_s7 + $0x18c] sm:$0xf] }
 0x35e   :  { %3227 = vmatpush.bf16.msrb.mxu1 %v6632_v63  ;;  %v6539_v63 = vld [vmem:[%s12283_s7 + $0x68] sm:$0xf] }
 0x361   :  { %3202 = vmatpush.bf16.msra.mxu3 %v6612_v17  ;;  %v6669_v17 = vld [vmem:[%s12283_s7 + $0x178] sm:$0xf0] }
 0x362   :  { %3228 = vmatpush.bf16.msrb.mxu1 %v6616_v13  ;;  %v6672_v11 = vor.u32 %v8014_v7, %v6669_v17  ;;  %v8012_v13 = vld [vmem:[%s12283_s7 + $0x154] sm:$0xf0] }
 0x363   :  { %v6652_v21 = vor.u32 %v8012_v13, %v6651_v12  ;;  %v6907_v13 = vld [vmem:[%s12285_s8 + $0x150] sm:$0xf] }
 0x365   :  { %3247 = vmatpush.bf16.msrb.mxu3 %v6732_v37  ;;  %v6507_v37 = vld [vmem:[%s12283_s7 + $0x28] sm:$0xf] }
 0x3d1   :  { %v2641_v27 = vpop.f32.mrf.mxu3 }
 0x3d2   :  { %v2642_v32 = vadd.f32 %v8259_v15, %v2641_v27  ;;  %v6604_v15 = vor.u32 %v8000_v19, %v6603_v14  ;;  %v6715_v27 = vld [vmem:[%s12283_s7 + $0x1c8] sm:$0xf]  ;;  %v7978_v14 = vld [vmem:[%s12283_s7 + $0x4c] sm:$0xf]  ;;  %v6525_v19 = vld [vmem:[%s12283_s7 + $0x58] sm:$0xf0] }
 0x3d3   :  { %v6528_v36 = vor.u32 %v7978_v14, %v6525_v19  ;;  %v8078_v14 = vld [vmem:[%s12285_s8 + $0x168] sm:$0xf0] }
 0x3d4   :  { %v2645_v42 = vmul.f32 0.5, %v2642_v32  ;;  %3234 = vmatpush.bf16.msrb.mxu2 %v6604_v15  ;;  %v6716_v32 = vor.u32 %v8028_v28, %v6715_v27  ;;  %v6524_v15 = vor.u32 %v7980_v59, %v6523_v10  ;;  %v8006_v27 = vld [vmem:[%s12283_s7 + $0x12c] sm:$0xf]  ;;  %v6637_v28 = vld [vmem:[%s12283_s7 + $0x138] sm:$0xf0] }
 0x3d5   :  { %v7131_v10 = vld [vmem:[%s12285_s8 + $0x310] sm:$0xf] }
 0x3d6   :  { %8276 = vtanh.f32 %v2645_v42  ;;  %v7992_v42 = vld [vmem:[%s12283_s7 + $0xb4] sm:$0xf0]  ;;  %3248 = vmatpush.bf16.msrb.mxu3 %v6716_v32 }
 0x3d7   :  { %v6572_v46 = vor.u32 %v7992_v42, %v6571_v41  ;;  %v8004_v41 = vld [vmem:[%s12283_s7 + $0x114] sm:$0xf0]  ;;  %v7970_v42 = vld [vmem:[%s12283_s7 + $0xc] sm:$0xf] }
 0x3d8   :  { %3235 = vmatpush.bf16.msrb.mxu2 %v6588_v30  ;;  %v2666_v30 = vld [vmem:[%s12284_s14] sm:$0x3]  ;;  %v6496_v25 = vor.u32 %v7970_v42, %v6493_v45 }
 0x3d9   :  { %v2643_v56 = vpop.f32.mrf.mxu3  ;;  %v2669_v44 = vperm.slane %v2666_v30, 1  ;;  %v7523_v45 = vld [vmem:[%s12285_s8 + $0x620] sm:$0xf] }
 0x3da   :  { %v7986_v56 = vld [vmem:[%s12283_s7 + $0x8c] sm:$0xf]  ;;  %3249 = vmatpush.bf16.msrb.mxu3 %v6700_v49 }
 0x3db   :  { %v6560_v47 = vor.u32 %v7986_v56, %v6557_v57 }
 0x3dc   :  { %v8277_v29 = vpop.eup %8276  ;;  %3236 = vmatpush.bf16.msrb.mxu2 %v6572_v46  ;;  %v2668_v46 = vperm.slane %v2666_v30, 0  ;;  %v8239_v30 = vld [vmem:[%s12285_s8 + $0x670] sm:$0xf0] }
 0x3dd   :  { %v2647_v0 = vadd.f32 1.0, %v8277_v29  ;;  %v6688_v29 = vor.u32 %v8018_v61, %v6685_v26  ;;  %v8141_v61 = vld [vmem:[%s12285_s8 + $0x360] sm:$0xf0] }
 0x3de   :  { %3250 = vmatpush.bf16.msrb.mxu3 %v6684_v58 }
 0x3df   :  { %v2648_v62 = vmul.f32 0.5, %v2647_v0  ;;  %v7984_v0 = vld [vmem:[%s12283_s7 + $0x74] sm:$0xf0] }
 0x3e0   :  { %3237 = vmatpush.bf16.msrb.mxu2 %v6556_v54 }
 0x3e1   :  { %v2649_v1 = vpack.c.bf16 %v2648_v62, %v2648_v62  ;;  %v6667_v62 = vld [vmem:[%s12283_s7 + $0x168] sm:$0xf] }
 0x3e2   :  { %v6668_v5 = vor.u32 %v8016_v2, %v6667_v62  ;;  %v8253_v2 = vld [vmem:[%s12285_s8 + $0x6e0] sm:$0xf0] }
 0x3e3   :  { %2760 = vmatmul.bf16.vlgmr.msra.gmra.mxu0 %v2649_v1  ;;  %2773 = vmatmul.bf16.vlgmr.msra.gmra.mxu1 %v2649_v1  ;;  %v6540_v1 = vor.u32 %v7984_v0, %v6539_v63  ;;  %v6935_v63 = vld [vmem:[%s12285_s8 + $0x188] sm:$0xf]  ;;  %v8085_v0 = vld [vmem:[%s12285_s8 + $0x1a0] sm:$0xf0] }
 0x3e4   :  { %3260 = vmatpush.bf16.msra.mxu0 %v6608_v22  ;;  %3273 = vmatpush.bf16.msra.mxu1 %v6736_v24  ;;  %v7976_v22 = vld [vmem:[%s12283_s7 + $0x34] sm:$0xf0]  ;;  %v7974_v24 = vld [vmem:[%s12283_s7 + $0x2c] sm:$0xf]  ;;  %v6936_v59 = vor.u32 %v8085_v0, %v6935_v63  ;;  %v7467_v63 = vld [vmem:[%s12285_s8 + $0x5b0] sm:$0xf] }
 0x3e5   :  { %3238 = vmatpush.bf16.msrb.mxu2 %v6540_v1  ;;  %3251 = vmatpush.bf16.msrb.mxu3 %v6668_v5  ;;  %v6508_v32 = vor.u32 %v7976_v22, %v6507_v37  ;;  %v6512_v35 = vor.u32 %v7974_v24, %v6509_v31  ;;  %v7607_v1 = vld [vmem:[%s12285_s8 + $0x6c8] sm:$0xf]  ;;  %v8197_v5 = vld [vmem:[%s12285_s8 + $0x520] sm:$0xf0]  ;;  %v7103_v22 = vld [vmem:[%s12285_s8 + $0x2d8] sm:$0xf]  ;;  %v7580_v31 = vor.u32 %v8246_v20, %v7579_v60 }
 0x3e6   :  { %v7608_v19 = vor.u32 %v8253_v2, %v7607_v1  ;;  %v8071_v24 = vld [vmem:[%s12285_s8 + $0x130] sm:$0xf0]  ;;  %v8218_v0 = vld [vmem:[%s12285_s8 + $0x5c8] sm:$0xf0]  ;;  %v6991_v1 = vld [vmem:[%s12285_s8 + $0x1f8] sm:$0xf] }
 0x3e7   :  { %v6937_v60 = vld [vmem:[%s12285_s8 + $0x1a4] sm:$0xf0] }
 0x3e8   :  { %3261 = vmatpush.bf16.msra.mxu0 %v6592_v16  ;;  %3274 = vmatpush.bf16.msra.mxu1 %v6720_v40  ;;  %v7972_v16 = vld [vmem:[%s12283_s7 + $0x14] sm:$0xf0]  ;;  %v6640_v40 = vor.u32 %v8006_v27, %v6637_v28 }
 0x3e9   :  { %3239 = vmatpush.bf16.msrb.mxu2 %v6524_v15  ;;  %3252 = vmatpush.bf16.msrb.mxu3 %v6652_v21  ;;  %v6492_v49 = vor.u32 %v7972_v16, %v6491_v38  ;;  %v7384_v15 = vor.u32 %v8197_v5, %v7383_v4  ;;  %v7355_v21 = vld [vmem:[%s12285_s8 + $0x4d0] sm:$0xf]  ;;  %v7551_v27 = vld [vmem:[%s12285_s8 + $0x658] sm:$0xf]  ;;  %v7075_v38 = vld [vmem:[%s12285_s8 + $0x2a0] sm:$0xf] }
 0x3ea   :  { %v8120_v16 = vld [vmem:[%s12285_s8 + $0x2b8] sm:$0xf0]  ;;  %v7552_v42 = vor.u32 %v8239_v30, %v7551_v27  ;;  %v6767_v4 = vld [vmem:[%s12285_s8 + $0x38] sm:$0xf]  ;;  %v8043_v5 = vld [vmem:[%s12285_s8 + $0x50] sm:$0xf0] }
 0x3eb   :  { %v8169_v27 = vld [vmem:[%s12285_s8 + $0x440] sm:$0xf0]  ;;  %v8075_v30 = vld [vmem:[%s12285_s8 + $0x154] sm:$0xf] }
 0x3ec   :  { %3262 = vmatpush.bf16.msra.mxu0 %v6576_v50  ;;  %3275 = vmatpush.bf16.msra.mxu1 %v6704_v52  ;;  %v6620_v50 = vor.u32 %v8004_v41, %v6619_v39  ;;  %v6880_v39 = vor.u32 %v8071_v24, %v6879_v18  ;;  %v8064_v41 = vld [vmem:[%s12285_s8 + $0xf8] sm:$0xf0]  ;;  %v7105_v18 = vld [vmem:[%s12285_s8 + $0x2f4] sm:$0xf0] }
 0x3ed   :  { %3240 = vmatpush.bf16.msrb.mxu2 %v6508_v32  ;;  %3253 = vmatpush.bf16.msrb.mxu3 %v6636_v34  ;;  %v7327_v32 = vld [vmem:[%s12285_s8 + $0x498] sm:$0xf]  ;;  %v8183_v34 = vld [vmem:[%s12285_s8 + $0x4b0] sm:$0xf0] }
 0x3f0   :  { %3263 = vmatpush.bf16.msra.mxu0 %v6560_v47  ;;  %3276 = vmatpush.bf16.msra.mxu1 %v6688_v29  ;;  %v7159_v47 = vld [vmem:[%s12285_s8 + $0x348] sm:$0xf] }
 0x3f1   :  { %3241 = vmatpush.bf16.msrb.mxu2 %v6492_v49  ;;  %3254 = vmatpush.bf16.msrb.mxu3 %v6620_v50  ;;  %v7160_v17 = vor.u32 %v8141_v61, %v7159_v47  ;;  %v7076_v49 = vor.u32 %v8120_v16, %v7075_v38  ;;  %v7047_v50 = vld [vmem:[%s12285_s8 + $0x268] sm:$0xf]  ;;  %v8106_v47 = vld [vmem:[%s12285_s8 + $0x248] sm:$0xf0]  ;;  %v6795_v61 = vld [vmem:[%s12285_s8 + $0x70] sm:$0xf] }
 0x3f2   :  { %v8211_v38 = vld [vmem:[%s12285_s8 + $0x590] sm:$0xf0] }
 0x3f4   :  { %3264 = vmatpush.bf16.msra.mxu0 %v6544_v6  ;;  %3277 = vmatpush.bf16.msra.mxu1 %v6672_v11  ;;  %v8134_v11 = vld [vmem:[%s12285_s8 + $0x328] sm:$0xf0] }
 0x3f5   :  { %v7132_v37 = vor.u32 %v8134_v11, %v7131_v10  ;;  %v8092_v10 = vld [vmem:[%s12285_s8 + $0x1d8] sm:$0xf0]  ;;  %v6768_v11 = vor.u32 %v8043_v5, %v6767_v4  ;;  %v8054_v5 = vld [vmem:[%s12285_s8 + $0xac] sm:$0xf] }
 0x3f8   :  { %3265 = vmatpush.bf16.msra.mxu0 %v6528_v36  ;;  %3278 = vmatpush.bf16.msra.mxu1 %v6656_v33  ;;  %v8190_v36 = vld [vmem:[%s12285_s8 + $0x4e8] sm:$0xf0]  ;;  %v6908_v33 = vor.u32 %v8078_v14, %v6907_v13  ;;  %v8036_v13 = vld [vmem:[%s12285_s8 + $0x18] sm:$0xf0]  ;;  %v7161_v14 = vld [vmem:[%s12285_s8 + $0x364] sm:$0xf0] }
 0x3f9   :  { %v7356_v28 = vor.u32 %v8190_v36, %v7355_v21 }
 0x3fc   :  { %3266 = vmatpush.bf16.msra.mxu0 %v6512_v35  ;;  %3279 = vmatpush.bf16.msra.mxu1 %v6640_v40  ;;  %v7104_v35 = vor.u32 %v8127_v23, %v7103_v22  ;;  %v6851_v40 = vld [vmem:[%s12285_s8 + $0xe0] sm:$0xf]  ;;  %v7133_v22 = vld [vmem:[%s12285_s8 + $0x32c] sm:$0xf0] }
 0x400   :  { %3267 = vmatpush.bf16.msra.mxu0 %v6496_v25  ;;  %3280 = vmatpush.bf16.msra.mxu1 %v6624_v8  ;;  %v6852_v25 = vor.u32 %v8064_v41, %v6851_v40  ;;  %v8057_v8 = vld [vmem:[%s12285_s8 + $0xc0] sm:$0xf0]  ;;  %v7077_v40 = vld [vmem:[%s12285_s8 + $0x2bc] sm:$0xf0] }
 0x460   :  { %v2761_v51 = vpop.f32.mrf.mxu0  ;;  %v2774_v52 = vpop.f32.mrf.mxu1 }
 0x461   :  { %v2762_v53 = vadd.f32 %v2761_v51, %v2668_v46  ;;  %v2775_v9 = vadd.f32 %v2774_v52, %v2669_v44  ;;  %v7328_v46 = vor.u32 %v8183_v34, %v7327_v32  ;;  %v8232_v44 = vld [vmem:[%s12285_s8 + $0x638] sm:$0xf0]  ;;  %v8113_v51 = vld [vmem:[%s12285_s8 + $0x280] sm:$0xf0]  ;;  %v6823_v52 = vld [vmem:[%s12285_s8 + $0xa8] sm:$0xf] }
 0x462   :  { %v6909_v32 = vld [vmem:[%s12285_s8 + $0x16c] sm:$0xf0] }
 0x463   :  { %v2778_v54 = vmul.f32 0.5, %v2762_v53  ;;  %v2779_v55 = vmul.f32 0.5, %v2775_v9  ;;  %v7524_v53 = vor.u32 %v8232_v44, %v7523_v45  ;;  %v7300_v9 = vor.u32 %v8176_v48, %v7299_v43  ;;  %v8162_v45 = vld [vmem:[%s12285_s8 + $0x408] sm:$0xf0]  ;;  %v8068_v44 = vld [vmem:[%s12285_s8 + $0x11c] sm:$0xf] }
 0x464   :  { %v6912_v34 = vor.u32 %v8075_v30, %v6909_v32  ;;  %v6881_v43 = vld [vmem:[%s12285_s8 + $0x134] sm:$0xf0]  ;;  %v8180_v32 = vld [vmem:[%s12285_s8 + $0x49c] sm:$0xf] }
 0x465   :  { %8278 = vtanh.f32 %v2778_v54  ;;  %v7495_v54 = vld [vmem:[%s12285_s8 + $0x5e8] sm:$0xf]  ;;  %v6884_v48 = vor.u32 %v8068_v44, %v6881_v43  ;;  %v6769_v30 = vld [vmem:[%s12285_s8 + $0x54] sm:$0xf0]  ;;  %v7301_v44 = vld [vmem:[%s12285_s8 + $0x47c] sm:$0xf0] }
 0x466   :  { %8280 = vtanh.f32 %v2779_v55  ;;  %v8225_v55 = vld [vmem:[%s12285_s8 + $0x600] sm:$0xf0] }
 0x468   :  { %v2763_v56 = vpop.f32.mrf.mxu0  ;;  %v2776_v57 = vpop.f32.mrf.mxu1 }
 0x469   :  { %v7048_v56 = vor.u32 %v8113_v51, %v7047_v50  ;;  %v7019_v57 = vld [vmem:[%s12285_s8 + $0x230] sm:$0xf]  ;;  %v8204_v50 = vld [vmem:[%s12285_s8 + $0x558] sm:$0xf0]  ;;  %v8110_v51 = vld [vmem:[%s12285_s8 + $0x26c] sm:$0xf] }
 0x46b   :  { %v8279_v58 = vpop.eup %8278 }
 0x46c   :  { %v8281_v26 = vpop.eup %8280  ;;  %v2782_v29 = vadd.f32 1.0, %v8279_v58  ;;  %v6824_v58 = vor.u32 %v8057_v8, %v6823_v52  ;;  %v7049_v52 = vld [vmem:[%s12285_s8 + $0x284] sm:$0xf0]  ;;  %v8250_v8 = vld [vmem:[%s12285_s8 + $0x6cc] sm:$0xf] }
 0x46d   :  { %v2783_v62 = vadd.f32 1.0, %v8281_v26  ;;  %v8050_v26 = vld [vmem:[%s12285_s8 + $0x88] sm:$0xf0] }
 0x46e   :  { %v2784_v3 = vmul.f32 0.5, %v2782_v29  ;;  %v7496_v29 = vor.u32 %v8225_v55, %v7495_v54  ;;  %v6796_v2 = vor.u32 %v8050_v26, %v6795_v61  ;;  %v7215_v54 = vld [vmem:[%s12285_s8 + $0x3b8] sm:$0xf]  ;;  %v8103_v26 = vld [vmem:[%s12285_s8 + $0x234] sm:$0xf] }
 0x46f   :  { %v2785_v6 = vmul.f32 0.5, %v2783_v62  ;;  %v7020_v62 = vor.u32 %v8106_v47, %v7019_v57  ;;  %v8061_v57 = vld [vmem:[%s12285_s8 + $0xe4] sm:$0xf] }
 0x470   :  { %v10857_v7 = vpack.c.bf16 %v2784_v3, %v2784_v3  ;;  %v8099_v3 = vld [vmem:[%s12285_s8 + $0x210] sm:$0xf0] }
 0x471   :  { %v10865_v12 = vpack.c.bf16 %v2785_v6, %v2785_v6  ;;  %v7468_v6 = vor.u32 %v8218_v0, %v7467_v63  ;;  %v8243_v63 = vld [vmem:[%s12285_s8 + $0x694] sm:$0xf] }
 0x472   :  { %3190 = vmatmul.bf16.vlgmr.msra.gmra.mxu2 %v10857_v7  ;;  %3216 = vmatmul.bf16.vlgmr.msrb.gmra.mxu0 %v10857_v7 }
 0x473   :  { %3203 = vmatmul.bf16.vlgmr.msra.gmra.mxu3 %v10865_v12  ;;  %3229 = vmatmul.bf16.vlgmr.msrb.gmra.mxu1 %v10865_v12 }
 0x474   :  { %4743 = vmatpush.bf16.msra.mxu3 %v7160_v17  ;;  %4730 = vmatpush.bf16.msra.mxu2 %v6936_v59  ;;  %v6963_v17 = vld [vmem:[%s12285_s8 + $0x1c0] sm:$0xf]  ;;  %v8138_v59 = vld [vmem:[%s12285_s8 + $0x34c] sm:$0xf] }
 0x475   :  { %4769 = vmatpush.bf16.msrb.mxu1 %v7608_v19  ;;  %4756 = vmatpush.bf16.msrb.mxu0 %v7384_v15  ;;  %v8082_v19 = vld [vmem:[%s12285_s8 + $0x18c] sm:$0xf]  ;;  %v6964_v15 = vor.u32 %v8092_v10, %v6963_v17  ;;  %v7164_v21 = vor.u32 %v8138_v59, %v7161_v14  ;;  %v7385_v10 = vld [vmem:[%s12285_s8 + $0x524] sm:$0xf0]  ;;  %v8096_v59 = vld [vmem:[%s12285_s8 + $0x1fc] sm:$0xf] }
 0x476   :  { %v6940_v36 = vor.u32 %v8082_v19, %v6937_v60  ;;  %v7553_v19 = vld [vmem:[%s12285_s8 + $0x674] sm:$0xf0] }
 0x478   :  { %4744 = vmatpush.bf16.msra.mxu3 %v7132_v37  ;;  %4731 = vmatpush.bf16.msra.mxu2 %v6908_v33  ;;  %v8131_v37 = vld [vmem:[%s12285_s8 + $0x314] sm:$0xf]  ;;  %v8124_v33 = vld [vmem:[%s12285_s8 + $0x2dc] sm:$0xf] }
 0x479   :  { %4770 = vmatpush.bf16.msrb.mxu1 %v7580_v31  ;;  %4757 = vmatpush.bf16.msrb.mxu0 %v7356_v28  ;;  %v7136_v23 = vor.u32 %v8131_v37, %v7133_v22  ;;  %v7108_v24 = vor.u32 %v8124_v33, %v7105_v18  ;;  %v7271_v31 = vld [vmem:[%s12285_s8 + $0x428] sm:$0xf]  ;;  %v7357_v37 = vld [vmem:[%s12285_s8 + $0x4ec] sm:$0xf0]  ;;  %v6965_v33 = vld [vmem:[%s12285_s8 + $0x1dc] sm:$0xf0] }
 0x47a   :  { %v7272_v28 = vor.u32 %v8169_v27, %v7271_v31  ;;  %v8229_v18 = vld [vmem:[%s12285_s8 + $0x624] sm:$0xf]  ;;  %v7525_v31 = vld [vmem:[%s12285_s8 + $0x63c] sm:$0xf0] }
 0x47b   :  { %v7528_v27 = vor.u32 %v8229_v18, %v7525_v31 }
 0x47c   :  { %4745 = vmatpush.bf16.msra.mxu3 %v7104_v35  ;;  %4732 = vmatpush.bf16.msra.mxu2 %v6880_v39  ;;  %v7439_v35 = vld [vmem:[%s12285_s8 + $0x578] sm:$0xf]  ;;  %v8117_v39 = vld [vmem:[%s12285_s8 + $0x2a4] sm:$0xf] }
 0x47d   :  { %4771 = vmatpush.bf16.msrb.mxu1 %v7552_v42  ;;  %4758 = vmatpush.bf16.msrb.mxu0 %v7328_v46  ;;  %v7440_v16 = vor.u32 %v8211_v38, %v7439_v35  ;;  %v7080_v41 = vor.u32 %v8117_v39, %v7077_v40  ;;  %v7243_v42 = vld [vmem:[%s12285_s8 + $0x3f0] sm:$0xf]  ;;  %v7329_v35 = vld [vmem:[%s12285_s8 + $0x4b4] sm:$0xf0]  ;;  %v7497_v39 = vld [vmem:[%s12285_s8 + $0x604] sm:$0xf0] }
 0x47e   :  { %v7244_v46 = vor.u32 %v8162_v45, %v7243_v42  ;;  %v7332_v38 = vor.u32 %v8180_v32, %v7329_v35  ;;  %v6741_v42 = vld [vmem:[%s12285_s8 + $0x1c] sm:$0xf0]  ;;  %v8173_v45 = vld [vmem:[%s12285_s8 + $0x464] sm:$0xf] }
 0x47f   :  { %v7304_v43 = vor.u32 %v8173_v45, %v7301_v44  ;;  %v8128_v44 = vld [vmem:[%s12285_s8 + $0x2f8] sm:$0xf0] }
 0x480   :  { %4746 = vmatpush.bf16.msra.mxu3 %v7076_v49  ;;  %4733 = vmatpush.bf16.msra.mxu2 %v6852_v25  ;;  %v7411_v49 = vld [vmem:[%s12285_s8 + $0x540] sm:$0xf] }
 0x481   :  { %4772 = vmatpush.bf16.msrb.mxu1 %v7524_v53  ;;  %4759 = vmatpush.bf16.msrb.mxu0 %v7300_v9  ;;  %v7412_v25 = vor.u32 %v8204_v50, %v7411_v49  ;;  %v7052_v53 = vor.u32 %v8110_v51, %v7049_v52  ;;  %v7609_v9 = vld [vmem:[%s12285_s8 + $0x6e4] sm:$0xf0]  ;;  %v7469_v49 = vld [vmem:[%s12285_s8 + $0x5cc] sm:$0xf0]  ;;  %v11196_v50 = vld [vmem:[%s12286_s15] sm:$0xf] }
 0x482   :  { %3242 = vmatmul.bf16.vlgmr.msrb.gmra.mxu2 %v10857_v7  ;;  %3268 = vmatmul.bf16.vlgmr.msra.gmra.mxu0 %v10857_v7  ;;  %v6992_v7 = vor.u32 %v8099_v3, %v6991_v1  ;;  %v7612_v55 = vor.u32 %v8250_v8, %v7609_v9  ;;  %v7187_v1 = vld [vmem:[%s12285_s8 + $0x380] sm:$0xf]  ;;  %v8166_v51 = vld [vmem:[%s12285_s8 + $0x42c] sm:$0xf]  ;;  %v7273_v52 = vld [vmem:[%s12285_s8 + $0x444] sm:$0xf0] }
 0x483   :  { %3255 = vmatmul.bf16.vlgmr.msrb.gmra.mxu3 %v10865_v12  ;;  %3281 = vmatmul.bf16.vlgmr.msra.gmra.mxu1 %v10865_v12  ;;  %v6739_v12 = vld [vmem:[%s12285_s8] sm:$0xf]  ;;  %v7276_v8 = vor.u32 %v8166_v51, %v7273_v52  ;;  %v8208_v9 = vld [vmem:[%s12285_s8 + $0x57c] sm:$0xf]  ;;  %v2856_v35 = vperm.slane %v11196_v50, 2 }
 0x484   :  { %4747 = vmatpush.bf16.msra.mxu3 %v7048_v56  ;;  %4734 = vmatpush.bf16.msra.mxu2 %v6824_v58  ;;  %v6740_v20 = vor.u32 %v8036_v13, %v6739_v12  ;;  %v8155_v56 = vld [vmem:[%s12285_s8 + $0x3d0] sm:$0xf0]  ;;  %v6853_v58 = vld [vmem:[%s12285_s8 + $0xfc] sm:$0xf0]  ;;  %v6993_v12 = vld [vmem:[%s12285_s8 + $0x214] sm:$0xf0] }
 0x485   :  { %4773 = vmatpush.bf16.msrb.mxu1 %v7496_v29  ;;  %4760 = vmatpush.bf16.msrb.mxu0 %v7272_v28  ;;  %v7216_v47 = vor.u32 %v8155_v56, %v7215_v54  ;;  %v6856_v61 = vor.u32 %v8061_v57, %v6853_v58  ;;  %v7021_v29 = vld [vmem:[%s12285_s8 + $0x24c] sm:$0xf0]  ;;  %v8236_v13 = vld [vmem:[%s12285_s8 + $0x65c] sm:$0xf]  ;;  %v6996_v14 = vor.u32 %v8096_v59, %v6993_v12  ;;  %v7441_v54 = vld [vmem:[%s12285_s8 + $0x594] sm:$0xf0] }
 0x486   :  { %v7024_v0 = vor.u32 %v8103_v26, %v7021_v29  ;;  %v7556_v60 = vor.u32 %v8236_v13, %v7553_v19  ;;  %v8040_v28 = vld [vmem:[%s12285_s8 + $0x3c] sm:$0xf]  ;;  %v8159_v56 = vld [vmem:[%s12285_s8 + $0x3f4] sm:$0xf]  ;;  %v7245_v57 = vld [vmem:[%s12285_s8 + $0x40c] sm:$0xf0] }
 0x487   :  { %v8201_v29 = vld [vmem:[%s12285_s8 + $0x544] sm:$0xf]  ;;  %v6915_v51 = vld [vmem:[%s12285_s8 + $0x158] sm:$0xf]  ;;  %v8079_v52 = vld [vmem:[%s12285_s8 + $0x170] sm:$0xf0] }
 0x488   :  { %4748 = vmatpush.bf16.msra.mxu3 %v7020_v62  ;;  %4735 = vmatpush.bf16.msra.mxu2 %v6796_v2  ;;  %v7581_v62 = vld [vmem:[%s12285_s8 + $0x6ac] sm:$0xf0]  ;;  %v8148_v2 = vld [vmem:[%s12285_s8 + $0x398] sm:$0xf0] }
 0x489   :  { %4774 = vmatpush.bf16.msrb.mxu1 %v7468_v6  ;;  %4761 = vmatpush.bf16.msrb.mxu0 %v7244_v46  ;;  %v7584_v3 = vor.u32 %v8243_v63, %v7581_v62  ;;  %v7188_v4 = vor.u32 %v8148_v2, %v7187_v1  ;;  %v6825_v6 = vld [vmem:[%s12285_s8 + $0xc4] sm:$0xf0]  ;;  %v7413_v63 = vld [vmem:[%s12285_s8 + $0x55c] sm:$0xf0]  ;;  %v2854_v1 = vperm.slane %v11196_v50, 0 }
 0x48a   :  { %v6828_v17 = vor.u32 %v8054_v5, %v6825_v6  ;;  %v8152_v2 = vld [vmem:[%s12285_s8 + $0x3bc] sm:$0xf] }
 0x48c   :  { %4749 = vmatpush.bf16.msra.mxu3 %v6992_v7  ;;  %4736 = vmatpush.bf16.msra.mxu2 %v6768_v11  ;;  %v8194_v7 = vld [vmem:[%s12285_s8 + $0x50c] sm:$0xf] }
 0x48d   :  { %4775 = vmatpush.bf16.msrb.mxu1 %v7440_v16  ;;  %4762 = vmatpush.bf16.msrb.mxu0 %v7216_v47  ;;  %v7388_v11 = vor.u32 %v8194_v7, %v7385_v10  ;;  %v8222_v16 = vld [vmem:[%s12285_s8 + $0x5ec] sm:$0xf]  ;;  %v7248_v47 = vor.u32 %v8159_v56, %v7245_v57  ;;  %v8145_v10 = vld [vmem:[%s12285_s8 + $0x384] sm:$0xf]  ;;  %v6916_v57 = vor.u32 %v8079_v52, %v6915_v51  ;;  %v6775_v51 = vld [vmem:[%s12285_s8 + $0x40] sm:$0xf] }
 0x48e   :  { %v7500_v40 = vor.u32 %v8222_v16, %v7497_v39  ;;  %v6943_v16 = vld [vmem:[%s12285_s8 + $0x190] sm:$0xf]  ;;  %v8086_v39 = vld [vmem:[%s12285_s8 + $0x1a8] sm:$0xf0]  ;;  %v8044_v52 = vld [vmem:[%s12285_s8 + $0x58] sm:$0xf0] }
 0x490   :  { %4750 = vmatpush.bf16.msra.mxu3 %v6964_v15  ;;  %4737 = vmatpush.bf16.msra.mxu2 %v6740_v20  ;;  %v8047_v15 = vld [vmem:[%s12285_s8 + $0x74] sm:$0xf]  ;;  %v6797_v20 = vld [vmem:[%s12285_s8 + $0x8c] sm:$0xf0] }
 0x491   :  { %4776 = vmatpush.bf16.msrb.mxu1 %v7412_v25  ;;  %4763 = vmatpush.bf16.msrb.mxu0 %v7188_v4 }
 0x494   :  { %4795 = vmatpush.bf16.msrb.mxu3 %v7164_v21  ;;  %4782 = vmatpush.bf16.msrb.mxu2 %v6940_v36  ;;  %v8187_v21 = vld [vmem:[%s12285_s8 + $0x4d4] sm:$0xf]  ;;  %v6800_v36 = vor.u32 %v8047_v15, %v6797_v20  ;;  %v2857_v15 = vperm.slane %v11196_v50, 3 }
 0x495   :  { %4821 = vmatpush.bf16.msra.mxu1 %v7612_v55  ;;  %4808 = vmatpush.bf16.msra.mxu0 %v7388_v11  ;;  %v7360_v22 = vor.u32 %v8187_v21, %v7357_v37  ;;  %v7444_v55 = vor.u32 %v8208_v9, %v7441_v54  ;;  %v7189_v11 = vld [vmem:[%s12285_s8 + $0x39c] sm:$0xf0]  ;;  %v8142_v37 = vld [vmem:[%s12285_s8 + $0x368] sm:$0xf0]  ;;  %v7083_v54 = vld [vmem:[%s12285_s8 + $0x2a8] sm:$0xf] }
 0x496   :  { %v7192_v12 = vor.u32 %v8145_v10, %v7189_v11  ;;  %v7027_v11 = vld [vmem:[%s12285_s8 + $0x238] sm:$0xf] }
 0x498   :  { %4796 = vmatpush.bf16.msrb.mxu3 %v7136_v23  ;;  %4783 = vmatpush.bf16.msrb.mxu2 %v6912_v34  ;;  %v8089_v23 = vld [vmem:[%s12285_s8 + $0x1c4] sm:$0xf]  ;;  %v6772_v34 = vor.u32 %v8040_v28, %v6769_v30  ;;  %v7139_v28 = vld [vmem:[%s12285_s8 + $0x318] sm:$0xf]  ;;  %v8135_v30 = vld [vmem:[%s12285_s8 + $0x330] sm:$0xf0] }
 0x499   :  { %4822 = vmatpush.bf16.msra.mxu1 %v7584_v3  ;;  %4809 = vmatpush.bf16.msra.mxu0 %v7360_v22  ;;  %v7217_v3 = vld [vmem:[%s12285_s8 + $0x3d4] sm:$0xf0] }
 0x49a   :  { %v7220_v4 = vor.u32 %v8152_v2, %v7217_v3  ;;  %v8254_v2 = vld [vmem:[%s12285_s8 + $0x6e8] sm:$0xf0] }
 0x49c   :  { %4797 = vmatpush.bf16.msrb.mxu3 %v7108_v24  ;;  %4784 = vmatpush.bf16.msrb.mxu2 %v6884_v48  ;;  %v6968_v24 = vor.u32 %v8089_v23, %v6965_v33  ;;  %v8215_v48 = vld [vmem:[%s12285_s8 + $0x5b4] sm:$0xf] }
 0x49d   :  { %4823 = vmatpush.bf16.msra.mxu1 %v7556_v60  ;;  %4810 = vmatpush.bf16.msra.mxu0 %v7332_v38  ;;  %v7472_v25 = vor.u32 %v8215_v48, %v7469_v49  ;;  %v6944_v49 = vor.u32 %v8086_v39, %v6943_v16  ;;  %v7363_v16 = vld [vmem:[%s12285_s8 + $0x4d8] sm:$0xf]  ;;  %v8191_v39 = vld [vmem:[%s12285_s8 + $0x4f0] sm:$0xf0] }
 0x4a0   :  { %4798 = vmatpush.bf16.msrb.mxu3 %v7080_v41  ;;  %4785 = vmatpush.bf16.msrb.mxu2 %v6856_v61  ;;  %v8033_v41 = vld [vmem:[%s12285_s8 + $0x4] sm:$0xf] }
 0x4a1   :  { %4824 = vmatpush.bf16.msra.mxu1 %v7528_v27  ;;  %v6744_v46 = vor.u32 %v8033_v41, %v6741_v42  ;;  %4811 = vmatpush.bf16.msra.mxu0 %v7304_v43  ;;  %v7140_v41 = vor.u32 %v8135_v30, %v7139_v28  ;;  %v8240_v28 = vld [vmem:[%s12285_s8 + $0x678] sm:$0xf0] }
 0x4a4   :  { %4799 = vmatpush.bf16.msrb.mxu3 %v7052_v53  ;;  %4786 = vmatpush.bf16.msrb.mxu2 %v6828_v17  ;;  %v2855_v53 = vperm.slane %v11196_v50, 1 }
 0x4a5   :  { %4825 = vmatpush.bf16.msra.mxu1 %v7500_v40  ;;  %4812 = vmatpush.bf16.msra.mxu0 %v7276_v8 }
 0x4a8   :  { %4800 = vmatpush.bf16.msrb.mxu3 %v7024_v0  ;;  %4787 = vmatpush.bf16.msrb.mxu2 %v6800_v36  ;;  %v7416_v0 = vor.u32 %v8201_v29, %v7413_v63  ;;  %v7167_v36 = vld [vmem:[%s12285_s8 + $0x350] sm:$0xf]  ;;  %v8114_v63 = vld [vmem:[%s12285_s8 + $0x288] sm:$0xf0] }
 0x4a9   :  { %4826 = vmatpush.bf16.msra.mxu1 %v7472_v25  ;;  %4813 = vmatpush.bf16.msra.mxu0 %v7248_v47  ;;  %v7168_v31 = vor.u32 %v8142_v37, %v7167_v36  ;;  %v8072_v47 = vld [vmem:[%s12285_s8 + $0x138] sm:$0xf0]  ;;  %v7055_v29 = vld [vmem:[%s12285_s8 + $0x270] sm:$0xf]  ;;  %v8198_v37 = vld [vmem:[%s12285_s8 + $0x528] sm:$0xf0] }
 0x4aa   :  { %v7391_v36 = vld [vmem:[%s12285_s8 + $0x510] sm:$0xf] }
 0x4ac   :  { %4801 = vmatpush.bf16.msrb.mxu3 %v6996_v14  ;;  %4788 = vmatpush.bf16.msrb.mxu2 %v6772_v34 }
 0x4ad   :  { %4827 = vmatpush.bf16.msra.mxu1 %v7444_v55  ;;  %4814 = vmatpush.bf16.msra.mxu0 %v7220_v4  ;;  %v8121_v55 = vld [vmem:[%s12285_s8 + $0x2c0] sm:$0xf0] }
 0x4b0   :  { %4802 = vmatpush.bf16.msrb.mxu3 %v6968_v24  ;;  %4789 = vmatpush.bf16.msrb.mxu2 %v6744_v46  ;;  %v7111_v46 = vld [vmem:[%s12285_s8 + $0x2e0] sm:$0xf] }
 0x4b1   :  { %4828 = vmatpush.bf16.msra.mxu1 %v7416_v0  ;;  %4815 = vmatpush.bf16.msra.mxu0 %v7192_v12  ;;  %v7112_v9 = vor.u32 %v8128_v44, %v7111_v46  ;;  %v8107_v12 = vld [vmem:[%s12285_s8 + $0x250] sm:$0xf0]  ;;  %v7531_v46 = vld [vmem:[%s12285_s8 + $0x628] sm:$0xf]  ;;  %v8233_v44 = vld [vmem:[%s12285_s8 + $0x640] sm:$0xf0] }
 0x4ef   :  { %v3217_v58 = vpop.f32.mrf.mxu0 }
 0x4f0   :  { %v3218_v61 = vadd.f32 %v3217_v58, %v2855_v53  ;;  %v3230_v26 = vpop.f32.mrf.mxu1  ;;  %v6887_v58 = vld [vmem:[%s12285_s8 + $0x120] sm:$0xf] }
 0x4f1   :  { %v6888_v4 = vor.u32 %v8072_v47, %v6887_v58  ;;  %v6776_v58 = vor.u32 %v8044_v52, %v6775_v51  ;;  %v8104_v52 = vld [vmem:[%s12285_s8 + $0x23c] sm:$0xf] }
 0x4f2   :  { %v3231_v62 = vadd.f32 %v3230_v26, %v3218_v61  ;;  %v7084_v26 = vor.u32 %v8121_v55, %v7083_v54  ;;  %v7532_v54 = vor.u32 %v8233_v44, %v7531_v46  ;;  %v7223_v46 = vld [vmem:[%s12285_s8 + $0x3c0] sm:$0xf]  ;;  %v8156_v44 = vld [vmem:[%s12285_s8 + $0x3d8] sm:$0xf0] }
 0x4f4   :  { %v3287_v5 = vmul.f32 0.5, %v3231_v62 }
 0x4f5   :  { %v3191_v6 = vpop.f32.mrf.mxu2 }
 0x4f6   :  { %8282 = vtanh.f32 %v3287_v5  ;;  %v3192_v7 = vadd.f32 %v3191_v6, %v2854_v1  ;;  %v3204_v17 = vpop.f32.mrf.mxu3  ;;  %v7615_v1 = vld [vmem:[%s12285_s8 + $0x6d0] sm:$0xf]  ;;  %v6859_v6 = vld [vmem:[%s12285_s8 + $0xe8] sm:$0xf] }
 0x4f7   :  { %v3219_v59 = vpop.f32.mrf.mxu0  ;;  %v7616_v10 = vor.u32 %v8254_v2, %v7615_v1  ;;  %v8083_v2 = vld [vmem:[%s12285_s8 + $0x194] sm:$0xf] }
 0x4f8   :  { %v3205_v13 = vadd.f32 %v3204_v17, %v3192_v7  ;;  %v3232_v14 = vpop.f32.mrf.mxu1  ;;  %v8065_v7 = vld [vmem:[%s12285_s8 + $0x100] sm:$0xf0]  ;;  %v7056_v17 = vor.u32 %v8114_v63, %v7055_v29  ;;  %v6747_v29 = vld [vmem:[%s12285_s8 + $0x8] sm:$0xf] }
 0x4f9   :  { %v8247_v14 = vld [vmem:[%s12285_s8 + $0x6b0] sm:$0xf0]  ;;  %v8037_v63 = vld [vmem:[%s12285_s8 + $0x20] sm:$0xf0] }
 0x4fa   :  { %v3286_v19 = vmul.f32 0.5, %v3205_v13  ;;  %v7587_v13 = vld [vmem:[%s12285_s8 + $0x698] sm:$0xf] }
 0x4fc   :  { %v8283_v60 = vpop.eup %8282  ;;  %8284 = vtanh.f32 %v3286_v19 }
 0x4fd   :  { %v3295_v20 = vadd.f32 1.0, %v8283_v60  ;;  %v3193_v21 = vpop.f32.mrf.mxu2  ;;  %v6860_v60 = vor.u32 %v8065_v7, %v6859_v6  ;;  %v8219_v6 = vld [vmem:[%s12285_s8 + $0x5d0] sm:$0xf0]  ;;  %v6748_v7 = vor.u32 %v8037_v63, %v6747_v29 }
 0x4fe   :  { %v3206_v22 = vpop.f32.mrf.mxu3 }
 0x4ff   :  { %v3299_v23 = vmul.f32 0.5, %v3295_v20  ;;  %v3269_v33 = vpop.f32.mrf.mxu0  ;;  %v8058_v20 = vld [vmem:[%s12285_s8 + $0xc8] sm:$0xf0]  ;;  %v7028_v22 = vor.u32 %v8107_v12, %v7027_v11  ;;  %v7113_v11 = vld [vmem:[%s12285_s8 + $0x2fc] sm:$0xf0] }
 0x500   :  { %v3270_v18 = vadd.f32 %v3269_v33, %v2857_v15  ;;  %v3282_v24 = vpop.f32.mrf.mxu1  ;;  %v6831_v15 = vld [vmem:[%s12285_s8 + $0xb0] sm:$0xf]  ;;  %v6999_v33 = vld [vmem:[%s12285_s8 + $0x200] sm:$0xf] }
 0x501   :  { %v11243_v27 = vpack.c.bf16 %v3299_v23, %v3299_v23  ;;  %v7588_v23 = vor.u32 %v8247_v14, %v7587_v13  ;;  %v6832_v30 = vor.u32 %v8058_v20, %v6831_v15  ;;  %v7279_v13 = vld [vmem:[%s12285_s8 + $0x430] sm:$0xf]  ;;  %v8170_v14 = vld [vmem:[%s12285_s8 + $0x448] sm:$0xf0]  ;;  %v6917_v15 = vld [vmem:[%s12285_s8 + $0x174] sm:$0xf0] }
 0x502   :  { %v8285_v32 = vpop.eup %8284  ;;  %v3283_v34 = vadd.f32 %v3282_v24, %v3270_v18  ;;  %v8100_v18 = vld [vmem:[%s12285_s8 + $0x218] sm:$0xf0] }
 0x503   :  { %v3294_v38 = vadd.f32 1.0, %v8285_v32  ;;  %4751 = vmatmul.bf16.vlgmr.msra.gmra.mxu3 %v11243_v27  ;;  %v7392_v32 = vor.u32 %v8198_v37, %v7391_v36  ;;  %v8212_v36 = vld [vmem:[%s12285_s8 + $0x598] sm:$0xf0]  ;;  %v7280_v37 = vor.u32 %v8170_v14, %v7279_v13  ;;  %v8090_v13 = vld [vmem:[%s12285_s8 + $0x1cc] sm:$0xf] }
 0x504   :  { %v3289_v40 = vmul.f32 0.5, %v3283_v34  ;;  %4847 = vmatpush.bf16.msra.mxu3 %v7168_v31  ;;  %v7559_v31 = vld [vmem:[%s12285_s8 + $0x660] sm:$0xf]  ;;  %v6803_v34 = vld [vmem:[%s12285_s8 + $0x78] sm:$0xf] }
 0x505   :  { %v3298_v42 = vmul.f32 0.5, %v3294_v38  ;;  %v3243_v45 = vpop.f32.mrf.mxu2  ;;  %v8051_v38 = vld [vmem:[%s12285_s8 + $0x90] sm:$0xf0]  ;;  %v6973_v14 = vld [vmem:[%s12285_s8 + $0x1e4] sm:$0xf0] }
 0x506   :  { %8286 = vtanh.f32 %v3289_v40  ;;  %v3244_v43 = vadd.f32 %v3243_v45, %v2856_v35  ;;  %v3256_v48 = vpop.f32.mrf.mxu3  ;;  %v7000_v40 = vor.u32 %v8100_v18, %v6999_v33  ;;  %v8093_v45 = vld [vmem:[%s12285_s8 + $0x1e0] sm:$0xf0]  ;;  %v7251_v18 = vld [vmem:[%s12285_s8 + $0x3f8] sm:$0xf] }
 0x507   :  { %v11265_v50 = vpack.c.bf16 %v3298_v42, %v3298_v42  ;;  %v3271_v25 = vpop.f32.mrf.mxu0  ;;  %v6971_v42 = vld [vmem:[%s12285_s8 + $0x1c8] sm:$0xf] }
 0x508   :  { %v3257_v8 = vadd.f32 %v3256_v48, %v3244_v43  ;;  %v3284_v53 = vpop.f32.mrf.mxu1  ;;  %4848 = vmatpush.bf16.msra.mxu3 %v7140_v41  ;;  %v7560_v41 = vor.u32 %v8240_v28, %v7559_v31  ;;  %v6804_v43 = vor.u32 %v8051_v38, %v6803_v34  ;;  %v7364_v48 = vor.u32 %v8191_v39, %v7363_v16  ;;  %v7169_v25 = vld [vmem:[%s12285_s8 + $0x36c] sm:$0xf0]  ;;  %v8069_v28 = vld [vmem:[%s12285_s8 + $0x124] sm:$0xf]  ;;  %v7419_v34 = vld [vmem:[%s12285_s8 + $0x548] sm:$0xf] }
 0x509   :  { %4738 = vmatmul.bf16.vlgmr.msra.gmra.mxu2 %v11265_v50  ;;  %v8184_v53 = vld [vmem:[%s12285_s8 + $0x4b8] sm:$0xf0]  ;;  %v8205_v38 = vld [vmem:[%s12285_s8 + $0x560] sm:$0xf0]  ;;  %v8111_v16 = vld [vmem:[%s12285_s8 + $0x274] sm:$0xf] }
 0x50a   :  { %v3288_v56 = vmul.f32 0.5, %v3257_v8  ;;  %4834 = vmatpush.bf16.msra.mxu2 %v6944_v49  ;;  %v8139_v49 = vld [vmem:[%s12285_s8 + $0x354] sm:$0xf]  ;;  %v7335_v8 = vld [vmem:[%s12285_s8 + $0x4a0] sm:$0xf] }
 0x50b   :  { %v7172_v55 = vor.u32 %v8139_v49, %v7169_v25  ;;  %v7336_v47 = vor.u32 %v8184_v53, %v7335_v8  ;;  %v6861_v49 = vld [vmem:[%s12285_s8 + $0x104] sm:$0xf0]  ;;  %v7224_v8 = vor.u32 %v8156_v44, %v7223_v46  ;;  %v7029_v53 = vld [vmem:[%s12285_s8 + $0x254] sm:$0xf0]  ;;  %v8087_v44 = vld [vmem:[%s12285_s8 + $0x1b0] sm:$0xf0] }
 0x50c   :  { %v8287_v61 = vpop.eup %8286  ;;  %8288 = vtanh.f32 %v3288_v56  ;;  %4849 = vmatpush.bf16.msra.mxu3 %v7112_v9  ;;  %v6972_v9 = vor.u32 %v8093_v45, %v6971_v42  ;;  %v7503_v56 = vld [vmem:[%s12285_s8 + $0x5f0] sm:$0xf]  ;;  %v7032_v29 = vor.u32 %v8104_v52, %v7029_v53  ;;  %v6951_v46 = vld [vmem:[%s12285_s8 + $0x198] sm:$0xf]  ;;  %v7119_v52 = vld [vmem:[%s12285_s8 + $0x2e8] sm:$0xf] }
 0x50d   :  { %v3297_v0 = vadd.f32 1.0, %v8287_v61  ;;  %v3245_v62 = vpop.f32.mrf.mxu2  ;;  %v8132_v61 = vld [vmem:[%s12285_s8 + $0x31c] sm:$0xf]  ;;  %v7617_v42 = vld [vmem:[%s12285_s8 + $0x6ec] sm:$0xf0]  ;;  %v6952_v53 = vor.u32 %v8087_v44, %v6951_v46 }
 0x50e   :  { %v3258_v3 = vpop.f32.mrf.mxu3  ;;  %4835 = vmatpush.bf16.msra.mxu2 %v6916_v57  ;;  %v8226_v57 = vld [vmem:[%s12285_s8 + $0x608] sm:$0xf0]  ;;  %v8177_v62 = vld [vmem:[%s12285_s8 + $0x480] sm:$0xf0] }
 0x50f   :  { %v3301_v5 = vmul.f32 0.5, %v3297_v0  ;;  %v7307_v0 = vld [vmem:[%s12285_s8 + $0x468] sm:$0xf]  ;;  %v7504_v1 = vor.u32 %v8226_v57, %v7503_v56  ;;  %v6945_v3 = vld [vmem:[%s12285_s8 + $0x1ac] sm:$0xf0] }
 0x510   :  { %4850 = vmatpush.bf16.msra.mxu3 %v7084_v26  ;;  %v7141_v26 = vld [vmem:[%s12285_s8 + $0x334] sm:$0xf0]  ;;  %v6948_v12 = vor.u32 %v8083_v2, %v6945_v3  ;;  %v7195_v56 = vld [vmem:[%s12285_s8 + $0x388] sm:$0xf]  ;;  %v8149_v57 = vld [vmem:[%s12285_s8 + $0x3a0] sm:$0xf0] }
 0x511   :  { %v11307_v59 = vpack.c.bf16 %v3301_v5, %v3301_v5  ;;  %v7475_v5 = vld [vmem:[%s12285_s8 + $0x5b8] sm:$0xf]  ;;  %v8237_v2 = vld [vmem:[%s12285_s8 + $0x664] sm:$0xf]  ;;  %v7561_v3 = vld [vmem:[%s12285_s8 + $0x67c] sm:$0xf0] }
 0x512   :  { %v8289_v19 = vpop.eup %8288  ;;  %4836 = vmatpush.bf16.msra.mxu2 %v6888_v4  ;;  %v7144_v4 = vor.u32 %v8132_v61, %v7141_v26  ;;  %v8195_v61 = vld [vmem:[%s12285_s8 + $0x514] sm:$0xf]  ;;  %v7393_v26 = vld [vmem:[%s12285_s8 + $0x52c] sm:$0xf0] }
 0x513   :  { %v3296_v21 = vadd.f32 1.0, %v8289_v19  ;;  %4777 = vmatmul.bf16.vlgmr.msrb.gmra.mxu1 %v11307_v59  ;;  %4803 = vmatmul.bf16.vlgmr.msrb.gmra.mxu3 %v11243_v27  ;;  %v7476_v19 = vor.u32 %v8219_v6, %v7475_v5  ;;  %v7396_v5 = vor.u32 %v8195_v61, %v7393_v26  ;;  %v8048_v6 = vld [vmem:[%s12285_s8 + $0x7c] sm:$0xf]  ;;  %v7449_v61 = vld [vmem:[%s12285_s8 + $0x59c] sm:$0xf0] }
 0x514   :  { %4851 = vmatpush.bf16.msra.mxu3 %v7056_v17  ;;  %4873 = vmatpush.bf16.msrb.mxu1 %v7616_v10  ;;  %v7308_v17 = vor.u32 %v8177_v62, %v7307_v0  ;;  %v8125_v10 = vld [vmem:[%s12285_s8 + $0x2e4] sm:$0xf]  ;;  %v7196_v62 = vor.u32 %v8149_v57, %v7195_v56  ;;  %v6923_v56 = vld [vmem:[%s12285_s8 + $0x160] sm:$0xf]  ;;  %v8080_v57 = vld [vmem:[%s12285_s8 + $0x178] sm:$0xf0] }
 0x515   :  { %v3300_v24 = vmul.f32 0.5, %v3296_v21  ;;  %v7116_v20 = vor.u32 %v8125_v10, %v7113_v11  ;;  %v7447_v21 = vld [vmem:[%s12285_s8 + $0x580] sm:$0xf]  ;;  %v8097_v0 = vld [vmem:[%s12285_s8 + $0x204] sm:$0xf] }
 0x516   :  { %4837 = vmatpush.bf16.msra.mxu2 %v6860_v60  ;;  %v8076_v60 = vld [vmem:[%s12285_s8 + $0x15c] sm:$0xf]  ;;  %v7448_v31 = vor.u32 %v8212_v36, %v7447_v21  ;;  %v7365_v10 = vld [vmem:[%s12285_s8 + $0x4f4] sm:$0xf0]  ;;  %v8143_v36 = vld [vmem:[%s12285_s8 + $0x370] sm:$0xf0] }
 0x517   :  { %v11347_v35 = vpack.c.bf16 %v3300_v24, %v3300_v24  ;;  %v6920_v33 = vor.u32 %v8076_v60, %v6917_v15  ;;  %v8163_v24 = vld [vmem:[%s12285_s8 + $0x410] sm:$0xf0]  ;;  %v7533_v60 = vld [vmem:[%s12285_s8 + $0x644] sm:$0xf0]  ;;  %v7175_v21 = vld [vmem:[%s12285_s8 + $0x358] sm:$0xf] }
 0x518   :  { %4852 = vmatpush.bf16.msra.mxu3 %v7028_v22  ;;  %4874 = vmatpush.bf16.msrb.mxu1 %v7588_v23  ;;  %v8118_v22 = vld [vmem:[%s12285_s8 + $0x2ac] sm:$0xf]  ;;  %v7085_v23 = vld [vmem:[%s12285_s8 + $0x2c4] sm:$0xf0]  ;;  %v7252_v39 = vor.u32 %v8163_v24, %v7251_v18  ;;  %v6976_v18 = vor.u32 %v8090_v13, %v6973_v14  ;;  %v8255_v13 = vld [vmem:[%s12285_s8 + $0x6f0] sm:$0xf0] }
 0x519   :  { %4764 = vmatmul.bf16.vlgmr.msrb.gmra.mxu0 %v11347_v35  ;;  %4790 = vmatmul.bf16.vlgmr.msrb.gmra.mxu2 %v11265_v50 }
 0x51a   :  { %4838 = vmatpush.bf16.msra.mxu2 %v6832_v30  ;;  %4860 = vmatpush.bf16.msrb.mxu0 %v7392_v32  ;;  %v6889_v30 = vld [vmem:[%s12285_s8 + $0x13c] sm:$0xf0]  ;;  %v7088_v32 = vor.u32 %v8118_v22, %v7085_v23  ;;  %v8181_v23 = vld [vmem:[%s12285_s8 + $0x4a4] sm:$0xf] }
 0x51b   :  { %v6892_v45 = vor.u32 %v8069_v28, %v6889_v30  ;;  %v6777_v22 = vld [vmem:[%s12285_s8 + $0x5c] sm:$0xf0]  ;;  %v8223_v28 = vld [vmem:[%s12285_s8 + $0x5f4] sm:$0xf]  ;;  %v7505_v30 = vld [vmem:[%s12285_s8 + $0x60c] sm:$0xf0] }
 0x51c   :  { %4853 = vmatpush.bf16.msra.mxu3 %v7000_v40  ;;  %4875 = vmatpush.bf16.msrb.mxu1 %v7560_v41  ;;  %v7057_v40 = vld [vmem:[%s12285_s8 + $0x28c] sm:$0xf0]  ;;  %v8251_v41 = vld [vmem:[%s12285_s8 + $0x6d4] sm:$0xf] }
 0x51d   :  { %v7060_v25 = vor.u32 %v8111_v16, %v7057_v40  ;;  %v7620_v51 = vor.u32 %v8251_v41, %v7617_v42  ;;  %v8136_v16 = vld [vmem:[%s12285_s8 + $0x338] sm:$0xf0]  ;;  %v6749_v40 = vld [vmem:[%s12285_s8 + $0x24] sm:$0xf0]  ;;  %v8174_v41 = vld [vmem:[%s12285_s8 + $0x46c] sm:$0xf] }
 0x51e   :  { %4839 = vmatpush.bf16.msra.mxu2 %v6804_v43  ;;  %4861 = vmatpush.bf16.msrb.mxu0 %v7364_v48  ;;  %v7420_v43 = vor.u32 %v8205_v38, %v7419_v34  ;;  %v8062_v48 = vld [vmem:[%s12285_s8 + $0xec] sm:$0xf]  ;;  %v7147_v38 = vld [vmem:[%s12285_s8 + $0x320] sm:$0xf]  ;;  %v7309_v42 = vld [vmem:[%s12285_s8 + $0x484] sm:$0xf0] }
 0x520   :  { %4854 = vmatpush.bf16.msra.mxu3 %v6972_v9  ;;  %4876 = vmatpush.bf16.msrb.mxu1 %v7532_v54  ;;  %v8244_v9 = vld [vmem:[%s12285_s8 + $0x69c] sm:$0xf]  ;;  %v7589_v54 = vld [vmem:[%s12285_s8 + $0x6b4] sm:$0xf0] }
 0x521   :  { %v7592_v63 = vor.u32 %v8244_v9, %v7589_v54  ;;  %v8167_v9 = vld [vmem:[%s12285_s8 + $0x434] sm:$0xf]  ;;  %v7281_v54 = vld [vmem:[%s12285_s8 + $0x44c] sm:$0xf0] }
 0x522   :  { %4840 = vmatpush.bf16.msra.mxu2 %v6776_v58  ;;  %4862 = vmatpush.bf16.msrb.mxu0 %v7336_v47  ;;  %v8055_v58 = vld [vmem:[%s12285_s8 + $0xb4] sm:$0xf]  ;;  %v6833_v47 = vld [vmem:[%s12285_s8 + $0xcc] sm:$0xf0]  ;;  %v7284_v26 = vor.u32 %v8167_v9, %v7281_v54  ;;  %v8094_v54 = vld [vmem:[%s12285_s8 + $0x1e8] sm:$0xf0] }
 0x523   :  { %4829 = vmatmul.bf16.vlgmr.msra.gmra.mxu1 %v11307_v59  ;;  %4855 = vmatmul.bf16.vlgmr.msra.gmra.mxu3 %v11243_v27 }
 0x524   :  { %4899 = vmatpush.bf16.msrb.mxu3 %v7172_v55  ;;  %4877 = vmatpush.bf16.msrb.mxu1 %v7504_v1  ;;  %v6864_v55 = vor.u32 %v8062_v48, %v6861_v49  ;;  %v7001_v1 = vld [vmem:[%s12285_s8 + $0x21c] sm:$0xf0]  ;;  %v8216_v48 = vld [vmem:[%s12285_s8 + $0x5bc] sm:$0xf]  ;;  %v7477_v49 = vld [vmem:[%s12285_s8 + $0x5d4] sm:$0xf0] }
 0x525   :  { %v7004_v11 = vor.u32 %v8097_v0, %v7001_v1  ;;  %v6924_v0 = vor.u32 %v8080_v57, %v6923_v56  ;;  %v7253_v1 = vld [vmem:[%s12285_s8 + $0x414] sm:$0xf0]  ;;  %v8234_v56 = vld [vmem:[%s12285_s8 + $0x648] sm:$0xf0] }
 0x526   :  { %4841 = vmatpush.bf16.msra.mxu2 %v6748_v7  ;;  %4863 = vmatpush.bf16.msrb.mxu0 %v7308_v17  ;;  %v6805_v7 = vld [vmem:[%s12285_s8 + $0x94] sm:$0xf0]  ;;  %v8188_v17 = vld [vmem:[%s12285_s8 + $0x4dc] sm:$0xf] }
 0x527   :  { %v6808_v15 = vor.u32 %v8048_v6, %v6805_v7  ;;  %v8202_v6 = vld [vmem:[%s12285_s8 + $0x54c] sm:$0xf]  ;;  %v7421_v7 = vld [vmem:[%s12285_s8 + $0x564] sm:$0xf0] }
 0x528   :  { %4900 = vmatpush.bf16.msrb.mxu3 %v7144_v4  ;;  %4878 = vmatpush.bf16.msrb.mxu1 %v7476_v19  ;;  %v6836_v4 = vor.u32 %v8055_v58, %v6833_v47  ;;  %v8230_v19 = vld [vmem:[%s12285_s8 + $0x62c] sm:$0xf]  ;;  %v8209_v47 = vld [vmem:[%s12285_s8 + $0x584] sm:$0xf] }
 0x529   :  { %4816 = vmatmul.bf16.vlgmr.msra.gmra.mxu0 %v11347_v35  ;;  %4842 = vmatmul.bf16.vlgmr.msra.gmra.mxu2 %v11265_v50  ;;  %v7536_v24 = vor.u32 %v8230_v19, %v7533_v60  ;;  %v8153_v19 = vld [vmem:[%s12285_s8 + $0x3c4] sm:$0xf]  ;;  %v7225_v60 = vld [vmem:[%s12285_s8 + $0x3dc] sm:$0xf0] }
 0x52a   :  { %4886 = vmatpush.bf16.msrb.mxu2 %v6948_v12  ;;  %4864 = vmatpush.bf16.msrb.mxu0 %v7280_v37  ;;  %v7564_v12 = vor.u32 %v8237_v2, %v7561_v3  ;;  %v8041_v37 = vld [vmem:[%s12285_s8 + $0x44] sm:$0xf]  ;;  %v7452_v2 = vor.u32 %v8209_v47, %v7449_v61  ;;  %v6895_v3 = vld [vmem:[%s12285_s8 + $0x128] sm:$0xf]  ;;  %v8140_v47 = vld [vmem:[%s12285_s8 + $0x35c] sm:$0xf] }
 0x52b   :  { %v7177_v61 = vld [vmem:[%s12285_s8 + $0x374] sm:$0xf0] }
 0x52c   :  { %4901 = vmatpush.bf16.msrb.mxu3 %v7116_v20  ;;  %4879 = vmatpush.bf16.msrb.mxu1 %v7448_v31  ;;  %v7368_v20 = vor.u32 %v8188_v17, %v7365_v10  ;;  %v7176_v31 = vor.u32 %v8143_v36, %v7175_v21  ;;  %v7063_v17 = vld [vmem:[%s12285_s8 + $0x278] sm:$0xf]  ;;  %v8066_v21 = vld [vmem:[%s12285_s8 + $0x108] sm:$0xf0] }
 0x52e   :  { %4887 = vmatpush.bf16.msrb.mxu2 %v6920_v33  ;;  %4865 = vmatpush.bf16.msrb.mxu0 %v7252_v39  ;;  %v7337_v33 = vld [vmem:[%s12285_s8 + $0x4bc] sm:$0xf0]  ;;  %v8034_v39 = vld [vmem:[%s12285_s8 + $0xc] sm:$0xf] }
 0x52f   :  { %v7340_v34 = vor.u32 %v8181_v23, %v7337_v33  ;;  %v7228_v23 = vor.u32 %v8153_v19, %v7225_v60  ;;  %v8108_v33 = vld [vmem:[%s12285_s8 + $0x258] sm:$0xf0]  ;;  %v6953_v19 = vld [vmem:[%s12285_s8 + $0x1b4] sm:$0xf0] }
 0x530   :  { %4902 = vmatpush.bf16.msrb.mxu3 %v7088_v32  ;;  %4880 = vmatpush.bf16.msrb.mxu1 %v7420_v43  ;;  %v6780_v32 = vor.u32 %v8041_v37, %v6777_v22  ;;  %v7148_v43 = vor.u32 %v8136_v16, %v7147_v38  ;;  %v7035_v22 = vld [vmem:[%s12285_s8 + $0x240] sm:$0xf]  ;;  %v7399_v38 = vld [vmem:[%s12285_s8 + $0x518] sm:$0xf]  ;;  %v8199_v16 = vld [vmem:[%s12285_s8 + $0x530] sm:$0xf0] }
 0x531   :  { %v7400_v44 = vor.u32 %v8199_v16, %v7399_v38  ;;  %v7455_v38 = vld [vmem:[%s12285_s8 + $0x588] sm:$0xf]  ;;  %v8213_v16 = vld [vmem:[%s12285_s8 + $0x5a0] sm:$0xf0] }
 0x532   :  { %4888 = vmatpush.bf16.msrb.mxu2 %v6892_v45  ;;  %4866 = vmatpush.bf16.msrb.mxu0 %v7224_v8  ;;  %v7508_v45 = vor.u32 %v8223_v28, %v7505_v30  ;;  %v8129_v8 = vld [vmem:[%s12285_s8 + $0x300] sm:$0xf0]  ;;  %v8146_v28 = vld [vmem:[%s12285_s8 + $0x38c] sm:$0xf]  ;;  %v7197_v30 = vld [vmem:[%s12285_s8 + $0x3a4] sm:$0xf0] }
 0x533   :  { %4881 = vmatmul.bf16.vlgmr.msrb.gmra.mxu1 %v11307_v59  ;;  %v7120_v58 = vor.u32 %v8129_v8, %v7119_v52  ;;  %v8192_v52 = vld [vmem:[%s12285_s8 + $0x4f8] sm:$0xf0] }
 0x534   :  { %4903 = vmatpush.bf16.msrb.mxu3 %v7060_v25  ;;  %4925 = vmatpush.bf16.msra.mxu1 %v7620_v51  ;;  %v6752_v25 = vor.u32 %v8034_v39, %v6749_v40  ;;  %v7312_v51 = vor.u32 %v8174_v41, %v7309_v42  ;;  %v7036_v39 = vor.u32 %v8108_v33, %v7035_v22  ;;  %v7007_v42 = vld [vmem:[%s12285_s8 + $0x208] sm:$0xf]  ;;  %v8126_v22 = vld [vmem:[%s12285_s8 + $0x2ec] sm:$0xf] }
 0x535   :  { %v7200_v41 = vor.u32 %v8146_v28, %v7197_v30  ;;  %v7121_v33 = vld [vmem:[%s12285_s8 + $0x304] sm:$0xf0]  ;;  %v6925_v28 = vld [vmem:[%s12285_s8 + $0x17c] sm:$0xf0] }
 0x536   :  { %4889 = vmatpush.bf16.msrb.mxu2 %v6864_v55  ;;  %4867 = vmatpush.bf16.msrb.mxu0 %v7196_v62  ;;  %v7480_v55 = vor.u32 %v8216_v48, %v7477_v49  ;;  %v8160_v62 = vld [vmem:[%s12285_s8 + $0x3fc] sm:$0xf]  ;;  %v8241_v48 = vld [vmem:[%s12285_s8 + $0x680] sm:$0xf0]  ;;  %v6811_v49 = vld [vmem:[%s12285_s8 + $0x80] sm:$0xf] }
 0x537   :  { %v7256_v10 = vor.u32 %v8160_v62, %v7253_v1 }
 0x538   :  { %4904 = vmatpush.bf16.msrb.mxu3 %v7032_v29  ;;  %4926 = vmatpush.bf16.msra.mxu1 %v7592_v63  ;;  %v7091_v29 = vld [vmem:[%s12285_s8 + $0x2b0] sm:$0xf]  ;;  %v8122_v63 = vld [vmem:[%s12285_s8 + $0x2c8] sm:$0xf0] }
 0x539   :  { %4868 = vmatmul.bf16.vlgmr.msrb.gmra.mxu0 %v11347_v35 }
 0x53a   :  { %4890 = vmatpush.bf16.msrb.mxu2 %v6836_v4  ;;  %4912 = vmatpush.bf16.msra.mxu0 %v7396_v5  ;;  %v8073_v4 = vld [vmem:[%s12285_s8 + $0x140] sm:$0xf0]  ;;  %v7092_v5 = vor.u32 %v8122_v63, %v7091_v29  ;;  %v7343_v63 = vld [vmem:[%s12285_s8 + $0x4a8] sm:$0xf] }
 0x53b   :  { %v6896_v14 = vor.u32 %v8073_v4, %v6895_v3  ;;  %v8045_v29 = vld [vmem:[%s12285_s8 + $0x60] sm:$0xf0]  ;;  %v7511_v3 = vld [vmem:[%s12285_s8 + $0x5f8] sm:$0xf]  ;;  %v8227_v4 = vld [vmem:[%s12285_s8 + $0x610] sm:$0xf0] }
 0x53c   :  { %4905 = vmatpush.bf16.msrb.mxu3 %v7004_v11  ;;  %4927 = vmatpush.bf16.msra.mxu1 %v7564_v12  ;;  %v8115_v11 = vld [vmem:[%s12285_s8 + $0x290] sm:$0xf0]  ;;  %v7623_v12 = vld [vmem:[%s12285_s8 + $0x6d8] sm:$0xf]  ;;  %v7512_v60 = vor.u32 %v8227_v4, %v7511_v3  ;;  %v7203_v3 = vld [vmem:[%s12285_s8 + $0x390] sm:$0xf] }
 0x53d   :  { %v7064_v36 = vor.u32 %v8115_v11, %v7063_v17  ;;  %v7624_v37 = vor.u32 %v8255_v13, %v7623_v12  ;;  %v7149_v17 = vld [vmem:[%s12285_s8 + $0x33c] sm:$0xf0]  ;;  %v8038_v11 = vld [vmem:[%s12285_s8 + $0x28] sm:$0xf0]  ;;  %v7315_v12 = vld [vmem:[%s12285_s8 + $0x470] sm:$0xf] }
 0x53e   :  { %4891 = vmatpush.bf16.msrb.mxu2 %v6808_v15  ;;  %4913 = vmatpush.bf16.msra.mxu0 %v7368_v20  ;;  %v7424_v15 = vor.u32 %v8202_v6, %v7421_v7  ;;  %v6867_v20 = vld [vmem:[%s12285_s8 + $0xf0] sm:$0xf]  ;;  %v8133_v7 = vld [vmem:[%s12285_s8 + $0x324] sm:$0xf]  ;;  %v8178_v13 = vld [vmem:[%s12285_s8 + $0x488] sm:$0xf0] }
 0x53f   :  { %v8150_v4 = vld [vmem:[%s12285_s8 + $0x3a8] sm:$0xf0] }
 0x540   :  { %4906 = vmatpush.bf16.msrb.mxu3 %v6976_v18  ;;  %4928 = vmatpush.bf16.msra.mxu1 %v7536_v24  ;;  %v7595_v18 = vld [vmem:[%s12285_s8 + $0x6a0] sm:$0xf]  ;;  %v8248_v24 = vld [vmem:[%s12285_s8 + $0x6b8] sm:$0xf0] }
 0x541   :  { %v7596_v40 = vor.u32 %v8248_v24, %v7595_v18  ;;  %v7287_v18 = vld [vmem:[%s12285_s8 + $0x438] sm:$0xf]  ;;  %v8171_v24 = vld [vmem:[%s12285_s8 + $0x450] sm:$0xf0] }
 0x542   :  { %4892 = vmatpush.bf16.msrb.mxu2 %v6780_v32  ;;  %4914 = vmatpush.bf16.msra.mxu0 %v7340_v34  ;;  %v6839_v32 = vld [vmem:[%s12285_s8 + $0xb8] sm:$0xf]  ;;  %v8059_v34 = vld [vmem:[%s12285_s8 + $0xd0] sm:$0xf0] }
 0x543   :  { %4907 = vmatmul.bf16.vlgmr.msrb.gmra.mxu3 %v11243_v27  ;;  %v6840_v46 = vor.u32 %v8059_v34, %v6839_v32  ;;  %v7124_v32 = vor.u32 %v8126_v22, %v7121_v33  ;;  %v7288_v34 = vor.u32 %v8171_v24, %v7287_v18  ;;  %v7373_v22 = vld [vmem:[%s12285_s8 + $0x4fc] sm:$0xf0]  ;;  %v8091_v33 = vld [vmem:[%s12285_s8 + $0x1d4] sm:$0xf] }
 0x544   :  { %4951 = vmatpush.bf16.msra.mxu3 %v7176_v31  ;;  %4929 = vmatpush.bf16.msra.mxu1 %v7508_v45  ;;  %v6868_v31 = vor.u32 %v8066_v21, %v6867_v20  ;;  %v8101_v45 = vld [vmem:[%s12285_s8 + $0x220] sm:$0xf0]  ;;  %v7316_v21 = vor.u32 %v8178_v13, %v7315_v12  ;;  %v7204_v12 = vor.u32 %v8150_v4, %v7203_v3 }
 0x545   :  { %v7008_v8 = vor.u32 %v8101_v45, %v7007_v42  ;;  %v7259_v42 = vld [vmem:[%s12285_s8 + $0x400] sm:$0xf]  ;;  %v8164_v45 = vld [vmem:[%s12285_s8 + $0x418] sm:$0xf0]  ;;  %v8081_v3 = vld [vmem:[%s12285_s8 + $0x180] sm:$0xf0] }
 0x546   :  { %4893 = vmatpush.bf16.msrb.mxu2 %v6752_v25  ;;  %4915 = vmatpush.bf16.msra.mxu0 %v7312_v51  ;;  %v8052_v25 = vld [vmem:[%s12285_s8 + $0x98] sm:$0xf0]  ;;  %v7371_v51 = vld [vmem:[%s12285_s8 + $0x4e0] sm:$0xf] }
 0x547   :  { %v6812_v57 = vor.u32 %v8052_v25, %v6811_v49  ;;  %v7260_v25 = vor.u32 %v8164_v45, %v7259_v42 }
 0x548   :  { %4952 = vmatpush.bf16.msra.mxu3 %v7148_v43  ;;  %4930 = vmatpush.bf16.msra.mxu1 %v7480_v55  ;;  %v7567_v43 = vld [vmem:[%s12285_s8 + $0x668] sm:$0xf]  ;;  %v7539_v55 = vld [vmem:[%s12285_s8 + $0x630] sm:$0xf] }
 0x549   :  { %4894 = vmatmul.bf16.vlgmr.msrb.gmra.mxu2 %v11265_v50  ;;  %v7568_v9 = vor.u32 %v8241_v48, %v7567_v43  ;;  %v7540_v1 = vor.u32 %v8234_v56, %v7539_v55  ;;  %v7456_v43 = vor.u32 %v8213_v16, %v7455_v38  ;;  %v7427_v48 = vld [vmem:[%s12285_s8 + $0x550] sm:$0xf]  ;;  %v7231_v55 = vld [vmem:[%s12285_s8 + $0x3c8] sm:$0xf]  ;;  %v8157_v56 = vld [vmem:[%s12285_s8 + $0x3e0] sm:$0xf0] }
 0x54a   :  { %4938 = vmatpush.bf16.msra.mxu2 %v6952_v53  ;;  %4916 = vmatpush.bf16.msra.mxu0 %v7284_v26  ;;  %v6979_v53 = vld [vmem:[%s12285_s8 + $0x1d0] sm:$0xf]  ;;  %v6783_v26 = vld [vmem:[%s12285_s8 + $0x48] sm:$0xf]  ;;  %v8144_v38 = vld [vmem:[%s12285_s8 + $0x378] sm:$0xf0] }
 0x54b   :  { %v6980_v62 = vor.u32 %v8094_v54, %v6979_v53  ;;  %v7625_v54 = vld [vmem:[%s12285_s8 + $0x6f4] sm:$0xf0]  ;;  %v8042_v16 = vld [vmem:[%s12285_s8 + $0x4c] sm:$0xf] }
 0x54c   :  { %4953 = vmatpush.bf16.msra.mxu3 %v7120_v58  ;;  %4931 = vmatpush.bf16.msra.mxu1 %v7452_v2  ;;  %v7372_v58 = vor.u32 %v8192_v52, %v7371_v51  ;;  %v7180_v2 = vor.u32 %v8140_v47, %v7177_v61  ;;  %v8206_v51 = vld [vmem:[%s12285_s8 + $0x568] sm:$0xf0]  ;;  %v8112_v52 = vld [vmem:[%s12285_s8 + $0x27c] sm:$0xf] }
 0x54d   :  { %v7428_v47 = vor.u32 %v8206_v51, %v7427_v48  ;;  %v8137_v51 = vld [vmem:[%s12285_s8 + $0x340] sm:$0xf0] }
 0x54e   :  { %4939 = vmatpush.bf16.msra.mxu2 %v6924_v0  ;;  %4917 = vmatpush.bf16.msra.mxu0 %v7256_v10  ;;  %v8185_v0 = vld [vmem:[%s12285_s8 + $0x4c0] sm:$0xf0]  ;;  %v6755_v10 = vld [vmem:[%s12285_s8 + $0x10] sm:$0xf] }
 0x54f   :  { %v7344_v6 = vor.u32 %v8185_v0, %v7343_v63  ;;  %v6756_v20 = vor.u32 %v8038_v11, %v6755_v10  ;;  %v7037_v63 = vld [vmem:[%s12285_s8 + $0x25c] sm:$0xf0]  ;;  %v7232_v0 = vor.u32 %v8157_v56, %v7231_v55  ;;  %v8088_v55 = vld [vmem:[%s12285_s8 + $0x1b8] sm:$0xf0] }
 0x550   :  { %4954 = vmatpush.bf16.msra.mxu3 %v7092_v5  ;;  %4932 = vmatpush.bf16.msra.mxu1 %v7424_v15  ;;  %v6784_v5 = vor.u32 %v8045_v29, %v6783_v26  ;;  %v7152_v15 = vor.u32 %v8133_v7, %v7149_v17  ;;  %v8105_v29 = vld [vmem:[%s12285_s8 + $0x244] sm:$0xf]  ;;  %v8196_v7 = vld [vmem:[%s12285_s8 + $0x51c] sm:$0xf]  ;;  %v7401_v17 = vld [vmem:[%s12285_s8 + $0x534] sm:$0xf0] }
 0x551   :  { %v7040_v10 = vor.u32 %v8105_v29, %v7037_v63  ;;  %v7127_v29 = vld [vmem:[%s12285_s8 + $0x2f0] sm:$0xf] }
 0x552   :  { %4940 = vmatpush.bf16.msra.mxu2 %v6896_v14  ;;  %4918 = vmatpush.bf16.msra.mxu0 %v7228_v23  ;;  %v8084_v14 = vld [vmem:[%s12285_s8 + $0x19c] sm:$0xf] }
 0x553   :  { %4933 = vmatmul.bf16.vlgmr.msra.gmra.mxu1 %v11307_v59  ;;  %v6956_v23 = vor.u32 %v8084_v14, %v6953_v19  ;;  %v8098_v14 = vld [vmem:[%s12285_s8 + $0x20c] sm:$0xf]  ;;  %v7009_v19 = vld [vmem:[%s12285_s8 + $0x224] sm:$0xf0] }
 0x554   :  { %4955 = vmatpush.bf16.msra.mxu3 %v7064_v36  ;;  %4977 = vmatpush.bf16.msrb.mxu1 %v7624_v37  ;;  %v7483_v36 = vld [vmem:[%s12285_s8 + $0x5c0] sm:$0xf]  ;;  %v8220_v37 = vld [vmem:[%s12285_s8 + $0x5d8] sm:$0xf0] }
 0x555   :  { %v7484_v30 = vor.u32 %v8220_v37, %v7483_v36  ;;  %v6813_v36 = vld [vmem:[%s12285_s8 + $0x9c] sm:$0xf0]  ;;  %v8189_v37 = vld [vmem:[%s12285_s8 + $0x4e4] sm:$0xf] }
 0x556   :  { %4941 = vmatpush.bf16.msra.mxu2 %v6868_v31  ;;  %4919 = vmatpush.bf16.msra.mxu0 %v7200_v41  ;;  %v8077_v31 = vld [vmem:[%s12285_s8 + $0x164] sm:$0xf]  ;;  %v7093_v41 = vld [vmem:[%s12285_s8 + $0x2cc] sm:$0xf0] }
 0x558   :  { %4956 = vmatpush.bf16.msra.mxu3 %v7036_v39  ;;  %4978 = vmatpush.bf16.msrb.mxu1 %v7596_v40  ;;  %v8119_v39 = vld [vmem:[%s12285_s8 + $0x2b4] sm:$0xf]  ;;  %v6928_v40 = vor.u32 %v8077_v31, %v6925_v28  ;;  %v6981_v31 = vld [vmem:[%s12285_s8 + $0x1ec] sm:$0xf0] }
 0x559   :  { %4920 = vmatmul.bf16.vlgmr.msra.gmra.mxu0 %v11347_v35  ;;  %v7096_v49 = vor.u32 %v8119_v39, %v7093_v41  ;;  %v8231_v28 = vld [vmem:[%s12285_s8 + $0x634] sm:$0xf]  ;;  %v6785_v39 = vld [vmem:[%s12285_s8 + $0x64] sm:$0xf0]  ;;  %v6984_v42 = vor.u32 %v8091_v33, %v6981_v31  ;;  %v8154_v31 = vld [vmem:[%s12285_s8 + $0x3cc] sm:$0xf] }
 0x55a   :  { %4942 = vmatpush.bf16.msra.mxu2 %v6840_v46  ;;  %4964 = vmatpush.bf16.msrb.mxu0 %v7400_v44  ;;  %v8070_v46 = vld [vmem:[%s12285_s8 + $0x12c] sm:$0xf]  ;;  %v6897_v44 = vld [vmem:[%s12285_s8 + $0x144] sm:$0xf0]  ;;  %v6788_v48 = vor.u32 %v8042_v16, %v6785_v39 }
 0x55b   :  { %v6900_v53 = vor.u32 %v8070_v46, %v6897_v44  ;;  %v7345_v41 = vld [vmem:[%s12285_s8 + $0x4c4] sm:$0xf0]  ;;  %v8224_v44 = vld [vmem:[%s12285_s8 + $0x5fc] sm:$0xf] }
 0x55c   :  { %4957 = vmatpush.bf16.msra.mxu3 %v7008_v8  ;;  %4979 = vmatpush.bf16.msrb.mxu1 %v7568_v9  ;;  %v7065_v8 = vld [vmem:[%s12285_s8 + $0x294] sm:$0xf0]  ;;  %v8252_v9 = vld [vmem:[%s12285_s8 + $0x6dc] sm:$0xf] }
 0x55d   :  { %v7068_v61 = vor.u32 %v8112_v52, %v7065_v8  ;;  %v7628_v26 = vor.u32 %v8252_v9, %v7625_v54  ;;  %v8035_v52 = vld [vmem:[%s12285_s8 + $0x14] sm:$0xf]  ;;  %v6757_v8 = vld [vmem:[%s12285_s8 + $0x2c] sm:$0xf0]  ;;  %v6959_v54 = vld [vmem:[%s12285_s8 + $0x1a0] sm:$0xf] }
 0x55e   :  { %4943 = vmatpush.bf16.msra.mxu2 %v6812_v57  ;;  %4965 = vmatpush.bf16.msrb.mxu0 %v7372_v58  ;;  %v8063_v57 = vld [vmem:[%s12285_s8 + $0xf4] sm:$0xf]  ;;  %v6869_v58 = vld [vmem:[%s12285_s8 + $0x10c] sm:$0xf0]  ;;  %v6960_v63 = vor.u32 %v8088_v55, %v6959_v54 }
 0x55f   :  { %v7317_v9 = vld [vmem:[%s12285_s8 + $0x48c] sm:$0xf0] }
 0x560   :  { %4958 = vmatpush.bf16.msra.mxu3 %v6980_v62  ;;  %4980 = vmatpush.bf16.msrb.mxu1 %v7540_v1  ;;  %v6872_v62 = vor.u32 %v8063_v57, %v6869_v58  ;;  %v8245_v1 = vld [vmem:[%s12285_s8 + $0x6a4] sm:$0xf]  ;;  %v6760_v58 = vor.u32 %v8035_v52, %v6757_v8  ;;  %v8200_v52 = vld [vmem:[%s12285_s8 + $0x538] sm:$0xf0] }
 0x562   :  { %4944 = vmatpush.bf16.msra.mxu2 %v6784_v5  ;;  %4966 = vmatpush.bf16.msrb.mxu0 %v7344_v6  ;;  %v8056_v5 = vld [vmem:[%s12285_s8 + $0xbc] sm:$0xf]  ;;  %v6841_v6 = vld [vmem:[%s12285_s8 + $0xd4] sm:$0xf0] }
 0x563   :  { %4959 = vmatmul.bf16.vlgmr.msra.gmra.mxu3 %v11243_v27  ;;  %v6844_v13 = vor.u32 %v8056_v5, %v6841_v6 }
 0x564   :  { %5003 = vmatpush.bf16.msrb.mxu3 %v7180_v2  ;;  %4981 = vmatpush.bf16.msrb.mxu1 %v7512_v60  ;;  %v7597_v2 = vld [vmem:[%s12285_s8 + $0x6bc] sm:$0xf0]  ;;  %v8238_v60 = vld [vmem:[%s12285_s8 + $0x66c] sm:$0xf] }
 0x565   :  { %v7600_v11 = vor.u32 %v8245_v1, %v7597_v2  ;;  %v7289_v1 = vld [vmem:[%s12285_s8 + $0x454] sm:$0xf0]  ;;  %v6931_v2 = vld [vmem:[%s12285_s8 + $0x168] sm:$0xf] }
 0x566   :  { %4945 = vmatpush.bf16.msra.mxu2 %v6756_v20  ;;  %4967 = vmatpush.bf16.msrb.mxu0 %v7316_v21  ;;  %v7569_v20 = vld [vmem:[%s12285_s8 + $0x684] sm:$0xf0]  ;;  %v8049_v21 = vld [vmem:[%s12285_s8 + $0x84] sm:$0xf] }
 0x567   :  { %v7572_v18 = vor.u32 %v8238_v60, %v7569_v20  ;;  %v6816_v24 = vor.u32 %v8049_v21, %v6813_v36  ;;  %v8074_v60 = vld [vmem:[%s12285_s8 + $0x148] sm:$0xf0]  ;;  %v8203_v20 = vld [vmem:[%s12285_s8 + $0x554] sm:$0xf] }
 0x568   :  { %5004 = vmatpush.bf16.msrb.mxu3 %v7152_v15  ;;  %4982 = vmatpush.bf16.msrb.mxu1 %v7484_v30  ;;  %v7404_v15 = vor.u32 %v8196_v7, %v7401_v17  ;;  %v7541_v30 = vld [vmem:[%s12285_s8 + $0x64c] sm:$0xf0]  ;;  %v8210_v7 = vld [vmem:[%s12285_s8 + $0x58c] sm:$0xf]  ;;  %v7457_v17 = vld [vmem:[%s12285_s8 + $0x5a4] sm:$0xf0] }
 0x569   :  { %4946 = vmatmul.bf16.vlgmr.msra.gmra.mxu2 %v11265_v50  ;;  %v7544_v45 = vor.u32 %v8231_v28, %v7541_v30  ;;  %v7233_v28 = vld [vmem:[%s12285_s8 + $0x3e4] sm:$0xf0]  ;;  %v6875_v30 = vld [vmem:[%s12285_s8 + $0xf8] sm:$0xf] }
 0x56a   :  { %4990 = vmatpush.bf16.msrb.mxu2 %v6956_v23  ;;  %4968 = vmatpush.bf16.msrb.mxu0 %v7288_v34  ;;  %v7012_v23 = vor.u32 %v8098_v14, %v7009_v19  ;;  %v7183_v34 = vld [vmem:[%s12285_s8 + $0x360] sm:$0xf]  ;;  %v6903_v19 = vld [vmem:[%s12285_s8 + $0x130] sm:$0xf] }
 0x56b   :  { %v7184_v46 = vor.u32 %v8144_v38, %v7183_v34  ;;  %v7261_v14 = vld [vmem:[%s12285_s8 + $0x41c] sm:$0xf0]  ;;  %v6904_v33 = vor.u32 %v8074_v60, %v6903_v19  ;;  %v7351_v60 = vld [vmem:[%s12285_s8 + $0x4b0] sm:$0xf] }
 0x56c   :  { %5005 = vmatpush.bf16.msrb.mxu3 %v7124_v32  ;;  %4983 = vmatpush.bf16.msrb.mxu1 %v7456_v43  ;;  %v7376_v32 = vor.u32 %v8189_v37, %v7373_v22  ;;  %v7513_v43 = vld [vmem:[%s12285_s8 + $0x614] sm:$0xf0]  ;;  %v7429_v37 = vld [vmem:[%s12285_s8 + $0x56c] sm:$0xf0]  ;;  %v7071_v22 = vld [vmem:[%s12285_s8 + $0x280] sm:$0xf] }
 0x56d   :  { %v7516_v56 = vor.u32 %v8224_v44, %v7513_v43  ;;  %v7432_v34 = vor.u32 %v8203_v20, %v7429_v37  ;;  %v8249_v44 = vld [vmem:[%s12285_s8 + $0x6c0] sm:$0xf0]  ;;  %v8147_v43 = vld [vmem:[%s12285_s8 + $0x394] sm:$0xf]  ;;  %v7519_v37 = vld [vmem:[%s12285_s8 + $0x600] sm:$0xf] }
 0x56e   :  { %4991 = vmatpush.bf16.msrb.mxu2 %v6928_v40  ;;  %4969 = vmatpush.bf16.msrb.mxu0 %v7260_v25  ;;  %v8182_v40 = vld [vmem:[%s12285_s8 + $0x4ac] sm:$0xf]  ;;  %v7155_v25 = vld [vmem:[%s12285_s8 + $0x328] sm:$0xf] }
 0x56f   :  { %v7156_v57 = vor.u32 %v8137_v51, %v7155_v25  ;;  %v8060_v25 = vld [vmem:[%s12285_s8 + $0xd8] sm:$0xf0]  ;;  %v7407_v51 = vld [vmem:[%s12285_s8 + $0x520] sm:$0xf] }
 0x570   :  { %5006 = vmatpush.bf16.msrb.mxu3 %v7096_v49  ;;  %4984 = vmatpush.bf16.msrb.mxu1 %v7428_v47  ;;  %v7348_v49 = vor.u32 %v8182_v40, %v7345_v41  ;;  %v7043_v40 = vld [vmem:[%s12285_s8 + $0x248] sm:$0xf]  ;;  %v8109_v41 = vld [vmem:[%s12285_s8 + $0x260] sm:$0xf0] }
 0x571   :  { %v7044_v8 = vor.u32 %v8109_v41, %v7043_v40 }
 0x572   :  { %4992 = vmatpush.bf16.msrb.mxu2 %v6900_v53  ;;  %4970 = vmatpush.bf16.msrb.mxu0 %v7232_v0  ;;  %v8175_v53 = vld [vmem:[%s12285_s8 + $0x474] sm:$0xf]  ;;  %v8130_v0 = vld [vmem:[%s12285_s8 + $0x308] sm:$0xf0] }
 0x573   :  { %4985 = vmatmul.bf16.vlgmr.msrb.gmra.mxu1 %v11307_v59  ;;  %v7320_v47 = vor.u32 %v8175_v53, %v7317_v9  ;;  %v7128_v5 = vor.u32 %v8130_v0, %v7127_v29  ;;  %v12125_v9 = vld [vmem:[%s12287_s16] sm:$0xff]  ;;  %v6819_v29 = vld [vmem:[%s12285_s8 + $0x88] sm:$0xf] }
 0x574   :  { %5007 = vmatpush.bf16.msrb.mxu3 %v7068_v61  ;;  %5029 = vmatpush.bf16.msra.mxu1 %v7628_v26  ;;  %v8217_v61 = vld [vmem:[%s12285_s8 + $0x5c4] sm:$0xf]  ;;  %v7485_v26 = vld [vmem:[%s12285_s8 + $0x5dc] sm:$0xf0]  ;;  %v3564_v0 = vperm.slane %v12125_v9, 0 }
 0x575   :  { %v7488_v4 = vor.u32 %v8217_v61, %v7485_v26  ;;  %v7408_v61 = vor.u32 %v8200_v52, %v7407_v51  ;;  %v8242_v26 = vld [vmem:[%s12285_s8 + $0x688] sm:$0xf0]  ;;  %v7463_v52 = vld [vmem:[%s12285_s8 + $0x590] sm:$0xf] }
 0x576   :  { %4993 = vmatpush.bf16.msrb.mxu2 %v6872_v62  ;;  %4971 = vmatpush.bf16.msrb.mxu0 %v7204_v12  ;;  %v8168_v62 = vld [vmem:[%s12285_s8 + $0x43c] sm:$0xf]  ;;  %v8123_v12 = vld [vmem:[%s12285_s8 + $0x2d0] sm:$0xf0] }
 0x577   :  { %v7292_v6 = vor.u32 %v8168_v62, %v7289_v1  ;;  %v7379_v62 = vld [vmem:[%s12285_s8 + $0x4e8] sm:$0xf]  ;;  %v8193_v1 = vld [vmem:[%s12285_s8 + $0x500] sm:$0xf0] }
 0x578   :  { %5008 = vmatpush.bf16.msrb.mxu3 %v7040_v10  ;;  %5030 = vmatpush.bf16.msra.mxu1 %v7600_v11  ;;  %v7099_v10 = vld [vmem:[%s12285_s8 + $0x2b8] sm:$0xf]  ;;  %v6932_v11 = vor.u32 %v8081_v3, %v6931_v2 }
 0x579   :  { %4972 = vmatmul.bf16.vlgmr.msrb.gmra.mxu0 %v11347_v35  ;;  %v7100_v21 = vor.u32 %v8123_v12, %v7099_v10  ;;  %v8235_v12 = vld [vmem:[%s12285_s8 + $0x650] sm:$0xf0] }
 0x57a   :  { %4994 = vmatpush.bf16.msrb.mxu2 %v6844_v13  ;;  %5016 = vmatpush.bf16.msra.mxu0 %v7404_v15  ;;  %v8161_v13 = vld [vmem:[%s12285_s8 + $0x404] sm:$0xf]  ;;  %v7460_v15 = vor.u32 %v8210_v7, %v7457_v17  ;;  %v8095_v7 = vld [vmem:[%s12285_s8 + $0x1f0] sm:$0xf0]  ;;  %v7547_v17 = vld [vmem:[%s12285_s8 + $0x638] sm:$0xf] }
 0x57b   :  { %v7264_v36 = vor.u32 %v8161_v13, %v7261_v14  ;;  %v6791_v13 = vld [vmem:[%s12285_s8 + $0x50] sm:$0xf]  ;;  %v8046_v14 = vld [vmem:[%s12285_s8 + $0x68] sm:$0xf0] }
 0x57c   :  { %5009 = vmatpush.bf16.msrb.mxu3 %v7012_v23  ;;  %5031 = vmatpush.bf16.msra.mxu1 %v7572_v18  ;;  %v8116_v23 = vld [vmem:[%s12285_s8 + $0x298] sm:$0xf0]  ;;  %v7631_v18 = vld [vmem:[%s12285_s8 + $0x6e0] sm:$0xf] }
 0x57d   :  { %v7072_v16 = vor.u32 %v8116_v23, %v7071_v22 }
 0x57e   :  { %4995 = vmatpush.bf16.msrb.mxu2 %v6816_v24  ;;  %5017 = vmatpush.bf16.msra.mxu0 %v7376_v32  ;;  %v8256_v24 = vld [vmem:[%s12285_s8 + $0x6f8] sm:$0xf0]  ;;  %v8067_v32 = vld [vmem:[%s12285_s8 + $0x110] sm:$0xf0] }
 0x57f   :  { %v7632_v39 = vor.u32 %v8256_v24, %v7631_v18  ;;  %v6763_v18 = vld [vmem:[%s12285_s8 + $0x18] sm:$0xf]  ;;  %v8039_v24 = vld [vmem:[%s12285_s8 + $0x30] sm:$0xf0] }
 0x580   :  { %5010 = vmatpush.bf16.msrb.mxu3 %v6984_v42  ;;  %5032 = vmatpush.bf16.msra.mxu1 %v7544_v45  ;;  %v7236_v42 = vor.u32 %v8154_v31, %v7233_v28  ;;  %v6876_v45 = vor.u32 %v8067_v32, %v6875_v30  ;;  %v7323_v28 = vld [vmem:[%s12285_s8 + $0x478] sm:$0xf]  ;;  %v8179_v30 = vld [vmem:[%s12285_s8 + $0x490] sm:$0xf0]  ;;  %v6764_v40 = vor.u32 %v8039_v24, %v6763_v18 }
 0x582   :  { %4996 = vmatpush.bf16.msrb.mxu2 %v6788_v48  ;;  %5018 = vmatpush.bf16.msra.mxu0 %v7348_v49  ;;  %v7205_v48 = vld [vmem:[%s12285_s8 + $0x3ac] sm:$0xf0]  ;;  %v6847_v49 = vld [vmem:[%s12285_s8 + $0xc0] sm:$0xf] }
 0x583   :  { %5011 = vmatmul.bf16.vlgmr.msrb.gmra.mxu3 %v11243_v27  ;;  %v7208_v54 = vor.u32 %v8147_v43, %v7205_v48  ;;  %v6848_v55 = vor.u32 %v8060_v25, %v6847_v49  ;;  %v8172_v43 = vld [vmem:[%s12285_s8 + $0x458] sm:$0xf0] }
 0x584   :  { %5055 = vmatpush.bf16.msra.mxu3 %v7184_v46  ;;  %5033 = vmatpush.bf16.msra.mxu1 %v7516_v56  ;;  %v7603_v46 = vld [vmem:[%s12285_s8 + $0x6a8] sm:$0xf]  ;;  %v7015_v56 = vld [vmem:[%s12285_s8 + $0x210] sm:$0xf] }
 0x585   :  { %v7604_v53 = vor.u32 %v8249_v44, %v7603_v46  ;;  %v7295_v44 = vld [vmem:[%s12285_s8 + $0x440] sm:$0xf] }
 0x586   :  { %4997 = vmatpush.bf16.msrb.mxu2 %v6760_v58  ;;  %5019 = vmatpush.bf16.msra.mxu0 %v7320_v47  ;;  %v12090_v38 = vpop.f32.mrf.mxu3  ;;  %v7575_v58 = vld [vmem:[%s12285_s8 + $0x670] sm:$0xf]  ;;  %v7296_v51 = vor.u32 %v8172_v43, %v7295_v44 }
 0x588   :  { %5056 = vmatpush.bf16.msra.mxu3 %v7156_v57  ;;  %5034 = vmatpush.bf16.msra.mxu1 %v7488_v4  ;;  %v8102_v57 = vld [vmem:[%s12285_s8 + $0x228] sm:$0xf0]  ;;  %v7576_v4 = vor.u32 %v8242_v26, %v7575_v58  ;;  %v8207_v26 = vld [vmem:[%s12285_s8 + $0x570] sm:$0xf0] }
 0x589   :  { %4998 = vmatmul.bf16.vlgmr.msrb.gmra.mxu2 %v11265_v50  ;;  %v7016_v3 = vor.u32 %v8102_v57, %v7015_v56 }
 0x58a   :  { %5042 = vmatpush.bf16.msra.mxu2 %v6960_v63  ;;  %5020 = vmatpush.bf16.msra.mxu0 %v7292_v6  ;;  %v8053_v63 = vld [vmem:[%s12285_s8 + $0xa0] sm:$0xf0]  ;;  %v6987_v6 = vld [vmem:[%s12285_s8 + $0x1d8] sm:$0xf] }
 0x58b   :  { %v6988_v20 = vor.u32 %v8095_v7, %v6987_v6  ;;  %v8151_v6 = vld [vmem:[%s12285_s8 + $0x3b0] sm:$0xf0] }
 0x58c   :  { %5057 = vmatpush.bf16.msra.mxu3 %v7128_v5  ;;  %5035 = vmatpush.bf16.msra.mxu1 %v7460_v15  ;;  %v4739_v47 = vpop.f32.mrf.mxu2  ;;  %v6820_v5 = vor.u32 %v8053_v63, %v6819_v29  ;;  %v8186_v15 = vld [vmem:[%s12285_s8 + $0x4c8] sm:$0xf0] }
 0x58d   :  { %v4740_v19 = vadd.f32 %v4739_v47, %v3564_v0  ;;  %v7352_v23 = vor.u32 %v8186_v15, %v7351_v60  ;;  %v8158_v63 = vld [vmem:[%s12285_s8 + $0x3e8] sm:$0xf0]  ;;  %v3566_v15 = vperm.slane %v12125_v9, 2 }
 0x58e   :  { %5043 = vmatpush.bf16.msra.mxu2 %v6932_v11  ;;  %5021 = vmatpush.bf16.msra.mxu0 %v7264_v36  ;;  %v4754_v2 = vpop.f32.mrf.mxu3  ;;  %v7380_v11 = vor.u32 %v8193_v1, %v7379_v62  ;;  %v6792_v36 = vor.u32 %v8046_v14, %v6791_v13 }
 0x58f   :  { %v4753_v31 = vadd.f32 %v12090_v38, %v4740_v19  ;;  %v7491_v38 = vld [vmem:[%s12285_s8 + $0x5c8] sm:$0xf] }
 0x590   :  { %5058 = vmatpush.bf16.msra.mxu3 %v7100_v21  ;;  %5036 = vmatpush.bf16.msra.mxu1 %v7432_v34  ;;  %v4778_v10 = vpop.f32.mrf.mxu1  ;;  %v7548_v21 = vor.u32 %v8235_v12, %v7547_v17 }
 0x592   :  { %5044 = vmatpush.bf16.msra.mxu2 %v6904_v33  ;;  %5022 = vmatpush.bf16.msra.mxu0 %v7236_v42  ;;  %v8228_v33 = vld [vmem:[%s12285_s8 + $0x618] sm:$0xf0]  ;;  %v7324_v42 = vor.u32 %v8179_v30, %v7323_v28 }
 0x593   :  { %5037 = vmatmul.bf16.vlgmr.msra.gmra.mxu1 %v11307_v59 }
 0x594   :  { %5059 = vmatpush.bf16.msra.mxu3 %v7072_v16  ;;  %5081 = vmatpush.bf16.msrb.mxu1 %v7632_v39  ;;  %v4741_v22 = vpop.f32.mrf.mxu2  ;;  %v7520_v39 = vor.u32 %v8228_v33, %v7519_v37 }
 0x596   :  { %5045 = vmatpush.bf16.msra.mxu2 %v6876_v45  ;;  %5023 = vmatpush.bf16.msra.mxu0 %v7208_v54  ;;  %v4765_v32 = vpop.f32.mrf.mxu0  ;;  %v4804_v34 = vpop.f32.mrf.mxu3  ;;  %v8221_v45 = vld [vmem:[%s12285_s8 + $0x5e0] sm:$0xf0] }
 0x597   :  { %v4766_v16 = vadd.f32 %v4765_v32, %v4753_v31  ;;  %v7492_v49 = vor.u32 %v8221_v45, %v7491_v38  ;;  %v8165_v54 = vld [vmem:[%s12285_s8 + $0x420] sm:$0xf0] }
 0x598   :  { %5060 = vmatpush.bf16.msra.mxu3 %v7044_v8  ;;  %5082 = vmatpush.bf16.msrb.mxu1 %v7604_v53  ;;  %v4780_v41 = vpop.f32.mrf.mxu1  ;;  %v3565_v8 = vperm.slane %v12125_v9, 1  ;;  %v7267_v53 = vld [vmem:[%s12285_s8 + $0x408] sm:$0xf] }
 0x599   :  { %5024 = vmatmul.bf16.vlgmr.msra.gmra.mxu0 %v11347_v35  ;;  %v4779_v46 = vadd.f32 %v4778_v10, %v4766_v16  ;;  %v7268_v47 = vor.u32 %v8165_v54, %v7267_v53 }
 0x59a   :  { %5046 = vmatpush.bf16.msra.mxu2 %v6848_v55  ;;  %5068 = vmatpush.bf16.msrb.mxu0 %v7408_v61  ;;  %v7435_v61 = vld [vmem:[%s12285_s8 + $0x558] sm:$0xf] }
 0x59b   :  { %v5094_v48 = vmul.f32 0.5, %v4779_v46  ;;  %v7436_v62 = vor.u32 %v8207_v26, %v7435_v61 }
 0x59c   :  { %5061 = vmatpush.bf16.msra.mxu3 %v7016_v3  ;;  %5083 = vmatpush.bf16.msrb.mxu1 %v7576_v4  ;;  %v4791_v25 = vpop.f32.mrf.mxu2 }
 0x59d   :  { %8290 = vtanh.f32 %v5094_v48  ;;  %v4792_v29 = vadd.f32 %v4791_v25, %v3565_v8 }
 0x59e   :  { %5047 = vmatpush.bf16.msra.mxu2 %v6820_v5  ;;  %5069 = vmatpush.bf16.msrb.mxu0 %v7380_v11  ;;  %v4767_v55 = vpop.f32.mrf.mxu0  ;;  %v4806_v56 = vpop.f32.mrf.mxu3  ;;  %v7211_v5 = vld [vmem:[%s12285_s8 + $0x398] sm:$0xf] }
 0x59f   :  { %v4805_v4 = vadd.f32 %v4804_v34, %v4792_v29  ;;  %v7212_v13 = vor.u32 %v8151_v6, %v7211_v5 }
 0x5a0   :  { %5062 = vmatpush.bf16.msra.mxu3 %v6988_v20  ;;  %5084 = vmatpush.bf16.msrb.mxu1 %v7548_v21  ;;  %v4830_v58 = vpop.f32.mrf.mxu1 }
 0x5a2   :  { %5048 = vmatpush.bf16.msra.mxu2 %v6792_v36  ;;  %5070 = vmatpush.bf16.msrb.mxu0 %v7352_v23 }
 0x5a3   :  { %5063 = vmatmul.bf16.vlgmr.msra.gmra.mxu3 %v11243_v27  ;;  %v8214_v27 = vld [vmem:[%s12285_s8 + $0x5a8] sm:$0xf0]  ;;  %v8291_v0 = vpop.eup %8290 }
 0x5a4   :  { %5085 = vmatpush.bf16.msrb.mxu1 %v7520_v39  ;;  %v7464_v57 = vor.u32 %v8214_v27, %v7463_v52  ;;  %v5108_v1 = vadd.f32 1.0, %v8291_v0  ;;  %v4793_v2 = vpop.f32.mrf.mxu2 }
 0x5a6   :  { %5049 = vmatpush.bf16.msra.mxu2 %v6764_v40  ;;  %5071 = vmatpush.bf16.msrb.mxu0 %v7324_v42  ;;  %v5115_v7 = vmul.f32 0.5, %v5108_v1  ;;  %v4817_v17 = vpop.f32.mrf.mxu0  ;;  %v4856_v10 = vpop.f32.mrf.mxu3  ;;  %v3567_v42 = vperm.slane %v12125_v9, 3 }
 0x5a7   :  { %v4818_v11 = vadd.f32 %v4817_v17, %v4805_v4  ;;  %v3569_v17 = vperm.slane %v12125_v9, 5 }
 0x5a8   :  { %5086 = vmatpush.bf16.msrb.mxu1 %v7492_v49  ;;  %5122 = vst [vmem:[%s12288_s17] sm:$0xff] %v5115_v7  ;;  %v4832_v12 = vpop.f32.mrf.mxu1 }
 0x5a9   :  { %5050 = vmatmul.bf16.vlgmr.msra.gmra.mxu2 %v11265_v50  ;;  %v7239_v50 = vld [vmem:[%s12285_s8 + $0x3d0] sm:$0xf]  ;;  %v4831_v14 = vadd.f32 %v4830_v58, %v4818_v11 }
 0x5aa   :  { %5072 = vmatpush.bf16.msrb.mxu0 %v7296_v51  ;;  %v7240_v3 = vor.u32 %v8158_v63, %v7239_v50 }
 0x5ab   :  { %v5095_v19 = vmul.f32 0.5, %v4831_v14 }
 0x5ac   :  { %5087 = vmatpush.bf16.msrb.mxu1 %v7464_v57  ;;  %v4843_v60 = vpop.f32.mrf.mxu2  ;;  %v3568_v57 = vperm.slane %v12125_v9, 4 }
 0x5ad   :  { %8292 = vtanh.f32 %v5095_v19  ;;  %v4844_v37 = vadd.f32 %v4843_v60, %v3566_v15 }
 0x5ae   :  { %5073 = vmatpush.bf16.msrb.mxu0 %v7268_v47  ;;  %v4819_v20 = vpop.f32.mrf.mxu0  ;;  %v4858_v21 = vpop.f32.mrf.mxu3 }
 0x5af   :  { %v4857_v24 = vadd.f32 %v4856_v10, %v4844_v37 }
 0x5b0   :  { %5088 = vmatpush.bf16.msrb.mxu1 %v7436_v62  ;;  %v4882_v36 = vpop.f32.mrf.mxu1 }
 0x5b2   :  { %5074 = vmatpush.bf16.msrb.mxu0 %v7240_v3 }
 0x5b3   :  { %5089 = vmatmul.bf16.vlgmr.msrb.gmra.mxu1 %v11307_v59  ;;  %v8293_v22 = vpop.eup %8292 }
 0x5b4   :  { %v5109_v23 = vadd.f32 1.0, %v8293_v22  ;;  %v4845_v33 = vpop.f32.mrf.mxu2 }
 0x5b6   :  { %5075 = vmatpush.bf16.msrb.mxu0 %v7212_v13  ;;  %v5116_v18 = vmul.f32 0.5, %v5109_v23  ;;  %v4869_v31 = vpop.f32.mrf.mxu0 }
 0x5b7   :  { %v4870_v59 = vadd.f32 %v4869_v31, %v4857_v24  ;;  %v3570_v24 = vperm.slane %v12125_v9, 6 }
 0x5b8   :  { %5123 = vst [vmem:[%s12288_s17 + $0x8] sm:$0xff] %v5116_v18  ;;  %v4884_v28 = vpop.f32.mrf.mxu1 }
 0x5b9   :  { %5076 = vmatmul.bf16.vlgmr.msrb.gmra.mxu0 %v11347_v35  ;;  %v4883_v30 = vadd.f32 %v4882_v36, %v4870_v59 }
 0x5bb   :  { %v5096_v32 = vmul.f32 0.5, %v4883_v30 }
 0x5bd   :  { %8294 = vtanh.f32 %v5096_v32 }
 0x5be   :  { %v4871_v34 = vpop.f32.mrf.mxu0 }
 0x5c3   :  { %v8295_v35 = vpop.eup %8294 }
 0x5c4   :  { %v5110_v39 = vadd.f32 1.0, %v8295_v35 }
 0x5c6   :  { %v4908_v16 = vpop.f32.mrf.mxu3  ;;  %v5117_v40 = vmul.f32 0.5, %v5110_v39 }
 0x5c8   :  { %5124 = vst [vmem:[%s12288_s17 + $0x10] sm:$0xff] %v5117_v40 }
 0x5cc   :  { %v4895_v41 = vpop.f32.mrf.mxu2 }
 0x5cd   :  { %v4896_v46 = vadd.f32 %v4895_v41, %v3567_v42 }
 0x5ce   :  { %v4910_v38 = vpop.f32.mrf.mxu3 }
 0x5cf   :  { %v4909_v43 = vadd.f32 %v4908_v16, %v4896_v46 }
 0x5d0   :  { %v4934_v45 = vpop.f32.mrf.mxu1 }
 0x5d4   :  { %v4897_v44 = vpop.f32.mrf.mxu2 }
 0x5d6   :  { %v4921_v48 = vpop.f32.mrf.mxu0 }
 0x5d7   :  { %v4922_v49 = vadd.f32 %v4921_v48, %v4909_v43 }
 0x5d8   :  { %v4936_v25 = vpop.f32.mrf.mxu1 }
 0x5d9   :  { %v4935_v51 = vadd.f32 %v4934_v45, %v4922_v49 }
 0x5db   :  { %v5097_v52 = vmul.f32 0.5, %v4935_v51 }
 0x5dd   :  { %8296 = vtanh.f32 %v5097_v52 }
 0x5de   :  { %v4923_v27 = vpop.f32.mrf.mxu0 }
 0x5e3   :  { %v8297_v8 = vpop.eup %8296 }
 0x5e4   :  { %v5111_v54 = vadd.f32 1.0, %v8297_v8 }
 0x5e6   :  { %v4960_v53 = vpop.f32.mrf.mxu3  ;;  %v5118_v55 = vmul.f32 0.5, %v5111_v54 }
 0x5e8   :  { %5125 = vst [vmem:[%s12288_s17 + $0x18] sm:$0xff] %v5118_v55 }
 0x5ec   :  { %v4947_v56 = vpop.f32.mrf.mxu2 }
 0x5ed   :  { %v4948_v61 = vadd.f32 %v4947_v56, %v3568_v57 }
 0x5ee   :  { %v4962_v58 = vpop.f32.mrf.mxu3 }
 0x5ef   :  { %v4961_v29 = vadd.f32 %v4960_v53, %v4948_v61 }
 0x5f0   :  { %v4986_v47 = vpop.f32.mrf.mxu1 }
 0x5f4   :  { %v4949_v26 = vpop.f32.mrf.mxu2 }
 0x5f6   :  { %v4973_v50 = vpop.f32.mrf.mxu0 }
 0x5f7   :  { %v4974_v63 = vadd.f32 %v4973_v50, %v4961_v29 }
 0x5f8   :  { %v4988_v0 = vpop.f32.mrf.mxu1 }
 0x5f9   :  { %v4987_v62 = vadd.f32 %v4986_v47, %v4974_v63 }
 0x5fb   :  { %v5098_v1 = vmul.f32 0.5, %v4987_v62 }
 0x5fd   :  { %8298 = vtanh.f32 %v5098_v1 }
 0x5fe   :  { %v4975_v2 = vpop.f32.mrf.mxu0 }
 0x603   :  { %v8299_v3 = vpop.eup %8298 }
 0x604   :  { %v5112_v5 = vadd.f32 1.0, %v8299_v3 }
 0x606   :  { %v5012_v4 = vpop.f32.mrf.mxu3  ;;  %v5119_v6 = vmul.f32 0.5, %v5112_v5 }
 0x608   :  { %5126 = vst [vmem:[%s12288_s17 + $0x20] sm:$0xff] %v5119_v6 }
 0x60c   :  { %v4999_v7 = vpop.f32.mrf.mxu2 }
 0x60d   :  { %v5000_v12 = vadd.f32 %v4999_v7, %v3569_v17 }
 0x60e   :  { %v5014_v10 = vpop.f32.mrf.mxu3 }
 0x60f   :  { %v5013_v14 = vadd.f32 %v5012_v4, %v5000_v12 }
 0x610   :  { %v5038_v11 = vpop.f32.mrf.mxu1 }
 0x614   :  { %v5001_v13 = vpop.f32.mrf.mxu2 }
 0x616   :  { %v5025_v19 = vpop.f32.mrf.mxu0 }
 0x617   :  { %v5026_v60 = vadd.f32 %v5025_v19, %v5013_v14 }
 0x618   :  { %v5040_v15 = vpop.f32.mrf.mxu1 }
 0x619   :  { %v5039_v20 = vadd.f32 %v5038_v11, %v5026_v60 }
 0x61b   :  { %v5099_v21 = vmul.f32 0.5, %v5039_v20 }
 0x61d   :  { %8300 = vtanh.f32 %v5099_v21 }
 0x61e   :  { %v5027_v36 = vpop.f32.mrf.mxu0 }
 0x623   :  { %v8301_v37 = vpop.eup %8300 }
 0x624   :  { %v5113_v23 = vadd.f32 1.0, %v8301_v37 }
 0x626   :  { %v5064_v22 = vpop.f32.mrf.mxu3  ;;  %v5120_v33 = vmul.f32 0.5, %v5113_v23 }
 0x628   :  { %5127 = vst [vmem:[%s12288_s17 + $0x28] sm:$0xff] %v5120_v33 }
 0x62c   :  { %v5051_v18 = vpop.f32.mrf.mxu2 }
 0x62d   :  { %v5052_v59 = vadd.f32 %v5051_v18, %v3570_v24 }
 0x62e   :  { %v5066_v31 = vpop.f32.mrf.mxu3 }
 0x62f   :  { %v5065_v32 = vadd.f32 %v5064_v22, %v5052_v59 }
 0x630   :  { %v5090_v28 = vpop.f32.mrf.mxu1 }
 0x634   :  { %v5053_v30 = vpop.f32.mrf.mxu2 }
 0x636   :  { %v5077_v34 = vpop.f32.mrf.mxu0 }
 0x637   :  { %v5078_v16 = vadd.f32 %v5077_v34, %v5065_v32 }
 0x638   :  { %v5092_v39 = vpop.f32.mrf.mxu1 }
 0x639   :  { %v5091_v35 = vadd.f32 %v5090_v28, %v5078_v16 }
 0x63b   :  { %v5100_v40 = vmul.f32 0.5, %v5091_v35 }
 0x63d   :  { %8302 = vtanh.f32 %v5100_v40 }
 0x63e   :  { %v5079_v41 = vpop.f32.mrf.mxu0 }
 0x643   :  { %v8303_v42 = vpop.eup %8302 }
 0x644   :  { %v5114_v38 = vadd.f32 1.0, %v8303_v42 }
 0x646   :  { %v5121_v45 = vmul.f32 0.5, %v5114_v38 }
 0x648   :  { %5128 = vst [vmem:[%s12288_s17 + $0x30] sm:$0xff] %v5121_v45 }

// kernel: _forward_impl.1
= control target key start
LH: loop header
LB: loop body
LE: loop exit
PB: predicated region body
PF: predicated region fallthrough
CT: control target
= control target key end

     0   :  { %s12270_s1 = inlined_call_operand.vmem [shape: bf16[896,512], index: 1, kind: input, shape index: {}]   ;;  %s12271_s0 = inlined_call_operand.vmem [shape: f32[8,896], index: 0, kind: input, shape index: {}]   ;;  %s12272_s9 = inlined_call_operand.vmem [shape: f32[1,512], index: 9, kind: input, shape index: {}]   ;;  %s12273_s2 = inlined_call_operand.vmem [shape: bf16[512,256], index: 2, kind: input, shape index: {}]   ;;  %s12274_s10 = inlined_call_operand.vmem [shape: f32[1,256], index: 10, kind: input, shape index: {}]   ;;  %s12275_s11 = inlined_call_operand.vmem [shape: f32[1,128], index: 11, kind: input, shape index: {}]   ;;  %s12276_s3 = inlined_call_operand.vmem [shape: bf16[256,128], index: 3, kind: input, shape index: {}]   ;;  %s12277_s12 = inlined_call_operand.vmem [shape: f32[1,128], index: 12, kind: input, shape index: {}]   ;;  %s12278_s4 = inlined_call_operand.vmem [shape: bf16[128,128], index: 4, kind: input, shape index: {}]   ;;  %s12279_s5 = inlined_call_operand.vmem [shape: bf16[128,128], index: 5, kind: input, shape index: {}]   ;;  %s12280_s13 = inlined_call_operand.vmem [shape: f32[1,128], index: 13, kind: input, shape index: {}]   ;;  %s12281_s6 = inlined_call_operand.vmem [shape: bf16[128,256], index: 6, kind: input, shape index: {}]   ;;  %s12282_s18 = inlined_call_operand.vmem [shape: f32[8,128], index: 18, kind: output, shape index: {1}]   ;;  %s12283_s7 = inlined_call_operand.vmem [shape: bf16[256,512], index: 7, kind: input, shape index: {}]   ;;  %s12284_s14 = inlined_call_operand.vmem [shape: f32[1,256], index: 14, kind: input, shape index: {}]   ;;  %s12285_s8 = inlined_call_operand.vmem [shape: bf16[512,896], index: 8, kind: input, shape index: {}]   ;;  %s12286_s15 = inlined_call_operand.vmem [shape: f32[1,512], index: 15, kind: input, shape index: {}]   ;;  %s12287_s16 = inlined_call_operand.vmem [shape: f32[1,896], index: 16, kind: input, shape index: {}]   ;;  %s12288_s17 = inlined_call_operand.vmem [shape: f32[8,896], index: 17, kind: output, shape index: {0}]  }
   0x1   :  { %12291 = sst [smem:[#allocation2_spill]] %s12270_s1 }
   0x2   :  { %12292 = sst [smem:[#allocation3_spill]] %s12271_s0 }
   0x3   :  { %12293 = sst [smem:[#allocation4_spill]] %s12272_s9 }
   0x4   :  { %s12294_s29 = sld [smem:[#allocation2_spill]] }
   0x5   :  { %s12295_s25 = sld [smem:[#allocation3_spill]] }
   0x6   :  { %s12296_s26 = sld [smem:[#allocation4_spill]] }
   0xa   :  { %v5251_v0 = vld [vmem:[%s12294_s29 + $0xe0] sm:$0xf]  ;;  %v7663_v1 = vld [vmem:[%s12294_s29 + $0xec] sm:$0xf0] }
   0xb   :  { %v5379_v2 = vld [vmem:[%s12294_s29 + $0x1e0] sm:$0xf]  ;;  %v5252_v3 = vor.u32 %v7663_v1, %v5251_v0  ;;  %v7695_v4 = vld [vmem:[%s12294_s29 + $0x1ec] sm:$0xf0] }
   0xc   :  { %v5507_v5 = vld [vmem:[%s12294_s29 + $0x2e0] sm:$0xf]  ;;  %v7727_v6 = vld [vmem:[%s12294_s29 + $0x2ec] sm:$0xf0]  ;;  %v5380_v7 = vor.u32 %v7695_v4, %v5379_v2 }
   0xd   :  { %v5508_v8 = vor.u32 %v7727_v6, %v5507_v5  ;;  %v5635_v9 = vld [vmem:[%s12294_s29 + $0x3e0] sm:$0xf]  ;;  %v7759_v10 = vld [vmem:[%s12294_s29 + $0x3ec] sm:$0xf0]  ;;  %1426 = vmatpush.bf16.msra.mxu0 %v5252_v3 }
   0xe   :  { %v5235_v11 = vld [vmem:[%s12294_s29 + $0xc0] sm:$0xf]  ;;  %v5636_v12 = vor.u32 %v7759_v10, %v5635_v9  ;;  %v7659_v13 = vld [vmem:[%s12294_s29 + $0xcc] sm:$0xf0]  ;;  %1439 = vmatpush.bf16.msra.mxu1 %v5380_v7 }
   0xf   :  { %v5363_v14 = vld [vmem:[%s12294_s29 + $0x1c0] sm:$0xf]  ;;  %v7691_v15 = vld [vmem:[%s12294_s29 + $0x1cc] sm:$0xf0]  ;;  %1452 = vmatpush.bf16.msra.mxu2 %v5508_v8  ;;  %v5236_v16 = vor.u32 %v7659_v13, %v5235_v11 }
  0x10   :  { %v5364_v17 = vor.u32 %v7691_v15, %v5363_v14  ;;  %v5491_v18 = vld [vmem:[%s12294_s29 + $0x2c0] sm:$0xf]  ;;  %v7723_v19 = vld [vmem:[%s12294_s29 + $0x2cc] sm:$0xf0]  ;;  %1465 = vmatpush.bf16.msra.mxu3 %v5636_v12 }
  0x11   :  { %v5619_v20 = vld [vmem:[%s12294_s29 + $0x3c0] sm:$0xf]  ;;  %v5492_v21 = vor.u32 %v7723_v19, %v5491_v18  ;;  %v7755_v22 = vld [vmem:[%s12294_s29 + $0x3cc] sm:$0xf0]  ;;  %1427 = vmatpush.bf16.msra.mxu0 %v5236_v16 }
  0x12   :  { %v5219_v23 = vld [vmem:[%s12294_s29 + $0xa0] sm:$0xf]  ;;  %v7655_v24 = vld [vmem:[%s12294_s29 + $0xac] sm:$0xf0]  ;;  %v5620_v25 = vor.u32 %v7755_v22, %v5619_v20  ;;  %1440 = vmatpush.bf16.msra.mxu1 %v5364_v17 }
  0x13   :  { %v5347_v26 = vld [vmem:[%s12294_s29 + $0x1a0] sm:$0xf]  ;;  %v7687_v27 = vld [vmem:[%s12294_s29 + $0x1ac] sm:$0xf0]  ;;  %v5220_v29 = vor.u32 %v7655_v24, %v5219_v23  ;;  %1453 = vmatpush.bf16.msra.mxu2 %v5492_v21 }
  0x14   :  { %v5475_v28 = vld [vmem:[%s12294_s29 + $0x2a0] sm:$0xf]  ;;  %v7719_v30 = vld [vmem:[%s12294_s29 + $0x2ac] sm:$0xf0]  ;;  %v5348_v33 = vor.u32 %v7687_v27, %v5347_v26  ;;  %1466 = vmatpush.bf16.msra.mxu3 %v5620_v25 }
  0x15   :  { %v5603_v31 = vld [vmem:[%s12294_s29 + $0x3a0] sm:$0xf]  ;;  %v7751_v32 = vld [vmem:[%s12294_s29 + $0x3ac] sm:$0xf0]  ;;  %v5476_v34 = vor.u32 %v7719_v30, %v5475_v28  ;;  %1428 = vmatpush.bf16.msra.mxu0 %v5220_v29 }
  0x16   :  { %v5203_v35 = vld [vmem:[%s12294_s29 + $0x80] sm:$0xf]  ;;  %v7651_v36 = vld [vmem:[%s12294_s29 + $0x8c] sm:$0xf0]  ;;  %v5604_v38 = vor.u32 %v7751_v32, %v5603_v31  ;;  %1441 = vmatpush.bf16.msra.mxu1 %v5348_v33 }
  0x17   :  { %v5331_v37 = vld [vmem:[%s12294_s29 + $0x180] sm:$0xf]  ;;  %v7683_v39 = vld [vmem:[%s12294_s29 + $0x18c] sm:$0xf0]  ;;  %v5204_v44 = vor.u32 %v7651_v36, %v5203_v35  ;;  %1454 = vmatpush.bf16.msra.mxu2 %v5476_v34 }
  0x18   :  { %v5459_v40 = vld [vmem:[%s12294_s29 + $0x280] sm:$0xf]  ;;  %v7715_v41 = vld [vmem:[%s12294_s29 + $0x28c] sm:$0xf0]  ;;  %v5332_v45 = vor.u32 %v7683_v39, %v5331_v37  ;;  %1467 = vmatpush.bf16.msra.mxu3 %v5604_v38  ;;  %v7661_v37 = vld [vmem:[%s12294_s29 + $0xe4] sm:$0xf] }
  0x19   :  { %v5587_v42 = vld [vmem:[%s12294_s29 + $0x380] sm:$0xf]  ;;  %v7747_v43 = vld [vmem:[%s12294_s29 + $0x38c] sm:$0xf0]  ;;  %v5460_v46 = vor.u32 %v7715_v41, %v5459_v40  ;;  %1429 = vmatpush.bf16.msra.mxu0 %v5204_v44  ;;  %v5253_v38 = vld [vmem:[%s12294_s29 + $0xf0] sm:$0xf0] }
  0x1a   :  { %v5187_v47 = vld [vmem:[%s12294_s29 + $0x60] sm:$0xf]  ;;  %v7647_v48 = vld [vmem:[%s12294_s29 + $0x6c] sm:$0xf0]  ;;  %v5588_v50 = vor.u32 %v7747_v43, %v5587_v42  ;;  %1442 = vmatpush.bf16.msra.mxu1 %v5332_v45 }
  0x1b   :  { %v5315_v49 = vld [vmem:[%s12294_s29 + $0x160] sm:$0xf]  ;;  %v7679_v51 = vld [vmem:[%s12294_s29 + $0x16c] sm:$0xf0]  ;;  %v5188_v56 = vor.u32 %v7647_v48, %v5187_v47  ;;  %1455 = vmatpush.bf16.msra.mxu2 %v5460_v46  ;;  %v5256_v46 = vor.u32 %v7661_v37, %v5253_v38 }
  0x1c   :  { %v5443_v52 = vld [vmem:[%s12294_s29 + $0x260] sm:$0xf]  ;;  %v7711_v53 = vld [vmem:[%s12294_s29 + $0x26c] sm:$0xf0]  ;;  %v5316_v57 = vor.u32 %v7679_v51, %v5315_v49  ;;  %1468 = vmatpush.bf16.msra.mxu3 %v5588_v50  ;;  %v7657_v50 = vld [vmem:[%s12294_s29 + $0xc4] sm:$0xf] }
  0x1d   :  { %v5571_v54 = vld [vmem:[%s12294_s29 + $0x360] sm:$0xf]  ;;  %v7743_v55 = vld [vmem:[%s12294_s29 + $0x36c] sm:$0xf0]  ;;  %v5444_v58 = vor.u32 %v7711_v53, %v5443_v52  ;;  %1430 = vmatpush.bf16.msra.mxu0 %v5188_v56  ;;  %v5237_v51 = vld [vmem:[%s12294_s29 + $0xd0] sm:$0xf0] }
  0x1e   :  { %v5171_v59 = vld [vmem:[%s12294_s29 + $0x40] sm:$0xf]  ;;  %v7643_v60 = vld [vmem:[%s12294_s29 + $0x4c] sm:$0xf0]  ;;  %v5572_v62 = vor.u32 %v7743_v55, %v5571_v54  ;;  %1443 = vmatpush.bf16.msra.mxu1 %v5316_v57 }
  0x1f   :  { %v5299_v61 = vld [vmem:[%s12294_s29 + $0x140] sm:$0xf]  ;;  %v7675_v63 = vld [vmem:[%s12294_s29 + $0x14c] sm:$0xf0]  ;;  %v5172_v4 = vor.u32 %v7643_v60, %v5171_v59  ;;  %1456 = vmatpush.bf16.msra.mxu2 %v5444_v58  ;;  %v5240_v59 = vor.u32 %v7657_v50, %v5237_v51 }
  0x20   :  { %v5427_v0 = vld [vmem:[%s12294_s29 + $0x240] sm:$0xf]  ;;  %v7707_v1 = vld [vmem:[%s12294_s29 + $0x24c] sm:$0xf0]  ;;  %v5300_v5 = vor.u32 %v7675_v63, %v5299_v61  ;;  %1469 = vmatpush.bf16.msra.mxu3 %v5572_v62  ;;  %v7653_v62 = vld [vmem:[%s12294_s29 + $0xa4] sm:$0xf] }
  0x21   :  { %v5555_v2 = vld [vmem:[%s12294_s29 + $0x340] sm:$0xf]  ;;  %v7739_v3 = vld [vmem:[%s12294_s29 + $0x34c] sm:$0xf0]  ;;  %v5428_v6 = vor.u32 %v7707_v1, %v5427_v0  ;;  %1431 = vmatpush.bf16.msra.mxu0 %v5172_v4  ;;  %v5221_v63 = vld [vmem:[%s12294_s29 + $0xb0] sm:$0xf0] }
  0x22   :  { %v5155_v7 = vld [vmem:[%s12294_s29 + $0x20] sm:$0xf]  ;;  %v7639_v8 = vld [vmem:[%s12294_s29 + $0x2c] sm:$0xf0]  ;;  %v5556_v10 = vor.u32 %v7739_v3, %v5555_v2  ;;  %1444 = vmatpush.bf16.msra.mxu1 %v5300_v5 }
  0x23   :  { %v5283_v9 = vld [vmem:[%s12294_s29 + $0x120] sm:$0xf]  ;;  %v7671_v11 = vld [vmem:[%s12294_s29 + $0x12c] sm:$0xf0]  ;;  %v5156_v16 = vor.u32 %v7639_v8, %v5155_v7  ;;  %1457 = vmatpush.bf16.msra.mxu2 %v5428_v6 }
  0x24   :  { %v5411_v12 = vld [vmem:[%s12294_s29 + $0x220] sm:$0xf]  ;;  %v7703_v13 = vld [vmem:[%s12294_s29 + $0x22c] sm:$0xf0]  ;;  %v5284_v19 = vor.u32 %v7671_v11, %v5283_v9  ;;  %1470 = vmatpush.bf16.msra.mxu3 %v5556_v10  ;;  %v61_v10 = vld [vmem:[%s12295_s25 + $0x18] sm:$0xff]  ;;  %v5224_v11 = vor.u32 %v7653_v62, %v5221_v63 }
  0x25   :  { %v5539_v14 = vld [vmem:[%s12294_s29 + $0x320] sm:$0xf]  ;;  %v7735_v15 = vld [vmem:[%s12294_s29 + $0x32c] sm:$0xf0]  ;;  %v5412_v20 = vor.u32 %v7703_v13, %v5411_v12  ;;  %1432 = vmatpush.bf16.msra.mxu0 %v5156_v16  ;;  %v7649_v16 = vld [vmem:[%s12294_s29 + $0x84] sm:$0xf] }
  0x26   :  { %v5139_v17 = vld [vmem:[%s12294_s29] sm:$0xf]  ;;  %v7635_v18 = vld [vmem:[%s12294_s29 + $0xc] sm:$0xf0]  ;;  %v5540_v24 = vor.u32 %v7735_v15, %v5539_v14  ;;  %1445 = vmatpush.bf16.msra.mxu1 %v5284_v19  ;;  %v8694_v15 = vpack.c.bf16 %v61_v10, %v61_v10  ;;  %v59_v19 = vld [vmem:[%s12295_s25 + $0x8] sm:$0xff] }
  0x27   :  { %v5267_v21 = vld [vmem:[%s12294_s29 + $0x100] sm:$0xf]  ;;  %v7667_v22 = vld [vmem:[%s12294_s29 + $0x10c] sm:$0xf0]  ;;  %v5140_v31 = vor.u32 %v7635_v18, %v5139_v17  ;;  %1458 = vmatpush.bf16.msra.mxu2 %v5412_v20  ;;  %v5205_v17 = vld [vmem:[%s12294_s29 + $0x90] sm:$0xf0] }
  0x28   :  { %v5395_v23 = vld [vmem:[%s12294_s29 + $0x200] sm:$0xf]  ;;  %v7699_v25 = vld [vmem:[%s12294_s29 + $0x20c] sm:$0xf0]  ;;  %v5268_v35 = vor.u32 %v7667_v22, %v5267_v21  ;;  %1471 = vmatpush.bf16.msra.mxu3 %v5540_v24  ;;  %v5509_v10 = vld [vmem:[%s12294_s29 + $0x2f0] sm:$0xf0] }
  0x29   :  { %v5523_v26 = vld [vmem:[%s12294_s29 + $0x300] sm:$0xf]  ;;  %v7731_v27 = vld [vmem:[%s12294_s29 + $0x30c] sm:$0xf0]  ;;  %v5396_v36 = vor.u32 %v7699_v25, %v5395_v23  ;;  %1433 = vmatpush.bf16.msra.mxu0 %v5140_v31  ;;  %v8717_v25 = vpack.c.bf16 %v59_v19, %v59_v19  ;;  %v5189_v31 = vld [vmem:[%s12294_s29 + $0x70] sm:$0xf0] }
  0x2a   :  { %v5763_v28 = vld [vmem:[%s12294_s29 + $0x4e0] sm:$0xf]  ;;  %v7791_v29 = vld [vmem:[%s12294_s29 + $0x4ec] sm:$0xf0]  ;;  %v5524_v39 = vor.u32 %v7731_v27, %v5523_v26  ;;  %1446 = vmatpush.bf16.msra.mxu1 %v5268_v35  ;;  %v5208_v26 = vor.u32 %v7649_v16, %v5205_v17  ;;  %v7789_v16 = vld [vmem:[%s12294_s29 + $0x4e4] sm:$0xf] }
  0x2b   :  { %v5891_v30 = vld [vmem:[%s12294_s29 + $0x5e0] sm:$0xf]  ;;  %v7823_v32 = vld [vmem:[%s12294_s29 + $0x5ec] sm:$0xf0]  ;;  %v5764_v40 = vor.u32 %v7791_v29, %v5763_v28  ;;  %1459 = vmatpush.bf16.msra.mxu2 %v5396_v36  ;;  %v5765_v17 = vld [vmem:[%s12294_s29 + $0x4f0] sm:$0xf0] }
  0x2c   :  { %v6019_v33 = vld [vmem:[%s12294_s29 + $0x6e0] sm:$0xf]  ;;  %v7855_v34 = vld [vmem:[%s12294_s29 + $0x6ec] sm:$0xf0]  ;;  %v5892_v41 = vor.u32 %v7823_v32, %v5891_v30  ;;  %1472 = vmatpush.bf16.msra.mxu3 %v5524_v39  ;;  %v7645_v30 = vld [vmem:[%s12294_s29 + $0x64] sm:$0xf] }
  0x2d   :  { %v6020_v42 = vor.u32 %v7855_v34, %v6019_v33  ;;  %v5747_v43 = vld [vmem:[%s12294_s29 + $0x4c0] sm:$0xf]  ;;  %v7787_v44 = vld [vmem:[%s12294_s29 + $0x4cc] sm:$0xf0]  ;;  %1478 = vmatpush.bf16.msrb.mxu0 %v5764_v40  ;;  %1447 = vmatmul.bf16.vlgmr.msra.gmra.mxu1 %v8717_v25  ;;  %v5192_v38 = vor.u32 %v7645_v30, %v5189_v31  ;;  %v5493_v30 = vld [vmem:[%s12294_s29 + $0x2d0] sm:$0xf0] }
  0x2e   :  { %v5875_v45 = vld [vmem:[%s12294_s29 + $0x5c0] sm:$0xf]  ;;  %v7819_v47 = vld [vmem:[%s12294_s29 + $0x5cc] sm:$0xf0]  ;;  %v5748_v52 = vor.u32 %v7787_v44, %v5747_v43  ;;  %1491 = vmatpush.bf16.msrb.mxu1 %v5892_v41  ;;  %v5173_v43 = vld [vmem:[%s12294_s29 + $0x50] sm:$0xf0] }
  0x2f   :  { %v6003_v48 = vld [vmem:[%s12294_s29 + $0x6c0] sm:$0xf]  ;;  %v7851_v49 = vld [vmem:[%s12294_s29 + $0x6cc] sm:$0xf0]  ;;  %1504 = vmatpush.bf16.msrb.mxu2 %v6020_v42  ;;  %v5876_v54 = vor.u32 %v7819_v47, %v5875_v45  ;;  %1473 = vmatmul.bf16.vlgmr.msra.gmra.mxu3 %v8694_v15  ;;  %v7641_v42 = vld [vmem:[%s12294_s29 + $0x44] sm:$0xf] }
  0x30   :  { %v5731_v53 = vld [vmem:[%s12294_s29 + $0x4a0] sm:$0xf]  ;;  %v6004_v55 = vor.u32 %v7851_v49, %v6003_v48  ;;  %v7783_v56 = vld [vmem:[%s12294_s29 + $0x4ac] sm:$0xf0]  ;;  %1517 = vmatpush.bf16.msrb.mxu3 %v5256_v46  ;;  %v5176_v50 = vor.u32 %v7641_v42, %v5173_v43  ;;  %v7753_v31 = vld [vmem:[%s12294_s29 + $0x3c4] sm:$0xf] }
  0x31   :  { %v5859_v57 = vld [vmem:[%s12294_s29 + $0x5a0] sm:$0xf]  ;;  %v7815_v58 = vld [vmem:[%s12294_s29 + $0x5ac] sm:$0xf0]  ;;  %1479 = vmatpush.bf16.msrb.mxu0 %v5748_v52  ;;  %v5732_v0 = vor.u32 %v7783_v56, %v5731_v53  ;;  %v5349_v42 = vld [vmem:[%s12294_s29 + $0x1b0] sm:$0xf0] }
  0x32   :  { %v5987_v60 = vld [vmem:[%s12294_s29 + $0x6a0] sm:$0xf]  ;;  %v7847_v61 = vld [vmem:[%s12294_s29 + $0x6ac] sm:$0xf0]  ;;  %v5860_v1 = vor.u32 %v7815_v58, %v5859_v57  ;;  %1492 = vmatpush.bf16.msrb.mxu1 %v5876_v54  ;;  %v7637_v54 = vld [vmem:[%s12294_s29 + $0x24] sm:$0xf] }
  0x33   :  { %v5715_v2 = vld [vmem:[%s12294_s29 + $0x480] sm:$0xf]  ;;  %v60_v3 = vld [vmem:[%s12295_s25 + $0x10] sm:$0xff]  ;;  %1505 = vmatpush.bf16.msrb.mxu2 %v6004_v55  ;;  %v5988_v5 = vor.u32 %v7847_v61, %v5987_v60  ;;  %v7717_v43 = vld [vmem:[%s12294_s29 + $0x2a4] sm:$0xf] }
  0x34   :  { %v58_v4 = vld [vmem:[%s12295_s25] sm:$0xff]  ;;  %v7779_v6 = vld [vmem:[%s12294_s29 + $0x48c] sm:$0xf0]  ;;  %v8678_v8 = vpack.c.bf16 %v60_v3, %v60_v3  ;;  %1518 = vmatpush.bf16.msrb.mxu3 %v5240_v59  ;;  %v5157_v55 = vld [vmem:[%s12294_s29 + $0x30] sm:$0xf0] }
  0x35   :  { %v5843_v7 = vld [vmem:[%s12294_s29 + $0x580] sm:$0xf]  ;;  %v8680_v9 = vpack.c.bf16 %v58_v4, %v58_v4  ;;  %v7811_v12 = vld [vmem:[%s12294_s29 + $0x58c] sm:$0xf0]  ;;  %1480 = vmatpush.bf16.msrb.mxu0 %v5732_v0  ;;  %v5716_v18 = vor.u32 %v7779_v6, %v5715_v2  ;;  %v5160_v0 = vor.u32 %v7637_v54, %v5157_v55  ;;  %v7633_v2 = vld [vmem:[%s12294_s29 + $0x4] sm:$0xf] }
  0x36   :  { %v5971_v13 = vld [vmem:[%s12294_s29 + $0x680] sm:$0xf]  ;;  %v7843_v14 = vld [vmem:[%s12294_s29 + $0x68c] sm:$0xf0]  ;;  %1460 = vmatmul.bf16.vlgmr.msra.gmra.mxu2 %v8678_v8  ;;  %1493 = vmatpush.bf16.msrb.mxu1 %v5860_v1  ;;  %v5844_v20 = vor.u32 %v7811_v12, %v5843_v7  ;;  %v5141_v3 = vld [vmem:[%s12294_s29 + $0x10] sm:$0xf0] }
  0x37   :  { %1434 = vmatmul.bf16.vlgmr.msra.gmra.mxu0 %v8680_v9  ;;  %1506 = vmatpush.bf16.msrb.mxu2 %v5988_v5  ;;  %v5972_v21 = vor.u32 %v7843_v14, %v5971_v13  ;;  %v5699_v22 = vld [vmem:[%s12294_s29 + $0x460] sm:$0xf]  ;;  %v7775_v23 = vld [vmem:[%s12294_s29 + $0x46c] sm:$0xf0]  ;;  %v7693_v4 = vld [vmem:[%s12294_s29 + $0x1e4] sm:$0xf]  ;;  %v5144_v19 = vor.u32 %v7633_v2, %v5141_v3 }
  0x38   :  { %v5827_v24 = vld [vmem:[%s12294_s29 + $0x560] sm:$0xf]  ;;  %1519 = vmatpush.bf16.msrb.mxu3 %v5224_v11  ;;  %v7807_v27 = vld [vmem:[%s12294_s29 + $0x56c] sm:$0xf0]  ;;  %v5700_v32 = vor.u32 %v7775_v23, %v5699_v22  ;;  %v5381_v5 = vld [vmem:[%s12294_s29 + $0x1f0] sm:$0xf0] }
  0x39   :  { %v5955_v28 = vld [vmem:[%s12294_s29 + $0x660] sm:$0xf]  ;;  %v7839_v29 = vld [vmem:[%s12294_s29 + $0x66c] sm:$0xf0]  ;;  %1481 = vmatpush.bf16.msrb.mxu0 %v5716_v18  ;;  %v5828_v33 = vor.u32 %v7807_v27, %v5827_v24  ;;  %v7725_v6 = vld [vmem:[%s12294_s29 + $0x2e4] sm:$0xf] }
  0x3a   :  { %1494 = vmatpush.bf16.msrb.mxu1 %v5844_v20  ;;  %v5956_v34 = vor.u32 %v7839_v29, %v5955_v28  ;;  %v5683_v35 = vld [vmem:[%s12294_s29 + $0x440] sm:$0xf]  ;;  %v7771_v36 = vld [vmem:[%s12294_s29 + $0x44c] sm:$0xf0]  ;;  %v7757_v11 = vld [vmem:[%s12294_s29 + $0x3e4] sm:$0xf]  ;;  %v5384_v20 = vor.u32 %v7693_v4, %v5381_v5  ;;  %v5512_v23 = vor.u32 %v7725_v6, %v5509_v10  ;;  %v5768_v29 = vor.u32 %v7789_v16, %v5765_v17 }
  0x3b   :  { %1507 = vmatpush.bf16.msrb.mxu2 %v5972_v21  ;;  %v5811_v37 = vld [vmem:[%s12294_s29 + $0x540] sm:$0xf]  ;;  %v7803_v39 = vld [vmem:[%s12294_s29 + $0x54c] sm:$0xf0]  ;;  %v5684_v44 = vor.u32 %v7771_v36, %v5683_v35  ;;  %v5637_v12 = vld [vmem:[%s12294_s29 + $0x3f0] sm:$0xf0] }
  0x3c   :  { %1520 = vmatpush.bf16.msrb.mxu3 %v5208_v26  ;;  %v5939_v40 = vld [vmem:[%s12294_s29 + $0x640] sm:$0xf]  ;;  %v7835_v41 = vld [vmem:[%s12294_s29 + $0x64c] sm:$0xf0]  ;;  %v5812_v45 = vor.u32 %v7803_v39, %v5811_v37  ;;  %v63_v22 = vld [vmem:[%s12295_s25 + $0x28] sm:$0xff]  ;;  %v5640_v24 = vor.u32 %v7757_v11, %v5637_v12 }
  0x3d   :  { %1482 = vmatpush.bf16.msrb.mxu0 %v5700_v32  ;;  %v5940_v46 = vor.u32 %v7835_v41, %v5939_v40  ;;  %v5667_v47 = vld [vmem:[%s12294_s29 + $0x420] sm:$0xf]  ;;  %v7767_v48 = vld [vmem:[%s12294_s29 + $0x42c] sm:$0xf0]  ;;  %v7689_v26 = vld [vmem:[%s12294_s29 + $0x1c4] sm:$0xf]  ;;  %v8868_v37 = vpack.c.bf16 %v63_v22, %v63_v22 }
  0x3e   :  { %1495 = vmatpush.bf16.msrb.mxu1 %v5828_v33  ;;  %v5795_v49 = vld [vmem:[%s12294_s29 + $0x520] sm:$0xf]  ;;  %v7799_v51 = vld [vmem:[%s12294_s29 + $0x52c] sm:$0xf0]  ;;  %v5668_v56 = vor.u32 %v7767_v48, %v5667_v47  ;;  %v5365_v27 = vld [vmem:[%s12294_s29 + $0x1d0] sm:$0xf0] }
  0x3f   :  { %1508 = vmatpush.bf16.msrb.mxu2 %v5956_v34  ;;  %v5923_v52 = vld [vmem:[%s12294_s29 + $0x620] sm:$0xf]  ;;  %v7831_v53 = vld [vmem:[%s12294_s29 + $0x62c] sm:$0xf0]  ;;  %v5796_v59 = vor.u32 %v7799_v51, %v5795_v49  ;;  %v7721_v28 = vld [vmem:[%s12294_s29 + $0x2c4] sm:$0xf] }
  0x40   :  { %1521 = vmatpush.bf16.msrb.mxu3 %v5192_v38  ;;  %v5651_v57 = vld [vmem:[%s12294_s29 + $0x400] sm:$0xf]  ;;  %v7763_v58 = vld [vmem:[%s12294_s29 + $0x40c] sm:$0xf0]  ;;  %v5924_v60 = vor.u32 %v7831_v53, %v5923_v52  ;;  %v5621_v32 = vld [vmem:[%s12294_s29 + $0x3d0] sm:$0xf0]  ;;  %v5368_v38 = vor.u32 %v7689_v26, %v5365_v27  ;;  %v5496_v39 = vor.u32 %v7721_v28, %v5493_v30 }
  0x41   :  { %1483 = vmatpush.bf16.msrb.mxu0 %v5684_v44  ;;  %v5779_v61 = vld [vmem:[%s12294_s29 + $0x500] sm:$0xf]  ;;  %v7795_v62 = vld [vmem:[%s12294_s29 + $0x50c] sm:$0xf0]  ;;  %v5652_v7 = vor.u32 %v7763_v58, %v5651_v57  ;;  %v7785_v34 = vld [vmem:[%s12294_s29 + $0x4c4] sm:$0xf]  ;;  %v5624_v40 = vor.u32 %v7753_v31, %v5621_v32 }
  0x42   :  { %1496 = vmatpush.bf16.msrb.mxu1 %v5812_v45  ;;  %v5907_v63 = vld [vmem:[%s12294_s29 + $0x600] sm:$0xf]  ;;  %v7827_v1 = vld [vmem:[%s12294_s29 + $0x60c] sm:$0xf0]  ;;  %v5780_v13 = vor.u32 %v7795_v62, %v5779_v61  ;;  %v5749_v35 = vld [vmem:[%s12294_s29 + $0x4d0] sm:$0xf0] }
  0x43   :  { %1509 = vmatpush.bf16.msrb.mxu2 %v5940_v46  ;;  %v5908_v14 = vor.u32 %v7827_v1, %v5907_v63  ;;  %v64_v18 = vld [vmem:[%s12295_s25 + $0x30] sm:$0xff]  ;;  %v62_v21 = vld [vmem:[%s12295_s25 + $0x20] sm:$0xff]  ;;  %v5752_v44 = vor.u32 %v7785_v34, %v5749_v35 }
  0x44   :  { %1522 = vmatpush.bf16.msrb.mxu3 %v5176_v50  ;;  %v8858_v33 = vpack.c.bf16 %v64_v18, %v64_v18  ;;  %v8866_v36 = vpack.c.bf16 %v62_v21, %v62_v21  ;;  %v7685_v41 = vld [vmem:[%s12294_s29 + $0x1a4] sm:$0xf]  ;;  %v5477_v45 = vld [vmem:[%s12294_s29 + $0x2b0] sm:$0xf0] }
  0x45   :  { %1484 = vmatpush.bf16.msrb.mxu0 %v5668_v56  ;;  %v7749_v46 = vld [vmem:[%s12294_s29 + $0x3a4] sm:$0xf]  ;;  %v5605_v47 = vld [vmem:[%s12294_s29 + $0x3b0] sm:$0xf0]  ;;  %v5352_v50 = vor.u32 %v7685_v41, %v5349_v42  ;;  %v5480_v51 = vor.u32 %v7717_v43, %v5477_v45 }
  0x46   :  { %1497 = vmatpush.bf16.msrb.mxu1 %v5796_v59  ;;  %v7781_v48 = vld [vmem:[%s12294_s29 + $0x4a4] sm:$0xf]  ;;  %v5733_v49 = vld [vmem:[%s12294_s29 + $0x4b0] sm:$0xf0]  ;;  %v5608_v52 = vor.u32 %v7749_v46, %v5605_v47 }
  0x47   :  { %1510 = vmatpush.bf16.msrb.mxu2 %v5924_v60  ;;  %v7681_v53 = vld [vmem:[%s12294_s29 + $0x184] sm:$0xf]  ;;  %v5333_v54 = vld [vmem:[%s12294_s29 + $0x190] sm:$0xf0]  ;;  %v5736_v56 = vor.u32 %v7781_v48, %v5733_v49 }
  0x48   :  { %1523 = vmatpush.bf16.msrb.mxu3 %v5160_v0  ;;  %v7713_v55 = vld [vmem:[%s12294_s29 + $0x284] sm:$0xf]  ;;  %v5461_v57 = vld [vmem:[%s12294_s29 + $0x290] sm:$0xf0]  ;;  %v5336_v62 = vor.u32 %v7681_v53, %v5333_v54 }
  0x49   :  { %1485 = vmatpush.bf16.msrb.mxu0 %v5652_v7  ;;  %v7745_v58 = vld [vmem:[%s12294_s29 + $0x384] sm:$0xf]  ;;  %v5589_v59 = vld [vmem:[%s12294_s29 + $0x390] sm:$0xf0]  ;;  %v5464_v63 = vor.u32 %v7713_v55, %v5461_v57 }
  0x4a   :  { %1498 = vmatpush.bf16.msrb.mxu1 %v5780_v13  ;;  %v7777_v60 = vld [vmem:[%s12294_s29 + $0x484] sm:$0xf]  ;;  %v5717_v61 = vld [vmem:[%s12294_s29 + $0x490] sm:$0xf0]  ;;  %v5592_v0 = vor.u32 %v7745_v58, %v5589_v59  ;;  %v5259_v58 = vld [vmem:[%s12294_s29 + $0xe8] sm:$0xf] }
  0x4b   :  { %1511 = vmatpush.bf16.msrb.mxu2 %v5908_v14  ;;  %v7677_v1 = vld [vmem:[%s12294_s29 + $0x164] sm:$0xf]  ;;  %v5317_v2 = vld [vmem:[%s12294_s29 + $0x170] sm:$0xf0]  ;;  %v5720_v4 = vor.u32 %v7777_v60, %v5717_v61  ;;  %v7664_v59 = vld [vmem:[%s12294_s29 + $0xf4] sm:$0xf0] }
  0x4c   :  { %1524 = vmatpush.bf16.msrb.mxu3 %v5144_v19  ;;  %1486 = vmatmul.bf16.vlgmr.msrb.gmra.mxu0 %v8866_v36  ;;  %v7709_v3 = vld [vmem:[%s12294_s29 + $0x264] sm:$0xf]  ;;  %v5445_v5 = vld [vmem:[%s12294_s29 + $0x270] sm:$0xf0]  ;;  %v5320_v12 = vor.u32 %v7677_v1, %v5317_v2 }
  0x4d   :  { %1530 = vmatpush.bf16.msra.mxu0 %v5384_v20  ;;  %1499 = vmatmul.bf16.vlgmr.msrb.gmra.mxu1 %v8868_v37  ;;  %v7741_v6 = vld [vmem:[%s12294_s29 + $0x364] sm:$0xf]  ;;  %v5573_v7 = vld [vmem:[%s12294_s29 + $0x370] sm:$0xf0]  ;;  %v5448_v13 = vor.u32 %v7709_v3, %v5445_v5  ;;  %v5260_v3 = vor.u32 %v7664_v59, %v5259_v58 }
  0x4e   :  { %1543 = vmatpush.bf16.msra.mxu1 %v5512_v23  ;;  %1512 = vmatmul.bf16.vlgmr.msrb.gmra.mxu2 %v8858_v33  ;;  %v7773_v10 = vld [vmem:[%s12294_s29 + $0x464] sm:$0xf]  ;;  %v5701_v11 = vld [vmem:[%s12294_s29 + $0x470] sm:$0xf0]  ;;  %v5576_v14 = vor.u32 %v7741_v6, %v5573_v7 }
  0x4f   :  { %1556 = vmatpush.bf16.msra.mxu2 %v5640_v24  ;;  %1525 = vmatmul.bf16.vlgmr.msrb.gmra.mxu3 %v8680_v9  ;;  %v7673_v16 = vld [vmem:[%s12294_s29 + $0x144] sm:$0xf]  ;;  %v5301_v17 = vld [vmem:[%s12294_s29 + $0x150] sm:$0xf0]  ;;  %v5704_v19 = vor.u32 %v7773_v10, %v5701_v11  ;;  %v5243_v11 = vld [vmem:[%s12294_s29 + $0xc8] sm:$0xf] }
  0x50   :  { %1569 = vmatpush.bf16.msra.mxu3 %v5768_v29  ;;  %v7705_v18 = vld [vmem:[%s12294_s29 + $0x244] sm:$0xf]  ;;  %v5429_v20 = vld [vmem:[%s12294_s29 + $0x250] sm:$0xf0]  ;;  %v5304_v26 = vor.u32 %v7673_v16, %v5301_v17 }
  0x51   :  { %1531 = vmatpush.bf16.msra.mxu0 %v5368_v38  ;;  %v7737_v21 = vld [vmem:[%s12294_s29 + $0x344] sm:$0xf]  ;;  %v5557_v22 = vld [vmem:[%s12294_s29 + $0x350] sm:$0xf0]  ;;  %v5432_v27 = vor.u32 %v7705_v18, %v5429_v20 }
  0x52   :  { %1544 = vmatpush.bf16.msra.mxu1 %v5496_v39  ;;  %v7769_v23 = vld [vmem:[%s12294_s29 + $0x444] sm:$0xf]  ;;  %v5685_v24 = vld [vmem:[%s12294_s29 + $0x450] sm:$0xf0]  ;;  %v5560_v28 = vor.u32 %v7737_v21, %v5557_v22 }
  0x53   :  { %1557 = vmatpush.bf16.msra.mxu2 %v5624_v40  ;;  %v7669_v29 = vld [vmem:[%s12294_s29 + $0x124] sm:$0xf]  ;;  %v5285_v30 = vld [vmem:[%s12294_s29 + $0x130] sm:$0xf0]  ;;  %v5688_v32 = vor.u32 %v7769_v23, %v5685_v24  ;;  %v5227_v24 = vld [vmem:[%s12294_s29 + $0xa8] sm:$0xf] }
  0x54   :  { %1570 = vmatpush.bf16.msra.mxu3 %v5752_v44  ;;  %v7701_v31 = vld [vmem:[%s12294_s29 + $0x224] sm:$0xf]  ;;  %v5413_v34 = vld [vmem:[%s12294_s29 + $0x230] sm:$0xf0]  ;;  %v5288_v41 = vor.u32 %v7669_v29, %v5285_v30 }
  0x55   :  { %1532 = vmatpush.bf16.msra.mxu0 %v5352_v50  ;;  %v7733_v35 = vld [vmem:[%s12294_s29 + $0x324] sm:$0xf]  ;;  %v5541_v38 = vld [vmem:[%s12294_s29 + $0x330] sm:$0xf0]  ;;  %v5416_v44 = vor.u32 %v7701_v31, %v5413_v34 }
  0x56   :  { %1545 = vmatpush.bf16.msra.mxu1 %v5480_v51  ;;  %v7765_v39 = vld [vmem:[%s12294_s29 + $0x424] sm:$0xf]  ;;  %v5669_v40 = vld [vmem:[%s12294_s29 + $0x430] sm:$0xf0]  ;;  %v5544_v45 = vor.u32 %v7733_v35, %v5541_v38 }
  0x57   :  { %1558 = vmatpush.bf16.msra.mxu2 %v5608_v52  ;;  %v7665_v42 = vld [vmem:[%s12294_s29 + $0x104] sm:$0xf]  ;;  %v5269_v43 = vld [vmem:[%s12294_s29 + $0x110] sm:$0xf0]  ;;  %v5672_v49 = vor.u32 %v7765_v39, %v5669_v40  ;;  %v5211_v40 = vld [vmem:[%s12294_s29 + $0x88] sm:$0xf] }
  0x58   :  { %1571 = vmatpush.bf16.msra.mxu3 %v5736_v56  ;;  %v7697_v46 = vld [vmem:[%s12294_s29 + $0x204] sm:$0xf]  ;;  %v5397_v47 = vld [vmem:[%s12294_s29 + $0x210] sm:$0xf0]  ;;  %v5272_v56 = vor.u32 %v7665_v42, %v5269_v43  ;;  %v5339_v42 = vld [vmem:[%s12294_s29 + $0x188] sm:$0xf] }
  0x59   :  { %1533 = vmatpush.bf16.msra.mxu0 %v5336_v62  ;;  %v7729_v48 = vld [vmem:[%s12294_s29 + $0x304] sm:$0xf]  ;;  %v5525_v50 = vld [vmem:[%s12294_s29 + $0x310] sm:$0xf0]  ;;  %v5400_v60 = vor.u32 %v7697_v46, %v5397_v47  ;;  %v5387_v62 = vld [vmem:[%s12294_s29 + $0x1e8] sm:$0xf] }
  0x5a   :  { %1546 = vmatpush.bf16.msra.mxu1 %v5464_v63  ;;  %v7761_v51 = vld [vmem:[%s12294_s29 + $0x404] sm:$0xf]  ;;  %v5653_v52 = vld [vmem:[%s12294_s29 + $0x410] sm:$0xf0]  ;;  %v5528_v61 = vor.u32 %v7729_v48, %v5525_v50  ;;  %v7696_v63 = vld [vmem:[%s12294_s29 + $0x1f4] sm:$0xf0] }
  0x5b   :  { %1559 = vmatpush.bf16.msra.mxu2 %v5592_v0  ;;  %v7821_v53 = vld [vmem:[%s12294_s29 + $0x5e4] sm:$0xf]  ;;  %v5893_v54 = vld [vmem:[%s12294_s29 + $0x5f0] sm:$0xf0]  ;;  %v5656_v0 = vor.u32 %v7761_v51, %v5653_v52  ;;  %v5388_v7 = vor.u32 %v7696_v63, %v5387_v62  ;;  %v7684_v43 = vld [vmem:[%s12294_s29 + $0x194] sm:$0xf0] }
  0x5c   :  { %1572 = vmatpush.bf16.msra.mxu3 %v5720_v4  ;;  %v7853_v55 = vld [vmem:[%s12294_s29 + $0x6e4] sm:$0xf]  ;;  %v6021_v57 = vld [vmem:[%s12294_s29 + $0x6f0] sm:$0xf0]  ;;  %v5896_v1 = vor.u32 %v7821_v53, %v5893_v54  ;;  %v5340_v50 = vor.u32 %v7684_v43, %v5339_v42  ;;  %v5195_v52 = vld [vmem:[%s12294_s29 + $0x68] sm:$0xf] }
  0x5d   :  { %1534 = vmatpush.bf16.msra.mxu0 %v5320_v12  ;;  %v6024_v2 = vor.u32 %v7853_v55, %v6021_v57  ;;  %v7817_v4 = vld [vmem:[%s12294_s29 + $0x5c4] sm:$0xf]  ;;  %v5877_v5 = vld [vmem:[%s12294_s29 + $0x5d0] sm:$0xf0]  ;;  %v7660_v12 = vld [vmem:[%s12294_s29 + $0xd4] sm:$0xf0] }
  0x5e   :  { %1547 = vmatpush.bf16.msra.mxu1 %v5448_v13  ;;  %v7849_v6 = vld [vmem:[%s12294_s29 + $0x6c4] sm:$0xf]  ;;  %v6005_v10 = vld [vmem:[%s12294_s29 + $0x6d0] sm:$0xf0]  ;;  %v5371_v13 = vld [vmem:[%s12294_s29 + $0x1c8] sm:$0xf]  ;;  %v5880_v16 = vor.u32 %v7817_v4, %v5877_v5  ;;  %v5244_v18 = vor.u32 %v7660_v12, %v5243_v11 }
  0x5f   :  { %1560 = vmatpush.bf16.msra.mxu2 %v5576_v14  ;;  %v7692_v14 = vld [vmem:[%s12294_s29 + $0x1d4] sm:$0xf0]  ;;  %v6008_v17 = vor.u32 %v7849_v6, %v6005_v10  ;;  %v5861_v20 = vld [vmem:[%s12294_s29 + $0x5b0] sm:$0xf0]  ;;  %v7845_v21 = vld [vmem:[%s12294_s29 + $0x6a4] sm:$0xf] }
  0x60   :  { %1573 = vmatpush.bf16.msra.mxu3 %v5704_v19  ;;  %v7813_v19 = vld [vmem:[%s12294_s29 + $0x5a4] sm:$0xf]  ;;  %v5372_v22 = vor.u32 %v7692_v14, %v5371_v13  ;;  %v5989_v23 = vld [vmem:[%s12294_s29 + $0x6b0] sm:$0xf0]  ;;  %v7648_v53 = vld [vmem:[%s12294_s29 + $0x74] sm:$0xf0] }
  0x61   :  { %1535 = vmatpush.bf16.msra.mxu0 %v5304_v26  ;;  %v7656_v26 = vld [vmem:[%s12294_s29 + $0xb4] sm:$0xf0]  ;;  %v5864_v29 = vor.u32 %v7813_v19, %v5861_v20  ;;  %v5992_v30 = vor.u32 %v7845_v21, %v5989_v23  ;;  %v5845_v34 = vld [vmem:[%s12294_s29 + $0x590] sm:$0xf0]  ;;  %v7841_v35 = vld [vmem:[%s12294_s29 + $0x684] sm:$0xf]  ;;  %v5196_v58 = vor.u32 %v7648_v53, %v5195_v52 }
  0x62   :  { %1548 = vmatpush.bf16.msra.mxu1 %v5432_v27  ;;  %v5355_v27 = vld [vmem:[%s12294_s29 + $0x1a8] sm:$0xf]  ;;  %v5228_v31 = vor.u32 %v7656_v26, %v5227_v24  ;;  %v5973_v39 = vld [vmem:[%s12294_s29 + $0x690] sm:$0xf0]  ;;  %v7805_v47 = vld [vmem:[%s12294_s29 + $0x564] sm:$0xf] }
  0x63   :  { %1561 = vmatpush.bf16.msra.mxu2 %v5560_v28  ;;  %v7688_v28 = vld [vmem:[%s12294_s29 + $0x1b4] sm:$0xf0]  ;;  %v5829_v48 = vld [vmem:[%s12294_s29 + $0x570] sm:$0xf0]  ;;  %v5323_v54 = vld [vmem:[%s12294_s29 + $0x168] sm:$0xf] }
  0x64   :  { %1574 = vmatpush.bf16.msra.mxu3 %v5688_v32  ;;  %v7809_v32 = vld [vmem:[%s12294_s29 + $0x584] sm:$0xf]  ;;  %v5356_v38 = vor.u32 %v7688_v28, %v5355_v27  ;;  %v5957_v51 = vld [vmem:[%s12294_s29 + $0x670] sm:$0xf0]  ;;  %v7680_v55 = vld [vmem:[%s12294_s29 + $0x174] sm:$0xf0] }
  0x65   :  { %1536 = vmatpush.bf16.msra.mxu0 %v5288_v41  ;;  %v7652_v41 = vld [vmem:[%s12294_s29 + $0x94] sm:$0xf0]  ;;  %v7801_v59 = vld [vmem:[%s12294_s29 + $0x544] sm:$0xf]  ;;  %v5324_v62 = vor.u32 %v7680_v55, %v5323_v54  ;;  %v5941_v63 = vld [vmem:[%s12294_s29 + $0x650] sm:$0xf0] }
  0x66   :  { %1549 = vmatpush.bf16.msra.mxu1 %v5416_v44  ;;  %v5848_v44 = vor.u32 %v7809_v32, %v5845_v34  ;;  %v5212_v46 = vor.u32 %v7652_v41, %v5211_v40  ;;  %v5797_v10 = vld [vmem:[%s12294_s29 + $0x530] sm:$0xf0]  ;;  %v7829_v11 = vld [vmem:[%s12294_s29 + $0x624] sm:$0xf]  ;;  %v5163_v14 = vld [vmem:[%s12294_s29 + $0x28] sm:$0xf] }
  0x67   :  { %1562 = vmatpush.bf16.msra.mxu2 %v5544_v45  ;;  %v5976_v45 = vor.u32 %v7841_v35, %v5973_v39  ;;  %v5925_v13 = vld [vmem:[%s12294_s29 + $0x630] sm:$0xf0]  ;;  %v7793_v20 = vld [vmem:[%s12294_s29 + $0x504] sm:$0xf]  ;;  %v5147_v27 = vld [vmem:[%s12294_s29 + $0x8] sm:$0xf] }
  0x68   :  { %1575 = vmatpush.bf16.msra.mxu3 %v5672_v49  ;;  %v7837_v49 = vld [vmem:[%s12294_s29 + $0x664] sm:$0xf]  ;;  %v5781_v21 = vld [vmem:[%s12294_s29 + $0x510] sm:$0xf0]  ;;  %v5515_v32 = vld [vmem:[%s12294_s29 + $0x2e8] sm:$0xf] }
  0x69   :  { %1537 = vmatpush.bf16.msra.mxu0 %v5272_v56  ;;  %v5832_v56 = vor.u32 %v7805_v47, %v5829_v48  ;;  %v5960_v57 = vor.u32 %v7837_v49, %v5957_v51  ;;  %v7825_v24 = vld [vmem:[%s12294_s29 + $0x604] sm:$0xf]  ;;  %v5909_v26 = vld [vmem:[%s12294_s29 + $0x610] sm:$0xf0]  ;;  %v7728_v34 = vld [vmem:[%s12294_s29 + $0x2f4] sm:$0xf0] }
  0x6a   :  { %1550 = vmatpush.bf16.msra.mxu1 %v5400_v60  ;;  %v5813_v60 = vld [vmem:[%s12294_s29 + $0x550] sm:$0xf0]  ;;  %v5643_v35 = vld [vmem:[%s12294_s29 + $0x3e8] sm:$0xf]  ;;  %v7760_v39 = vld [vmem:[%s12294_s29 + $0x3f4] sm:$0xf0]  ;;  %v5912_v42 = vor.u32 %v7825_v24, %v5909_v26  ;;  %v5516_v47 = vor.u32 %v7728_v34, %v5515_v32 }
  0x6b   :  { %1563 = vmatpush.bf16.msra.mxu2 %v5528_v61  ;;  %v7833_v61 = vld [vmem:[%s12294_s29 + $0x644] sm:$0xf]  ;;  %v5816_v4 = vor.u32 %v7801_v59, %v5813_v60  ;;  %v5771_v40 = vld [vmem:[%s12294_s29 + $0x4e8] sm:$0xf]  ;;  %v7792_v41 = vld [vmem:[%s12294_s29 + $0x4f4] sm:$0xf0]  ;;  %v5644_v48 = vor.u32 %v7760_v39, %v5643_v35 }
  0x6c   :  { %1576 = vmatpush.bf16.msra.mxu3 %v5656_v0  ;;  %1538 = vmatmul.bf16.vlgmr.msra.gmra.mxu0 %v8717_v25  ;;  %v5179_v0 = vld [vmem:[%s12294_s29 + $0x48] sm:$0xf]  ;;  %v5944_v5 = vor.u32 %v7833_v61, %v5941_v63  ;;  %v5772_v49 = vor.u32 %v7792_v41, %v5771_v40  ;;  %v7724_v51 = vld [vmem:[%s12294_s29 + $0x2d4] sm:$0xf0] }
  0x6d   :  { %1582 = vmatpush.bf16.msrb.mxu0 %v5896_v1  ;;  %1551 = vmatmul.bf16.vlgmr.msra.gmra.mxu1 %v8678_v8  ;;  %v7644_v1 = vld [vmem:[%s12294_s29 + $0x54] sm:$0xf0]  ;;  %v5627_v52 = vld [vmem:[%s12294_s29 + $0x3c8] sm:$0xf] }
  0x6e   :  { %1595 = vmatpush.bf16.msrb.mxu1 %v6024_v2  ;;  %1564 = vmatmul.bf16.vlgmr.msra.gmra.mxu2 %v8694_v15  ;;  %v5307_v2 = vld [vmem:[%s12294_s29 + $0x148] sm:$0xf]  ;;  %v5180_v6 = vor.u32 %v7644_v1, %v5179_v0  ;;  %v7756_v54 = vld [vmem:[%s12294_s29 + $0x3d4] sm:$0xf0] }
  0x6f   :  { %1608 = vmatpush.bf16.msrb.mxu2 %v5260_v3  ;;  %1577 = vmatmul.bf16.vlgmr.msra.gmra.mxu3 %v8866_v36  ;;  %v7676_v3 = vld [vmem:[%s12294_s29 + $0x154] sm:$0xf0]  ;;  %v5755_v55 = vld [vmem:[%s12294_s29 + $0x4c8] sm:$0xf]  ;;  %v5628_v60 = vor.u32 %v7756_v54, %v5627_v52 }
  0x70   :  { %1621 = vmatpush.bf16.msrb.mxu3 %v5388_v7  ;;  %v7797_v7 = vld [vmem:[%s12294_s29 + $0x524] sm:$0xf]  ;;  %v5308_v12 = vor.u32 %v7676_v3, %v5307_v2  ;;  %v7720_v63 = vld [vmem:[%s12294_s29 + $0x2b4] sm:$0xf0]  ;;  %v5611_v0 = vld [vmem:[%s12294_s29 + $0x3a8] sm:$0xf] }
  0x71   :  { %1583 = vmatpush.bf16.msrb.mxu0 %v5880_v16  ;;  %v7640_v16 = vld [vmem:[%s12294_s29 + $0x34] sm:$0xf0]  ;;  %v5800_v19 = vor.u32 %v7797_v7, %v5797_v10  ;;  %v5739_v3 = vld [vmem:[%s12294_s29 + $0x4a8] sm:$0xf] }
  0x72   :  { %1596 = vmatpush.bf16.msrb.mxu1 %v6008_v17  ;;  %v5291_v17 = vld [vmem:[%s12294_s29 + $0x128] sm:$0xf]  ;;  %v5164_v23 = vor.u32 %v7640_v16, %v5163_v14  ;;  %v7752_v2 = vld [vmem:[%s12294_s29 + $0x3b4] sm:$0xf0] }
  0x73   :  { %1609 = vmatpush.bf16.msrb.mxu2 %v5244_v18  ;;  %v7672_v18 = vld [vmem:[%s12294_s29 + $0x134] sm:$0xf0]  ;;  %v5612_v10 = vor.u32 %v7752_v2, %v5611_v0  ;;  %v5595_v14 = vld [vmem:[%s12294_s29 + $0x388] sm:$0xf] }
  0x74   :  { %1622 = vmatpush.bf16.msrb.mxu3 %v5372_v22  ;;  %v5928_v22 = vor.u32 %v7829_v11, %v5925_v13  ;;  %v5292_v28 = vor.u32 %v7672_v18, %v5291_v17  ;;  %v7716_v13 = vld [vmem:[%s12294_s29 + $0x294] sm:$0xf0]  ;;  %v5723_v18 = vld [vmem:[%s12294_s29 + $0x488] sm:$0xf] }
  0x75   :  { %1584 = vmatpush.bf16.msrb.mxu0 %v5864_v29  ;;  %v7636_v29 = vld [vmem:[%s12294_s29 + $0x14] sm:$0xf0]  ;;  %v5451_v26 = vld [vmem:[%s12294_s29 + $0x268] sm:$0xf] }
  0x76   :  { %1597 = vmatpush.bf16.msrb.mxu1 %v5992_v30  ;;  %v5275_v30 = vld [vmem:[%s12294_s29 + $0x108] sm:$0xf]  ;;  %v5148_v43 = vor.u32 %v7636_v29, %v5147_v27  ;;  %v7748_v17 = vld [vmem:[%s12294_s29 + $0x394] sm:$0xf0] }
  0x77   :  { %1610 = vmatpush.bf16.msrb.mxu2 %v5228_v31  ;;  %v7668_v31 = vld [vmem:[%s12294_s29 + $0x114] sm:$0xf0]  ;;  %v5835_v34 = vld [vmem:[%s12294_s29 + $0x568] sm:$0xf] }
  0x78   :  { %1623 = vmatpush.bf16.msrb.mxu3 %v5356_v38  ;;  %v5784_v38 = vor.u32 %v7793_v20, %v5781_v21  ;;  %v5851_v20 = vld [vmem:[%s12294_s29 + $0x588] sm:$0xf]  ;;  %v7812_v21 = vld [vmem:[%s12294_s29 + $0x594] sm:$0xf0] }
  0x79   :  { %1585 = vmatpush.bf16.msrb.mxu0 %v5848_v44  ;;  %v5899_v44 = vld [vmem:[%s12294_s29 + $0x5e8] sm:$0xf]  ;;  %v7712_v27 = vld [vmem:[%s12294_s29 + $0x274] sm:$0xf0]  ;;  %v5852_v29 = vor.u32 %v7812_v21, %v5851_v20 }
  0x7a   :  { %1598 = vmatpush.bf16.msrb.mxu1 %v5976_v45  ;;  %v7824_v45 = vld [vmem:[%s12294_s29 + $0x5f4] sm:$0xf0]  ;;  %v5435_v41 = vld [vmem:[%s12294_s29 + $0x248] sm:$0xf] }
  0x7b   :  { %1611 = vmatpush.bf16.msrb.mxu2 %v5212_v46  ;;  %v5276_v46 = vor.u32 %v7668_v31, %v5275_v30  ;;  %v5900_v53 = vor.u32 %v7824_v45, %v5899_v44  ;;  %v7744_v30 = vld [vmem:[%s12294_s29 + $0x374] sm:$0xf0]  ;;  %v5707_v31 = vld [vmem:[%s12294_s29 + $0x468] sm:$0xf] }
  0x7c   :  { %1624 = vmatpush.bf16.msrb.mxu3 %v5340_v50  ;;  %v5499_v50 = vld [vmem:[%s12294_s29 + $0x2c8] sm:$0xf]  ;;  %v7776_v32 = vld [vmem:[%s12294_s29 + $0x474] sm:$0xf0] }
  0x7d   :  { %1586 = vmatpush.bf16.msrb.mxu0 %v5832_v56  ;;  %v7788_v56 = vld [vmem:[%s12294_s29 + $0x4d4] sm:$0xf0]  ;;  %v5500_v59 = vor.u32 %v7724_v51, %v5499_v50  ;;  %v5708_v40 = vor.u32 %v7776_v32, %v5707_v31  ;;  %v7658_v31 = vld [vmem:[%s12294_s29 + $0xcc] sm:$0xf] }
  0x7e   :  { %1599 = vmatpush.bf16.msrb.mxu1 %v5960_v57  ;;  %v5883_v57 = vld [vmem:[%s12294_s29 + $0x5c8] sm:$0xf]  ;;  %v5756_v61 = vor.u32 %v7788_v56, %v5755_v55  ;;  %v7808_v35 = vld [vmem:[%s12294_s29 + $0x574] sm:$0xf0] }
  0x7f   :  { %1612 = vmatpush.bf16.msrb.mxu2 %v5196_v58  ;;  %v7820_v58 = vld [vmem:[%s12294_s29 + $0x5d4] sm:$0xf0]  ;;  %v5836_v44 = vor.u32 %v7808_v35, %v5835_v34  ;;  %v5547_v55 = vld [vmem:[%s12294_s29 + $0x328] sm:$0xf]  ;;  %v5245_v34 = vld [vmem:[%s12294_s29 + $0xd8] sm:$0xf0] }
  0x80   :  { %1625 = vmatpush.bf16.msrb.mxu3 %v5324_v62  ;;  %v5483_v62 = vld [vmem:[%s12294_s29 + $0x2a8] sm:$0xf]  ;;  %v5884_v1 = vor.u32 %v7820_v58, %v5883_v57  ;;  %v7740_v45 = vld [vmem:[%s12294_s29 + $0x354] sm:$0xf0]  ;;  %v7690_v35 = vld [vmem:[%s12294_s29 + $0x1cc] sm:$0xf] }
  0x81   :  { %1587 = vmatpush.bf16.msrb.mxu0 %v5816_v4  ;;  %v7784_v4 = vld [vmem:[%s12294_s29 + $0x4b4] sm:$0xf0]  ;;  %v5484_v7 = vor.u32 %v7720_v63, %v5483_v62  ;;  %v5675_v58 = vld [vmem:[%s12294_s29 + $0x428] sm:$0xf] }
  0x82   :  { %1600 = vmatpush.bf16.msrb.mxu1 %v5944_v5  ;;  %v5867_v5 = vld [vmem:[%s12294_s29 + $0x5a8] sm:$0xf]  ;;  %v5740_v11 = vor.u32 %v7784_v4, %v5739_v3  ;;  %v7704_v54 = vld [vmem:[%s12294_s29 + $0x234] sm:$0xf0] }
  0x83   :  { %1613 = vmatpush.bf16.msrb.mxu2 %v5180_v6  ;;  %v7816_v6 = vld [vmem:[%s12294_s29 + $0x5b4] sm:$0xf0]  ;;  %v5403_v63 = vld [vmem:[%s12294_s29 + $0x208] sm:$0xf] }
  0x84   :  { %1626 = vmatpush.bf16.msrb.mxu3 %v5308_v12  ;;  %v5467_v12 = vld [vmem:[%s12294_s29 + $0x288] sm:$0xf]  ;;  %v5868_v16 = vor.u32 %v7816_v6, %v5867_v5  ;;  %v7736_v57 = vld [vmem:[%s12294_s29 + $0x334] sm:$0xf0] }
  0x85   :  { %1588 = vmatpush.bf16.msrb.mxu0 %v5800_v19  ;;  %v7780_v19 = vld [vmem:[%s12294_s29 + $0x494] sm:$0xf0]  ;;  %v5531_v3 = vld [vmem:[%s12294_s29 + $0x308] sm:$0xf] }
  0x86   :  { %1601 = vmatpush.bf16.msrb.mxu1 %v5928_v22  ;;  %v5468_v22 = vor.u32 %v7716_v13, %v5467_v12  ;;  %v5724_v24 = vor.u32 %v7780_v19, %v5723_v18  ;;  %v7700_v0 = vld [vmem:[%s12294_s29 + $0x214] sm:$0xf0]  ;;  %v5659_v5 = vld [vmem:[%s12294_s29 + $0x408] sm:$0xf]  ;;  %v7694_v18 = vld [vmem:[%s12294_s29 + $0x1ec] sm:$0xf] }
  0x87   :  { %1614 = vmatpush.bf16.msrb.mxu2 %v5164_v23  ;;  %v5596_v23 = vor.u32 %v7748_v17, %v5595_v14  ;;  %v7732_v4 = vld [vmem:[%s12294_s29 + $0x314] sm:$0xf0]  ;;  %v6027_v12 = vld [vmem:[%s12294_s29 + $0x6e8] sm:$0xf]  ;;  %v7662_v14 = vld [vmem:[%s12294_s29 + $0xec] sm:$0xf] }
  0x88   :  { %1627 = vmatpush.bf16.msrb.mxu3 %v5292_v28  ;;  %v5579_v28 = vld [vmem:[%s12294_s29 + $0x368] sm:$0xf]  ;;  %v7856_v13 = vld [vmem:[%s12294_s29 + $0x6f4] sm:$0xf0]  ;;  %v5261_v17 = vld [vmem:[%s12294_s29 + $0xf8] sm:$0xf0]  ;;  %v5532_v20 = vor.u32 %v7732_v4, %v5531_v3 }
  0x89   :  { %1589 = vmatpush.bf16.msrb.mxu0 %v5784_v38  ;;  %v5452_v38 = vor.u32 %v7712_v27, %v5451_v26  ;;  %v5580_v39 = vor.u32 %v7744_v30, %v5579_v28  ;;  %v5389_v19 = vld [vmem:[%s12294_s29 + $0x1f8] sm:$0xf0]  ;;  %v6028_v26 = vor.u32 %v7856_v13, %v6027_v12  ;;  %v5264_v27 = vor.u32 %v7662_v14, %v5261_v17  ;;  %v7852_v30 = vld [vmem:[%s12294_s29 + $0x6d4] sm:$0xf0]  ;;  %v5963_v4 = vld [vmem:[%s12294_s29 + $0x668] sm:$0xf] }
  0x8a   :  { %1602 = vmatpush.bf16.msrb.mxu1 %v5912_v42  ;;  %v7708_v42 = vld [vmem:[%s12294_s29 + $0x254] sm:$0xf0]  ;;  %v5392_v28 = vor.u32 %v7694_v18, %v5389_v19  ;;  %v5325_v12 = vld [vmem:[%s12294_s29 + $0x178] sm:$0xf0]  ;;  %v7710_v13 = vld [vmem:[%s12294_s29 + $0x26c] sm:$0xf] }
  0x8b   :  { %1615 = vmatpush.bf16.msrb.mxu2 %v5148_v43  ;;  %v5563_v43 = vld [vmem:[%s12294_s29 + $0x348] sm:$0xf]  ;;  %v5436_v50 = vor.u32 %v7708_v42, %v5435_v41  ;;  %v5248_v42 = vor.u32 %v7658_v31, %v5245_v34  ;;  %v5453_v14 = vld [vmem:[%s12294_s29 + $0x278] sm:$0xf0] }
  0x8c   :  { %1628 = vmatpush.bf16.msrb.mxu3 %v5276_v46  ;;  %1590 = vmatmul.bf16.vlgmr.msrb.gmra.mxu0 %v8868_v37  ;;  %v5691_v46 = vld [vmem:[%s12294_s29 + $0x448] sm:$0xf]  ;;  %v5564_v51 = vor.u32 %v7740_v45, %v5563_v43  ;;  %v7848_v45 = vld [vmem:[%s12294_s29 + $0x6b4] sm:$0xf0] }
  0x8d   :  { %1634 = vmatpush.bf16.msra.mxu0 %v5516_v47  ;;  %1603 = vmatmul.bf16.vlgmr.msrb.gmra.mxu1 %v8858_v33  ;;  %v7772_v47 = vld [vmem:[%s12294_s29 + $0x454] sm:$0xf0] }
  0x8e   :  { %1647 = vmatpush.bf16.msra.mxu1 %v5644_v48  ;;  %1616 = vmatmul.bf16.vlgmr.msrb.gmra.mxu2 %v8680_v9  ;;  %v5819_v48 = vld [vmem:[%s12294_s29 + $0x548] sm:$0xf]  ;;  %v5692_v52 = vor.u32 %v7772_v47, %v5691_v46  ;;  %v7654_v46 = vld [vmem:[%s12294_s29 + $0xac] sm:$0xf] }
  0x8f   :  { %1660 = vmatpush.bf16.msra.mxu2 %v5772_v49  ;;  %1629 = vmatmul.bf16.vlgmr.msrb.gmra.mxu3 %v8717_v25  ;;  %v7804_v49 = vld [vmem:[%s12294_s29 + $0x554] sm:$0xf0] }
  0x90   :  { %1673 = vmatpush.bf16.msra.mxu3 %v5900_v53  ;;  %v5419_v53 = vld [vmem:[%s12294_s29 + $0x228] sm:$0xf]  ;;  %v5820_v56 = vor.u32 %v7804_v49, %v5819_v48  ;;  %v5229_v48 = vld [vmem:[%s12294_s29 + $0xb8] sm:$0xf0]  ;;  %v7686_v49 = vld [vmem:[%s12294_s29 + $0x1ac] sm:$0xf] }
  0x91   :  { %1635 = vmatpush.bf16.msra.mxu0 %v5500_v59  ;;  %v7768_v59 = vld [vmem:[%s12294_s29 + $0x434] sm:$0xf0]  ;;  %v5420_v62 = vor.u32 %v7704_v54, %v5419_v53  ;;  %v5232_v54 = vor.u32 %v7654_v46, %v5229_v48  ;;  %v5421_v46 = vld [vmem:[%s12294_s29 + $0x238] sm:$0xf0] }
  0x92   :  { %1648 = vmatpush.bf16.msra.mxu1 %v5628_v60  ;;  %v5803_v60 = vld [vmem:[%s12294_s29 + $0x528] sm:$0xf]  ;;  %v5676_v2 = vor.u32 %v7768_v59, %v5675_v58  ;;  %v7650_v58 = vld [vmem:[%s12294_s29 + $0x8c] sm:$0xf] }
  0x93   :  { %1661 = vmatpush.bf16.msra.mxu2 %v5756_v61  ;;  %v7800_v61 = vld [vmem:[%s12294_s29 + $0x534] sm:$0xf0] }
  0x94   :  { %1674 = vmatpush.bf16.msra.mxu3 %v5884_v1  ;;  %v5548_v1 = vor.u32 %v7736_v57, %v5547_v55  ;;  %v5804_v6 = vor.u32 %v7800_v61, %v5803_v60  ;;  %v7844_v57 = vld [vmem:[%s12294_s29 + $0x694] sm:$0xf0]  ;;  %v5213_v60 = vld [vmem:[%s12294_s29 + $0x98] sm:$0xf0]  ;;  %v7682_v61 = vld [vmem:[%s12294_s29 + $0x18c] sm:$0xf] }
  0x95   :  { %1636 = vmatpush.bf16.msra.mxu0 %v5484_v7  ;;  %v7764_v7 = vld [vmem:[%s12294_s29 + $0x414] sm:$0xf0] }
  0x96   :  { %1649 = vmatpush.bf16.msra.mxu1 %v5612_v10  ;;  %v5787_v10 = vld [vmem:[%s12294_s29 + $0x508] sm:$0xf]  ;;  %v5660_v21 = vor.u32 %v7764_v7, %v5659_v5  ;;  %v7840_v5 = vld [vmem:[%s12294_s29 + $0x674] sm:$0xf0] }
  0x97   :  { %1662 = vmatpush.bf16.msra.mxu2 %v5740_v11  ;;  %v7796_v11 = vld [vmem:[%s12294_s29 + $0x514] sm:$0xf0] }
  0x98   :  { %1675 = vmatpush.bf16.msra.mxu3 %v5868_v16  ;;  %v5404_v16 = vor.u32 %v7700_v0, %v5403_v63  ;;  %v7714_v63 = vld [vmem:[%s12294_s29 + $0x28c] sm:$0xf]  ;;  %v5469_v0 = vld [vmem:[%s12294_s29 + $0x298] sm:$0xf0] }
  0x99   :  { %1637 = vmatpush.bf16.msra.mxu0 %v5468_v22  ;;  %v7726_v22 = vld [vmem:[%s12294_s29 + $0x2ec] sm:$0xf]  ;;  %v5472_v7 = vor.u32 %v7714_v63, %v5469_v0 }
  0x9a   :  { %1650 = vmatpush.bf16.msra.mxu1 %v5596_v23  ;;  %v5517_v23 = vld [vmem:[%s12294_s29 + $0x2f8] sm:$0xf0]  ;;  %v7790_v63 = vld [vmem:[%s12294_s29 + $0x4ec] sm:$0xf] }
  0x9b   :  { %1663 = vmatpush.bf16.msra.mxu2 %v5724_v24  ;;  %v5788_v24 = vor.u32 %v7796_v11, %v5787_v10  ;;  %v5520_v32 = vor.u32 %v7726_v22, %v5517_v23  ;;  %v5197_v10 = vld [vmem:[%s12294_s29 + $0x78] sm:$0xf0]  ;;  %v7678_v11 = vld [vmem:[%s12294_s29 + $0x16c] sm:$0xf]  ;;  %v5456_v23 = vor.u32 %v7710_v13, %v5453_v14 }
  0x9c   :  { %1676 = vmatpush.bf16.msra.mxu3 %v5852_v29  ;;  %v6011_v29 = vld [vmem:[%s12294_s29 + $0x6c8] sm:$0xf]  ;;  %v5328_v19 = vor.u32 %v7678_v11, %v5325_v12  ;;  %v7642_v22 = vld [vmem:[%s12294_s29 + $0x4c] sm:$0xf] }
  0x9d   :  { %1638 = vmatpush.bf16.msra.mxu0 %v5452_v38  ;;  %v5373_v38 = vld [vmem:[%s12294_s29 + $0x1d8] sm:$0xf0]  ;;  %v6012_v41 = vor.u32 %v7852_v30, %v6011_v29 }
  0x9e   :  { %1651 = vmatpush.bf16.msra.mxu1 %v5580_v39  ;;  %v7722_v39 = vld [vmem:[%s12294_s29 + $0x2cc] sm:$0xf]  ;;  %v5376_v43 = vor.u32 %v7690_v35, %v5373_v38  ;;  %v5437_v29 = vld [vmem:[%s12294_s29 + $0x258] sm:$0xf0]  ;;  %v5931_v35 = vld [vmem:[%s12294_s29 + $0x628] sm:$0xf] }
  0x9f   :  { %1664 = vmatpush.bf16.msra.mxu2 %v5708_v40  ;;  %v5501_v40 = vld [vmem:[%s12294_s29 + $0x2d8] sm:$0xf0]  ;;  %v7832_v38 = vld [vmem:[%s12294_s29 + $0x634] sm:$0xf0] }
  0xa0   :  { %1677 = vmatpush.bf16.msra.mxu3 %v5836_v44  ;;  %v5995_v44 = vld [vmem:[%s12294_s29 + $0x6a8] sm:$0xf]  ;;  %v5504_v47 = vor.u32 %v7722_v39, %v5501_v40  ;;  %v7638_v39 = vld [vmem:[%s12294_s29 + $0x2c] sm:$0xf]  ;;  %v5932_v48 = vor.u32 %v7832_v38, %v5931_v35  ;;  %v5613_v38 = vld [vmem:[%s12294_s29 + $0x3b8] sm:$0xf0] }
  0xa1   :  { %1639 = vmatpush.bf16.msra.mxu0 %v5436_v50  ;;  %v5357_v50 = vld [vmem:[%s12294_s29 + $0x1b8] sm:$0xf0]  ;;  %v5996_v53 = vor.u32 %v7848_v45, %v5995_v44  ;;  %v7702_v45 = vld [vmem:[%s12294_s29 + $0x22c] sm:$0xf] }
  0xa2   :  { %1652 = vmatpush.bf16.msra.mxu1 %v5564_v51  ;;  %v7718_v51 = vld [vmem:[%s12294_s29 + $0x2ac] sm:$0xf]  ;;  %v5360_v55 = vor.u32 %v7686_v49, %v5357_v50  ;;  %v5915_v49 = vld [vmem:[%s12294_s29 + $0x608] sm:$0xf]  ;;  %v7828_v50 = vld [vmem:[%s12294_s29 + $0x614] sm:$0xf0] }
  0xa3   :  { %1665 = vmatpush.bf16.msra.mxu2 %v5692_v52  ;;  %v5485_v52 = vld [vmem:[%s12294_s29 + $0x2b8] sm:$0xf0]  ;;  %v5916_v0 = vor.u32 %v7828_v50, %v5915_v49  ;;  %v7750_v35 = vld [vmem:[%s12294_s29 + $0x3ac] sm:$0xf] }
  0xa4   :  { %1678 = vmatpush.bf16.msra.mxu3 %v5820_v56  ;;  %v5979_v56 = vld [vmem:[%s12294_s29 + $0x688] sm:$0xf]  ;;  %v5488_v59 = vor.u32 %v7718_v51, %v5485_v52  ;;  %v5616_v49 = vor.u32 %v7750_v35, %v5613_v38  ;;  %v7734_v35 = vld [vmem:[%s12294_s29 + $0x32c] sm:$0xf]  ;;  %v5549_v38 = vld [vmem:[%s12294_s29 + $0x338] sm:$0xf0] }
  0xa5   :  { %1640 = vmatpush.bf16.msra.mxu0 %v5420_v62  ;;  %v5341_v62 = vld [vmem:[%s12294_s29 + $0x198] sm:$0xf0] }
  0xa6   :  { %1653 = vmatpush.bf16.msra.mxu1 %v5548_v1  ;;  %v5980_v1 = vor.u32 %v7844_v57, %v5979_v56  ;;  %v5344_v3 = vor.u32 %v7682_v61, %v5341_v62  ;;  %v7666_v56 = vld [vmem:[%s12294_s29 + $0x10c] sm:$0xf]  ;;  %v5424_v57 = vor.u32 %v7702_v45, %v5421_v46  ;;  %v5645_v62 = vld [vmem:[%s12294_s29 + $0x3f8] sm:$0xf0] }
  0xa7   :  { %1666 = vmatpush.bf16.msra.mxu2 %v5676_v2  ;;  %v5216_v2 = vor.u32 %v7650_v58, %v5213_v60  ;;  %v5277_v58 = vld [vmem:[%s12294_s29 + $0x118] sm:$0xf0]  ;;  %v7758_v61 = vld [vmem:[%s12294_s29 + $0x3ec] sm:$0xf] }
  0xa8   :  { %1679 = vmatpush.bf16.msra.mxu3 %v5804_v6  ;;  %v7646_v6 = vld [vmem:[%s12294_s29 + $0x6c] sm:$0xf]  ;;  %v5405_v60 = vld [vmem:[%s12294_s29 + $0x218] sm:$0xf0]  ;;  %v5648_v12 = vor.u32 %v7758_v61, %v5645_v62 }
  0xa9   :  { %1641 = vmatpush.bf16.msra.mxu0 %v5404_v16  ;;  %v5964_v16 = vor.u32 %v7840_v5, %v5963_v4  ;;  %v5200_v18 = vor.u32 %v7646_v6, %v5197_v10  ;;  %v5280_v6 = vor.u32 %v7666_v56, %v5277_v58  ;;  %v6029_v10 = vld [vmem:[%s12294_s29 + $0x6f8] sm:$0xf0]  ;;  %v7846_v45 = vld [vmem:[%s12294_s29 + $0x6ac] sm:$0xf] }
  0xaa   :  { %1654 = vmatpush.bf16.msra.mxu1 %v5532_v20  ;;  %v5947_v20 = vld [vmem:[%s12294_s29 + $0x648] sm:$0xf]  ;;  %v9560_v31 = vpop.f32.mrf.mxu1  ;;  %v5997_v46 = vld [vmem:[%s12294_s29 + $0x6b8] sm:$0xf0]  ;;  %v7842_v56 = vld [vmem:[%s12294_s29 + $0x68c] sm:$0xf] }
  0xab   :  { %1667 = vmatpush.bf16.msra.mxu2 %v5660_v21  ;;  %v7836_v21 = vld [vmem:[%s12294_s29 + $0x654] sm:$0xf0] }
  0xac   :  { %1680 = vmatpush.bf16.msra.mxu3 %v5788_v24  ;;  %1642 = vmatmul.bf16.vlgmr.msra.gmra.mxu0 %v8678_v8  ;;  %v5181_v24 = vld [vmem:[%s12294_s29 + $0x58] sm:$0xf0]  ;;  %v5948_v30 = vor.u32 %v7836_v21, %v5947_v20  ;;  %v7786_v20 = vld [vmem:[%s12294_s29 + $0x4cc] sm:$0xf] }
  0xad   :  { %1686 = vmatpush.bf16.msrb.mxu0 %v6028_v26  ;;  %1655 = vmatmul.bf16.vlgmr.msra.gmra.mxu1 %v8694_v15  ;;  %v7674_v26 = vld [vmem:[%s12294_s29 + $0x14c] sm:$0xf] }
  0xae   :  { %1699 = vmatpush.bf16.msrb.mxu1 %v5264_v27  ;;  %1668 = vmatmul.bf16.vlgmr.msra.gmra.mxu2 %v8866_v36  ;;  %v5309_v27 = vld [vmem:[%s12294_s29 + $0x158] sm:$0xf0] }
  0xaf   :  { %1712 = vmatpush.bf16.msrb.mxu2 %v5392_v28  ;;  %1681 = vmatmul.bf16.vlgmr.msra.gmra.mxu3 %v8868_v37  ;;  %v7706_v28 = vld [vmem:[%s12294_s29 + $0x24c] sm:$0xf]  ;;  %v5312_v34 = vor.u32 %v7674_v26, %v5309_v27  ;;  %v5885_v26 = vld [vmem:[%s12294_s29 + $0x5d8] sm:$0xf0] }
  0xb0   :  { %1725 = vmatpush.bf16.msrb.mxu3 %v5520_v32  ;;  %v5184_v32 = vor.u32 %v7642_v22, %v5181_v24  ;;  %v5440_v40 = vor.u32 %v7706_v28, %v5437_v29  ;;  %v7818_v24 = vld [vmem:[%s12294_s29 + $0x5cc] sm:$0xf]  ;;  %v6013_v28 = vld [vmem:[%s12294_s29 + $0x6d8] sm:$0xf0]  ;;  %v9665_v29 = vld [vmem:[%s12296_s26] sm:$0xf] }
  0xb1   :  { %1687 = vmatpush.bf16.msrb.mxu0 %v6012_v41  ;;  %v5165_v41 = vld [vmem:[%s12294_s29 + $0x38] sm:$0xf0]  ;;  %v7850_v27 = vld [vmem:[%s12294_s29 + $0x6cc] sm:$0xf] }
  0xb2   :  { %1700 = vmatpush.bf16.msrb.mxu1 %v5248_v42  ;;  %v7670_v42 = vld [vmem:[%s12294_s29 + $0x12c] sm:$0xf]  ;;  %v5168_v52 = vor.u32 %v7638_v39, %v5165_v41  ;;  %v1450_v4 = vpop.f32.mrf.mxu1  ;;  %v5741_v41 = vld [vmem:[%s12294_s29 + $0x4b8] sm:$0xf0] }
  0xb3   :  { %1713 = vmatpush.bf16.msrb.mxu2 %v5376_v43  ;;  %v5293_v43 = vld [vmem:[%s12294_s29 + $0x138] sm:$0xf0]  ;;  %v7782_v39 = vld [vmem:[%s12294_s29 + $0x4ac] sm:$0xf] }
  0xb4   :  { %1726 = vmatpush.bf16.msrb.mxu3 %v5504_v47  ;;  %v9534_v17 = vpop.f32.mrf.mxu0  ;;  %v9588_v47 = vpop.f32.mrf.mxu3  ;;  %v5744_v50 = vor.u32 %v7782_v39, %v5741_v41  ;;  %v5709_v4 = vld [vmem:[%s12294_s29 + $0x478] sm:$0xf0]  ;;  %v7766_v39 = vld [vmem:[%s12294_s29 + $0x42c] sm:$0xf] }
  0xb5   :  { %1688 = vmatpush.bf16.msrb.mxu0 %v5996_v53  ;;  %v5296_v53 = vor.u32 %v7670_v42, %v5293_v43  ;;  %v7814_v42 = vld [vmem:[%s12294_s29 + $0x5ac] sm:$0xf]  ;;  %v5869_v43 = vld [vmem:[%s12294_s29 + $0x5b8] sm:$0xf0] }
  0xb6   :  { %1701 = vmatpush.bf16.msrb.mxu1 %v5232_v54  ;;  %v7634_v54 = vld [vmem:[%s12294_s29 + $0xc] sm:$0xf] }
  0xb7   :  { %1714 = vmatpush.bf16.msrb.mxu2 %v5360_v55  ;;  %v5149_v55 = vld [vmem:[%s12294_s29 + $0x18] sm:$0xf0] }
  0xb8   :  { %1727 = vmatpush.bf16.msrb.mxu3 %v5488_v59  ;;  %v7698_v59 = vld [vmem:[%s12294_s29 + $0x20c] sm:$0xf]  ;;  %v5152_v5 = vor.u32 %v7634_v54, %v5149_v55  ;;  %v5853_v55 = vld [vmem:[%s12294_s29 + $0x598] sm:$0xf0] }
  0xb9   :  { %1689 = vmatpush.bf16.msrb.mxu0 %v5980_v1  ;;  %v9580_v44 = vpop.f32.mrf.mxu2  ;;  %v5773_v1 = vld [vmem:[%s12294_s29 + $0x4f8] sm:$0xf0]  ;;  %v5408_v11 = vor.u32 %v7698_v59, %v5405_v60  ;;  %v7810_v54 = vld [vmem:[%s12294_s29 + $0x58c] sm:$0xf] }
  0xba   :  { %1702 = vmatpush.bf16.msrb.mxu1 %v5216_v2  ;;  %v7822_v2 = vld [vmem:[%s12294_s29 + $0x5ec] sm:$0xf]  ;;  %v5776_v14 = vor.u32 %v7790_v63, %v5773_v1  ;;  %v5856_v62 = vor.u32 %v7810_v54, %v5853_v55 }
  0xbb   :  { %1715 = vmatpush.bf16.msrb.mxu2 %v5344_v3  ;;  %v5901_v3 = vld [vmem:[%s12294_s29 + $0x5f8] sm:$0xf0]  ;;  %v7742_v63 = vld [vmem:[%s12294_s29 + $0x36c] sm:$0xf] }
  0xbc   :  { %1728 = vmatpush.bf16.msrb.mxu3 %v5472_v7  ;;  %v1437_v51 = vpop.f32.mrf.mxu0  ;;  %v7854_v7 = vld [vmem:[%s12294_s29 + $0x6ec] sm:$0xf]  ;;  %v1476_v21 = vpop.f32.mrf.mxu3 }
  0xbd   :  { %1690 = vmatpush.bf16.msrb.mxu0 %v5964_v16  ;;  %v5904_v16 = vor.u32 %v7822_v2, %v5901_v3  ;;  %v6032_v22 = vor.u32 %v7854_v7, %v6029_v10  ;;  %v7746_v51 = vld [vmem:[%s12294_s29 + $0x38c] sm:$0xf]  ;;  %v5693_v21 = vld [vmem:[%s12294_s29 + $0x458] sm:$0xf0] }
  0xbe   :  { %1703 = vmatpush.bf16.msrb.mxu1 %v5200_v18  ;;  %v7754_v18 = vld [vmem:[%s12294_s29 + $0x3cc] sm:$0xf] }
  0xbf   :  { %1716 = vmatpush.bf16.msrb.mxu2 %v5328_v19  ;;  %v5629_v19 = vld [vmem:[%s12294_s29 + $0x3d8] sm:$0xf0]  ;;  %v7774_v1 = vld [vmem:[%s12294_s29 + $0x46c] sm:$0xf] }
  0xc0   :  { %1729 = vmatpush.bf16.msrb.mxu3 %v5456_v23  ;;  %v5757_v23 = vld [vmem:[%s12294_s29 + $0x4d8] sm:$0xf0]  ;;  %v7838_v7 = vld [vmem:[%s12294_s29 + $0x66c] sm:$0xf] }
  0xc1   :  { %1691 = vmatpush.bf16.msrb.mxu0 %v5948_v30  ;;  %v1463_v13 = vpop.f32.mrf.mxu2  ;;  %v5632_v30 = vor.u32 %v7754_v18, %v5629_v19  ;;  %v7794_v55 = vld [vmem:[%s12294_s29 + $0x50c] sm:$0xf] }
  0xc2   :  { %1704 = vmatpush.bf16.msrb.mxu1 %v5184_v32  ;;  %v5760_v32 = vor.u32 %v7786_v20, %v5757_v23  ;;  %v7738_v13 = vld [vmem:[%s12294_s29 + $0x34c] sm:$0xf]  ;;  %v5821_v23 = vld [vmem:[%s12294_s29 + $0x558] sm:$0xf0] }
  0xc3   :  { %1717 = vmatpush.bf16.msrb.mxu2 %v5312_v34  ;;  %v5888_v34 = vor.u32 %v7818_v24, %v5885_v26  ;;  %v7834_v24 = vld [vmem:[%s12294_s29 + $0x64c] sm:$0xf] }
  0xc4   :  { %1730 = vmatpush.bf16.msrb.mxu3 %v5440_v40  ;;  %v6016_v40 = vor.u32 %v7850_v27, %v6013_v28 }
  0xc5   :  { %1692 = vmatpush.bf16.msrb.mxu0 %v5932_v48  ;;  %v298_v48 = vperm.slane %v9665_v29, 0 }
  0xc6   :  { %1705 = vmatpush.bf16.msrb.mxu1 %v5168_v52  ;;  %v5597_v52 = vld [vmem:[%s12294_s29 + $0x398] sm:$0xf0] }
  0xc7   :  { %1718 = vmatpush.bf16.msrb.mxu2 %v5296_v53  ;;  %v6000_v53 = vor.u32 %v7846_v45, %v5997_v46  ;;  %v5600_v58 = vor.u32 %v7746_v51, %v5597_v52  ;;  %v1436_v2 = vadd.f32 %v9534_v17, %v298_v48  ;;  %v5965_v17 = vld [vmem:[%s12294_s29 + $0x678] sm:$0xf0]  ;;  %v7830_v46 = vld [vmem:[%s12294_s29 + $0x62c] sm:$0xf]  ;;  %v5552_v48 = vor.u32 %v7734_v35, %v5549_v38  ;;  %v7880_v35 = vld [vmem:[%s12273_s2 + $0xb4] sm:$0xf0] }
  0xc8   :  { %1731 = vmatpush.bf16.msrb.mxu3 %v5424_v57  ;;  %v5981_v57 = vld [vmem:[%s12294_s29 + $0x698] sm:$0xf0]  ;;  %v5968_v20 = vor.u32 %v7838_v7, %v5965_v17  ;;  %v7762_v52 = vld [vmem:[%s12294_s29 + $0x40c] sm:$0xf]  ;;  %v6083_v7 = vld [vmem:[%s12273_s2 + $0x60] sm:$0xf] }
  0xc9   :  { %1693 = vmatpush.bf16.msrb.mxu0 %v5916_v0  ;;  %v9720_v59 = vpop.f32.mrf.mxu0  ;;  %v5581_v0 = vld [vmem:[%s12294_s29 + $0x378] sm:$0xf0]  ;;  %v5984_v3 = vor.u32 %v7842_v56, %v5981_v57  ;;  %v1449_v19 = vadd.f32 %v9560_v31, %v1436_v2  ;;  %v7826_v57 = vld [vmem:[%s12294_s29 + $0x60c] sm:$0xf]  ;;  %v7870_v17 = vld [vmem:[%s12273_s2 + $0x64] sm:$0xf0] }
  0xca   :  { %1706 = vmatpush.bf16.msrb.mxu1 %v5152_v5  ;;  %v9722_v60 = vpop.f32.mrf.mxu1  ;;  %v7806_v5 = vld [vmem:[%s12294_s29 + $0x56c] sm:$0xf]  ;;  %v5584_v10 = vor.u32 %v7742_v63, %v5581_v0  ;;  %v5949_v31 = vld [vmem:[%s12294_s29 + $0x658] sm:$0xf0]  ;;  %v6155_v0 = vld [vmem:[%s12273_s2 + $0xf0] sm:$0xf] }
  0xcb   :  { %1719 = vmatpush.bf16.msrb.mxu2 %v5280_v6  ;;  %v5837_v6 = vld [vmem:[%s12294_s29 + $0x578] sm:$0xf0]  ;;  %v5952_v41 = vor.u32 %v7834_v24, %v5949_v31 }
  0xcc   :  { %1732 = vmatpush.bf16.msrb.mxu3 %v5408_v11  ;;  %1694 = vmatmul.bf16.vlgmr.msrb.gmra.mxu0 %v8858_v33  ;;  %v5712_v11 = vor.u32 %v7774_v1, %v5709_v4  ;;  %v5805_v45 = vld [vmem:[%s12294_s29 + $0x538] sm:$0xf0]  ;;  %v7888_v1 = vld [vmem:[%s12273_s2 + $0xf4] sm:$0xf0] }
  0xcd   :  { %1738 = vmatpush.bf16.msra.mxu0 %v5648_v12  ;;  %1707 = vmatmul.bf16.vlgmr.msrb.gmra.mxu1 %v8680_v9  ;;  %v5725_v9 = vld [vmem:[%s12294_s29 + $0x498] sm:$0xf0]  ;;  %v5840_v12 = vor.u32 %v7806_v5, %v5837_v6 }
  0xce   :  { %1751 = vmatpush.bf16.msra.mxu1 %v5776_v14  ;;  %1720 = vmatmul.bf16.vlgmr.msrb.gmra.mxu2 %v8717_v25  ;;  %v5872_v25 = vor.u32 %v7814_v42, %v5869_v43  ;;  %v5565_v14 = vld [vmem:[%s12294_s29 + $0x358] sm:$0xf0]  ;;  %v7798_v43 = vld [vmem:[%s12294_s29 + $0x52c] sm:$0xf] }
  0xcf   :  { %1764 = vmatpush.bf16.msra.mxu2 %v5904_v16  ;;  %1733 = vmatmul.bf16.vlgmr.msrb.gmra.mxu3 %v8678_v8  ;;  %v7778_v8 = vld [vmem:[%s12294_s29 + $0x48c] sm:$0xf]  ;;  %v5568_v27 = vor.u32 %v7738_v13, %v5565_v14  ;;  %v5677_v42 = vld [vmem:[%s12294_s29 + $0x438] sm:$0xf0]  ;;  %v6084_v13 = vor.u32 %v7870_v17, %v6083_v7  ;;  %v6075_v14 = vld [vmem:[%s12273_s2 + $0x50] sm:$0xf] }
  0xd0   :  { %1777 = vmatpush.bf16.msra.mxu3 %v6032_v22  ;;  %v5728_v61 = vor.u32 %v7778_v8, %v5725_v9  ;;  %v7770_v16 = vld [vmem:[%s12294_s29 + $0x44c] sm:$0xf]  ;;  %v5533_v51 = vld [vmem:[%s12294_s29 + $0x318] sm:$0xf0] }
  0xd1   :  { %1739 = vmatpush.bf16.msra.mxu0 %v5632_v30  ;;  %v9758_v18 = vpop.f32.mrf.mxu2  ;;  %v7802_v22 = vld [vmem:[%s12294_s29 + $0x54c] sm:$0xf]  ;;  %v1489_v28 = vpop.f32.mrf.mxu0  ;;  %v5661_v8 = vld [vmem:[%s12294_s29 + $0x418] sm:$0xf0] }
  0xd2   :  { %1752 = vmatpush.bf16.msra.mxu1 %v5760_v32  ;;  %v9776_v26 = vpop.f32.mrf.mxu3  ;;  %v1502_v30 = vpop.f32.mrf.mxu1  ;;  %v5696_v32 = vor.u32 %v7770_v16, %v5693_v21  ;;  %v5789_v56 = vld [vmem:[%s12294_s29 + $0x518] sm:$0xf0]  ;;  %v5664_v2 = vor.u32 %v7762_v52, %v5661_v8  ;;  %v7868_v16 = vld [vmem:[%s12273_s2 + $0x54] sm:$0xf0] }
  0xd3   :  { %1765 = vmatpush.bf16.msra.mxu2 %v5888_v34  ;;  %v5824_v34 = vor.u32 %v7802_v22, %v5821_v23  ;;  %v6076_v21 = vor.u32 %v7868_v16, %v6075_v14  ;;  %v6131_v23 = vld [vmem:[%s12273_s2 + $0xc0] sm:$0xf]  ;;  %v7864_v28 = vld [vmem:[%s12273_s2 + $0x34] sm:$0xf0] }
  0xd4   :  { %1778 = vmatpush.bf16.msra.mxu3 %v6016_v40  ;;  %v1462_v40 = vadd.f32 %v9580_v44, %v1449_v19  ;;  %v5933_v44 = vld [vmem:[%s12294_s29 + $0x638] sm:$0xf0] }
  0xd5   :  { %1740 = vmatpush.bf16.msra.mxu0 %v5616_v49  ;;  %v7730_v49 = vld [vmem:[%s12294_s29 + $0x30c] sm:$0xf]  ;;  %v5936_v54 = vor.u32 %v7830_v46, %v5933_v44  ;;  %v7878_v46 = vld [vmem:[%s12273_s2 + $0xa4] sm:$0xf0]  ;;  %v299_v44 = vperm.slane %v9665_v29, 1 }
  0xd6   :  { %1753 = vmatpush.bf16.msra.mxu1 %v5744_v50  ;;  %v5680_v50 = vor.u32 %v7766_v39, %v5677_v42  ;;  %v1475_v9 = vadd.f32 %v9588_v47, %v1462_v40  ;;  %v6091_v47 = vld [vmem:[%s12273_s2 + $0x70] sm:$0xf]  ;;  %v5536_v63 = vor.u32 %v7730_v49, %v5533_v51  ;;  %v6051_v39 = vld [vmem:[%s12273_s2 + $0x20] sm:$0xf]  ;;  %v7862_v40 = vld [vmem:[%s12273_s2 + $0x24] sm:$0xf0] }
  0xd7   :  { %1766 = vmatpush.bf16.msra.mxu2 %v5872_v25  ;;  %v5808_v25 = vor.u32 %v7798_v43, %v5805_v45  ;;  %v6115_v45 = vld [vmem:[%s12273_s2 + $0xa0] sm:$0xf] }
  0xd8   :  { %1779 = vmatpush.bf16.msra.mxu3 %v6000_v53  ;;  %v1488_v4 = vadd.f32 %v9720_v59, %v1475_v9  ;;  %v7886_v59 = vld [vmem:[%s12273_s2 + $0xe4] sm:$0xf0]  ;;  %v6116_v52 = vor.u32 %v7878_v46, %v6115_v45  ;;  %v7876_v9 = vld [vmem:[%s12273_s2 + $0x94] sm:$0xf0]  ;;  %v7863_v45 = vld [vmem:[%s12273_s2 + $0x34] sm:$0xf] }
  0xd9   :  { %1741 = vmatpush.bf16.msra.mxu0 %v5600_v58  ;;  %v1515_v53 = vpop.f32.mrf.mxu2  ;;  %v5917_v58 = vld [vmem:[%s12294_s29 + $0x618] sm:$0xf0] }
  0xda   :  { %1754 = vmatpush.bf16.msra.mxu1 %v5728_v61  ;;  %v7872_v61 = vld [vmem:[%s12273_s2 + $0x74] sm:$0xf0]  ;;  %v5920_v5 = vor.u32 %v7826_v57, %v5917_v58  ;;  %v6107_v53 = vld [vmem:[%s12273_s2 + $0x90] sm:$0xf]  ;;  %v7858_v58 = vld [vmem:[%s12273_s2 + $0x4] sm:$0xf0] }
  0xdb   :  { %1767 = vmatpush.bf16.msra.mxu2 %v5856_v62  ;;  %v1528_v62 = vpop.f32.mrf.mxu3  ;;  %v6092_v6 = vor.u32 %v7872_v61, %v6091_v47  ;;  %v7871_v47 = vld [vmem:[%s12273_s2 + $0x74] sm:$0xf]  ;;  %v6108_v61 = vor.u32 %v7876_v9, %v6107_v53  ;;  %v6061_v46 = vld [vmem:[%s12273_s2 + $0x38] sm:$0xf0]  ;;  %v6053_v53 = vld [vmem:[%s12273_s2 + $0x28] sm:$0xf0] }
  0xdc   :  { %1780 = vmatpush.bf16.msra.mxu3 %v5984_v3  ;;  %v5792_v3 = vor.u32 %v7794_v55, %v5789_v56  ;;  %v6035_v56 = vld [vmem:[%s12273_s2] sm:$0xf] }
  0xdd   :  { %1742 = vmatpush.bf16.msra.mxu0 %v5584_v10  ;;  %v6156_v10 = vor.u32 %v7888_v1, %v6155_v0  ;;  %v7874_v0 = vld [vmem:[%s12273_s2 + $0x84] sm:$0xf0] }
  0xde   :  { %1755 = vmatpush.bf16.msra.mxu1 %v5712_v11  ;;  %v6147_v11 = vld [vmem:[%s12273_s2 + $0xe0] sm:$0xf] }
  0xdf   :  { %1768 = vmatpush.bf16.msra.mxu2 %v5840_v12  ;;  %v1501_v12 = vadd.f32 %v9722_v60, %v1488_v4  ;;  %v6148_v19 = vor.u32 %v7886_v59, %v6147_v11  ;;  %v6139_v60 = vld [vmem:[%s12273_s2 + $0xd0] sm:$0xf]  ;;  %v6085_v11 = vld [vmem:[%s12273_s2 + $0x68] sm:$0xf0] }
  0xe0   :  { %1781 = vmatpush.bf16.msra.mxu3 %v5968_v20 }
  0xe1   :  { %1743 = vmatpush.bf16.msra.mxu0 %v5568_v27  ;;  %v1514_v20 = vadd.f32 %v9758_v18, %v1501_v12  ;;  %v6059_v27 = vld [vmem:[%s12273_s2 + $0x30] sm:$0xf]  ;;  %v7885_v12 = vld [vmem:[%s12273_s2 + $0xe4] sm:$0xf] }
  0xe2   :  { %1756 = vmatpush.bf16.msra.mxu1 %v5696_v32  ;;  %v6060_v38 = vor.u32 %v7864_v28, %v6059_v27  ;;  %v7865_v28 = vld [vmem:[%s12273_s2 + $0x44] sm:$0xf] }
  0xe3   :  { %1769 = vmatpush.bf16.msra.mxu2 %v5824_v34  ;;  %v1790_v18 = vmul.f32 0.5, %v1514_v20  ;;  %v6123_v34 = vld [vmem:[%s12273_s2 + $0xb0] sm:$0xf]  ;;  %v6077_v20 = vld [vmem:[%s12273_s2 + $0x58] sm:$0xf0] }
  0xe4   :  { %1782 = vmatpush.bf16.msra.mxu3 %v5952_v41  ;;  %v6124_v42 = vor.u32 %v7880_v35, %v6123_v34  ;;  %v7881_v34 = vld [vmem:[%s12273_s2 + $0xc4] sm:$0xf]  ;;  %v6133_v35 = vld [vmem:[%s12273_s2 + $0xc8] sm:$0xf0] }
  0xe5   :  { %1744 = vmatpush.bf16.msra.mxu0 %v5552_v48  ;;  %8260 = vtanh.f32 %v1790_v18  ;;  %v6052_v48 = vor.u32 %v7862_v40, %v6051_v39  ;;  %v7902_v18 = vld [vmem:[%s12273_s2 + $0x164] sm:$0xf0] }
  0xe6   :  { %1757 = vmatpush.bf16.msra.mxu1 %v5680_v50  ;;  %v6043_v50 = vld [vmem:[%s12273_s2 + $0x10] sm:$0xf] }
  0xe7   :  { %1770 = vmatpush.bf16.msra.mxu2 %v5808_v25  ;;  %v7860_v25 = vld [vmem:[%s12273_s2 + $0x14] sm:$0xf0] }
  0xe8   :  { %1783 = vmatpush.bf16.msra.mxu3 %v5936_v54  ;;  %v1527_v54 = vadd.f32 %v9776_v26, %v299_v44  ;;  %v6044_v55 = vor.u32 %v7860_v25, %v6043_v50  ;;  %v6093_v26 = vld [vmem:[%s12273_s2 + $0x78] sm:$0xf0]  ;;  %v6136_v44 = vor.u32 %v7881_v34, %v6133_v35  ;;  %v6064_v50 = vor.u32 %v7863_v45, %v6061_v46  ;;  %v6203_v25 = vld [vmem:[%s12273_s2 + $0x150] sm:$0xf]  ;;  %v7903_v34 = vld [vmem:[%s12273_s2 + $0x174] sm:$0xf] }
  0xe9   :  { %1745 = vmatpush.bf16.msra.mxu0 %v5536_v63  ;;  %v1539_v31 = vpop.f32.mrf.mxu0  ;;  %v6099_v63 = vld [vmem:[%s12273_s2 + $0x80] sm:$0xf]  ;;  %v6096_v7 = vor.u32 %v7871_v47, %v6093_v26  ;;  %v7898_v47 = vld [vmem:[%s12273_s2 + $0x144] sm:$0xf0]  ;;  %v6221_v35 = vld [vmem:[%s12273_s2 + $0x178] sm:$0xf0] }
  0xea   :  { %1758 = vmatpush.bf16.msra.mxu1 %v5664_v2  ;;  %v1552_v30 = vpop.f32.mrf.mxu1  ;;  %v7887_v2 = vld [vmem:[%s12273_s2 + $0xf4] sm:$0xf]  ;;  %v1540_v4 = vadd.f32 %v1539_v31, %v1527_v54  ;;  %v6100_v17 = vor.u32 %v7874_v0, %v6099_v63  ;;  %v6187_v0 = vld [vmem:[%s12273_s2 + $0x130] sm:$0xf] }
  0xeb   :  { %1771 = vmatpush.bf16.msra.mxu2 %v5792_v3  ;;  %v8261_v8 = vpop.eup %8260  ;;  %v6157_v3 = vld [vmem:[%s12273_s2 + $0xf8] sm:$0xf0] }
  0xec   :  { %1784 = vmatpush.bf16.msra.mxu3 %v5920_v5  ;;  %1746 = vmatmul.bf16.vlgmr.msra.gmra.mxu0 %v8694_v15  ;;  %v7884_v15 = vld [vmem:[%s12273_s2 + $0xd4] sm:$0xf0]  ;;  %v1798_v57 = vadd.f32 1.0, %v8261_v8  ;;  %v6036_v5 = vor.u32 %v7858_v58, %v6035_v56  ;;  %v6160_v59 = vor.u32 %v7887_v2, %v6157_v3  ;;  %v1553_v14 = vadd.f32 %v1552_v30, %v1540_v4  ;;  %v6069_v30 = vld [vmem:[%s12273_s2 + $0x48] sm:$0xf0] }
  0xed   :  { %2200 = vmatpush.bf16.msrb.mxu0 %v6092_v6  ;;  %1759 = vmatmul.bf16.vlgmr.msra.gmra.mxu1 %v8866_v36  ;;  %v6067_v36 = vld [vmem:[%s12273_s2 + $0x40] sm:$0xf]  ;;  %v6140_v22 = vor.u32 %v7884_v15, %v6139_v60  ;;  %v7867_v60 = vld [vmem:[%s12273_s2 + $0x54] sm:$0xf]  ;;  %v6219_v15 = vld [vmem:[%s12273_s2 + $0x170] sm:$0xf]  ;;  %v6072_v40 = vor.u32 %v7865_v28, %v6069_v30 }
  0xee   :  { %2213 = vmatpush.bf16.msrb.mxu1 %v6156_v10  ;;  %1772 = vmatmul.bf16.vlgmr.msra.gmra.mxu2 %v8868_v37  ;;  %v7866_v37 = vld [vmem:[%s12273_s2 + $0x44] sm:$0xf0]  ;;  %v1802_v6 = vmul.f32 0.5, %v1798_v57  ;;  %v7869_v10 = vld [vmem:[%s12273_s2 + $0x64] sm:$0xf]  ;;  %v6080_v31 = vor.u32 %v7867_v60, %v6077_v20 }
  0xef   :  { %1785 = vmatmul.bf16.vlgmr.msra.gmra.mxu3 %v8858_v33  ;;  %v7882_v33 = vld [vmem:[%s12273_s2 + $0xc4] sm:$0xf0]  ;;  %v6068_v24 = vor.u32 %v7866_v37, %v6067_v36  ;;  %v7883_v36 = vld [vmem:[%s12273_s2 + $0xd4] sm:$0xf]  ;;  %v7904_v37 = vld [vmem:[%s12273_s2 + $0x174] sm:$0xf0] }
  0xf0   :  { %v6132_v32 = vor.u32 %v7882_v33, %v6131_v23  ;;  %v9961_v16 = vpack.c.bf16 %v1802_v6, %v1802_v6  ;;  %v6220_v23 = vor.u32 %v7904_v37, %v6219_v15  ;;  %v6211_v33 = vld [vmem:[%s12273_s2 + $0x160] sm:$0xf]  ;;  %v7861_v8 = vld [vmem:[%s12273_s2 + $0x24] sm:$0xf]  ;;  %v6117_v56 = vld [vmem:[%s12273_s2 + $0xa8] sm:$0xf0] }
  0xf1   :  { %2201 = vmatpush.bf16.msrb.mxu0 %v6084_v13  ;;  %v9901_v41 = vpop.f32.mrf.mxu2  ;;  %v1541_v49 = vpop.f32.mrf.mxu0  ;;  %v6149_v13 = vld [vmem:[%s12273_s2 + $0xe8] sm:$0xf0]  ;;  %v6212_v27 = vor.u32 %v7902_v18, %v6211_v33  ;;  %v6195_v58 = vld [vmem:[%s12273_s2 + $0x140] sm:$0xf]  ;;  %v7859_v2 = vld [vmem:[%s12273_s2 + $0x14] sm:$0xf] }
  0xf2   :  { %2214 = vmatpush.bf16.msrb.mxu1 %v6148_v19  ;;  %v9903_v43 = vpop.f32.mrf.mxu3  ;;  %v1554_v51 = vpop.f32.mrf.mxu1  ;;  %v6088_v19 = vor.u32 %v7869_v10, %v6085_v11  ;;  %2226 = vmatpush.bf16.msrb.mxu2 %v6220_v23  ;;  %v6196_v63 = vor.u32 %v7898_v47, %v6195_v58  ;;  %v6045_v3 = vld [vmem:[%s12273_s2 + $0x18] sm:$0xf0]  ;;  %v7875_v6 = vld [vmem:[%s12273_s2 + $0x94] sm:$0xf]  ;;  %v6179_v11 = vld [vmem:[%s12273_s2 + $0x120] sm:$0xf] }
  0xf3   :  { %v7900_v51 = vld [vmem:[%s12273_s2 + $0x154] sm:$0xf0]  ;;  %v6048_v10 = vor.u32 %v7859_v2, %v6045_v3  ;;  %v7873_v15 = vld [vmem:[%s12273_s2 + $0x84] sm:$0xf]  ;;  %v6101_v20 = vld [vmem:[%s12273_s2 + $0x88] sm:$0xf0] }
  0xf4   :  { %v6204_v54 = vor.u32 %v7900_v51, %v6203_v25  ;;  %v6171_v33 = vld [vmem:[%s12273_s2 + $0x110] sm:$0xf]  ;;  %v7892_v18 = vld [vmem:[%s12273_s2 + $0x114] sm:$0xf0]  ;;  %v6163_v28 = vld [vmem:[%s12273_s2 + $0x100] sm:$0xf] }
  0xf5   :  { %2202 = vmatpush.bf16.msrb.mxu0 %v6076_v21  ;;  %v6152_v21 = vor.u32 %v7885_v12, %v6149_v13  ;;  %v7857_v13 = vld [vmem:[%s12273_s2 + $0x4] sm:$0xf]  ;;  %v7890_v30 = vld [vmem:[%s12273_s2 + $0x104] sm:$0xf0]  ;;  %v6197_v58 = vld [vmem:[%s12273_s2 + $0x148] sm:$0xf0] }
  0xf6   :  { %2215 = vmatpush.bf16.msrb.mxu1 %v6140_v22  ;;  %v6141_v22 = vld [vmem:[%s12273_s2 + $0xd8] sm:$0xf0]  ;;  %2227 = vmatpush.bf16.msrb.mxu2 %v6212_v27  ;;  %v6172_v27 = vor.u32 %v7892_v18, %v6171_v33  ;;  %v6165_v33 = vld [vmem:[%s12273_s2 + $0x108] sm:$0xf0] }
  0xf7   :  { %v6189_v3 = vld [vmem:[%s12273_s2 + $0x138] sm:$0xf0] }
  0xf9   :  { %2203 = vmatpush.bf16.msrb.mxu0 %v6068_v24  ;;  %v1567_v62 = vpop.f32.mrf.mxu2  ;;  %v1566_v24 = vadd.f32 %v9901_v41, %v1553_v14  ;;  %v6037_v14 = vld [vmem:[%s12273_s2 + $0x8] sm:$0xf0] }
  0xfa   :  { %2216 = vmatpush.bf16.msrb.mxu1 %v6132_v32  ;;  %v1580_v1 = vpop.f32.mrf.mxu3  ;;  %v6144_v32 = vor.u32 %v7883_v36, %v6141_v22  ;;  %2228 = vmatpush.bf16.msrb.mxu2 %v6204_v54  ;;  %v6040_v22 = vor.u32 %v7857_v13, %v6037_v14  ;;  %v7918_v54 = vld [vmem:[%s12273_s2 + $0x1e4] sm:$0xf0]  ;;  %v7891_v14 = vld [vmem:[%s12273_s2 + $0x114] sm:$0xf] }
  0xfb   :  { %v7896_v1 = vld [vmem:[%s12273_s2 + $0x134] sm:$0xf0] }
  0xfd   :  { %2204 = vmatpush.bf16.msrb.mxu0 %v6060_v38  ;;  %v1579_v38 = vadd.f32 %v9903_v43, %v1566_v24  ;;  %v7879_v43 = vld [vmem:[%s12273_s2 + $0xb4] sm:$0xf]  ;;  %v6104_v24 = vor.u32 %v7873_v15, %v6101_v20 }
  0xfe   :  { %2217 = vmatpush.bf16.msrb.mxu1 %v6124_v42  ;;  %2229 = vmatpush.bf16.msrb.mxu2 %v6196_v63  ;;  %v6267_v63 = vld [vmem:[%s12273_s2 + $0x1d0] sm:$0xf] }
 0x101   :  { %2205 = vmatpush.bf16.msrb.mxu0 %v6052_v48  ;;  %v6125_v48 = vld [vmem:[%s12273_s2 + $0xb8] sm:$0xf0] }
 0x102   :  { %2218 = vmatpush.bf16.msrb.mxu1 %v6116_v52  ;;  %v6128_v9 = vor.u32 %v7879_v43, %v6125_v48  ;;  %v6283_v43 = vld [vmem:[%s12273_s2 + $0x1f0] sm:$0xf]  ;;  %v7920_v48 = vld [vmem:[%s12273_s2 + $0x1f4] sm:$0xf0] }
 0x103   :  { %v6284_v51 = vor.u32 %v7920_v48, %v6283_v43  ;;  %v7917_v48 = vld [vmem:[%s12273_s2 + $0x1e4] sm:$0xf] }
 0x105   :  { %2206 = vmatpush.bf16.msrb.mxu0 %v6044_v55  ;;  %v7877_v55 = vld [vmem:[%s12273_s2 + $0xa4] sm:$0xf]  ;;  %2239 = vmatpush.bf16.msrb.mxu3 %v6284_v51 }
 0x106   :  { %2219 = vmatpush.bf16.msrb.mxu1 %v6108_v61  ;;  %v6056_v61 = vor.u32 %v7861_v8, %v6053_v53  ;;  %v6120_v4 = vor.u32 %v7877_v55, %v6117_v56  ;;  %v7897_v55 = vld [vmem:[%s12273_s2 + $0x144] sm:$0xf] }
 0x109   :  { %2207 = vmatpush.bf16.msrb.mxu0 %v6036_v5  ;;  %v1591_v39 = vpop.f32.mrf.mxu0 }
 0x10a   :  { %2220 = vmatpush.bf16.msrb.mxu1 %v6100_v17  ;;  %v1592_v41 = vadd.f32 %v1591_v39, %v1579_v38  ;;  %v1604_v42 = vpop.f32.mrf.mxu1  ;;  %v6188_v17 = vor.u32 %v7896_v1, %v6187_v0  ;;  %v7916_v0 = vld [vmem:[%s12273_s2 + $0x1d4] sm:$0xf0] }
 0x10b   :  { %v6268_v2 = vor.u32 %v7916_v0, %v6267_v63 }
 0x10c   :  { %2208 = vmatmul.bf16.vlgmr.msrb.gmra.mxu0 %v9961_v16  ;;  %v1605_v49 = vadd.f32 %v1604_v42, %v1592_v41  ;;  %2230 = vmatpush.bf16.msrb.mxu2 %v6188_v17  ;;  %v6213_v41 = vld [vmem:[%s12273_s2 + $0x168] sm:$0xf0]  ;;  %v300_v42 = vperm.slane %v9665_v29, 2 }
 0x10d   :  { %2252 = vmatpush.bf16.msra.mxu0 %v6096_v7  ;;  %v6109_v7 = vld [vmem:[%s12273_s2 + $0x98] sm:$0xf0]  ;;  %v6181_v17 = vld [vmem:[%s12273_s2 + $0x128] sm:$0xf0] }
 0x10e   :  { %2265 = vmatpush.bf16.msra.mxu1 %v6160_v59  ;;  %v1791_v52 = vmul.f32 0.5, %v1605_v49  ;;  %v7894_v59 = vld [vmem:[%s12273_s2 + $0x124] sm:$0xf0]  ;;  %v7899_v49 = vld [vmem:[%s12273_s2 + $0x154] sm:$0xf] }
 0x10f   :  { %v6180_v36 = vor.u32 %v7894_v59, %v6179_v11  ;;  %v6251_v59 = vld [vmem:[%s12273_s2 + $0x1b0] sm:$0xf] }
 0x110   :  { %8262 = vtanh.f32 %v1791_v52  ;;  %v6205_v52 = vld [vmem:[%s12273_s2 + $0x158] sm:$0xf0] }
 0x111   :  { %2253 = vmatpush.bf16.msra.mxu0 %v6088_v19  ;;  %v10032_v57 = vpop.f32.mrf.mxu2  ;;  %v1593_v26 = vpop.f32.mrf.mxu0  ;;  %v6112_v19 = vor.u32 %v7875_v6, %v6109_v7  ;;  %2231 = vmatpush.bf16.msrb.mxu2 %v6180_v36  ;;  %v6208_v53 = vor.u32 %v7899_v49, %v6205_v52  ;;  %v7893_v7 = vld [vmem:[%s12273_s2 + $0x124] sm:$0xf]  ;;  %v7910_v36 = vld [vmem:[%s12273_s2 + $0x1a4] sm:$0xf0]  ;;  %v6277_v49 = vld [vmem:[%s12273_s2 + $0x1e8] sm:$0xf0] }
 0x112   :  { %2266 = vmatpush.bf16.msra.mxu1 %v6152_v21  ;;  %v10040_v62 = vpop.f32.mrf.mxu3  ;;  %v1606_v5 = vpop.f32.mrf.mxu1  ;;  %v6184_v11 = vor.u32 %v7893_v7, %v6181_v17 }
 0x113   :  { %v7914_v5 = vld [vmem:[%s12273_s2 + $0x1c4] sm:$0xf0] }
 0x115   :  { %2254 = vmatpush.bf16.msra.mxu0 %v6080_v31  ;;  %2232 = vmatpush.bf16.msrb.mxu2 %v6172_v27 }
 0x116   :  { %2267 = vmatpush.bf16.msra.mxu1 %v6144_v32  ;;  %v8263_v12 = vpop.eup %8262  ;;  %v6164_v32 = vor.u32 %v7890_v30, %v6163_v28  ;;  %v6235_v28 = vld [vmem:[%s12273_s2 + $0x190] sm:$0xf]  ;;  %v7908_v30 = vld [vmem:[%s12273_s2 + $0x194] sm:$0xf0] }
 0x117   :  { %v1799_v60 = vadd.f32 1.0, %v8263_v12  ;;  %v7912_v12 = vld [vmem:[%s12273_s2 + $0x1b4] sm:$0xf0] }
 0x119   :  { %2255 = vmatpush.bf16.msra.mxu0 %v6072_v40  ;;  %v1619_v21 = vpop.f32.mrf.mxu2  ;;  %v1803_v37 = vmul.f32 0.5, %v1799_v60  ;;  %2233 = vmatpush.bf16.msrb.mxu2 %v6164_v32  ;;  %v7901_v40 = vld [vmem:[%s12273_s2 + $0x164] sm:$0xf]  ;;  %v6252_v60 = vor.u32 %v7912_v12, %v6251_v59  ;;  %v6229_v12 = vld [vmem:[%s12273_s2 + $0x188] sm:$0xf0] }
 0x11a   :  { %2268 = vmatpush.bf16.msra.mxu1 %v6136_v44  ;;  %v1632_v23 = vpop.f32.mrf.mxu3  ;;  %v6216_v45 = vor.u32 %v7901_v40, %v6213_v41  ;;  %v6243_v21 = vld [vmem:[%s12273_s2 + $0x1a0] sm:$0xf]  ;;  %v7919_v41 = vld [vmem:[%s12273_s2 + $0x1f4] sm:$0xf]  ;;  %v7905_v59 = vld [vmem:[%s12273_s2 + $0x184] sm:$0xf] }
 0x11b   :  { %v1807_v31 = vpack.c.bf16 %v1803_v37, %v1803_v37  ;;  %v7889_v37 = vld [vmem:[%s12273_s2 + $0x104] sm:$0xf]  ;;  %v6244_v23 = vor.u32 %v7910_v36, %v6243_v21 }
 0x11d   :  { %2256 = vmatpush.bf16.msra.mxu0 %v6064_v50  ;;  %2221 = vmatmul.bf16.vlgmr.msrb.gmra.mxu1 %v1807_v31  ;;  %v1618_v50 = vadd.f32 %v10032_v57, %v300_v42  ;;  %v6285_v42 = vld [vmem:[%s12273_s2 + $0x1f8] sm:$0xf0] }
 0x11e   :  { %2269 = vmatpush.bf16.msra.mxu1 %v6128_v9  ;;  %v6275_v9 = vld [vmem:[%s12273_s2 + $0x1e0] sm:$0xf] }
 0x11f   :  { %v1631_v56 = vadd.f32 %v10040_v62, %v1618_v50  ;;  %v6276_v57 = vor.u32 %v7918_v54, %v6275_v9  ;;  %v7895_v62 = vld [vmem:[%s12273_s2 + $0x134] sm:$0xf]  ;;  %v6269_v9 = vld [vmem:[%s12273_s2 + $0x1d8] sm:$0xf0] }
 0x120   :  { %v6192_v6 = vor.u32 %v7895_v62, %v6189_v3  ;;  %v7909_v62 = vld [vmem:[%s12273_s2 + $0x1a4] sm:$0xf]  ;;  %v7907_v3 = vld [vmem:[%s12273_s2 + $0x194] sm:$0xf] }
 0x121   :  { %2257 = vmatpush.bf16.msra.mxu0 %v6056_v61  ;;  %v6200_v61 = vor.u32 %v7897_v55, %v6197_v58  ;;  %2240 = vmatpush.bf16.msrb.mxu3 %v6276_v57  ;;  %v7913_v57 = vld [vmem:[%s12273_s2 + $0x1c4] sm:$0xf]  ;;  %v6261_v58 = vld [vmem:[%s12273_s2 + $0x1c8] sm:$0xf0] }
 0x122   :  { %2270 = vmatpush.bf16.msra.mxu1 %v6120_v4  ;;  %v6259_v4 = vld [vmem:[%s12273_s2 + $0x1c0] sm:$0xf] }
 0x125   :  { %2258 = vmatpush.bf16.msra.mxu0 %v6048_v10  ;;  %2241 = vmatpush.bf16.msrb.mxu3 %v6268_v2  ;;  %v6260_v10 = vor.u32 %v7914_v5, %v6259_v4  ;;  %v6237_v4 = vld [vmem:[%s12273_s2 + $0x198] sm:$0xf0] }
 0x126   :  { %2271 = vmatpush.bf16.msra.mxu1 %v6112_v19  ;;  %v6173_v19 = vld [vmem:[%s12273_s2 + $0x118] sm:$0xf0]  ;;  %v6240_v17 = vor.u32 %v7907_v3, %v6237_v4 }
 0x127   :  { %v6176_v15 = vor.u32 %v7891_v14, %v6173_v19  ;;  %v6232_v14 = vor.u32 %v7905_v59, %v6229_v12 }
 0x129   :  { %2259 = vmatpush.bf16.msra.mxu0 %v6040_v22  ;;  %v1643_v38 = vpop.f32.mrf.mxu0  ;;  %2242 = vmatpush.bf16.msrb.mxu3 %v6260_v10 }
 0x12a   :  { %2272 = vmatpush.bf16.msra.mxu1 %v6104_v24  ;;  %v1656_v39 = vpop.f32.mrf.mxu1  ;;  %v1644_v1 = vadd.f32 %v1643_v38, %v1631_v56  ;;  %v6168_v24 = vor.u32 %v7889_v37, %v6165_v33  ;;  %v7906_v38 = vld [vmem:[%s12273_s2 + $0x184] sm:$0xf0]  ;;  %v301_v56 = vperm.slane %v9665_v29, 3  ;;  %v6253_v29 = vld [vmem:[%s12273_s2 + $0x1b8] sm:$0xf0] }
 0x12c   :  { %2260 = vmatmul.bf16.vlgmr.msra.gmra.mxu0 %v9961_v16  ;;  %v6224_v16 = vor.u32 %v7903_v34, %v6221_v35  ;;  %v1657_v13 = vadd.f32 %v1656_v39, %v1644_v1  ;;  %v6236_v34 = vor.u32 %v7908_v30, %v6235_v28  ;;  %v6227_v35 = vld [vmem:[%s12273_s2 + $0x180] sm:$0xf]  ;;  %v6245_v1 = vld [vmem:[%s12273_s2 + $0x1a8] sm:$0xf0] }
 0x12d   :  { %2273 = vmatmul.bf16.vlgmr.msra.gmra.mxu1 %v1807_v31  ;;  %2243 = vmatpush.bf16.msrb.mxu3 %v6252_v60  ;;  %v6228_v40 = vor.u32 %v7906_v38, %v6227_v35  ;;  %v6248_v2 = vor.u32 %v7909_v62, %v6245_v1  ;;  %v1874_v28 = vld [vmem:[%s12274_s10] sm:$0x3] }
 0x12e   :  { %2278 = vmatpush.bf16.msra.mxu2 %v6224_v16  ;;  %v1876_v30 = vperm.slane %v1874_v28, 0 }
 0x131   :  { %v1669_v46 = vpop.f32.mrf.mxu2  ;;  %v1645_v25 = vpop.f32.mrf.mxu0  ;;  %2244 = vmatpush.bf16.msrb.mxu3 %v6244_v23 }
 0x132   :  { %v1682_v44 = vpop.f32.mrf.mxu3  ;;  %2279 = vmatpush.bf16.msra.mxu2 %v6216_v45  ;;  %v1658_v8 = vpop.f32.mrf.mxu1  ;;  %v1670_v20 = vadd.f32 %v1669_v46, %v1657_v13  ;;  %v6288_v46 = vor.u32 %v7919_v41, %v6285_v42  ;;  %v6280_v25 = vor.u32 %v7917_v48, %v6277_v49  ;;  %v7926_v48 = vld [vmem:[%s12276_s3 + $0x28] sm:$0xff] }
 0x134   :  { %v1683_v22 = vadd.f32 %v1682_v44, %v1670_v20 }
 0x135   :  { %2245 = vmatpush.bf16.msrb.mxu3 %v6236_v34 }
 0x136   :  { %2280 = vmatpush.bf16.msra.mxu2 %v6208_v53  ;;  %v7915_v53 = vld [vmem:[%s12273_s2 + $0x1d4] sm:$0xf] }
 0x137   :  { %v6272_v55 = vor.u32 %v7915_v53, %v6269_v9  ;;  %v7935_v53 = vld [vmem:[%s12276_s3 + $0x70] sm:$0xff] }
 0x139   :  { %v1671_v47 = vpop.f32.mrf.mxu2  ;;  %2246 = vmatpush.bf16.msrb.mxu3 %v6228_v40 }
 0x13a   :  { %v1684_v26 = vpop.f32.mrf.mxu3  ;;  %2281 = vmatpush.bf16.msra.mxu2 %v6200_v61  ;;  %v6264_v47 = vor.u32 %v7913_v57, %v6261_v58  ;;  %v7933_v57 = vld [vmem:[%s12276_s3 + $0x60] sm:$0xff] }
 0x13b   :  { %v7911_v26 = vld [vmem:[%s12273_s2 + $0x1b4] sm:$0xf] }
 0x13c   :  { %v6256_v63 = vor.u32 %v7911_v26, %v6253_v29  ;;  %v7930_v26 = vld [vmem:[%s12276_s3 + $0x48] sm:$0xff]  ;;  %v7929_v29 = vld [vmem:[%s12276_s3 + $0x40] sm:$0xff] }
 0x13d   :  { %2291 = vmatpush.bf16.msra.mxu3 %v6288_v46 }
 0x13e   :  { %2282 = vmatpush.bf16.msra.mxu2 %v6192_v6 }
 0x141   :  { %2292 = vmatpush.bf16.msra.mxu3 %v6280_v25 }
 0x142   :  { %2283 = vmatpush.bf16.msra.mxu2 %v6184_v11 }
 0x145   :  { %2293 = vmatpush.bf16.msra.mxu3 %v6272_v55  ;;  %v7934_v55 = vld [vmem:[%s12276_s3 + $0x68] sm:$0xff] }
 0x146   :  { %2284 = vmatpush.bf16.msra.mxu2 %v6176_v15 }
 0x149   :  { %v1695_v18 = vpop.f32.mrf.mxu0  ;;  %2294 = vmatpush.bf16.msra.mxu3 %v6264_v47  ;;  %v7932_v47 = vld [vmem:[%s12276_s3 + $0x58] sm:$0xff] }
 0x14a   :  { %v1696_v31 = vadd.f32 %v1695_v18, %v1683_v22  ;;  %v1708_v27 = vpop.f32.mrf.mxu1  ;;  %2285 = vmatpush.bf16.msra.mxu2 %v6168_v24 }
 0x14b   :  { %v1709_v61 = vadd.f32 %v1708_v27, %v301_v56  ;;  %v7921_v56 = vld [vmem:[%s12276_s3] sm:$0xff] }
 0x14c   :  { %v1792_v32 = vmul.f32 0.5, %v1696_v31 }
 0x14d   :  { %2295 = vmatpush.bf16.msra.mxu3 %v6256_v63 }
 0x14e   :  { %8264 = vtanh.f32 %v1792_v32 }
 0x151   :  { %v1721_v16 = vpop.f32.mrf.mxu2  ;;  %v1697_v45 = vpop.f32.mrf.mxu0  ;;  %2296 = vmatpush.bf16.msra.mxu3 %v6248_v2 }
 0x152   :  { %v1734_v39 = vpop.f32.mrf.mxu3  ;;  %v1710_v44 = vpop.f32.mrf.mxu1  ;;  %v1722_v0 = vadd.f32 %v1721_v16, %v1709_v61  ;;  %v7931_v61 = vld [vmem:[%s12276_s3 + $0x50] sm:$0xff] }
 0x153   :  { %v7928_v44 = vld [vmem:[%s12276_s3 + $0x38] sm:$0xff] }
 0x154   :  { %v8265_v43 = vpop.eup %8264  ;;  %v1735_v5 = vadd.f32 %v1734_v39, %v1722_v0  ;;  %v1877_v39 = vperm.slane %v1874_v28, 1  ;;  %2446 = vmatpush.bf16.msrb.mxu0 %v7928_v44  ;;  %v8257_v28 = vld [vmem:[%s12275_s11] ss:$0 sm:$0xff]  ;;  %v7946_v44 = vld [vmem:[%s12279_s5 + $0x8] sm:$0xff] }
 0x155   :  { %v1800_v50 = vadd.f32 1.0, %v8265_v43  ;;  %2297 = vmatpush.bf16.msra.mxu3 %v6240_v17  ;;  %v7927_v43 = vld [vmem:[%s12276_s3 + $0x30] sm:$0xff] }
 0x157   :  { %v1804_v51 = vmul.f32 0.5, %v1800_v50  ;;  %v7925_v50 = vld [vmem:[%s12276_s3 + $0x20] sm:$0xff] }
 0x158   :  { %2447 = vmatpush.bf16.msrb.mxu0 %v7927_v43  ;;  %v7945_v43 = vld [vmem:[%s12279_s5] sm:$0xff] }
 0x159   :  { %v1723_v52 = vpop.f32.mrf.mxu2  ;;  %v1808_v54 = vpack.c.bf16 %v1804_v51, %v1804_v51  ;;  %2298 = vmatpush.bf16.msra.mxu3 %v6232_v14  ;;  %v7924_v51 = vld [vmem:[%s12276_s3 + $0x18] sm:$0xff] }
 0x15a   :  { %v1736_v8 = vpop.f32.mrf.mxu3  ;;  %v7936_v52 = vld [vmem:[%s12276_s3 + $0x78] sm:$0xff] }
 0x15b   :  { %2234 = vmatmul.bf16.vlgmr.msrb.gmra.mxu2 %v1808_v54  ;;  %2459 = vmatpush.bf16.msrb.mxu1 %v7936_v52  ;;  %v7923_v8 = vld [vmem:[%s12276_s3 + $0x10] sm:$0xff]  ;;  %v6467_v52 = vld [vmem:[%s12281_s6 + $0x60] sm:$0xf] }
 0x15c   :  { %2448 = vmatpush.bf16.msrb.mxu0 %v7926_v48  ;;  %v6475_v48 = vld [vmem:[%s12281_s6 + $0x70] sm:$0xf] }
 0x15f   :  { %2460 = vmatpush.bf16.msrb.mxu1 %v7935_v53 }
 0x160   :  { %2449 = vmatpush.bf16.msrb.mxu0 %v7925_v50  ;;  %v7967_v50 = vld [vmem:[%s12281_s6 + $0x74] sm:$0xf] }
 0x163   :  { %2461 = vmatpush.bf16.msrb.mxu1 %v7934_v55 }
 0x164   :  { %2450 = vmatpush.bf16.msrb.mxu0 %v7924_v51  ;;  %v6477_v51 = vld [vmem:[%s12281_s6 + $0x78] sm:$0xf0] }
 0x165   :  { %v6480_v53 = vor.u32 %v7967_v50, %v6477_v51  ;;  %v8029_v50 = vld [vmem:[%s12283_s7 + $0x1e4] sm:$0xf]  ;;  %v6579_v51 = vld [vmem:[%s12283_s7 + $0xc0] sm:$0xf] }
 0x167   :  { %2462 = vmatpush.bf16.msrb.mxu1 %v7933_v57  ;;  %v6459_v57 = vld [vmem:[%s12281_s6 + $0x50] sm:$0xf] }
 0x168   :  { %2451 = vmatpush.bf16.msrb.mxu0 %v7923_v8  ;;  %v7966_v8 = vld [vmem:[%s12281_s6 + $0x64] sm:$0xf0] }
 0x169   :  { %v1747_v6 = vpop.f32.mrf.mxu0  ;;  %v6468_v55 = vor.u32 %v7966_v8, %v6467_v52  ;;  %v7995_v8 = vld [vmem:[%s12283_s7 + $0xcc] sm:$0xf0] }
 0x16a   :  { %v1760_v7 = vpop.f32.mrf.mxu1  ;;  %v1748_v10 = vadd.f32 %v1747_v6, %v1735_v5 }
 0x16b   :  { %2286 = vmatmul.bf16.vlgmr.msra.gmra.mxu2 %v1808_v54  ;;  %v7922_v54 = vld [vmem:[%s12276_s3 + $0x8] sm:$0xff]  ;;  %2463 = vmatpush.bf16.msrb.mxu1 %v7932_v47  ;;  %v7963_v47 = vld [vmem:[%s12281_s6 + $0x54] sm:$0xf] }
 0x16c   :  { %v1761_v11 = vadd.f32 %v1760_v7, %v1748_v10  ;;  %2452 = vmatpush.bf16.msrb.mxu0 %v7922_v54  ;;  %v6469_v54 = vld [vmem:[%s12281_s6 + $0x68] sm:$0xf0] }
 0x16f   :  { %2464 = vmatpush.bf16.msrb.mxu1 %v7931_v61  ;;  %v6461_v61 = vld [vmem:[%s12281_s6 + $0x58] sm:$0xf0] }
 0x170   :  { %2453 = vmatpush.bf16.msrb.mxu0 %v7921_v56 }
 0x171   :  { %v1773_v13 = vpop.f32.mrf.mxu2  ;;  %v1749_v15 = vpop.f32.mrf.mxu0 }
 0x172   :  { %v1774_v19 = vadd.f32 %v1773_v13, %v1761_v11  ;;  %v1786_v60 = vpop.f32.mrf.mxu3  ;;  %v1762_v20 = vpop.f32.mrf.mxu1  ;;  %v7943_v15 = vld [vmem:[%s12278_s4 + $0x30] sm:$0xff] }
 0x173   :  { %2465 = vmatpush.bf16.msrb.mxu1 %v7930_v26  ;;  %v7942_v20 = vld [vmem:[%s12278_s4 + $0x28] sm:$0xff] }
 0x174   :  { %v1787_v21 = vadd.f32 %v1786_v60, %v1774_v19  ;;  %v7944_v60 = vld [vmem:[%s12278_s4 + $0x38] sm:$0xff] }
 0x175   :  { %2545 = vmatpush.bf16.msrb.mxu2 %v7944_v60 }
 0x176   :  { %v1793_v36 = vmul.f32 0.5, %v1787_v21  ;;  %v7941_v21 = vld [vmem:[%s12278_s4 + $0x20] sm:$0xff] }
 0x177   :  { %2466 = vmatpush.bf16.msrb.mxu1 %v7929_v29  ;;  %v6464_v29 = vor.u32 %v7963_v47, %v6461_v61  ;;  %v6709_v61 = vld [vmem:[%s12283_s7 + $0x1d0] sm:$0xf0] }
 0x178   :  { %8266 = vtanh.f32 %v1793_v36  ;;  %v7940_v36 = vld [vmem:[%s12278_s4 + $0x18] sm:$0xff] }
 0x179   :  { %v1775_v37 = vpop.f32.mrf.mxu2  ;;  %2546 = vmatpush.bf16.msrb.mxu2 %v7943_v15  ;;  %v6445_v15 = vld [vmem:[%s12281_s6 + $0x38] sm:$0xf0] }
 0x17a   :  { %v1788_v22 = vpop.f32.mrf.mxu3  ;;  %v7939_v37 = vld [vmem:[%s12278_s4 + $0x10] sm:$0xff] }
 0x17b   :  { %v7938_v22 = vld [vmem:[%s12278_s4 + $0x8] sm:$0xff]  ;;  %2765 = vmatpush.bf16.msra.mxu1 %v6480_v53  ;;  %v6707_v53 = vld [vmem:[%s12283_s7 + $0x1c0] sm:$0xf] }
 0x17d   :  { %2547 = vmatpush.bf16.msrb.mxu2 %v7942_v20 }
 0x17e   :  { %v8267_v23 = vpop.eup %8266 }
 0x17f   :  { %v1801_v33 = vadd.f32 1.0, %v8267_v23  ;;  %v7937_v23 = vld [vmem:[%s12278_s4] sm:$0xff] }
 0x181   :  { %v1805_v18 = vmul.f32 0.5, %v1801_v33  ;;  %2548 = vmatpush.bf16.msrb.mxu2 %v7941_v21  ;;  %v6435_v21 = vld [vmem:[%s12281_s6 + $0x20] sm:$0xf] }
 0x183   :  { %v1809_v24 = vpack.c.bf16 %v1805_v18, %v1805_v18  ;;  %v7952_v18 = vld [vmem:[%s12279_s5 + $0x38] sm:$0xff] }
 0x185   :  { %2247 = vmatmul.bf16.vlgmr.msrb.gmra.mxu3 %v1809_v24  ;;  %2549 = vmatpush.bf16.msrb.mxu2 %v7940_v36  ;;  %v7958_v36 = vld [vmem:[%s12281_s6 + $0x24] sm:$0xf0] }
 0x186   :  { %2632 = vmatpush.bf16.msrb.mxu3 %v7952_v18  ;;  %v6427_v18 = vld [vmem:[%s12281_s6 + $0x10] sm:$0xf] }
 0x189   :  { %v2209_v31 = vpop.f32.mrf.mxu0  ;;  %2550 = vmatpush.bf16.msrb.mxu2 %v7939_v37  ;;  %v7957_v37 = vld [vmem:[%s12281_s6 + $0x24] sm:$0xf] }
 0x18a   :  { %v2210_v32 = vadd.f32 %v2209_v31, %v1876_v30  ;;  %v7949_v30 = vld [vmem:[%s12279_s5 + $0x20] sm:$0xff] }
 0x18d   :  { %2551 = vmatpush.bf16.msrb.mxu2 %v7938_v22  ;;  %v6436_v22 = vor.u32 %v7958_v36, %v6435_v21 }
 0x191   :  { %v2211_v27 = vpop.f32.mrf.mxu0  ;;  %2552 = vmatpush.bf16.msrb.mxu2 %v7937_v23  ;;  %v6437_v23 = vld [vmem:[%s12281_s6 + $0x28] sm:$0xf0] }
 0x192   :  { %v7950_v27 = vld [vmem:[%s12279_s5 + $0x28] sm:$0xff] }
 0x195   :  { %2299 = vmatmul.bf16.vlgmr.msra.gmra.mxu3 %v1809_v24  ;;  %v7951_v24 = vld [vmem:[%s12279_s5 + $0x30] sm:$0xff] }
 0x196   :  { %2633 = vmatpush.bf16.msrb.mxu3 %v7951_v24  ;;  %v7956_v24 = vld [vmem:[%s12281_s6 + $0x14] sm:$0xf0] }
 0x19a   :  { %v2222_v34 = vpop.f32.mrf.mxu1  ;;  %2634 = vmatpush.bf16.msrb.mxu3 %v7950_v27  ;;  %v6428_v27 = vor.u32 %v7956_v24, %v6427_v18  ;;  %v8015_v18 = vld [vmem:[%s12283_s7 + $0x16c] sm:$0xf0]  ;;  %v7981_v24 = vld [vmem:[%s12283_s7 + $0x64] sm:$0xf] }
 0x19b   :  { %v2223_v35 = vadd.f32 %v2222_v34, %v2210_v32 }
 0x19e   :  { %2635 = vmatpush.bf16.msrb.mxu3 %v7949_v30 }
 0x1a2   :  { %v2224_v16 = vpop.f32.mrf.mxu1 }
 0x1a9   :  { %v2261_v38 = vpop.f32.mrf.mxu0 }
 0x1aa   :  { %v2262_v41 = vadd.f32 %v2261_v38, %v1877_v39  ;;  %v2274_v42 = vpop.f32.mrf.mxu1 }
 0x1ac   :  { %v2275_v45 = vadd.f32 %v2274_v42, %v2262_v41 }
 0x1b1   :  { %v2263_v40 = vpop.f32.mrf.mxu0 }
 0x1b2   :  { %v2276_v46 = vpop.f32.mrf.mxu1 }
 0x1b3   :  { %v7947_v46 = vld [vmem:[%s12279_s5 + $0x10] sm:$0xff] }
 0x1de   :  { %v2235_v49 = vpop.f32.mrf.mxu2 }
 0x1df   :  { %v2236_v63 = vadd.f32 %v2235_v49, %v2223_v35  ;;  %v7968_v49 = vld [vmem:[%s12281_s6 + $0x74] sm:$0xf0] }
 0x1e6   :  { %v2237_v25 = vpop.f32.mrf.mxu2 }
 0x1e7   :  { %v6476_v25 = vor.u32 %v7968_v49, %v6475_v48 }
 0x1e9   :  { %2752 = vmatpush.bf16.msra.mxu0 %v6476_v25  ;;  %v6725_v25 = vld [vmem:[%s12283_s7 + $0x1f0] sm:$0xf0] }
 0x1ea   :  { %v6728_v52 = vor.u32 %v8029_v50, %v6725_v25 }
 0x1ed   :  { %2753 = vmatpush.bf16.msra.mxu0 %v6468_v55 }
 0x1ee   :  { %v2287_v9 = vpop.f32.mrf.mxu2 }
 0x1ef   :  { %v2288_v6 = vadd.f32 %v2287_v9, %v2275_v45  ;;  %v7948_v45 = vld [vmem:[%s12279_s5 + $0x18] sm:$0xff]  ;;  %v7965_v9 = vld [vmem:[%s12281_s6 + $0x64] sm:$0xf] }
 0x1f0   :  { %2636 = vmatpush.bf16.msrb.mxu3 %v7948_v45  ;;  %v6472_v56 = vor.u32 %v7965_v9, %v6469_v54  ;;  %v8027_v9 = vld [vmem:[%s12283_s7 + $0x1cc] sm:$0xf0]  ;;  %v6580_v54 = vor.u32 %v7995_v8, %v6579_v51  ;;  %v6499_v51 = vld [vmem:[%s12283_s7 + $0x20] sm:$0xf] }
 0x1f1   :  { %v6708_v55 = vor.u32 %v8027_v9, %v6707_v53  ;;  %v6627_v8 = vld [vmem:[%s12283_s7 + $0x120] sm:$0xf]  ;;  %v8007_v9 = vld [vmem:[%s12283_s7 + $0x12c] sm:$0xf0] }
 0x1f2   :  { %2766 = vmatpush.bf16.msra.mxu1 %v6472_v56  ;;  %v7993_v56 = vld [vmem:[%s12283_s7 + $0xc4] sm:$0xf] }
 0x1f4   :  { %2637 = vmatpush.bf16.msrb.mxu3 %v7947_v46  ;;  %v8031_v46 = vld [vmem:[%s12283_s7 + $0x1ec] sm:$0xf0] }
 0x1f6   :  { %v2289_v58 = vpop.f32.mrf.mxu2  ;;  %2767 = vmatpush.bf16.msra.mxu1 %v6464_v29  ;;  %v7991_v29 = vld [vmem:[%s12283_s7 + $0xac] sm:$0xf0] }
 0x1f7   :  { %v7964_v58 = vld [vmem:[%s12281_s6 + $0x54] sm:$0xf0] }
 0x1f8   :  { %2638 = vmatpush.bf16.msrb.mxu3 %v7946_v44  ;;  %v6460_v26 = vor.u32 %v7964_v58, %v6459_v57  ;;  %v7997_v44 = vld [vmem:[%s12283_s7 + $0xe4] sm:$0xf]  ;;  %v6581_v57 = vld [vmem:[%s12283_s7 + $0xd0] sm:$0xf0] }
 0x1f9   :  { %v8025_v58 = vld [vmem:[%s12283_s7 + $0x1c4] sm:$0xf]  ;;  %v6584_v47 = vor.u32 %v7993_v56, %v6581_v57 }
 0x1fa   :  { %2754 = vmatpush.bf16.msra.mxu0 %v6460_v26  ;;  %v6563_v26 = vld [vmem:[%s12283_s7 + $0xa0] sm:$0xf]  ;;  %v8005_v57 = vld [vmem:[%s12283_s7 + $0x124] sm:$0xf] }
 0x1fc   :  { %2639 = vmatpush.bf16.msrb.mxu3 %v7945_v43  ;;  %v6597_v43 = vld [vmem:[%s12283_s7 + $0xf0] sm:$0xf0] }
 0x1fd   :  { %v6600_v49 = vor.u32 %v7997_v44, %v6597_v43  ;;  %v6517_v44 = vld [vmem:[%s12283_s7 + $0x50] sm:$0xf0]  ;;  %v8009_v43 = vld [vmem:[%s12283_s7 + $0x144] sm:$0xf] }
 0x208   :  { %v2248_v0 = vpop.f32.mrf.mxu3 }
 0x209   :  { %v2249_v62 = vadd.f32 %v2248_v0, %v2236_v63  ;;  %v6451_v63 = vld [vmem:[%s12281_s6 + $0x40] sm:$0xf]  ;;  %v7962_v0 = vld [vmem:[%s12281_s6 + $0x44] sm:$0xf0] }
 0x20b   :  { %v2304_v1 = vmul.f32 0.5, %v2249_v62  ;;  %v7961_v62 = vld [vmem:[%s12281_s6 + $0x44] sm:$0xf] }
 0x20d   :  { %8268 = vtanh.f32 %v2304_v1  ;;  %v6453_v1 = vld [vmem:[%s12281_s6 + $0x48] sm:$0xf0] }
 0x210   :  { %v2250_v2 = vpop.f32.mrf.mxu3 }
 0x211   :  { %v8258_v2 = vld [vmem:[%s12277_s12] ss:$0 sm:$0xff] }
 0x213   :  { %v8269_v3 = vpop.eup %8268 }
 0x214   :  { %v2308_v4 = vadd.f32 1.0, %v8269_v3  ;;  %v6452_v3 = vor.u32 %v7962_v0, %v6451_v63  ;;  %v6712_v63 = vor.u32 %v8025_v58, %v6709_v61  ;;  %v6691_v0 = vld [vmem:[%s12283_s7 + $0x1a0] sm:$0xf]  ;;  %v6629_v58 = vld [vmem:[%s12283_s7 + $0x130] sm:$0xf0]  ;;  %v6628_v61 = vor.u32 %v8007_v9, %v6627_v8 }
 0x215   :  { %v6555_v8 = vld [vmem:[%s12283_s7 + $0x88] sm:$0xf] }
 0x216   :  { %v2310_v5 = vmul.f32 0.5, %v2308_v4  ;;  %v6456_v4 = vor.u32 %v7961_v62, %v6453_v1  ;;  %2755 = vmatpush.bf16.msra.mxu0 %v6452_v3  ;;  %v8023_v62 = vld [vmem:[%s12283_s7 + $0x1ac] sm:$0xf0]  ;;  %v7989_v1 = vld [vmem:[%s12283_s7 + $0xa4] sm:$0xf] }
 0x217   :  { %v6565_v3 = vld [vmem:[%s12283_s7 + $0xb0] sm:$0xf0]  ;;  %v6683_v9 = vld [vmem:[%s12283_s7 + $0x188] sm:$0xf] }
 0x218   :  { %v2312_v7 = vpack.c.bf16 %v2310_v5, %v2310_v5  ;;  %v2300_v17 = vpop.f32.mrf.mxu3  ;;  %2768 = vmatpush.bf16.msra.mxu1 %v6456_v4  ;;  %v8021_v4 = vld [vmem:[%s12283_s7 + $0x1a4] sm:$0xf] }
 0x219   :  { %v2301_v10 = vadd.f32 %v2300_v17, %v2288_v6 }
 0x21a   :  { %2454 = vmatmul.bf16.vlgmr.msrb.gmra.mxu0 %v2312_v7 }
 0x21b   :  { %v2305_v11 = vmul.f32 0.5, %v2301_v10 }
 0x21d   :  { %8270 = vtanh.f32 %v2305_v11 }
 0x220   :  { %v2302_v59 = vpop.f32.mrf.mxu3 }
 0x223   :  { %v8271_v12 = vpop.eup %8270 }
 0x224   :  { %v2309_v13 = vadd.f32 1.0, %v8271_v12 }
 0x226   :  { %v2311_v14 = vmul.f32 0.5, %v2309_v13  ;;  %v6443_v13 = vld [vmem:[%s12281_s6 + $0x30] sm:$0xf] }
 0x228   :  { %v2313_v19 = vpack.c.bf16 %v2311_v14, %v2311_v14  ;;  %v7960_v14 = vld [vmem:[%s12281_s6 + $0x34] sm:$0xf0] }
 0x229   :  { %v6444_v60 = vor.u32 %v7960_v14, %v6443_v13  ;;  %v7985_v13 = vld [vmem:[%s12283_s7 + $0x84] sm:$0xf]  ;;  %v6549_v14 = vld [vmem:[%s12283_s7 + $0x90] sm:$0xf0] }
 0x22a   :  { %2467 = vmatmul.bf16.vlgmr.msrb.gmra.mxu1 %v2313_v19  ;;  %v7959_v19 = vld [vmem:[%s12281_s6 + $0x34] sm:$0xf]  ;;  %v6552_v36 = vor.u32 %v7985_v13, %v6549_v14  ;;  %v6603_v14 = vld [vmem:[%s12283_s7 + $0xe8] sm:$0xf] }
 0x22b   :  { %v6448_v20 = vor.u32 %v7959_v19, %v6445_v15  ;;  %2756 = vmatpush.bf16.msra.mxu0 %v6444_v60  ;;  %v8017_v19 = vld [vmem:[%s12283_s7 + $0x184] sm:$0xf]  ;;  %v6677_v60 = vld [vmem:[%s12283_s7 + $0x190] sm:$0xf0]  ;;  %v8259_v15 = vld [vmem:[%s12280_s13] ss:$0 sm:$0xff] }
 0x22d   :  { %2769 = vmatpush.bf16.msra.mxu1 %v6448_v20 }
 0x22f   :  { %2757 = vmatpush.bf16.msra.mxu0 %v6436_v22  ;;  %v7983_v22 = vld [vmem:[%s12283_s7 + $0x6c] sm:$0xf0] }
 0x233   :  { %2758 = vmatpush.bf16.msra.mxu0 %v6428_v27 }
 0x297   :  { %v2455_v33 = vpop.f32.mrf.mxu0 }
 0x298   :  { %v2456_v32 = vadd.f32 %v8257_v28, %v2455_v33  ;;  %v6440_v33 = vor.u32 %v7957_v37, %v6437_v23  ;;  %v6429_v28 = vld [vmem:[%s12281_s6 + $0x18] sm:$0xf0]  ;;  %v6531_v37 = vld [vmem:[%s12283_s7 + $0x60] sm:$0xf] }
 0x299   :  { %v6659_v23 = vld [vmem:[%s12283_s7 + $0x160] sm:$0xf] }
 0x29a   :  { %2770 = vmatpush.bf16.msra.mxu1 %v6440_v33  ;;  %v6680_v33 = vor.u32 %v8017_v19, %v6677_v60  ;;  %v8000_v19 = vld [vmem:[%s12283_s7 + $0xf4] sm:$0xf0]  ;;  %v6731_v60 = vld [vmem:[%s12283_s7 + $0x1e8] sm:$0xf] }
 0x29f   :  { %v2457_v31 = vpop.f32.mrf.mxu0 }
 0x2a0   :  { %v7955_v31 = vld [vmem:[%s12281_s6 + $0x14] sm:$0xf] }
 0x2a1   :  { %v6432_v30 = vor.u32 %v7955_v31, %v6429_v28  ;;  %v6533_v31 = vld [vmem:[%s12283_s7 + $0x70] sm:$0xf0]  ;;  %v8013_v28 = vld [vmem:[%s12283_s7 + $0x164] sm:$0xf] }
 0x2a3   :  { %2771 = vmatpush.bf16.msra.mxu1 %v6432_v30  ;;  %v6661_v30 = vld [vmem:[%s12283_s7 + $0x170] sm:$0xf0] }
 0x2a7   :  { %v2468_v34 = vpop.f32.mrf.mxu1 }
 0x2a8   :  { %v2469_v35 = vadd.f32 %v2468_v34, %v2456_v32  ;;  %v6419_v32 = vld [vmem:[%s12281_s6] sm:$0xf]  ;;  %v7954_v34 = vld [vmem:[%s12281_s6 + $0x4] sm:$0xf0] }
 0x2aa   :  { %v2472_v38 = vmul.f32 0.5, %v2469_v35  ;;  %v7953_v35 = vld [vmem:[%s12281_s6 + $0x4] sm:$0xf] }
 0x2ac   :  { %8272 = vtanh.f32 %v2472_v38  ;;  %v6420_v38 = vor.u32 %v7954_v34, %v6419_v32  ;;  %v6532_v34 = vor.u32 %v7983_v22, %v6531_v37 }
 0x2ae   :  { %2759 = vmatpush.bf16.msra.mxu0 %v6420_v38  ;;  %v6660_v38 = vor.u32 %v8015_v18, %v6659_v23  ;;  %v8030_v23 = vld [vmem:[%s12283_s7 + $0x1ec] sm:$0xf]  ;;  %v6587_v18 = vld [vmem:[%s12283_s7 + $0xc8] sm:$0xf] }
 0x2af   :  { %v2470_v16 = vpop.f32.mrf.mxu1 }
 0x2b0   :  { %v6421_v16 = vld [vmem:[%s12281_s6 + $0x8] sm:$0xf0] }
 0x2b2   :  { %v8273_v39 = vpop.eup %8272  ;;  %3208 = vmatpush.bf16.msrb.mxu0 %v6600_v49 }
 0x2b3   :  { %v2474_v40 = vadd.f32 1.0, %v8273_v39  ;;  %v6424_v39 = vor.u32 %v7953_v35, %v6421_v16  ;;  %v6515_v35 = vld [vmem:[%s12283_s7 + $0x40] sm:$0xf]  ;;  %v6536_v16 = vor.u32 %v7981_v24, %v6533_v31  ;;  %v7996_v31 = vld [vmem:[%s12283_s7 + $0xd4] sm:$0xf0] }
 0x2b5   :  { %v2475_v41 = vmul.f32 0.5, %v2474_v40  ;;  %2772 = vmatpush.bf16.msra.mxu1 %v6424_v39  ;;  %v6595_v40 = vld [vmem:[%s12283_s7 + $0xe0] sm:$0xf]  ;;  %v7979_v39 = vld [vmem:[%s12283_s7 + $0x4c] sm:$0xf0] }
 0x2b6   :  { %3209 = vmatpush.bf16.msrb.mxu0 %v6584_v47  ;;  %v6516_v49 = vor.u32 %v7979_v39, %v6515_v35  ;;  %v6589_v35 = vld [vmem:[%s12283_s7 + $0xd8] sm:$0xf0] }
 0x2b7   :  { %v2476_v42 = vpack.c.bf16 %v2475_v41, %v2475_v41  ;;  %v7999_v41 = vld [vmem:[%s12283_s7 + $0xec] sm:$0xf0]  ;;  %v6717_v39 = vld [vmem:[%s12283_s7 + $0x1d8] sm:$0xf0] }
 0x2b8   :  { %v6596_v45 = vor.u32 %v7999_v41, %v6595_v40  ;;  %v6643_v40 = vld [vmem:[%s12283_s7 + $0x140] sm:$0xf]  ;;  %v8011_v41 = vld [vmem:[%s12283_s7 + $0x14c] sm:$0xf0] }
 0x2b9   :  { %2553 = vmatmul.bf16.vlgmr.msrb.gmra.mxu2 %v2476_v42  ;;  %v6723_v42 = vld [vmem:[%s12283_s7 + $0x1e0] sm:$0xf]  ;;  %3221 = vmatpush.bf16.msrb.mxu1 %v6728_v52  ;;  %v6644_v50 = vor.u32 %v8011_v41, %v6643_v40  ;;  %v7975_v52 = vld [vmem:[%s12283_s7 + $0x2c] sm:$0xf0]  ;;  %v6571_v41 = vld [vmem:[%s12283_s7 + $0xa8] sm:$0xf] }
 0x2ba   :  { %v6724_v48 = vor.u32 %v8031_v46, %v6723_v42  ;;  %3182 = vmatpush.bf16.msra.mxu2 %v6596_v45  ;;  %v6664_v45 = vor.u32 %v8013_v28, %v6661_v30  ;;  %v7977_v46 = vld [vmem:[%s12283_s7 + $0x44] sm:$0xf]  ;;  %v6500_v47 = vor.u32 %v7975_v52, %v6499_v51  ;;  %v8028_v28 = vld [vmem:[%s12283_s7 + $0x1d4] sm:$0xf0]  ;;  %v6588_v30 = vor.u32 %v7996_v31, %v6587_v18  ;;  %v6701_v51 = vld [vmem:[%s12283_s7 + $0x1b8] sm:$0xf0] }
 0x2bb   :  { %v6520_v25 = vor.u32 %v7977_v46, %v6517_v44  ;;  %v8024_v44 = vld [vmem:[%s12283_s7 + $0x1b4] sm:$0xf0]  ;;  %v6509_v31 = vld [vmem:[%s12283_s7 + $0x38] sm:$0xf0] }
 0x2bc   :  { %3195 = vmatpush.bf16.msra.mxu3 %v6724_v48  ;;  %v6645_v48 = vld [vmem:[%s12283_s7 + $0x150] sm:$0xf0]  ;;  %v8008_v18 = vld [vmem:[%s12283_s7 + $0x134] sm:$0xf0] }
 0x2bd   :  { %3222 = vmatpush.bf16.msrb.mxu1 %v6712_v63  ;;  %v6648_v53 = vor.u32 %v8009_v43, %v6645_v48  ;;  %v6632_v63 = vor.u32 %v8005_v57, %v6629_v58  ;;  %v7990_v43 = vld [vmem:[%s12283_s7 + $0xac] sm:$0xf]  ;;  %v6573_v48 = vld [vmem:[%s12283_s7 + $0xb8] sm:$0xf0] }
 0x2be   :  { %3183 = vmatpush.bf16.msra.mxu2 %v6580_v54  ;;  %v7973_v54 = vld [vmem:[%s12283_s7 + $0x24] sm:$0xf]  ;;  %v6557_v57 = vld [vmem:[%s12283_s7 + $0x98] sm:$0xf0] }
 0x2c0   :  { %3196 = vmatpush.bf16.msra.mxu3 %v6708_v55  ;;  %v6501_v55 = vld [vmem:[%s12283_s7 + $0x30] sm:$0xf0] }
 0x33c   :  { %v2554_v5 = vpop.f32.mrf.mxu2 }
 0x33d   :  { %v2555_v6 = vadd.f32 %v8258_v2, %v2554_v5  ;;  %v6564_v2 = vor.u32 %v7991_v29, %v6563_v26  ;;  %v6693_v5 = vld [vmem:[%s12283_s7 + $0x1b0] sm:$0xf0]  ;;  %v6504_v26 = vor.u32 %v7973_v54, %v6501_v55  ;;  %v8020_v55 = vld [vmem:[%s12283_s7 + $0x194] sm:$0xf0] }
 0x33e   :  { %v6684_v58 = vor.u32 %v8020_v55, %v6683_v9 }
 0x33f   :  { %v2558_v7 = vmul.f32 0.5, %v2555_v6  ;;  %v6692_v6 = vor.u32 %v8023_v62, %v6691_v0  ;;  %3184 = vmatpush.bf16.msra.mxu2 %v6564_v2  ;;  %v6483_v2 = vld [vmem:[%s12283_s7] sm:$0xf] }
 0x341   :  { %8274 = vtanh.f32 %v2558_v7  ;;  %v6568_v7 = vor.u32 %v7989_v1, %v6565_v3  ;;  %3197 = vmatpush.bf16.msra.mxu3 %v6692_v6  ;;  %v7971_v3 = vld [vmem:[%s12283_s7 + $0xc] sm:$0xf0] }
 0x342   :  { %v8003_v6 = vld [vmem:[%s12283_s7 + $0x10c] sm:$0xf0] }
 0x343   :  { %3210 = vmatpush.bf16.msrb.mxu0 %v6568_v7  ;;  %v7969_v7 = vld [vmem:[%s12283_s7 + $0x4] sm:$0xf] }
 0x344   :  { %v2556_v17 = vpop.f32.mrf.mxu2 }
 0x345   :  { %v6547_v17 = vld [vmem:[%s12283_s7 + $0x80] sm:$0xf] }
 0x347   :  { %v8275_v10 = vpop.eup %8274  ;;  %3211 = vmatpush.bf16.msrb.mxu0 %v6552_v36  ;;  %v6605_v36 = vld [vmem:[%s12283_s7 + $0xf8] sm:$0xf0] }
 0x348   :  { %v2560_v11 = vadd.f32 1.0, %v8275_v10  ;;  %v7987_v10 = vld [vmem:[%s12283_s7 + $0x8c] sm:$0xf0] }
 0x349   :  { %v6548_v20 = vor.u32 %v7987_v10, %v6547_v17  ;;  %v6485_v10 = vld [vmem:[%s12283_s7 + $0x10] sm:$0xf0] }
 0x34a   :  { %v2561_v59 = vmul.f32 0.5, %v2560_v11  ;;  %v6675_v11 = vld [vmem:[%s12283_s7 + $0x180] sm:$0xf] }
 0x34b   :  { %3185 = vmatpush.bf16.msra.mxu2 %v6548_v20  ;;  %3212 = vmatpush.bf16.msrb.mxu0 %v6536_v16  ;;  %v8032_v20 = vld [vmem:[%s12283_s7 + $0x1f4] sm:$0xf0] }
 0x34c   :  { %2562 = vst [vmem:[%s12282_s18] sm:$0xff] %v2561_v59  ;;  %v2563_v12 = vpack.c.bf16 %v2561_v59, %v2561_v59  ;;  %v6696_v59 = vor.u32 %v8021_v4, %v6693_v5  ;;  %v6484_v4 = vor.u32 %v7971_v3, %v6483_v2  ;;  %v6611_v5 = vld [vmem:[%s12283_s7 + $0x100] sm:$0xf]  ;;  %v6732_v37 = vor.u32 %v8032_v20, %v6731_v60  ;;  %v8016_v2 = vld [vmem:[%s12283_s7 + $0x174] sm:$0xf0]  ;;  %v7982_v3 = vld [vmem:[%s12283_s7 + $0x6c] sm:$0xf] }
 0x34d   :  { %v6612_v17 = vor.u32 %v8003_v6, %v6611_v5  ;;  %v8010_v60 = vld [vmem:[%s12283_s7 + $0x14c] sm:$0xf]  ;;  %v6653_v20 = vld [vmem:[%s12283_s7 + $0x158] sm:$0xf0] }
 0x34e   :  { %2640 = vmatmul.bf16.vlgmr.msrb.gmra.mxu3 %v2563_v12  ;;  %v8019_v12 = vld [vmem:[%s12283_s7 + $0x18c] sm:$0xf0]  ;;  %3223 = vmatpush.bf16.msrb.mxu1 %v6696_v59  ;;  %v6613_v59 = vld [vmem:[%s12283_s7 + $0x110] sm:$0xf0] }
 0x34f   :  { %v6676_v21 = vor.u32 %v8019_v12, %v6675_v11  ;;  %3186 = vmatpush.bf16.msra.mxu2 %v6532_v34  ;;  %3213 = vmatpush.bf16.msrb.mxu0 %v6520_v25  ;;  %v8001_v11 = vld [vmem:[%s12283_s7 + $0x104] sm:$0xf]  ;;  %v6488_v12 = vor.u32 %v7969_v7, %v6485_v10  ;;  %v7994_v34 = vld [vmem:[%s12283_s7 + $0xcc] sm:$0xf]  ;;  %v6523_v10 = vld [vmem:[%s12283_s7 + $0x48] sm:$0xf] }
 0x350   :  { %v6616_v13 = vor.u32 %v8001_v11, %v6613_v59  ;;  %v6592_v16 = vor.u32 %v7994_v34, %v6589_v35  ;;  %v8022_v25 = vld [vmem:[%s12283_s7 + $0x1ac] sm:$0xf]  ;;  %v7980_v59 = vld [vmem:[%s12283_s7 + $0x54] sm:$0xf0] }
 0x351   :  { %3198 = vmatpush.bf16.msra.mxu3 %v6676_v21  ;;  %v7998_v21 = vld [vmem:[%s12283_s7 + $0xec] sm:$0xf]  ;;  %v6704_v52 = vor.u32 %v8022_v25, %v6701_v51 }
 0x352   :  { %3224 = vmatpush.bf16.msrb.mxu1 %v6680_v33  ;;  %v6608_v22 = vor.u32 %v7998_v21, %v6605_v36  ;;  %v6733_v33 = vld [vmem:[%s12283_s7 + $0x1f8] sm:$0xf0]  ;;  %v8014_v7 = vld [vmem:[%s12283_s7 + $0x16c] sm:$0xf] }
 0x353   :  { %3187 = vmatpush.bf16.msra.mxu2 %v6516_v49  ;;  %3214 = vmatpush.bf16.msrb.mxu0 %v6504_v26  ;;  %v6736_v24 = vor.u32 %v8030_v23, %v6733_v33  ;;  %v6685_v26 = vld [vmem:[%s12283_s7 + $0x198] sm:$0xf0]  ;;  %v6635_v23 = vld [vmem:[%s12283_s7 + $0x128] sm:$0xf]  ;;  %v6656_v33 = vor.u32 %v8010_v60, %v6653_v20  ;;  %v7579_v60 = vld [vmem:[%s12285_s8 + $0x690] sm:$0xf] }
 0x354   :  { %v6636_v34 = vor.u32 %v8008_v18, %v6635_v23  ;;  %v8246_v20 = vld [vmem:[%s12285_s8 + $0x6a8] sm:$0xf0]  ;;  %v8127_v23 = vld [vmem:[%s12285_s8 + $0x2f0] sm:$0xf0]  ;;  %v6879_v18 = vld [vmem:[%s12285_s8 + $0x118] sm:$0xf] }
 0x355   :  { %3199 = vmatpush.bf16.msra.mxu3 %v6660_v38  ;;  %v8026_v38 = vld [vmem:[%s12283_s7 + $0x1cc] sm:$0xf] }
 0x356   :  { %3225 = vmatpush.bf16.msrb.mxu1 %v6664_v45  ;;  %v6720_v40 = vor.u32 %v8026_v38, %v6717_v39  ;;  %v6699_v45 = vld [vmem:[%s12283_s7 + $0x1a8] sm:$0xf] }
 0x357   :  { %3188 = vmatpush.bf16.msra.mxu2 %v6500_v47  ;;  %3215 = vmatpush.bf16.msrb.mxu0 %v6488_v12  ;;  %v6700_v49 = vor.u32 %v8024_v44, %v6699_v45  ;;  %v6651_v12 = vld [vmem:[%s12283_s7 + $0x148] sm:$0xf]  ;;  %v6493_v45 = vld [vmem:[%s12283_s7 + $0x18] sm:$0xf0] }
 0x358   :  { %v6491_v38 = vld [vmem:[%s12283_s7 + $0x8] sm:$0xf] }
 0x359   :  { %3200 = vmatpush.bf16.msra.mxu3 %v6644_v50  ;;  %v6576_v50 = vor.u32 %v7990_v43, %v6573_v48  ;;  %v6619_v39 = vld [vmem:[%s12283_s7 + $0x108] sm:$0xf]  ;;  %v8002_v43 = vld [vmem:[%s12283_s7 + $0x10c] sm:$0xf]  ;;  %v6621_v48 = vld [vmem:[%s12283_s7 + $0x118] sm:$0xf0] }
 0x35a   :  { %3226 = vmatpush.bf16.msrb.mxu1 %v6648_v53  ;;  %v7988_v53 = vld [vmem:[%s12283_s7 + $0x94] sm:$0xf0] }
 0x35b   :  { %3189 = vmatpush.bf16.msra.mxu2 %v6484_v4  ;;  %v6556_v54 = vor.u32 %v7988_v53, %v6555_v8  ;;  %v6541_v4 = vld [vmem:[%s12283_s7 + $0x78] sm:$0xf0]  ;;  %v6624_v8 = vor.u32 %v8002_v43, %v6621_v48  ;;  %v7299_v43 = vld [vmem:[%s12285_s8 + $0x460] sm:$0xf] }
 0x35c   :  { %v6544_v6 = vor.u32 %v7982_v3, %v6541_v4  ;;  %v7383_v4 = vld [vmem:[%s12285_s8 + $0x508] sm:$0xf]  ;;  %v8176_v48 = vld [vmem:[%s12285_s8 + $0x478] sm:$0xf0] }
 0x35d   :  { %3201 = vmatpush.bf16.msra.mxu3 %v6628_v61  ;;  %v8018_v61 = vld [vmem:[%s12283_s7 + $0x18c] sm:$0xf] }
 0x35e   :  { %3227 = vmatpush.bf16.msrb.mxu1 %v6632_v63  ;;  %v6539_v63 = vld [vmem:[%s12283_s7 + $0x68] sm:$0xf] }
 0x361   :  { %3202 = vmatpush.bf16.msra.mxu3 %v6612_v17  ;;  %v6669_v17 = vld [vmem:[%s12283_s7 + $0x178] sm:$0xf0] }
 0x362   :  { %3228 = vmatpush.bf16.msrb.mxu1 %v6616_v13  ;;  %v6672_v11 = vor.u32 %v8014_v7, %v6669_v17  ;;  %v8012_v13 = vld [vmem:[%s12283_s7 + $0x154] sm:$0xf0] }
 0x363   :  { %v6652_v21 = vor.u32 %v8012_v13, %v6651_v12  ;;  %v6907_v13 = vld [vmem:[%s12285_s8 + $0x150] sm:$0xf] }
 0x365   :  { %3247 = vmatpush.bf16.msrb.mxu3 %v6732_v37  ;;  %v6507_v37 = vld [vmem:[%s12283_s7 + $0x28] sm:$0xf] }
 0x3d1   :  { %v2641_v27 = vpop.f32.mrf.mxu3 }
 0x3d2   :  { %v2642_v32 = vadd.f32 %v8259_v15, %v2641_v27  ;;  %v6604_v15 = vor.u32 %v8000_v19, %v6603_v14  ;;  %v6715_v27 = vld [vmem:[%s12283_s7 + $0x1c8] sm:$0xf]  ;;  %v7978_v14 = vld [vmem:[%s12283_s7 + $0x4c] sm:$0xf]  ;;  %v6525_v19 = vld [vmem:[%s12283_s7 + $0x58] sm:$0xf0] }
 0x3d3   :  { %v6528_v36 = vor.u32 %v7978_v14, %v6525_v19  ;;  %v8078_v14 = vld [vmem:[%s12285_s8 + $0x168] sm:$0xf0] }
 0x3d4   :  { %v2645_v42 = vmul.f32 0.5, %v2642_v32  ;;  %3234 = vmatpush.bf16.msrb.mxu2 %v6604_v15  ;;  %v6716_v32 = vor.u32 %v8028_v28, %v6715_v27  ;;  %v6524_v15 = vor.u32 %v7980_v59, %v6523_v10  ;;  %v8006_v27 = vld [vmem:[%s12283_s7 + $0x12c] sm:$0xf]  ;;  %v6637_v28 = vld [vmem:[%s12283_s7 + $0x138] sm:$0xf0] }
 0x3d5   :  { %v7131_v10 = vld [vmem:[%s12285_s8 + $0x310] sm:$0xf] }
 0x3d6   :  { %8276 = vtanh.f32 %v2645_v42  ;;  %v7992_v42 = vld [vmem:[%s12283_s7 + $0xb4] sm:$0xf0]  ;;  %3248 = vmatpush.bf16.msrb.mxu3 %v6716_v32 }
 0x3d7   :  { %v6572_v46 = vor.u32 %v7992_v42, %v6571_v41  ;;  %v8004_v41 = vld [vmem:[%s12283_s7 + $0x114] sm:$0xf0]  ;;  %v7970_v42 = vld [vmem:[%s12283_s7 + $0xc] sm:$0xf] }
 0x3d8   :  { %3235 = vmatpush.bf16.msrb.mxu2 %v6588_v30  ;;  %v2666_v30 = vld [vmem:[%s12284_s14] sm:$0x3]  ;;  %v6496_v25 = vor.u32 %v7970_v42, %v6493_v45 }
 0x3d9   :  { %v2643_v56 = vpop.f32.mrf.mxu3  ;;  %v2669_v44 = vperm.slane %v2666_v30, 1  ;;  %v7523_v45 = vld [vmem:[%s12285_s8 + $0x620] sm:$0xf] }
 0x3da   :  { %v7986_v56 = vld [vmem:[%s12283_s7 + $0x8c] sm:$0xf]  ;;  %3249 = vmatpush.bf16.msrb.mxu3 %v6700_v49 }
 0x3db   :  { %v6560_v47 = vor.u32 %v7986_v56, %v6557_v57 }
 0x3dc   :  { %v8277_v29 = vpop.eup %8276  ;;  %3236 = vmatpush.bf16.msrb.mxu2 %v6572_v46  ;;  %v2668_v46 = vperm.slane %v2666_v30, 0  ;;  %v8239_v30 = vld [vmem:[%s12285_s8 + $0x670] sm:$0xf0] }
 0x3dd   :  { %v2647_v0 = vadd.f32 1.0, %v8277_v29  ;;  %v6688_v29 = vor.u32 %v8018_v61, %v6685_v26  ;;  %v8141_v61 = vld [vmem:[%s12285_s8 + $0x360] sm:$0xf0] }
 0x3de   :  { %3250 = vmatpush.bf16.msrb.mxu3 %v6684_v58 }
 0x3df   :  { %v2648_v62 = vmul.f32 0.5, %v2647_v0  ;;  %v7984_v0 = vld [vmem:[%s12283_s7 + $0x74] sm:$0xf0] }
 0x3e0   :  { %3237 = vmatpush.bf16.msrb.mxu2 %v6556_v54 }
 0x3e1   :  { %v2649_v1 = vpack.c.bf16 %v2648_v62, %v2648_v62  ;;  %v6667_v62 = vld [vmem:[%s12283_s7 + $0x168] sm:$0xf] }
 0x3e2   :  { %v6668_v5 = vor.u32 %v8016_v2, %v6667_v62  ;;  %v8253_v2 = vld [vmem:[%s12285_s8 + $0x6e0] sm:$0xf0] }
 0x3e3   :  { %2760 = vmatmul.bf16.vlgmr.msra.gmra.mxu0 %v2649_v1  ;;  %2773 = vmatmul.bf16.vlgmr.msra.gmra.mxu1 %v2649_v1  ;;  %v6540_v1 = vor.u32 %v7984_v0, %v6539_v63  ;;  %v6935_v63 = vld [vmem:[%s12285_s8 + $0x188] sm:$0xf]  ;;  %v8085_v0 = vld [vmem:[%s12285_s8 + $0x1a0] sm:$0xf0] }
 0x3e4   :  { %3260 = vmatpush.bf16.msra.mxu0 %v6608_v22  ;;  %3273 = vmatpush.bf16.msra.mxu1 %v6736_v24  ;;  %v7976_v22 = vld [vmem:[%s12283_s7 + $0x34] sm:$0xf0]  ;;  %v7974_v24 = vld [vmem:[%s12283_s7 + $0x2c] sm:$0xf]  ;;  %v6936_v59 = vor.u32 %v8085_v0, %v6935_v63  ;;  %v7467_v63 = vld [vmem:[%s12285_s8 + $0x5b0] sm:$0xf] }
 0x3e5   :  { %3238 = vmatpush.bf16.msrb.mxu2 %v6540_v1  ;;  %3251 = vmatpush.bf16.msrb.mxu3 %v6668_v5  ;;  %v6508_v32 = vor.u32 %v7976_v22, %v6507_v37  ;;  %v6512_v35 = vor.u32 %v7974_v24, %v6509_v31  ;;  %v7607_v1 = vld [vmem:[%s12285_s8 + $0x6c8] sm:$0xf]  ;;  %v8197_v5 = vld [vmem:[%s12285_s8 + $0x520] sm:$0xf0]  ;;  %v7103_v22 = vld [vmem:[%s12285_s8 + $0x2d8] sm:$0xf]  ;;  %v7580_v31 = vor.u32 %v8246_v20, %v7579_v60 }
 0x3e6   :  { %v7608_v19 = vor.u32 %v8253_v2, %v7607_v1  ;;  %v8071_v24 = vld [vmem:[%s12285_s8 + $0x130] sm:$0xf0]  ;;  %v8218_v0 = vld [vmem:[%s12285_s8 + $0x5c8] sm:$0xf0]  ;;  %v6991_v1 = vld [vmem:[%s12285_s8 + $0x1f8] sm:$0xf] }
 0x3e7   :  { %v6937_v60 = vld [vmem:[%s12285_s8 + $0x1a4] sm:$0xf0] }
 0x3e8   :  { %3261 = vmatpush.bf16.msra.mxu0 %v6592_v16  ;;  %3274 = vmatpush.bf16.msra.mxu1 %v6720_v40  ;;  %v7972_v16 = vld [vmem:[%s12283_s7 + $0x14] sm:$0xf0]  ;;  %v6640_v40 = vor.u32 %v8006_v27, %v6637_v28 }
 0x3e9   :  { %3239 = vmatpush.bf16.msrb.mxu2 %v6524_v15  ;;  %3252 = vmatpush.bf16.msrb.mxu3 %v6652_v21  ;;  %v6492_v49 = vor.u32 %v7972_v16, %v6491_v38  ;;  %v7384_v15 = vor.u32 %v8197_v5, %v7383_v4  ;;  %v7355_v21 = vld [vmem:[%s12285_s8 + $0x4d0] sm:$0xf]  ;;  %v7551_v27 = vld [vmem:[%s12285_s8 + $0x658] sm:$0xf]  ;;  %v7075_v38 = vld [vmem:[%s12285_s8 + $0x2a0] sm:$0xf] }
 0x3ea   :  { %v8120_v16 = vld [vmem:[%s12285_s8 + $0x2b8] sm:$0xf0]  ;;  %v7552_v42 = vor.u32 %v8239_v30, %v7551_v27  ;;  %v6767_v4 = vld [vmem:[%s12285_s8 + $0x38] sm:$0xf]  ;;  %v8043_v5 = vld [vmem:[%s12285_s8 + $0x50] sm:$0xf0] }
 0x3eb   :  { %v8169_v27 = vld [vmem:[%s12285_s8 + $0x440] sm:$0xf0]  ;;  %v8075_v30 = vld [vmem:[%s12285_s8 + $0x154] sm:$0xf] }
 0x3ec   :  { %3262 = vmatpush.bf16.msra.mxu0 %v6576_v50  ;;  %3275 = vmatpush.bf16.msra.mxu1 %v6704_v52  ;;  %v6620_v50 = vor.u32 %v8004_v41, %v6619_v39  ;;  %v6880_v39 = vor.u32 %v8071_v24, %v6879_v18  ;;  %v8064_v41 = vld [vmem:[%s12285_s8 + $0xf8] sm:$0xf0]  ;;  %v7105_v18 = vld [vmem:[%s12285_s8 + $0x2f4] sm:$0xf0] }
 0x3ed   :  { %3240 = vmatpush.bf16.msrb.mxu2 %v6508_v32  ;;  %3253 = vmatpush.bf16.msrb.mxu3 %v6636_v34  ;;  %v7327_v32 = vld [vmem:[%s12285_s8 + $0x498] sm:$0xf]  ;;  %v8183_v34 = vld [vmem:[%s12285_s8 + $0x4b0] sm:$0xf0] }
 0x3f0   :  { %3263 = vmatpush.bf16.msra.mxu0 %v6560_v47  ;;  %3276 = vmatpush.bf16.msra.mxu1 %v6688_v29  ;;  %v7159_v47 = vld [vmem:[%s12285_s8 + $0x348] sm:$0xf] }
 0x3f1   :  { %3241 = vmatpush.bf16.msrb.mxu2 %v6492_v49  ;;  %3254 = vmatpush.bf16.msrb.mxu3 %v6620_v50  ;;  %v7160_v17 = vor.u32 %v8141_v61, %v7159_v47  ;;  %v7076_v49 = vor.u32 %v8120_v16, %v7075_v38  ;;  %v7047_v50 = vld [vmem:[%s12285_s8 + $0x268] sm:$0xf]  ;;  %v8106_v47 = vld [vmem:[%s12285_s8 + $0x248] sm:$0xf0]  ;;  %v6795_v61 = vld [vmem:[%s12285_s8 + $0x70] sm:$0xf] }
 0x3f2   :  { %v8211_v38 = vld [vmem:[%s12285_s8 + $0x590] sm:$0xf0] }
 0x3f4   :  { %3264 = vmatpush.bf16.msra.mxu0 %v6544_v6  ;;  %3277 = vmatpush.bf16.msra.mxu1 %v6672_v11  ;;  %v8134_v11 = vld [vmem:[%s12285_s8 + $0x328] sm:$0xf0] }
 0x3f5   :  { %v7132_v37 = vor.u32 %v8134_v11, %v7131_v10  ;;  %v8092_v10 = vld [vmem:[%s12285_s8 + $0x1d8] sm:$0xf0]  ;;  %v6768_v11 = vor.u32 %v8043_v5, %v6767_v4  ;;  %v8054_v5 = vld [vmem:[%s12285_s8 + $0xac] sm:$0xf] }
 0x3f8   :  { %3265 = vmatpush.bf16.msra.mxu0 %v6528_v36  ;;  %3278 = vmatpush.bf16.msra.mxu1 %v6656_v33  ;;  %v8190_v36 = vld [vmem:[%s12285_s8 + $0x4e8] sm:$0xf0]  ;;  %v6908_v33 = vor.u32 %v8078_v14, %v6907_v13  ;;  %v8036_v13 = vld [vmem:[%s12285_s8 + $0x18] sm:$0xf0]  ;;  %v7161_v14 = vld [vmem:[%s12285_s8 + $0x364] sm:$0xf0] }
 0x3f9   :  { %v7356_v28 = vor.u32 %v8190_v36, %v7355_v21 }
 0x3fc   :  { %3266 = vmatpush.bf16.msra.mxu0 %v6512_v35  ;;  %3279 = vmatpush.bf16.msra.mxu1 %v6640_v40  ;;  %v7104_v35 = vor.u32 %v8127_v23, %v7103_v22  ;;  %v6851_v40 = vld [vmem:[%s12285_s8 + $0xe0] sm:$0xf]  ;;  %v7133_v22 = vld [vmem:[%s12285_s8 + $0x32c] sm:$0xf0] }
 0x400   :  { %3267 = vmatpush.bf16.msra.mxu0 %v6496_v25  ;;  %3280 = vmatpush.bf16.msra.mxu1 %v6624_v8  ;;  %v6852_v25 = vor.u32 %v8064_v41, %v6851_v40  ;;  %v8057_v8 = vld [vmem:[%s12285_s8 + $0xc0] sm:$0xf0]  ;;  %v7077_v40 = vld [vmem:[%s12285_s8 + $0x2bc] sm:$0xf0] }
 0x460   :  { %v2761_v51 = vpop.f32.mrf.mxu0  ;;  %v2774_v52 = vpop.f32.mrf.mxu1 }
 0x461   :  { %v2762_v53 = vadd.f32 %v2761_v51, %v2668_v46  ;;  %v2775_v9 = vadd.f32 %v2774_v52, %v2669_v44  ;;  %v7328_v46 = vor.u32 %v8183_v34, %v7327_v32  ;;  %v8232_v44 = vld [vmem:[%s12285_s8 + $0x638] sm:$0xf0]  ;;  %v8113_v51 = vld [vmem:[%s12285_s8 + $0x280] sm:$0xf0]  ;;  %v6823_v52 = vld [vmem:[%s12285_s8 + $0xa8] sm:$0xf] }
 0x462   :  { %v6909_v32 = vld [vmem:[%s12285_s8 + $0x16c] sm:$0xf0] }
 0x463   :  { %v2778_v54 = vmul.f32 0.5, %v2762_v53  ;;  %v2779_v55 = vmul.f32 0.5, %v2775_v9  ;;  %v7524_v53 = vor.u32 %v8232_v44, %v7523_v45  ;;  %v7300_v9 = vor.u32 %v8176_v48, %v7299_v43  ;;  %v8162_v45 = vld [vmem:[%s12285_s8 + $0x408] sm:$0xf0]  ;;  %v8068_v44 = vld [vmem:[%s12285_s8 + $0x11c] sm:$0xf] }
 0x464   :  { %v6912_v34 = vor.u32 %v8075_v30, %v6909_v32  ;;  %v6881_v43 = vld [vmem:[%s12285_s8 + $0x134] sm:$0xf0]  ;;  %v8180_v32 = vld [vmem:[%s12285_s8 + $0x49c] sm:$0xf] }
 0x465   :  { %8278 = vtanh.f32 %v2778_v54  ;;  %v7495_v54 = vld [vmem:[%s12285_s8 + $0x5e8] sm:$0xf]  ;;  %v6884_v48 = vor.u32 %v8068_v44, %v6881_v43  ;;  %v6769_v30 = vld [vmem:[%s12285_s8 + $0x54] sm:$0xf0]  ;;  %v7301_v44 = vld [vmem:[%s12285_s8 + $0x47c] sm:$0xf0] }
 0x466   :  { %8280 = vtanh.f32 %v2779_v55  ;;  %v8225_v55 = vld [vmem:[%s12285_s8 + $0x600] sm:$0xf0] }
 0x468   :  { %v2763_v56 = vpop.f32.mrf.mxu0  ;;  %v2776_v57 = vpop.f32.mrf.mxu1 }
 0x469   :  { %v7048_v56 = vor.u32 %v8113_v51, %v7047_v50  ;;  %v7019_v57 = vld [vmem:[%s12285_s8 + $0x230] sm:$0xf]  ;;  %v8204_v50 = vld [vmem:[%s12285_s8 + $0x558] sm:$0xf0]  ;;  %v8110_v51 = vld [vmem:[%s12285_s8 + $0x26c] sm:$0xf] }
 0x46b   :  { %v8279_v58 = vpop.eup %8278 }
 0x46c   :  { %v8281_v26 = vpop.eup %8280  ;;  %v2782_v29 = vadd.f32 1.0, %v8279_v58  ;;  %v6824_v58 = vor.u32 %v8057_v8, %v6823_v52  ;;  %v7049_v52 = vld [vmem:[%s12285_s8 + $0x284] sm:$0xf0]  ;;  %v8250_v8 = vld [vmem:[%s12285_s8 + $0x6cc] sm:$0xf] }
 0x46d   :  { %v2783_v62 = vadd.f32 1.0, %v8281_v26  ;;  %v8050_v26 = vld [vmem:[%s12285_s8 + $0x88] sm:$0xf0] }
 0x46e   :  { %v2784_v3 = vmul.f32 0.5, %v2782_v29  ;;  %v7496_v29 = vor.u32 %v8225_v55, %v7495_v54  ;;  %v6796_v2 = vor.u32 %v8050_v26, %v6795_v61  ;;  %v7215_v54 = vld [vmem:[%s12285_s8 + $0x3b8] sm:$0xf]  ;;  %v8103_v26 = vld [vmem:[%s12285_s8 + $0x234] sm:$0xf] }
 0x46f   :  { %v2785_v6 = vmul.f32 0.5, %v2783_v62  ;;  %v7020_v62 = vor.u32 %v8106_v47, %v7019_v57  ;;  %v8061_v57 = vld [vmem:[%s12285_s8 + $0xe4] sm:$0xf] }
 0x470   :  { %v10857_v7 = vpack.c.bf16 %v2784_v3, %v2784_v3  ;;  %v8099_v3 = vld [vmem:[%s12285_s8 + $0x210] sm:$0xf0] }
 0x471   :  { %v10865_v12 = vpack.c.bf16 %v2785_v6, %v2785_v6  ;;  %v7468_v6 = vor.u32 %v8218_v0, %v7467_v63  ;;  %v8243_v63 = vld [vmem:[%s12285_s8 + $0x694] sm:$0xf] }
 0x472   :  { %3190 = vmatmul.bf16.vlgmr.msra.gmra.mxu2 %v10857_v7  ;;  %3216 = vmatmul.bf16.vlgmr.msrb.gmra.mxu0 %v10857_v7 }
 0x473   :  { %3203 = vmatmul.bf16.vlgmr.msra.gmra.mxu3 %v10865_v12  ;;  %3229 = vmatmul.bf16.vlgmr.msrb.gmra.mxu1 %v10865_v12 }
 0x474   :  { %4743 = vmatpush.bf16.msra.mxu3 %v7160_v17  ;;  %4730 = vmatpush.bf16.msra.mxu2 %v6936_v59  ;;  %v6963_v17 = vld [vmem:[%s12285_s8 + $0x1c0] sm:$0xf]  ;;  %v8138_v59 = vld [vmem:[%s12285_s8 + $0x34c] sm:$0xf] }
 0x475   :  { %4769 = vmatpush.bf16.msrb.mxu1 %v7608_v19  ;;  %4756 = vmatpush.bf16.msrb.mxu0 %v7384_v15  ;;  %v8082_v19 = vld [vmem:[%s12285_s8 + $0x18c] sm:$0xf]  ;;  %v6964_v15 = vor.u32 %v8092_v10, %v6963_v17  ;;  %v7164_v21 = vor.u32 %v8138_v59, %v7161_v14  ;;  %v7385_v10 = vld [vmem:[%s12285_s8 + $0x524] sm:$0xf0]  ;;  %v8096_v59 = vld [vmem:[%s12285_s8 + $0x1fc] sm:$0xf] }
 0x476   :  { %v6940_v36 = vor.u32 %v8082_v19, %v6937_v60  ;;  %v7553_v19 = vld [vmem:[%s12285_s8 + $0x674] sm:$0xf0] }
 0x478   :  { %4744 = vmatpush.bf16.msra.mxu3 %v7132_v37  ;;  %4731 = vmatpush.bf16.msra.mxu2 %v6908_v33  ;;  %v8131_v37 = vld [vmem:[%s12285_s8 + $0x314] sm:$0xf]  ;;  %v8124_v33 = vld [vmem:[%s12285_s8 + $0x2dc] sm:$0xf] }
 0x479   :  { %4770 = vmatpush.bf16.msrb.mxu1 %v7580_v31  ;;  %4757 = vmatpush.bf16.msrb.mxu0 %v7356_v28  ;;  %v7136_v23 = vor.u32 %v8131_v37, %v7133_v22  ;;  %v7108_v24 = vor.u32 %v8124_v33, %v7105_v18  ;;  %v7271_v31 = vld [vmem:[%s12285_s8 + $0x428] sm:$0xf]  ;;  %v7357_v37 = vld [vmem:[%s12285_s8 + $0x4ec] sm:$0xf0]  ;;  %v6965_v33 = vld [vmem:[%s12285_s8 + $0x1dc] sm:$0xf0] }
 0x47a   :  { %v7272_v28 = vor.u32 %v8169_v27, %v7271_v31  ;;  %v8229_v18 = vld [vmem:[%s12285_s8 + $0x624] sm:$0xf]  ;;  %v7525_v31 = vld [vmem:[%s12285_s8 + $0x63c] sm:$0xf0] }
 0x47b   :  { %v7528_v27 = vor.u32 %v8229_v18, %v7525_v31 }
 0x47c   :  { %4745 = vmatpush.bf16.msra.mxu3 %v7104_v35  ;;  %4732 = vmatpush.bf16.msra.mxu2 %v6880_v39  ;;  %v7439_v35 = vld [vmem:[%s12285_s8 + $0x578] sm:$0xf]  ;;  %v8117_v39 = vld [vmem:[%s12285_s8 + $0x2a4] sm:$0xf] }
 0x47d   :  { %4771 = vmatpush.bf16.msrb.mxu1 %v7552_v42  ;;  %4758 = vmatpush.bf16.msrb.mxu0 %v7328_v46  ;;  %v7440_v16 = vor.u32 %v8211_v38, %v7439_v35  ;;  %v7080_v41 = vor.u32 %v8117_v39, %v7077_v40  ;;  %v7243_v42 = vld [vmem:[%s12285_s8 + $0x3f0] sm:$0xf]  ;;  %v7329_v35 = vld [vmem:[%s12285_s8 + $0x4b4] sm:$0xf0]  ;;  %v7497_v39 = vld [vmem:[%s12285_s8 + $0x604] sm:$0xf0] }
 0x47e   :  { %v7244_v46 = vor.u32 %v8162_v45, %v7243_v42  ;;  %v7332_v38 = vor.u32 %v8180_v32, %v7329_v35  ;;  %v6741_v42 = vld [vmem:[%s12285_s8 + $0x1c] sm:$0xf0]  ;;  %v8173_v45 = vld [vmem:[%s12285_s8 + $0x464] sm:$0xf] }
 0x47f   :  { %v7304_v43 = vor.u32 %v8173_v45, %v7301_v44  ;;  %v8128_v44 = vld [vmem:[%s12285_s8 + $0x2f8] sm:$0xf0] }
 0x480   :  { %4746 = vmatpush.bf16.msra.mxu3 %v7076_v49  ;;  %4733 = vmatpush.bf16.msra.mxu2 %v6852_v25  ;;  %v7411_v49 = vld [vmem:[%s12285_s8 + $0x540] sm:$0xf] }
 0x481   :  { %4772 = vmatpush.bf16.msrb.mxu1 %v7524_v53  ;;  %4759 = vmatpush.bf16.msrb.mxu0 %v7300_v9  ;;  %v7412_v25 = vor.u32 %v8204_v50, %v7411_v49  ;;  %v7052_v53 = vor.u32 %v8110_v51, %v7049_v52  ;;  %v7609_v9 = vld [vmem:[%s12285_s8 + $0x6e4] sm:$0xf0]  ;;  %v7469_v49 = vld [vmem:[%s12285_s8 + $0x5cc] sm:$0xf0]  ;;  %v11196_v50 = vld [vmem:[%s12286_s15] sm:$0xf] }
 0x482   :  { %3242 = vmatmul.bf16.vlgmr.msrb.gmra.mxu2 %v10857_v7  ;;  %3268 = vmatmul.bf16.vlgmr.msra.gmra.mxu0 %v10857_v7  ;;  %v6992_v7 = vor.u32 %v8099_v3, %v6991_v1  ;;  %v7612_v55 = vor.u32 %v8250_v8, %v7609_v9  ;;  %v7187_v1 = vld [vmem:[%s12285_s8 + $0x380] sm:$0xf]  ;;  %v8166_v51 = vld [vmem:[%s12285_s8 + $0x42c] sm:$0xf]  ;;  %v7273_v52 = vld [vmem:[%s12285_s8 + $0x444] sm:$0xf0] }
 0x483   :  { %3255 = vmatmul.bf16.vlgmr.msrb.gmra.mxu3 %v10865_v12  ;;  %3281 = vmatmul.bf16.vlgmr.msra.gmra.mxu1 %v10865_v12  ;;  %v6739_v12 = vld [vmem:[%s12285_s8] sm:$0xf]  ;;  %v7276_v8 = vor.u32 %v8166_v51, %v7273_v52  ;;  %v8208_v9 = vld [vmem:[%s12285_s8 + $0x57c] sm:$0xf]  ;;  %v2856_v35 = vperm.slane %v11196_v50, 2 }
 0x484   :  { %4747 = vmatpush.bf16.msra.mxu3 %v7048_v56  ;;  %4734 = vmatpush.bf16.msra.mxu2 %v6824_v58  ;;  %v6740_v20 = vor.u32 %v8036_v13, %v6739_v12  ;;  %v8155_v56 = vld [vmem:[%s12285_s8 + $0x3d0] sm:$0xf0]  ;;  %v6853_v58 = vld [vmem:[%s12285_s8 + $0xfc] sm:$0xf0]  ;;  %v6993_v12 = vld [vmem:[%s12285_s8 + $0x214] sm:$0xf0] }
 0x485   :  { %4773 = vmatpush.bf16.msrb.mxu1 %v7496_v29  ;;  %4760 = vmatpush.bf16.msrb.mxu0 %v7272_v28  ;;  %v7216_v47 = vor.u32 %v8155_v56, %v7215_v54  ;;  %v6856_v61 = vor.u32 %v8061_v57, %v6853_v58  ;;  %v7021_v29 = vld [vmem:[%s12285_s8 + $0x24c] sm:$0xf0]  ;;  %v8236_v13 = vld [vmem:[%s12285_s8 + $0x65c] sm:$0xf]  ;;  %v6996_v14 = vor.u32 %v8096_v59, %v6993_v12  ;;  %v7441_v54 = vld [vmem:[%s12285_s8 + $0x594] sm:$0xf0] }
 0x486   :  { %v7024_v0 = vor.u32 %v8103_v26, %v7021_v29  ;;  %v7556_v60 = vor.u32 %v8236_v13, %v7553_v19  ;;  %v8040_v28 = vld [vmem:[%s12285_s8 + $0x3c] sm:$0xf]  ;;  %v8159_v56 = vld [vmem:[%s12285_s8 + $0x3f4] sm:$0xf]  ;;  %v7245_v57 = vld [vmem:[%s12285_s8 + $0x40c] sm:$0xf0] }
 0x487   :  { %v8201_v29 = vld [vmem:[%s12285_s8 + $0x544] sm:$0xf]  ;;  %v6915_v51 = vld [vmem:[%s12285_s8 + $0x158] sm:$0xf]  ;;  %v8079_v52 = vld [vmem:[%s12285_s8 + $0x170] sm:$0xf0] }
 0x488   :  { %4748 = vmatpush.bf16.msra.mxu3 %v7020_v62  ;;  %4735 = vmatpush.bf16.msra.mxu2 %v6796_v2  ;;  %v7581_v62 = vld [vmem:[%s12285_s8 + $0x6ac] sm:$0xf0]  ;;  %v8148_v2 = vld [vmem:[%s12285_s8 + $0x398] sm:$0xf0] }
 0x489   :  { %4774 = vmatpush.bf16.msrb.mxu1 %v7468_v6  ;;  %4761 = vmatpush.bf16.msrb.mxu0 %v7244_v46  ;;  %v7584_v3 = vor.u32 %v8243_v63, %v7581_v62  ;;  %v7188_v4 = vor.u32 %v8148_v2, %v7187_v1  ;;  %v6825_v6 = vld [vmem:[%s12285_s8 + $0xc4] sm:$0xf0]  ;;  %v7413_v63 = vld [vmem:[%s12285_s8 + $0x55c] sm:$0xf0]  ;;  %v2854_v1 = vperm.slane %v11196_v50, 0 }
 0x48a   :  { %v6828_v17 = vor.u32 %v8054_v5, %v6825_v6  ;;  %v8152_v2 = vld [vmem:[%s12285_s8 + $0x3bc] sm:$0xf] }
 0x48c   :  { %4749 = vmatpush.bf16.msra.mxu3 %v6992_v7  ;;  %4736 = vmatpush.bf16.msra.mxu2 %v6768_v11  ;;  %v8194_v7 = vld [vmem:[%s12285_s8 + $0x50c] sm:$0xf] }
 0x48d   :  { %4775 = vmatpush.bf16.msrb.mxu1 %v7440_v16  ;;  %4762 = vmatpush.bf16.msrb.mxu0 %v7216_v47  ;;  %v7388_v11 = vor.u32 %v8194_v7, %v7385_v10  ;;  %v8222_v16 = vld [vmem:[%s12285_s8 + $0x5ec] sm:$0xf]  ;;  %v7248_v47 = vor.u32 %v8159_v56, %v7245_v57  ;;  %v8145_v10 = vld [vmem:[%s12285_s8 + $0x384] sm:$0xf]  ;;  %v6916_v57 = vor.u32 %v8079_v52, %v6915_v51  ;;  %v6775_v51 = vld [vmem:[%s12285_s8 + $0x40] sm:$0xf] }
 0x48e   :  { %v7500_v40 = vor.u32 %v8222_v16, %v7497_v39  ;;  %v6943_v16 = vld [vmem:[%s12285_s8 + $0x190] sm:$0xf]  ;;  %v8086_v39 = vld [vmem:[%s12285_s8 + $0x1a8] sm:$0xf0]  ;;  %v8044_v52 = vld [vmem:[%s12285_s8 + $0x58] sm:$0xf0] }
 0x490   :  { %4750 = vmatpush.bf16.msra.mxu3 %v6964_v15  ;;  %4737 = vmatpush.bf16.msra.mxu2 %v6740_v20  ;;  %v8047_v15 = vld [vmem:[%s12285_s8 + $0x74] sm:$0xf]  ;;  %v6797_v20 = vld [vmem:[%s12285_s8 + $0x8c] sm:$0xf0] }
 0x491   :  { %4776 = vmatpush.bf16.msrb.mxu1 %v7412_v25  ;;  %4763 = vmatpush.bf16.msrb.mxu0 %v7188_v4 }
 0x494   :  { %4795 = vmatpush.bf16.msrb.mxu3 %v7164_v21  ;;  %4782 = vmatpush.bf16.msrb.mxu2 %v6940_v36  ;;  %v8187_v21 = vld [vmem:[%s12285_s8 + $0x4d4] sm:$0xf]  ;;  %v6800_v36 = vor.u32 %v8047_v15, %v6797_v20  ;;  %v2857_v15 = vperm.slane %v11196_v50, 3 }
 0x495   :  { %4821 = vmatpush.bf16.msra.mxu1 %v7612_v55  ;;  %4808 = vmatpush.bf16.msra.mxu0 %v7388_v11  ;;  %v7360_v22 = vor.u32 %v8187_v21, %v7357_v37  ;;  %v7444_v55 = vor.u32 %v8208_v9, %v7441_v54  ;;  %v7189_v11 = vld [vmem:[%s12285_s8 + $0x39c] sm:$0xf0]  ;;  %v8142_v37 = vld [vmem:[%s12285_s8 + $0x368] sm:$0xf0]  ;;  %v7083_v54 = vld [vmem:[%s12285_s8 + $0x2a8] sm:$0xf] }
 0x496   :  { %v7192_v12 = vor.u32 %v8145_v10, %v7189_v11  ;;  %v7027_v11 = vld [vmem:[%s12285_s8 + $0x238] sm:$0xf] }
 0x498   :  { %4796 = vmatpush.bf16.msrb.mxu3 %v7136_v23  ;;  %4783 = vmatpush.bf16.msrb.mxu2 %v6912_v34  ;;  %v8089_v23 = vld [vmem:[%s12285_s8 + $0x1c4] sm:$0xf]  ;;  %v6772_v34 = vor.u32 %v8040_v28, %v6769_v30  ;;  %v7139_v28 = vld [vmem:[%s12285_s8 + $0x318] sm:$0xf]  ;;  %v8135_v30 = vld [vmem:[%s12285_s8 + $0x330] sm:$0xf0] }
 0x499   :  { %4822 = vmatpush.bf16.msra.mxu1 %v7584_v3  ;;  %4809 = vmatpush.bf16.msra.mxu0 %v7360_v22  ;;  %v7217_v3 = vld [vmem:[%s12285_s8 + $0x3d4] sm:$0xf0] }
 0x49a   :  { %v7220_v4 = vor.u32 %v8152_v2, %v7217_v3  ;;  %v8254_v2 = vld [vmem:[%s12285_s8 + $0x6e8] sm:$0xf0] }
 0x49c   :  { %4797 = vmatpush.bf16.msrb.mxu3 %v7108_v24  ;;  %4784 = vmatpush.bf16.msrb.mxu2 %v6884_v48  ;;  %v6968_v24 = vor.u32 %v8089_v23, %v6965_v33  ;;  %v8215_v48 = vld [vmem:[%s12285_s8 + $0x5b4] sm:$0xf] }
 0x49d   :  { %4823 = vmatpush.bf16.msra.mxu1 %v7556_v60  ;;  %4810 = vmatpush.bf16.msra.mxu0 %v7332_v38  ;;  %v7472_v25 = vor.u32 %v8215_v48, %v7469_v49  ;;  %v6944_v49 = vor.u32 %v8086_v39, %v6943_v16  ;;  %v7363_v16 = vld [vmem:[%s12285_s8 + $0x4d8] sm:$0xf]  ;;  %v8191_v39 = vld [vmem:[%s12285_s8 + $0x4f0] sm:$0xf0] }
 0x4a0   :  { %4798 = vmatpush.bf16.msrb.mxu3 %v7080_v41  ;;  %4785 = vmatpush.bf16.msrb.mxu2 %v6856_v61  ;;  %v8033_v41 = vld [vmem:[%s12285_s8 + $0x4] sm:$0xf] }
 0x4a1   :  { %4824 = vmatpush.bf16.msra.mxu1 %v7528_v27  ;;  %v6744_v46 = vor.u32 %v8033_v41, %v6741_v42  ;;  %4811 = vmatpush.bf16.msra.mxu0 %v7304_v43  ;;  %v7140_v41 = vor.u32 %v8135_v30, %v7139_v28  ;;  %v8240_v28 = vld [vmem:[%s12285_s8 + $0x678] sm:$0xf0] }
 0x4a4   :  { %4799 = vmatpush.bf16.msrb.mxu3 %v7052_v53  ;;  %4786 = vmatpush.bf16.msrb.mxu2 %v6828_v17  ;;  %v2855_v53 = vperm.slane %v11196_v50, 1 }
 0x4a5   :  { %4825 = vmatpush.bf16.msra.mxu1 %v7500_v40  ;;  %4812 = vmatpush.bf16.msra.mxu0 %v7276_v8 }
 0x4a8   :  { %4800 = vmatpush.bf16.msrb.mxu3 %v7024_v0  ;;  %4787 = vmatpush.bf16.msrb.mxu2 %v6800_v36  ;;  %v7416_v0 = vor.u32 %v8201_v29, %v7413_v63  ;;  %v7167_v36 = vld [vmem:[%s12285_s8 + $0x350] sm:$0xf]  ;;  %v8114_v63 = vld [vmem:[%s12285_s8 + $0x288] sm:$0xf0] }
 0x4a9   :  { %4826 = vmatpush.bf16.msra.mxu1 %v7472_v25  ;;  %4813 = vmatpush.bf16.msra.mxu0 %v7248_v47  ;;  %v7168_v31 = vor.u32 %v8142_v37, %v7167_v36  ;;  %v8072_v47 = vld [vmem:[%s12285_s8 + $0x138] sm:$0xf0]  ;;  %v7055_v29 = vld [vmem:[%s12285_s8 + $0x270] sm:$0xf]  ;;  %v8198_v37 = vld [vmem:[%s12285_s8 + $0x528] sm:$0xf0] }
 0x4aa   :  { %v7391_v36 = vld [vmem:[%s12285_s8 + $0x510] sm:$0xf] }
 0x4ac   :  { %4801 = vmatpush.bf16.msrb.mxu3 %v6996_v14  ;;  %4788 = vmatpush.bf16.msrb.mxu2 %v6772_v34 }
 0x4ad   :  { %4827 = vmatpush.bf16.msra.mxu1 %v7444_v55  ;;  %4814 = vmatpush.bf16.msra.mxu0 %v7220_v4  ;;  %v8121_v55 = vld [vmem:[%s12285_s8 + $0x2c0] sm:$0xf0] }
 0x4b0   :  { %4802 = vmatpush.bf16.msrb.mxu3 %v6968_v24  ;;  %4789 = vmatpush.bf16.msrb.mxu2 %v6744_v46  ;;  %v7111_v46 = vld [vmem:[%s12285_s8 + $0x2e0] sm:$0xf] }
 0x4b1   :  { %4828 = vmatpush.bf16.msra.mxu1 %v7416_v0  ;;  %4815 = vmatpush.bf16.msra.mxu0 %v7192_v12  ;;  %v7112_v9 = vor.u32 %v8128_v44, %v7111_v46  ;;  %v8107_v12 = vld [vmem:[%s12285_s8 + $0x250] sm:$0xf0]  ;;  %v7531_v46 = vld [vmem:[%s12285_s8 + $0x628] sm:$0xf]  ;;  %v8233_v44 = vld [vmem:[%s12285_s8 + $0x640] sm:$0xf0] }
 0x4ef   :  { %v3217_v58 = vpop.f32.mrf.mxu0 }
 0x4f0   :  { %v3218_v61 = vadd.f32 %v3217_v58, %v2855_v53  ;;  %v3230_v26 = vpop.f32.mrf.mxu1  ;;  %v6887_v58 = vld [vmem:[%s12285_s8 + $0x120] sm:$0xf] }
 0x4f1   :  { %v6888_v4 = vor.u32 %v8072_v47, %v6887_v58  ;;  %v6776_v58 = vor.u32 %v8044_v52, %v6775_v51  ;;  %v8104_v52 = vld [vmem:[%s12285_s8 + $0x23c] sm:$0xf] }
 0x4f2   :  { %v3231_v62 = vadd.f32 %v3230_v26, %v3218_v61  ;;  %v7084_v26 = vor.u32 %v8121_v55, %v7083_v54  ;;  %v7532_v54 = vor.u32 %v8233_v44, %v7531_v46  ;;  %v7223_v46 = vld [vmem:[%s12285_s8 + $0x3c0] sm:$0xf]  ;;  %v8156_v44 = vld [vmem:[%s12285_s8 + $0x3d8] sm:$0xf0] }
 0x4f4   :  { %v3287_v5 = vmul.f32 0.5, %v3231_v62 }
 0x4f5   :  { %v3191_v6 = vpop.f32.mrf.mxu2 }
 0x4f6   :  { %8282 = vtanh.f32 %v3287_v5  ;;  %v3192_v7 = vadd.f32 %v3191_v6, %v2854_v1  ;;  %v3204_v17 = vpop.f32.mrf.mxu3  ;;  %v7615_v1 = vld [vmem:[%s12285_s8 + $0x6d0] sm:$0xf]  ;;  %v6859_v6 = vld [vmem:[%s12285_s8 + $0xe8] sm:$0xf] }
 0x4f7   :  { %v3219_v59 = vpop.f32.mrf.mxu0  ;;  %v7616_v10 = vor.u32 %v8254_v2, %v7615_v1  ;;  %v8083_v2 = vld [vmem:[%s12285_s8 + $0x194] sm:$0xf] }
 0x4f8   :  { %v3205_v13 = vadd.f32 %v3204_v17, %v3192_v7  ;;  %v3232_v14 = vpop.f32.mrf.mxu1  ;;  %v8065_v7 = vld [vmem:[%s12285_s8 + $0x100] sm:$0xf0]  ;;  %v7056_v17 = vor.u32 %v8114_v63, %v7055_v29  ;;  %v6747_v29 = vld [vmem:[%s12285_s8 + $0x8] sm:$0xf] }
 0x4f9   :  { %v8247_v14 = vld [vmem:[%s12285_s8 + $0x6b0] sm:$0xf0]  ;;  %v8037_v63 = vld [vmem:[%s12285_s8 + $0x20] sm:$0xf0] }
 0x4fa   :  { %v3286_v19 = vmul.f32 0.5, %v3205_v13  ;;  %v7587_v13 = vld [vmem:[%s12285_s8 + $0x698] sm:$0xf] }
 0x4fc   :  { %v8283_v60 = vpop.eup %8282  ;;  %8284 = vtanh.f32 %v3286_v19 }
 0x4fd   :  { %v3295_v20 = vadd.f32 1.0, %v8283_v60  ;;  %v3193_v21 = vpop.f32.mrf.mxu2  ;;  %v6860_v60 = vor.u32 %v8065_v7, %v6859_v6  ;;  %v8219_v6 = vld [vmem:[%s12285_s8 + $0x5d0] sm:$0xf0]  ;;  %v6748_v7 = vor.u32 %v8037_v63, %v6747_v29 }
 0x4fe   :  { %v3206_v22 = vpop.f32.mrf.mxu3 }
 0x4ff   :  { %v3299_v23 = vmul.f32 0.5, %v3295_v20  ;;  %v3269_v33 = vpop.f32.mrf.mxu0  ;;  %v8058_v20 = vld [vmem:[%s12285_s8 + $0xc8] sm:$0xf0]  ;;  %v7028_v22 = vor.u32 %v8107_v12, %v7027_v11  ;;  %v7113_v11 = vld [vmem:[%s12285_s8 + $0x2fc] sm:$0xf0] }
 0x500   :  { %v3270_v18 = vadd.f32 %v3269_v33, %v2857_v15  ;;  %v3282_v24 = vpop.f32.mrf.mxu1  ;;  %v6831_v15 = vld [vmem:[%s12285_s8 + $0xb0] sm:$0xf]  ;;  %v6999_v33 = vld [vmem:[%s12285_s8 + $0x200] sm:$0xf] }
 0x501   :  { %v11243_v27 = vpack.c.bf16 %v3299_v23, %v3299_v23  ;;  %v7588_v23 = vor.u32 %v8247_v14, %v7587_v13  ;;  %v6832_v30 = vor.u32 %v8058_v20, %v6831_v15  ;;  %v7279_v13 = vld [vmem:[%s12285_s8 + $0x430] sm:$0xf]  ;;  %v8170_v14 = vld [vmem:[%s12285_s8 + $0x448] sm:$0xf0]  ;;  %v6917_v15 = vld [vmem:[%s12285_s8 + $0x174] sm:$0xf0] }
 0x502   :  { %v8285_v32 = vpop.eup %8284  ;;  %v3283_v34 = vadd.f32 %v3282_v24, %v3270_v18  ;;  %v8100_v18 = vld [vmem:[%s12285_s8 + $0x218] sm:$0xf0] }
 0x503   :  { %v3294_v38 = vadd.f32 1.0, %v8285_v32  ;;  %4751 = vmatmul.bf16.vlgmr.msra.gmra.mxu3 %v11243_v27  ;;  %v7392_v32 = vor.u32 %v8198_v37, %v7391_v36  ;;  %v8212_v36 = vld [vmem:[%s12285_s8 + $0x598] sm:$0xf0]  ;;  %v7280_v37 = vor.u32 %v8170_v14, %v7279_v13  ;;  %v8090_v13 = vld [vmem:[%s12285_s8 + $0x1cc] sm:$0xf] }
 0x504   :  { %v3289_v40 = vmul.f32 0.5, %v3283_v34  ;;  %4847 = vmatpush.bf16.msra.mxu3 %v7168_v31  ;;  %v7559_v31 = vld [vmem:[%s12285_s8 + $0x660] sm:$0xf]  ;;  %v6803_v34 = vld [vmem:[%s12285_s8 + $0x78] sm:$0xf] }
 0x505   :  { %v3298_v42 = vmul.f32 0.5, %v3294_v38  ;;  %v3243_v45 = vpop.f32.mrf.mxu2  ;;  %v8051_v38 = vld [vmem:[%s12285_s8 + $0x90] sm:$0xf0]  ;;  %v6973_v14 = vld [vmem:[%s12285_s8 + $0x1e4] sm:$0xf0] }
 0x506   :  { %8286 = vtanh.f32 %v3289_v40  ;;  %v3244_v43 = vadd.f32 %v3243_v45, %v2856_v35  ;;  %v3256_v48 = vpop.f32.mrf.mxu3  ;;  %v7000_v40 = vor.u32 %v8100_v18, %v6999_v33  ;;  %v8093_v45 = vld [vmem:[%s12285_s8 + $0x1e0] sm:$0xf0]  ;;  %v7251_v18 = vld [vmem:[%s12285_s8 + $0x3f8] sm:$0xf] }
 0x507   :  { %v11265_v50 = vpack.c.bf16 %v3298_v42, %v3298_v42  ;;  %v3271_v25 = vpop.f32.mrf.mxu0  ;;  %v6971_v42 = vld [vmem:[%s12285_s8 + $0x1c8] sm:$0xf] }
 0x508   :  { %v3257_v8 = vadd.f32 %v3256_v48, %v3244_v43  ;;  %v3284_v53 = vpop.f32.mrf.mxu1  ;;  %4848 = vmatpush.bf16.msra.mxu3 %v7140_v41  ;;  %v7560_v41 = vor.u32 %v8240_v28, %v7559_v31  ;;  %v6804_v43 = vor.u32 %v8051_v38, %v6803_v34  ;;  %v7364_v48 = vor.u32 %v8191_v39, %v7363_v16  ;;  %v7169_v25 = vld [vmem:[%s12285_s8 + $0x36c] sm:$0xf0]  ;;  %v8069_v28 = vld [vmem:[%s12285_s8 + $0x124] sm:$0xf]  ;;  %v7419_v34 = vld [vmem:[%s12285_s8 + $0x548] sm:$0xf] }
 0x509   :  { %4738 = vmatmul.bf16.vlgmr.msra.gmra.mxu2 %v11265_v50  ;;  %v8184_v53 = vld [vmem:[%s12285_s8 + $0x4b8] sm:$0xf0]  ;;  %v8205_v38 = vld [vmem:[%s12285_s8 + $0x560] sm:$0xf0]  ;;  %v8111_v16 = vld [vmem:[%s12285_s8 + $0x274] sm:$0xf] }
 0x50a   :  { %v3288_v56 = vmul.f32 0.5, %v3257_v8  ;;  %4834 = vmatpush.bf16.msra.mxu2 %v6944_v49  ;;  %v8139_v49 = vld [vmem:[%s12285_s8 + $0x354] sm:$0xf]  ;;  %v7335_v8 = vld [vmem:[%s12285_s8 + $0x4a0] sm:$0xf] }
 0x50b   :  { %v7172_v55 = vor.u32 %v8139_v49, %v7169_v25  ;;  %v7336_v47 = vor.u32 %v8184_v53, %v7335_v8  ;;  %v6861_v49 = vld [vmem:[%s12285_s8 + $0x104] sm:$0xf0]  ;;  %v7224_v8 = vor.u32 %v8156_v44, %v7223_v46  ;;  %v7029_v53 = vld [vmem:[%s12285_s8 + $0x254] sm:$0xf0]  ;;  %v8087_v44 = vld [vmem:[%s12285_s8 + $0x1b0] sm:$0xf0] }
 0x50c   :  { %v8287_v61 = vpop.eup %8286  ;;  %8288 = vtanh.f32 %v3288_v56  ;;  %4849 = vmatpush.bf16.msra.mxu3 %v7112_v9  ;;  %v6972_v9 = vor.u32 %v8093_v45, %v6971_v42  ;;  %v7503_v56 = vld [vmem:[%s12285_s8 + $0x5f0] sm:$0xf]  ;;  %v7032_v29 = vor.u32 %v8104_v52, %v7029_v53  ;;  %v6951_v46 = vld [vmem:[%s12285_s8 + $0x198] sm:$0xf]  ;;  %v7119_v52 = vld [vmem:[%s12285_s8 + $0x2e8] sm:$0xf] }
 0x50d   :  { %v3297_v0 = vadd.f32 1.0, %v8287_v61  ;;  %v3245_v62 = vpop.f32.mrf.mxu2  ;;  %v8132_v61 = vld [vmem:[%s12285_s8 + $0x31c] sm:$0xf]  ;;  %v7617_v42 = vld [vmem:[%s12285_s8 + $0x6ec] sm:$0xf0]  ;;  %v6952_v53 = vor.u32 %v8087_v44, %v6951_v46 }
 0x50e   :  { %v3258_v3 = vpop.f32.mrf.mxu3  ;;  %4835 = vmatpush.bf16.msra.mxu2 %v6916_v57  ;;  %v8226_v57 = vld [vmem:[%s12285_s8 + $0x608] sm:$0xf0]  ;;  %v8177_v62 = vld [vmem:[%s12285_s8 + $0x480] sm:$0xf0] }
 0x50f   :  { %v3301_v5 = vmul.f32 0.5, %v3297_v0  ;;  %v7307_v0 = vld [vmem:[%s12285_s8 + $0x468] sm:$0xf]  ;;  %v7504_v1 = vor.u32 %v8226_v57, %v7503_v56  ;;  %v6945_v3 = vld [vmem:[%s12285_s8 + $0x1ac] sm:$0xf0] }
 0x510   :  { %4850 = vmatpush.bf16.msra.mxu3 %v7084_v26  ;;  %v7141_v26 = vld [vmem:[%s12285_s8 + $0x334] sm:$0xf0]  ;;  %v6948_v12 = vor.u32 %v8083_v2, %v6945_v3  ;;  %v7195_v56 = vld [vmem:[%s12285_s8 + $0x388] sm:$0xf]  ;;  %v8149_v57 = vld [vmem:[%s12285_s8 + $0x3a0] sm:$0xf0] }
 0x511   :  { %v11307_v59 = vpack.c.bf16 %v3301_v5, %v3301_v5  ;;  %v7475_v5 = vld [vmem:[%s12285_s8 + $0x5b8] sm:$0xf]  ;;  %v8237_v2 = vld [vmem:[%s12285_s8 + $0x664] sm:$0xf]  ;;  %v7561_v3 = vld [vmem:[%s12285_s8 + $0x67c] sm:$0xf0] }
 0x512   :  { %v8289_v19 = vpop.eup %8288  ;;  %4836 = vmatpush.bf16.msra.mxu2 %v6888_v4  ;;  %v7144_v4 = vor.u32 %v8132_v61, %v7141_v26  ;;  %v8195_v61 = vld [vmem:[%s12285_s8 + $0x514] sm:$0xf]  ;;  %v7393_v26 = vld [vmem:[%s12285_s8 + $0x52c] sm:$0xf0] }
 0x513   :  { %v3296_v21 = vadd.f32 1.0, %v8289_v19  ;;  %4777 = vmatmul.bf16.vlgmr.msrb.gmra.mxu1 %v11307_v59  ;;  %4803 = vmatmul.bf16.vlgmr.msrb.gmra.mxu3 %v11243_v27  ;;  %v7476_v19 = vor.u32 %v8219_v6, %v7475_v5  ;;  %v7396_v5 = vor.u32 %v8195_v61, %v7393_v26  ;;  %v8048_v6 = vld [vmem:[%s12285_s8 + $0x7c] sm:$0xf]  ;;  %v7449_v61 = vld [vmem:[%s12285_s8 + $0x59c] sm:$0xf0] }
 0x514   :  { %4851 = vmatpush.bf16.msra.mxu3 %v7056_v17  ;;  %4873 = vmatpush.bf16.msrb.mxu1 %v7616_v10  ;;  %v7308_v17 = vor.u32 %v8177_v62, %v7307_v0  ;;  %v8125_v10 = vld [vmem:[%s12285_s8 + $0x2e4] sm:$0xf]  ;;  %v7196_v62 = vor.u32 %v8149_v57, %v7195_v56  ;;  %v6923_v56 = vld [vmem:[%s12285_s8 + $0x160] sm:$0xf]  ;;  %v8080_v57 = vld [vmem:[%s12285_s8 + $0x178] sm:$0xf0] }
 0x515   :  { %v3300_v24 = vmul.f32 0.5, %v3296_v21  ;;  %v7116_v20 = vor.u32 %v8125_v10, %v7113_v11  ;;  %v7447_v21 = vld [vmem:[%s12285_s8 + $0x580] sm:$0xf]  ;;  %v8097_v0 = vld [vmem:[%s12285_s8 + $0x204] sm:$0xf] }
 0x516   :  { %4837 = vmatpush.bf16.msra.mxu2 %v6860_v60  ;;  %v8076_v60 = vld [vmem:[%s12285_s8 + $0x15c] sm:$0xf]  ;;  %v7448_v31 = vor.u32 %v8212_v36, %v7447_v21  ;;  %v7365_v10 = vld [vmem:[%s12285_s8 + $0x4f4] sm:$0xf0]  ;;  %v8143_v36 = vld [vmem:[%s12285_s8 + $0x370] sm:$0xf0] }
 0x517   :  { %v11347_v35 = vpack.c.bf16 %v3300_v24, %v3300_v24  ;;  %v6920_v33 = vor.u32 %v8076_v60, %v6917_v15  ;;  %v8163_v24 = vld [vmem:[%s12285_s8 + $0x410] sm:$0xf0]  ;;  %v7533_v60 = vld [vmem:[%s12285_s8 + $0x644] sm:$0xf0]  ;;  %v7175_v21 = vld [vmem:[%s12285_s8 + $0x358] sm:$0xf] }
 0x518   :  { %4852 = vmatpush.bf16.msra.mxu3 %v7028_v22  ;;  %4874 = vmatpush.bf16.msrb.mxu1 %v7588_v23  ;;  %v8118_v22 = vld [vmem:[%s12285_s8 + $0x2ac] sm:$0xf]  ;;  %v7085_v23 = vld [vmem:[%s12285_s8 + $0x2c4] sm:$0xf0]  ;;  %v7252_v39 = vor.u32 %v8163_v24, %v7251_v18  ;;  %v6976_v18 = vor.u32 %v8090_v13, %v6973_v14  ;;  %v8255_v13 = vld [vmem:[%s12285_s8 + $0x6f0] sm:$0xf0] }
 0x519   :  { %4764 = vmatmul.bf16.vlgmr.msrb.gmra.mxu0 %v11347_v35  ;;  %4790 = vmatmul.bf16.vlgmr.msrb.gmra.mxu2 %v11265_v50 }
 0x51a   :  { %4838 = vmatpush.bf16.msra.mxu2 %v6832_v30  ;;  %4860 = vmatpush.bf16.msrb.mxu0 %v7392_v32  ;;  %v6889_v30 = vld [vmem:[%s12285_s8 + $0x13c] sm:$0xf0]  ;;  %v7088_v32 = vor.u32 %v8118_v22, %v7085_v23  ;;  %v8181_v23 = vld [vmem:[%s12285_s8 + $0x4a4] sm:$0xf] }
 0x51b   :  { %v6892_v45 = vor.u32 %v8069_v28, %v6889_v30  ;;  %v6777_v22 = vld [vmem:[%s12285_s8 + $0x5c] sm:$0xf0]  ;;  %v8223_v28 = vld [vmem:[%s12285_s8 + $0x5f4] sm:$0xf]  ;;  %v7505_v30 = vld [vmem:[%s12285_s8 + $0x60c] sm:$0xf0] }
 0x51c   :  { %4853 = vmatpush.bf16.msra.mxu3 %v7000_v40  ;;  %4875 = vmatpush.bf16.msrb.mxu1 %v7560_v41  ;;  %v7057_v40 = vld [vmem:[%s12285_s8 + $0x28c] sm:$0xf0]  ;;  %v8251_v41 = vld [vmem:[%s12285_s8 + $0x6d4] sm:$0xf] }
 0x51d   :  { %v7060_v25 = vor.u32 %v8111_v16, %v7057_v40  ;;  %v7620_v51 = vor.u32 %v8251_v41, %v7617_v42  ;;  %v8136_v16 = vld [vmem:[%s12285_s8 + $0x338] sm:$0xf0]  ;;  %v6749_v40 = vld [vmem:[%s12285_s8 + $0x24] sm:$0xf0]  ;;  %v8174_v41 = vld [vmem:[%s12285_s8 + $0x46c] sm:$0xf] }
 0x51e   :  { %4839 = vmatpush.bf16.msra.mxu2 %v6804_v43  ;;  %4861 = vmatpush.bf16.msrb.mxu0 %v7364_v48  ;;  %v7420_v43 = vor.u32 %v8205_v38, %v7419_v34  ;;  %v8062_v48 = vld [vmem:[%s12285_s8 + $0xec] sm:$0xf]  ;;  %v7147_v38 = vld [vmem:[%s12285_s8 + $0x320] sm:$0xf]  ;;  %v7309_v42 = vld [vmem:[%s12285_s8 + $0x484] sm:$0xf0] }
 0x520   :  { %4854 = vmatpush.bf16.msra.mxu3 %v6972_v9  ;;  %4876 = vmatpush.bf16.msrb.mxu1 %v7532_v54  ;;  %v8244_v9 = vld [vmem:[%s12285_s8 + $0x69c] sm:$0xf]  ;;  %v7589_v54 = vld [vmem:[%s12285_s8 + $0x6b4] sm:$0xf0] }
 0x521   :  { %v7592_v63 = vor.u32 %v8244_v9, %v7589_v54  ;;  %v8167_v9 = vld [vmem:[%s12285_s8 + $0x434] sm:$0xf]  ;;  %v7281_v54 = vld [vmem:[%s12285_s8 + $0x44c] sm:$0xf0] }
 0x522   :  { %4840 = vmatpush.bf16.msra.mxu2 %v6776_v58  ;;  %4862 = vmatpush.bf16.msrb.mxu0 %v7336_v47  ;;  %v8055_v58 = vld [vmem:[%s12285_s8 + $0xb4] sm:$0xf]  ;;  %v6833_v47 = vld [vmem:[%s12285_s8 + $0xcc] sm:$0xf0]  ;;  %v7284_v26 = vor.u32 %v8167_v9, %v7281_v54  ;;  %v8094_v54 = vld [vmem:[%s12285_s8 + $0x1e8] sm:$0xf0] }
 0x523   :  { %4829 = vmatmul.bf16.vlgmr.msra.gmra.mxu1 %v11307_v59  ;;  %4855 = vmatmul.bf16.vlgmr.msra.gmra.mxu3 %v11243_v27 }
 0x524   :  { %4899 = vmatpush.bf16.msrb.mxu3 %v7172_v55  ;;  %4877 = vmatpush.bf16.msrb.mxu1 %v7504_v1  ;;  %v6864_v55 = vor.u32 %v8062_v48, %v6861_v49  ;;  %v7001_v1 = vld [vmem:[%s12285_s8 + $0x21c] sm:$0xf0]  ;;  %v8216_v48 = vld [vmem:[%s12285_s8 + $0x5bc] sm:$0xf]  ;;  %v7477_v49 = vld [vmem:[%s12285_s8 + $0x5d4] sm:$0xf0] }
 0x525   :  { %v7004_v11 = vor.u32 %v8097_v0, %v7001_v1  ;;  %v6924_v0 = vor.u32 %v8080_v57, %v6923_v56  ;;  %v7253_v1 = vld [vmem:[%s12285_s8 + $0x414] sm:$0xf0]  ;;  %v8234_v56 = vld [vmem:[%s12285_s8 + $0x648] sm:$0xf0] }
 0x526   :  { %4841 = vmatpush.bf16.msra.mxu2 %v6748_v7  ;;  %4863 = vmatpush.bf16.msrb.mxu0 %v7308_v17  ;;  %v6805_v7 = vld [vmem:[%s12285_s8 + $0x94] sm:$0xf0]  ;;  %v8188_v17 = vld [vmem:[%s12285_s8 + $0x4dc] sm:$0xf] }
 0x527   :  { %v6808_v15 = vor.u32 %v8048_v6, %v6805_v7  ;;  %v8202_v6 = vld [vmem:[%s12285_s8 + $0x54c] sm:$0xf]  ;;  %v7421_v7 = vld [vmem:[%s12285_s8 + $0x564] sm:$0xf0] }
 0x528   :  { %4900 = vmatpush.bf16.msrb.mxu3 %v7144_v4  ;;  %4878 = vmatpush.bf16.msrb.mxu1 %v7476_v19  ;;  %v6836_v4 = vor.u32 %v8055_v58, %v6833_v47  ;;  %v8230_v19 = vld [vmem:[%s12285_s8 + $0x62c] sm:$0xf]  ;;  %v8209_v47 = vld [vmem:[%s12285_s8 + $0x584] sm:$0xf] }
 0x529   :  { %4816 = vmatmul.bf16.vlgmr.msra.gmra.mxu0 %v11347_v35  ;;  %4842 = vmatmul.bf16.vlgmr.msra.gmra.mxu2 %v11265_v50  ;;  %v7536_v24 = vor.u32 %v8230_v19, %v7533_v60  ;;  %v8153_v19 = vld [vmem:[%s12285_s8 + $0x3c4] sm:$0xf]  ;;  %v7225_v60 = vld [vmem:[%s12285_s8 + $0x3dc] sm:$0xf0] }
 0x52a   :  { %4886 = vmatpush.bf16.msrb.mxu2 %v6948_v12  ;;  %4864 = vmatpush.bf16.msrb.mxu0 %v7280_v37  ;;  %v7564_v12 = vor.u32 %v8237_v2, %v7561_v3  ;;  %v8041_v37 = vld [vmem:[%s12285_s8 + $0x44] sm:$0xf]  ;;  %v7452_v2 = vor.u32 %v8209_v47, %v7449_v61  ;;  %v6895_v3 = vld [vmem:[%s12285_s8 + $0x128] sm:$0xf]  ;;  %v8140_v47 = vld [vmem:[%s12285_s8 + $0x35c] sm:$0xf] }
 0x52b   :  { %v7177_v61 = vld [vmem:[%s12285_s8 + $0x374] sm:$0xf0] }
 0x52c   :  { %4901 = vmatpush.bf16.msrb.mxu3 %v7116_v20  ;;  %4879 = vmatpush.bf16.msrb.mxu1 %v7448_v31  ;;  %v7368_v20 = vor.u32 %v8188_v17, %v7365_v10  ;;  %v7176_v31 = vor.u32 %v8143_v36, %v7175_v21  ;;  %v7063_v17 = vld [vmem:[%s12285_s8 + $0x278] sm:$0xf]  ;;  %v8066_v21 = vld [vmem:[%s12285_s8 + $0x108] sm:$0xf0] }
 0x52e   :  { %4887 = vmatpush.bf16.msrb.mxu2 %v6920_v33  ;;  %4865 = vmatpush.bf16.msrb.mxu0 %v7252_v39  ;;  %v7337_v33 = vld [vmem:[%s12285_s8 + $0x4bc] sm:$0xf0]  ;;  %v8034_v39 = vld [vmem:[%s12285_s8 + $0xc] sm:$0xf] }
 0x52f   :  { %v7340_v34 = vor.u32 %v8181_v23, %v7337_v33  ;;  %v7228_v23 = vor.u32 %v8153_v19, %v7225_v60  ;;  %v8108_v33 = vld [vmem:[%s12285_s8 + $0x258] sm:$0xf0]  ;;  %v6953_v19 = vld [vmem:[%s12285_s8 + $0x1b4] sm:$0xf0] }
 0x530   :  { %4902 = vmatpush.bf16.msrb.mxu3 %v7088_v32  ;;  %4880 = vmatpush.bf16.msrb.mxu1 %v7420_v43  ;;  %v6780_v32 = vor.u32 %v8041_v37, %v6777_v22  ;;  %v7148_v43 = vor.u32 %v8136_v16, %v7147_v38  ;;  %v7035_v22 = vld [vmem:[%s12285_s8 + $0x240] sm:$0xf]  ;;  %v7399_v38 = vld [vmem:[%s12285_s8 + $0x518] sm:$0xf]  ;;  %v8199_v16 = vld [vmem:[%s12285_s8 + $0x530] sm:$0xf0] }
 0x531   :  { %v7400_v44 = vor.u32 %v8199_v16, %v7399_v38  ;;  %v7455_v38 = vld [vmem:[%s12285_s8 + $0x588] sm:$0xf]  ;;  %v8213_v16 = vld [vmem:[%s12285_s8 + $0x5a0] sm:$0xf0] }
 0x532   :  { %4888 = vmatpush.bf16.msrb.mxu2 %v6892_v45  ;;  %4866 = vmatpush.bf16.msrb.mxu0 %v7224_v8  ;;  %v7508_v45 = vor.u32 %v8223_v28, %v7505_v30  ;;  %v8129_v8 = vld [vmem:[%s12285_s8 + $0x300] sm:$0xf0]  ;;  %v8146_v28 = vld [vmem:[%s12285_s8 + $0x38c] sm:$0xf]  ;;  %v7197_v30 = vld [vmem:[%s12285_s8 + $0x3a4] sm:$0xf0] }
 0x533   :  { %4881 = vmatmul.bf16.vlgmr.msrb.gmra.mxu1 %v11307_v59  ;;  %v7120_v58 = vor.u32 %v8129_v8, %v7119_v52  ;;  %v8192_v52 = vld [vmem:[%s12285_s8 + $0x4f8] sm:$0xf0] }
 0x534   :  { %4903 = vmatpush.bf16.msrb.mxu3 %v7060_v25  ;;  %4925 = vmatpush.bf16.msra.mxu1 %v7620_v51  ;;  %v6752_v25 = vor.u32 %v8034_v39, %v6749_v40  ;;  %v7312_v51 = vor.u32 %v8174_v41, %v7309_v42  ;;  %v7036_v39 = vor.u32 %v8108_v33, %v7035_v22  ;;  %v7007_v42 = vld [vmem:[%s12285_s8 + $0x208] sm:$0xf]  ;;  %v8126_v22 = vld [vmem:[%s12285_s8 + $0x2ec] sm:$0xf] }
 0x535   :  { %v7200_v41 = vor.u32 %v8146_v28, %v7197_v30  ;;  %v7121_v33 = vld [vmem:[%s12285_s8 + $0x304] sm:$0xf0]  ;;  %v6925_v28 = vld [vmem:[%s12285_s8 + $0x17c] sm:$0xf0] }
 0x536   :  { %4889 = vmatpush.bf16.msrb.mxu2 %v6864_v55  ;;  %4867 = vmatpush.bf16.msrb.mxu0 %v7196_v62  ;;  %v7480_v55 = vor.u32 %v8216_v48, %v7477_v49  ;;  %v8160_v62 = vld [vmem:[%s12285_s8 + $0x3fc] sm:$0xf]  ;;  %v8241_v48 = vld [vmem:[%s12285_s8 + $0x680] sm:$0xf0]  ;;  %v6811_v49 = vld [vmem:[%s12285_s8 + $0x80] sm:$0xf] }
 0x537   :  { %v7256_v10 = vor.u32 %v8160_v62, %v7253_v1 }
 0x538   :  { %4904 = vmatpush.bf16.msrb.mxu3 %v7032_v29  ;;  %4926 = vmatpush.bf16.msra.mxu1 %v7592_v63  ;;  %v7091_v29 = vld [vmem:[%s12285_s8 + $0x2b0] sm:$0xf]  ;;  %v8122_v63 = vld [vmem:[%s12285_s8 + $0x2c8] sm:$0xf0] }
 0x539   :  { %4868 = vmatmul.bf16.vlgmr.msrb.gmra.mxu0 %v11347_v35 }
 0x53a   :  { %4890 = vmatpush.bf16.msrb.mxu2 %v6836_v4  ;;  %4912 = vmatpush.bf16.msra.mxu0 %v7396_v5  ;;  %v8073_v4 = vld [vmem:[%s12285_s8 + $0x140] sm:$0xf0]  ;;  %v7092_v5 = vor.u32 %v8122_v63, %v7091_v29  ;;  %v7343_v63 = vld [vmem:[%s12285_s8 + $0x4a8] sm:$0xf] }
 0x53b   :  { %v6896_v14 = vor.u32 %v8073_v4, %v6895_v3  ;;  %v8045_v29 = vld [vmem:[%s12285_s8 + $0x60] sm:$0xf0]  ;;  %v7511_v3 = vld [vmem:[%s12285_s8 + $0x5f8] sm:$0xf]  ;;  %v8227_v4 = vld [vmem:[%s12285_s8 + $0x610] sm:$0xf0] }
 0x53c   :  { %4905 = vmatpush.bf16.msrb.mxu3 %v7004_v11  ;;  %4927 = vmatpush.bf16.msra.mxu1 %v7564_v12  ;;  %v8115_v11 = vld [vmem:[%s12285_s8 + $0x290] sm:$0xf0]  ;;  %v7623_v12 = vld [vmem:[%s12285_s8 + $0x6d8] sm:$0xf]  ;;  %v7512_v60 = vor.u32 %v8227_v4, %v7511_v3  ;;  %v7203_v3 = vld [vmem:[%s12285_s8 + $0x390] sm:$0xf] }
 0x53d   :  { %v7064_v36 = vor.u32 %v8115_v11, %v7063_v17  ;;  %v7624_v37 = vor.u32 %v8255_v13, %v7623_v12  ;;  %v7149_v17 = vld [vmem:[%s12285_s8 + $0x33c] sm:$0xf0]  ;;  %v8038_v11 = vld [vmem:[%s12285_s8 + $0x28] sm:$0xf0]  ;;  %v7315_v12 = vld [vmem:[%s12285_s8 + $0x470] sm:$0xf] }
 0x53e   :  { %4891 = vmatpush.bf16.msrb.mxu2 %v6808_v15  ;;  %4913 = vmatpush.bf16.msra.mxu0 %v7368_v20  ;;  %v7424_v15 = vor.u32 %v8202_v6, %v7421_v7  ;;  %v6867_v20 = vld [vmem:[%s12285_s8 + $0xf0] sm:$0xf]  ;;  %v8133_v7 = vld [vmem:[%s12285_s8 + $0x324] sm:$0xf]  ;;  %v8178_v13 = vld [vmem:[%s12285_s8 + $0x488] sm:$0xf0] }
 0x53f   :  { %v8150_v4 = vld [vmem:[%s12285_s8 + $0x3a8] sm:$0xf0] }
 0x540   :  { %4906 = vmatpush.bf16.msrb.mxu3 %v6976_v18  ;;  %4928 = vmatpush.bf16.msra.mxu1 %v7536_v24  ;;  %v7595_v18 = vld [vmem:[%s12285_s8 + $0x6a0] sm:$0xf]  ;;  %v8248_v24 = vld [vmem:[%s12285_s8 + $0x6b8] sm:$0xf0] }
 0x541   :  { %v7596_v40 = vor.u32 %v8248_v24, %v7595_v18  ;;  %v7287_v18 = vld [vmem:[%s12285_s8 + $0x438] sm:$0xf]  ;;  %v8171_v24 = vld [vmem:[%s12285_s8 + $0x450] sm:$0xf0] }
 0x542   :  { %4892 = vmatpush.bf16.msrb.mxu2 %v6780_v32  ;;  %4914 = vmatpush.bf16.msra.mxu0 %v7340_v34  ;;  %v6839_v32 = vld [vmem:[%s12285_s8 + $0xb8] sm:$0xf]  ;;  %v8059_v34 = vld [vmem:[%s12285_s8 + $0xd0] sm:$0xf0] }
 0x543   :  { %4907 = vmatmul.bf16.vlgmr.msrb.gmra.mxu3 %v11243_v27  ;;  %v6840_v46 = vor.u32 %v8059_v34, %v6839_v32  ;;  %v7124_v32 = vor.u32 %v8126_v22, %v7121_v33  ;;  %v7288_v34 = vor.u32 %v8171_v24, %v7287_v18  ;;  %v7373_v22 = vld [vmem:[%s12285_s8 + $0x4fc] sm:$0xf0]  ;;  %v8091_v33 = vld [vmem:[%s12285_s8 + $0x1d4] sm:$0xf] }
 0x544   :  { %4951 = vmatpush.bf16.msra.mxu3 %v7176_v31  ;;  %4929 = vmatpush.bf16.msra.mxu1 %v7508_v45  ;;  %v6868_v31 = vor.u32 %v8066_v21, %v6867_v20  ;;  %v8101_v45 = vld [vmem:[%s12285_s8 + $0x220] sm:$0xf0]  ;;  %v7316_v21 = vor.u32 %v8178_v13, %v7315_v12  ;;  %v7204_v12 = vor.u32 %v8150_v4, %v7203_v3 }
 0x545   :  { %v7008_v8 = vor.u32 %v8101_v45, %v7007_v42  ;;  %v7259_v42 = vld [vmem:[%s12285_s8 + $0x400] sm:$0xf]  ;;  %v8164_v45 = vld [vmem:[%s12285_s8 + $0x418] sm:$0xf0]  ;;  %v8081_v3 = vld [vmem:[%s12285_s8 + $0x180] sm:$0xf0] }
 0x546   :  { %4893 = vmatpush.bf16.msrb.mxu2 %v6752_v25  ;;  %4915 = vmatpush.bf16.msra.mxu0 %v7312_v51  ;;  %v8052_v25 = vld [vmem:[%s12285_s8 + $0x98] sm:$0xf0]  ;;  %v7371_v51 = vld [vmem:[%s12285_s8 + $0x4e0] sm:$0xf] }
 0x547   :  { %v6812_v57 = vor.u32 %v8052_v25, %v6811_v49  ;;  %v7260_v25 = vor.u32 %v8164_v45, %v7259_v42 }
 0x548   :  { %4952 = vmatpush.bf16.msra.mxu3 %v7148_v43  ;;  %4930 = vmatpush.bf16.msra.mxu1 %v7480_v55  ;;  %v7567_v43 = vld [vmem:[%s12285_s8 + $0x668] sm:$0xf]  ;;  %v7539_v55 = vld [vmem:[%s12285_s8 + $0x630] sm:$0xf] }
 0x549   :  { %4894 = vmatmul.bf16.vlgmr.msrb.gmra.mxu2 %v11265_v50  ;;  %v7568_v9 = vor.u32 %v8241_v48, %v7567_v43  ;;  %v7540_v1 = vor.u32 %v8234_v56, %v7539_v55  ;;  %v7456_v43 = vor.u32 %v8213_v16, %v7455_v38  ;;  %v7427_v48 = vld [vmem:[%s12285_s8 + $0x550] sm:$0xf]  ;;  %v7231_v55 = vld [vmem:[%s12285_s8 + $0x3c8] sm:$0xf]  ;;  %v8157_v56 = vld [vmem:[%s12285_s8 + $0x3e0] sm:$0xf0] }
 0x54a   :  { %4938 = vmatpush.bf16.msra.mxu2 %v6952_v53  ;;  %4916 = vmatpush.bf16.msra.mxu0 %v7284_v26  ;;  %v6979_v53 = vld [vmem:[%s12285_s8 + $0x1d0] sm:$0xf]  ;;  %v6783_v26 = vld [vmem:[%s12285_s8 + $0x48] sm:$0xf]  ;;  %v8144_v38 = vld [vmem:[%s12285_s8 + $0x378] sm:$0xf0] }
 0x54b   :  { %v6980_v62 = vor.u32 %v8094_v54, %v6979_v53  ;;  %v7625_v54 = vld [vmem:[%s12285_s8 + $0x6f4] sm:$0xf0]  ;;  %v8042_v16 = vld [vmem:[%s12285_s8 + $0x4c] sm:$0xf] }
 0x54c   :  { %4953 = vmatpush.bf16.msra.mxu3 %v7120_v58  ;;  %4931 = vmatpush.bf16.msra.mxu1 %v7452_v2  ;;  %v7372_v58 = vor.u32 %v8192_v52, %v7371_v51  ;;  %v7180_v2 = vor.u32 %v8140_v47, %v7177_v61  ;;  %v8206_v51 = vld [vmem:[%s12285_s8 + $0x568] sm:$0xf0]  ;;  %v8112_v52 = vld [vmem:[%s12285_s8 + $0x27c] sm:$0xf] }
 0x54d   :  { %v7428_v47 = vor.u32 %v8206_v51, %v7427_v48  ;;  %v8137_v51 = vld [vmem:[%s12285_s8 + $0x340] sm:$0xf0] }
 0x54e   :  { %4939 = vmatpush.bf16.msra.mxu2 %v6924_v0  ;;  %4917 = vmatpush.bf16.msra.mxu0 %v7256_v10  ;;  %v8185_v0 = vld [vmem:[%s12285_s8 + $0x4c0] sm:$0xf0]  ;;  %v6755_v10 = vld [vmem:[%s12285_s8 + $0x10] sm:$0xf] }
 0x54f   :  { %v7344_v6 = vor.u32 %v8185_v0, %v7343_v63  ;;  %v6756_v20 = vor.u32 %v8038_v11, %v6755_v10  ;;  %v7037_v63 = vld [vmem:[%s12285_s8 + $0x25c] sm:$0xf0]  ;;  %v7232_v0 = vor.u32 %v8157_v56, %v7231_v55  ;;  %v8088_v55 = vld [vmem:[%s12285_s8 + $0x1b8] sm:$0xf0] }
 0x550   :  { %4954 = vmatpush.bf16.msra.mxu3 %v7092_v5  ;;  %4932 = vmatpush.bf16.msra.mxu1 %v7424_v15  ;;  %v6784_v5 = vor.u32 %v8045_v29, %v6783_v26  ;;  %v7152_v15 = vor.u32 %v8133_v7, %v7149_v17  ;;  %v8105_v29 = vld [vmem:[%s12285_s8 + $0x244] sm:$0xf]  ;;  %v8196_v7 = vld [vmem:[%s12285_s8 + $0x51c] sm:$0xf]  ;;  %v7401_v17 = vld [vmem:[%s12285_s8 + $0x534] sm:$0xf0] }
 0x551   :  { %v7040_v10 = vor.u32 %v8105_v29, %v7037_v63  ;;  %v7127_v29 = vld [vmem:[%s12285_s8 + $0x2f0] sm:$0xf] }
 0x552   :  { %4940 = vmatpush.bf16.msra.mxu2 %v6896_v14  ;;  %4918 = vmatpush.bf16.msra.mxu0 %v7228_v23  ;;  %v8084_v14 = vld [vmem:[%s12285_s8 + $0x19c] sm:$0xf] }
 0x553   :  { %4933 = vmatmul.bf16.vlgmr.msra.gmra.mxu1 %v11307_v59  ;;  %v6956_v23 = vor.u32 %v8084_v14, %v6953_v19  ;;  %v8098_v14 = vld [vmem:[%s12285_s8 + $0x20c] sm:$0xf]  ;;  %v7009_v19 = vld [vmem:[%s12285_s8 + $0x224] sm:$0xf0] }
 0x554   :  { %4955 = vmatpush.bf16.msra.mxu3 %v7064_v36  ;;  %4977 = vmatpush.bf16.msrb.mxu1 %v7624_v37  ;;  %v7483_v36 = vld [vmem:[%s12285_s8 + $0x5c0] sm:$0xf]  ;;  %v8220_v37 = vld [vmem:[%s12285_s8 + $0x5d8] sm:$0xf0] }
 0x555   :  { %v7484_v30 = vor.u32 %v8220_v37, %v7483_v36  ;;  %v6813_v36 = vld [vmem:[%s12285_s8 + $0x9c] sm:$0xf0]  ;;  %v8189_v37 = vld [vmem:[%s12285_s8 + $0x4e4] sm:$0xf] }
 0x556   :  { %4941 = vmatpush.bf16.msra.mxu2 %v6868_v31  ;;  %4919 = vmatpush.bf16.msra.mxu0 %v7200_v41  ;;  %v8077_v31 = vld [vmem:[%s12285_s8 + $0x164] sm:$0xf]  ;;  %v7093_v41 = vld [vmem:[%s12285_s8 + $0x2cc] sm:$0xf0] }
 0x558   :  { %4956 = vmatpush.bf16.msra.mxu3 %v7036_v39  ;;  %4978 = vmatpush.bf16.msrb.mxu1 %v7596_v40  ;;  %v8119_v39 = vld [vmem:[%s12285_s8 + $0x2b4] sm:$0xf]  ;;  %v6928_v40 = vor.u32 %v8077_v31, %v6925_v28  ;;  %v6981_v31 = vld [vmem:[%s12285_s8 + $0x1ec] sm:$0xf0] }
 0x559   :  { %4920 = vmatmul.bf16.vlgmr.msra.gmra.mxu0 %v11347_v35  ;;  %v7096_v49 = vor.u32 %v8119_v39, %v7093_v41  ;;  %v8231_v28 = vld [vmem:[%s12285_s8 + $0x634] sm:$0xf]  ;;  %v6785_v39 = vld [vmem:[%s12285_s8 + $0x64] sm:$0xf0]  ;;  %v6984_v42 = vor.u32 %v8091_v33, %v6981_v31  ;;  %v8154_v31 = vld [vmem:[%s12285_s8 + $0x3cc] sm:$0xf] }
 0x55a   :  { %4942 = vmatpush.bf16.msra.mxu2 %v6840_v46  ;;  %4964 = vmatpush.bf16.msrb.mxu0 %v7400_v44  ;;  %v8070_v46 = vld [vmem:[%s12285_s8 + $0x12c] sm:$0xf]  ;;  %v6897_v44 = vld [vmem:[%s12285_s8 + $0x144] sm:$0xf0]  ;;  %v6788_v48 = vor.u32 %v8042_v16, %v6785_v39 }
 0x55b   :  { %v6900_v53 = vor.u32 %v8070_v46, %v6897_v44  ;;  %v7345_v41 = vld [vmem:[%s12285_s8 + $0x4c4] sm:$0xf0]  ;;  %v8224_v44 = vld [vmem:[%s12285_s8 + $0x5fc] sm:$0xf] }
 0x55c   :  { %4957 = vmatpush.bf16.msra.mxu3 %v7008_v8  ;;  %4979 = vmatpush.bf16.msrb.mxu1 %v7568_v9  ;;  %v7065_v8 = vld [vmem:[%s12285_s8 + $0x294] sm:$0xf0]  ;;  %v8252_v9 = vld [vmem:[%s12285_s8 + $0x6dc] sm:$0xf] }
 0x55d   :  { %v7068_v61 = vor.u32 %v8112_v52, %v7065_v8  ;;  %v7628_v26 = vor.u32 %v8252_v9, %v7625_v54  ;;  %v8035_v52 = vld [vmem:[%s12285_s8 + $0x14] sm:$0xf]  ;;  %v6757_v8 = vld [vmem:[%s12285_s8 + $0x2c] sm:$0xf0]  ;;  %v6959_v54 = vld [vmem:[%s12285_s8 + $0x1a0] sm:$0xf] }
 0x55e   :  { %4943 = vmatpush.bf16.msra.mxu2 %v6812_v57  ;;  %4965 = vmatpush.bf16.msrb.mxu0 %v7372_v58  ;;  %v8063_v57 = vld [vmem:[%s12285_s8 + $0xf4] sm:$0xf]  ;;  %v6869_v58 = vld [vmem:[%s12285_s8 + $0x10c] sm:$0xf0]  ;;  %v6960_v63 = vor.u32 %v8088_v55, %v6959_v54 }
 0x55f   :  { %v7317_v9 = vld [vmem:[%s12285_s8 + $0x48c] sm:$0xf0] }
 0x560   :  { %4958 = vmatpush.bf16.msra.mxu3 %v6980_v62  ;;  %4980 = vmatpush.bf16.msrb.mxu1 %v7540_v1  ;;  %v6872_v62 = vor.u32 %v8063_v57, %v6869_v58  ;;  %v8245_v1 = vld [vmem:[%s12285_s8 + $0x6a4] sm:$0xf]  ;;  %v6760_v58 = vor.u32 %v8035_v52, %v6757_v8  ;;  %v8200_v52 = vld [vmem:[%s12285_s8 + $0x538] sm:$0xf0] }
 0x562   :  { %4944 = vmatpush.bf16.msra.mxu2 %v6784_v5  ;;  %4966 = vmatpush.bf16.msrb.mxu0 %v7344_v6  ;;  %v8056_v5 = vld [vmem:[%s12285_s8 + $0xbc] sm:$0xf]  ;;  %v6841_v6 = vld [vmem:[%s12285_s8 + $0xd4] sm:$0xf0] }
 0x563   :  { %4959 = vmatmul.bf16.vlgmr.msra.gmra.mxu3 %v11243_v27  ;;  %v6844_v13 = vor.u32 %v8056_v5, %v6841_v6 }
 0x564   :  { %5003 = vmatpush.bf16.msrb.mxu3 %v7180_v2  ;;  %4981 = vmatpush.bf16.msrb.mxu1 %v7512_v60  ;;  %v7597_v2 = vld [vmem:[%s12285_s8 + $0x6bc] sm:$0xf0]  ;;  %v8238_v60 = vld [vmem:[%s12285_s8 + $0x66c] sm:$0xf] }
 0x565   :  { %v7600_v11 = vor.u32 %v8245_v1, %v7597_v2  ;;  %v7289_v1 = vld [vmem:[%s12285_s8 + $0x454] sm:$0xf0]  ;;  %v6931_v2 = vld [vmem:[%s12285_s8 + $0x168] sm:$0xf] }
 0x566   :  { %4945 = vmatpush.bf16.msra.mxu2 %v6756_v20  ;;  %4967 = vmatpush.bf16.msrb.mxu0 %v7316_v21  ;;  %v7569_v20 = vld [vmem:[%s12285_s8 + $0x684] sm:$0xf0]  ;;  %v8049_v21 = vld [vmem:[%s12285_s8 + $0x84] sm:$0xf] }
 0x567   :  { %v7572_v18 = vor.u32 %v8238_v60, %v7569_v20  ;;  %v6816_v24 = vor.u32 %v8049_v21, %v6813_v36  ;;  %v8074_v60 = vld [vmem:[%s12285_s8 + $0x148] sm:$0xf0]  ;;  %v8203_v20 = vld [vmem:[%s12285_s8 + $0x554] sm:$0xf] }
 0x568   :  { %5004 = vmatpush.bf16.msrb.mxu3 %v7152_v15  ;;  %4982 = vmatpush.bf16.msrb.mxu1 %v7484_v30  ;;  %v7404_v15 = vor.u32 %v8196_v7, %v7401_v17  ;;  %v7541_v30 = vld [vmem:[%s12285_s8 + $0x64c] sm:$0xf0]  ;;  %v8210_v7 = vld [vmem:[%s12285_s8 + $0x58c] sm:$0xf]  ;;  %v7457_v17 = vld [vmem:[%s12285_s8 + $0x5a4] sm:$0xf0] }
 0x569   :  { %4946 = vmatmul.bf16.vlgmr.msra.gmra.mxu2 %v11265_v50  ;;  %v7544_v45 = vor.u32 %v8231_v28, %v7541_v30  ;;  %v7233_v28 = vld [vmem:[%s12285_s8 + $0x3e4] sm:$0xf0]  ;;  %v6875_v30 = vld [vmem:[%s12285_s8 + $0xf8] sm:$0xf] }
 0x56a   :  { %4990 = vmatpush.bf16.msrb.mxu2 %v6956_v23  ;;  %4968 = vmatpush.bf16.msrb.mxu0 %v7288_v34  ;;  %v7012_v23 = vor.u32 %v8098_v14, %v7009_v19  ;;  %v7183_v34 = vld [vmem:[%s12285_s8 + $0x360] sm:$0xf]  ;;  %v6903_v19 = vld [vmem:[%s12285_s8 + $0x130] sm:$0xf] }
 0x56b   :  { %v7184_v46 = vor.u32 %v8144_v38, %v7183_v34  ;;  %v7261_v14 = vld [vmem:[%s12285_s8 + $0x41c] sm:$0xf0]  ;;  %v6904_v33 = vor.u32 %v8074_v60, %v6903_v19  ;;  %v7351_v60 = vld [vmem:[%s12285_s8 + $0x4b0] sm:$0xf] }
 0x56c   :  { %5005 = vmatpush.bf16.msrb.mxu3 %v7124_v32  ;;  %4983 = vmatpush.bf16.msrb.mxu1 %v7456_v43  ;;  %v7376_v32 = vor.u32 %v8189_v37, %v7373_v22  ;;  %v7513_v43 = vld [vmem:[%s12285_s8 + $0x614] sm:$0xf0]  ;;  %v7429_v37 = vld [vmem:[%s12285_s8 + $0x56c] sm:$0xf0]  ;;  %v7071_v22 = vld [vmem:[%s12285_s8 + $0x280] sm:$0xf] }
 0x56d   :  { %v7516_v56 = vor.u32 %v8224_v44, %v7513_v43  ;;  %v7432_v34 = vor.u32 %v8203_v20, %v7429_v37  ;;  %v8249_v44 = vld [vmem:[%s12285_s8 + $0x6c0] sm:$0xf0]  ;;  %v8147_v43 = vld [vmem:[%s12285_s8 + $0x394] sm:$0xf]  ;;  %v7519_v37 = vld [vmem:[%s12285_s8 + $0x600] sm:$0xf] }
 0x56e   :  { %4991 = vmatpush.bf16.msrb.mxu2 %v6928_v40  ;;  %4969 = vmatpush.bf16.msrb.mxu0 %v7260_v25  ;;  %v8182_v40 = vld [vmem:[%s12285_s8 + $0x4ac] sm:$0xf]  ;;  %v7155_v25 = vld [vmem:[%s12285_s8 + $0x328] sm:$0xf] }
 0x56f   :  { %v7156_v57 = vor.u32 %v8137_v51, %v7155_v25  ;;  %v8060_v25 = vld [vmem:[%s12285_s8 + $0xd8] sm:$0xf0]  ;;  %v7407_v51 = vld [vmem:[%s12285_s8 + $0x520] sm:$0xf] }
 0x570   :  { %5006 = vmatpush.bf16.msrb.mxu3 %v7096_v49  ;;  %4984 = vmatpush.bf16.msrb.mxu1 %v7428_v47  ;;  %v7348_v49 = vor.u32 %v8182_v40, %v7345_v41  ;;  %v7043_v40 = vld [vmem:[%s12285_s8 + $0x248] sm:$0xf]  ;;  %v8109_v41 = vld [vmem:[%s12285_s8 + $0x260] sm:$0xf0] }
 0x571   :  { %v7044_v8 = vor.u32 %v8109_v41, %v7043_v40 }
 0x572   :  { %4992 = vmatpush.bf16.msrb.mxu2 %v6900_v53  ;;  %4970 = vmatpush.bf16.msrb.mxu0 %v7232_v0  ;;  %v8175_v53 = vld [vmem:[%s12285_s8 + $0x474] sm:$0xf]  ;;  %v8130_v0 = vld [vmem:[%s12285_s8 + $0x308] sm:$0xf0] }
 0x573   :  { %4985 = vmatmul.bf16.vlgmr.msrb.gmra.mxu1 %v11307_v59  ;;  %v7320_v47 = vor.u32 %v8175_v53, %v7317_v9  ;;  %v7128_v5 = vor.u32 %v8130_v0, %v7127_v29  ;;  %v12125_v9 = vld [vmem:[%s12287_s16] sm:$0xff]  ;;  %v6819_v29 = vld [vmem:[%s12285_s8 + $0x88] sm:$0xf] }
 0x574   :  { %5007 = vmatpush.bf16.msrb.mxu3 %v7068_v61  ;;  %5029 = vmatpush.bf16.msra.mxu1 %v7628_v26  ;;  %v8217_v61 = vld [vmem:[%s12285_s8 + $0x5c4] sm:$0xf]  ;;  %v7485_v26 = vld [vmem:[%s12285_s8 + $0x5dc] sm:$0xf0]  ;;  %v3564_v0 = vperm.slane %v12125_v9, 0 }
 0x575   :  { %v7488_v4 = vor.u32 %v8217_v61, %v7485_v26  ;;  %v7408_v61 = vor.u32 %v8200_v52, %v7407_v51  ;;  %v8242_v26 = vld [vmem:[%s12285_s8 + $0x688] sm:$0xf0]  ;;  %v7463_v52 = vld [vmem:[%s12285_s8 + $0x590] sm:$0xf] }
 0x576   :  { %4993 = vmatpush.bf16.msrb.mxu2 %v6872_v62  ;;  %4971 = vmatpush.bf16.msrb.mxu0 %v7204_v12  ;;  %v8168_v62 = vld [vmem:[%s12285_s8 + $0x43c] sm:$0xf]  ;;  %v8123_v12 = vld [vmem:[%s12285_s8 + $0x2d0] sm:$0xf0] }
 0x577   :  { %v7292_v6 = vor.u32 %v8168_v62, %v7289_v1  ;;  %v7379_v62 = vld [vmem:[%s12285_s8 + $0x4e8] sm:$0xf]  ;;  %v8193_v1 = vld [vmem:[%s12285_s8 + $0x500] sm:$0xf0] }
 0x578   :  { %5008 = vmatpush.bf16.msrb.mxu3 %v7040_v10  ;;  %5030 = vmatpush.bf16.msra.mxu1 %v7600_v11  ;;  %v7099_v10 = vld [vmem:[%s12285_s8 + $0x2b8] sm:$0xf]  ;;  %v6932_v11 = vor.u32 %v8081_v3, %v6931_v2 }
 0x579   :  { %4972 = vmatmul.bf16.vlgmr.msrb.gmra.mxu0 %v11347_v35  ;;  %v7100_v21 = vor.u32 %v8123_v12, %v7099_v10  ;;  %v8235_v12 = vld [vmem:[%s12285_s8 + $0x650] sm:$0xf0] }
 0x57a   :  { %4994 = vmatpush.bf16.msrb.mxu2 %v6844_v13  ;;  %5016 = vmatpush.bf16.msra.mxu0 %v7404_v15  ;;  %v8161_v13 = vld [vmem:[%s12285_s8 + $0x404] sm:$0xf]  ;;  %v7460_v15 = vor.u32 %v8210_v7, %v7457_v17  ;;  %v8095_v7 = vld [vmem:[%s12285_s8 + $0x1f0] sm:$0xf0]  ;;  %v7547_v17 = vld [vmem:[%s12285_s8 + $0x638] sm:$0xf] }
 0x57b   :  { %v7264_v36 = vor.u32 %v8161_v13, %v7261_v14  ;;  %v6791_v13 = vld [vmem:[%s12285_s8 + $0x50] sm:$0xf]  ;;  %v8046_v14 = vld [vmem:[%s12285_s8 + $0x68] sm:$0xf0] }
 0x57c   :  { %5009 = vmatpush.bf16.msrb.mxu3 %v7012_v23  ;;  %5031 = vmatpush.bf16.msra.mxu1 %v7572_v18  ;;  %v8116_v23 = vld [vmem:[%s12285_s8 + $0x298] sm:$0xf0]  ;;  %v7631_v18 = vld [vmem:[%s12285_s8 + $0x6e0] sm:$0xf] }
 0x57d   :  { %v7072_v16 = vor.u32 %v8116_v23, %v7071_v22 }
 0x57e   :  { %4995 = vmatpush.bf16.msrb.mxu2 %v6816_v24  ;;  %5017 = vmatpush.bf16.msra.mxu0 %v7376_v32  ;;  %v8256_v24 = vld [vmem:[%s12285_s8 + $0x6f8] sm:$0xf0]  ;;  %v8067_v32 = vld [vmem:[%s12285_s8 + $0x110] sm:$0xf0] }
 0x57f   :  { %v7632_v39 = vor.u32 %v8256_v24, %v7631_v18  ;;  %v6763_v18 = vld [vmem:[%s12285_s8 + $0x18] sm:$0xf]  ;;  %v8039_v24 = vld [vmem:[%s12285_s8 + $0x30] sm:$0xf0] }
 0x580   :  { %5010 = vmatpush.bf16.msrb.mxu3 %v6984_v42  ;;  %5032 = vmatpush.bf16.msra.mxu1 %v7544_v45  ;;  %v7236_v42 = vor.u32 %v8154_v31, %v7233_v28  ;;  %v6876_v45 = vor.u32 %v8067_v32, %v6875_v30  ;;  %v7323_v28 = vld [vmem:[%s12285_s8 + $0x478] sm:$0xf]  ;;  %v8179_v30 = vld [vmem:[%s12285_s8 + $0x490] sm:$0xf0]  ;;  %v6764_v40 = vor.u32 %v8039_v24, %v6763_v18 }
 0x582   :  { %4996 = vmatpush.bf16.msrb.mxu2 %v6788_v48  ;;  %5018 = vmatpush.bf16.msra.mxu0 %v7348_v49  ;;  %v7205_v48 = vld [vmem:[%s12285_s8 + $0x3ac] sm:$0xf0]  ;;  %v6847_v49 = vld [vmem:[%s12285_s8 + $0xc0] sm:$0xf] }
 0x583   :  { %5011 = vmatmul.bf16.vlgmr.msrb.gmra.mxu3 %v11243_v27  ;;  %v7208_v54 = vor.u32 %v8147_v43, %v7205_v48  ;;  %v6848_v55 = vor.u32 %v8060_v25, %v6847_v49  ;;  %v8172_v43 = vld [vmem:[%s12285_s8 + $0x458] sm:$0xf0] }
 0x584   :  { %5055 = vmatpush.bf16.msra.mxu3 %v7184_v46  ;;  %5033 = vmatpush.bf16.msra.mxu1 %v7516_v56  ;;  %v7603_v46 = vld [vmem:[%s12285_s8 + $0x6a8] sm:$0xf]  ;;  %v7015_v56 = vld [vmem:[%s12285_s8 + $0x210] sm:$0xf] }
 0x585   :  { %v7604_v53 = vor.u32 %v8249_v44, %v7603_v46  ;;  %v7295_v44 = vld [vmem:[%s12285_s8 + $0x440] sm:$0xf] }
 0x586   :  { %4997 = vmatpush.bf16.msrb.mxu2 %v6760_v58  ;;  %5019 = vmatpush.bf16.msra.mxu0 %v7320_v47  ;;  %v12090_v38 = vpop.f32.mrf.mxu3  ;;  %v7575_v58 = vld [vmem:[%s12285_s8 + $0x670] sm:$0xf]  ;;  %v7296_v51 = vor.u32 %v8172_v43, %v7295_v44 }
 0x588   :  { %5056 = vmatpush.bf16.msra.mxu3 %v7156_v57  ;;  %5034 = vmatpush.bf16.msra.mxu1 %v7488_v4  ;;  %v8102_v57 = vld [vmem:[%s12285_s8 + $0x228] sm:$0xf0]  ;;  %v7576_v4 = vor.u32 %v8242_v26, %v7575_v58  ;;  %v8207_v26 = vld [vmem:[%s12285_s8 + $0x570] sm:$0xf0] }
 0x589   :  { %4998 = vmatmul.bf16.vlgmr.msrb.gmra.mxu2 %v11265_v50  ;;  %v7016_v3 = vor.u32 %v8102_v57, %v7015_v56 }
 0x58a   :  { %5042 = vmatpush.bf16.msra.mxu2 %v6960_v63  ;;  %5020 = vmatpush.bf16.msra.mxu0 %v7292_v6  ;;  %v8053_v63 = vld [vmem:[%s12285_s8 + $0xa0] sm:$0xf0]  ;;  %v6987_v6 = vld [vmem:[%s12285_s8 + $0x1d8] sm:$0xf] }
 0x58b   :  { %v6988_v20 = vor.u32 %v8095_v7, %v6987_v6  ;;  %v8151_v6 = vld [vmem:[%s12285_s8 + $0x3b0] sm:$0xf0] }
 0x58c   :  { %5057 = vmatpush.bf16.msra.mxu3 %v7128_v5  ;;  %5035 = vmatpush.bf16.msra.mxu1 %v7460_v15  ;;  %v4739_v47 = vpop.f32.mrf.mxu2  ;;  %v6820_v5 = vor.u32 %v8053_v63, %v6819_v29  ;;  %v8186_v15 = vld [vmem:[%s12285_s8 + $0x4c8] sm:$0xf0] }
 0x58d   :  { %v4740_v19 = vadd.f32 %v4739_v47, %v3564_v0  ;;  %v7352_v23 = vor.u32 %v8186_v15, %v7351_v60  ;;  %v8158_v63 = vld [vmem:[%s12285_s8 + $0x3e8] sm:$0xf0]  ;;  %v3566_v15 = vperm.slane %v12125_v9, 2 }
 0x58e   :  { %5043 = vmatpush.bf16.msra.mxu2 %v6932_v11  ;;  %5021 = vmatpush.bf16.msra.mxu0 %v7264_v36  ;;  %v4754_v2 = vpop.f32.mrf.mxu3  ;;  %v7380_v11 = vor.u32 %v8193_v1, %v7379_v62  ;;  %v6792_v36 = vor.u32 %v8046_v14, %v6791_v13 }
 0x58f   :  { %v4753_v31 = vadd.f32 %v12090_v38, %v4740_v19  ;;  %v7491_v38 = vld [vmem:[%s12285_s8 + $0x5c8] sm:$0xf] }
 0x590   :  { %5058 = vmatpush.bf16.msra.mxu3 %v7100_v21  ;;  %5036 = vmatpush.bf16.msra.mxu1 %v7432_v34  ;;  %v4778_v10 = vpop.f32.mrf.mxu1  ;;  %v7548_v21 = vor.u32 %v8235_v12, %v7547_v17 }
 0x592   :  { %5044 = vmatpush.bf16.msra.mxu2 %v6904_v33  ;;  %5022 = vmatpush.bf16.msra.mxu0 %v7236_v42  ;;  %v8228_v33 = vld [vmem:[%s12285_s8 + $0x618] sm:$0xf0]  ;;  %v7324_v42 = vor.u32 %v8179_v30, %v7323_v28 }
 0x593   :  { %5037 = vmatmul.bf16.vlgmr.msra.gmra.mxu1 %v11307_v59 }
 0x594   :  { %5059 = vmatpush.bf16.msra.mxu3 %v7072_v16  ;;  %5081 = vmatpush.bf16.msrb.mxu1 %v7632_v39  ;;  %v4741_v22 = vpop.f32.mrf.mxu2  ;;  %v7520_v39 = vor.u32 %v8228_v33, %v7519_v37 }
 0x596   :  { %5045 = vmatpush.bf16.msra.mxu2 %v6876_v45  ;;  %5023 = vmatpush.bf16.msra.mxu0 %v7208_v54  ;;  %v4765_v32 = vpop.f32.mrf.mxu0  ;;  %v4804_v34 = vpop.f32.mrf.mxu3  ;;  %v8221_v45 = vld [vmem:[%s12285_s8 + $0x5e0] sm:$0xf0] }
 0x597   :  { %v4766_v16 = vadd.f32 %v4765_v32, %v4753_v31  ;;  %v7492_v49 = vor.u32 %v8221_v45, %v7491_v38  ;;  %v8165_v54 = vld [vmem:[%s12285_s8 + $0x420] sm:$0xf0] }
 0x598   :  { %5060 = vmatpush.bf16.msra.mxu3 %v7044_v8  ;;  %5082 = vmatpush.bf16.msrb.mxu1 %v7604_v53  ;;  %v4780_v41 = vpop.f32.mrf.mxu1  ;;  %v3565_v8 = vperm.slane %v12125_v9, 1  ;;  %v7267_v53 = vld [vmem:[%s12285_s8 + $0x408] sm:$0xf] }
 0x599   :  { %5024 = vmatmul.bf16.vlgmr.msra.gmra.mxu0 %v11347_v35  ;;  %v4779_v46 = vadd.f32 %v4778_v10, %v4766_v16  ;;  %v7268_v47 = vor.u32 %v8165_v54, %v7267_v53 }
 0x59a   :  { %5046 = vmatpush.bf16.msra.mxu2 %v6848_v55  ;;  %5068 = vmatpush.bf16.msrb.mxu0 %v7408_v61  ;;  %v7435_v61 = vld [vmem:[%s12285_s8 + $0x558] sm:$0xf] }
 0x59b   :  { %v5094_v48 = vmul.f32 0.5, %v4779_v46  ;;  %v7436_v62 = vor.u32 %v8207_v26, %v7435_v61 }
 0x59c   :  { %5061 = vmatpush.bf16.msra.mxu3 %v7016_v3  ;;  %5083 = vmatpush.bf16.msrb.mxu1 %v7576_v4  ;;  %v4791_v25 = vpop.f32.mrf.mxu2 }
 0x59d   :  { %8290 = vtanh.f32 %v5094_v48  ;;  %v4792_v29 = vadd.f32 %v4791_v25, %v3565_v8 }
 0x59e   :  { %5047 = vmatpush.bf16.msra.mxu2 %v6820_v5  ;;  %5069 = vmatpush.bf16.msrb.mxu0 %v7380_v11  ;;  %v4767_v55 = vpop.f32.mrf.mxu0  ;;  %v4806_v56 = vpop.f32.mrf.mxu3  ;;  %v7211_v5 = vld [vmem:[%s12285_s8 + $0x398] sm:$0xf] }
 0x59f   :  { %v4805_v4 = vadd.f32 %v4804_v34, %v4792_v29  ;;  %v7212_v13 = vor.u32 %v8151_v6, %v7211_v5 }
 0x5a0   :  { %5062 = vmatpush.bf16.msra.mxu3 %v6988_v20  ;;  %5084 = vmatpush.bf16.msrb.mxu1 %v7548_v21  ;;  %v4830_v58 = vpop.f32.mrf.mxu1 }
 0x5a2   :  { %5048 = vmatpush.bf16.msra.mxu2 %v6792_v36  ;;  %5070 = vmatpush.bf16.msrb.mxu0 %v7352_v23 }
 0x5a3   :  { %5063 = vmatmul.bf16.vlgmr.msra.gmra.mxu3 %v11243_v27  ;;  %v8214_v27 = vld [vmem:[%s12285_s8 + $0x5a8] sm:$0xf0]  ;;  %v8291_v0 = vpop.eup %8290 }
 0x5a4   :  { %5085 = vmatpush.bf16.msrb.mxu1 %v7520_v39  ;;  %v7464_v57 = vor.u32 %v8214_v27, %v7463_v52  ;;  %v5108_v1 = vadd.f32 1.0, %v8291_v0  ;;  %v4793_v2 = vpop.f32.mrf.mxu2 }
 0x5a6   :  { %5049 = vmatpush.bf16.msra.mxu2 %v6764_v40  ;;  %5071 = vmatpush.bf16.msrb.mxu0 %v7324_v42  ;;  %v5115_v7 = vmul.f32 0.5, %v5108_v1  ;;  %v4817_v17 = vpop.f32.mrf.mxu0  ;;  %v4856_v10 = vpop.f32.mrf.mxu3  ;;  %v3567_v42 = vperm.slane %v12125_v9, 3 }
 0x5a7   :  { %v4818_v11 = vadd.f32 %v4817_v17, %v4805_v4  ;;  %v3569_v17 = vperm.slane %v12125_v9, 5 }
 0x5a8   :  { %5086 = vmatpush.bf16.msrb.mxu1 %v7492_v49  ;;  %5122 = vst [vmem:[%s12288_s17] sm:$0xff] %v5115_v7  ;;  %v4832_v12 = vpop.f32.mrf.mxu1 }
 0x5a9   :  { %5050 = vmatmul.bf16.vlgmr.msra.gmra.mxu2 %v11265_v50  ;;  %v7239_v50 = vld [vmem:[%s12285_s8 + $0x3d0] sm:$0xf]  ;;  %v4831_v14 = vadd.f32 %v4830_v58, %v4818_v11 }
 0x5aa   :  { %5072 = vmatpush.bf16.msrb.mxu0 %v7296_v51  ;;  %v7240_v3 = vor.u32 %v8158_v63, %v7239_v50 }
 0x5ab   :  { %v5095_v19 = vmul.f32 0.5, %v4831_v14 }
 0x5ac   :  { %5087 = vmatpush.bf16.msrb.mxu1 %v7464_v57  ;;  %v4843_v60 = vpop.f32.mrf.mxu2  ;;  %v3568_v57 = vperm.slane %v12125_v9, 4 }
 0x5ad   :  { %8292 = vtanh.f32 %v5095_v19  ;;  %v4844_v37 = vadd.f32 %v4843_v60, %v3566_v15 }
 0x5ae   :  { %5073 = vmatpush.bf16.msrb.mxu0 %v7268_v47  ;;  %v4819_v20 = vpop.f32.mrf.mxu0  ;;  %v4858_v21 = vpop.f32.mrf.mxu3 }
 0x5af   :  { %v4857_v24 = vadd.f32 %v4856_v10, %v4844_v37 }
 0x5b0   :  { %5088 = vmatpush.bf16.msrb.mxu1 %v7436_v62  ;;  %v4882_v36 = vpop.f32.mrf.mxu1 }
 0x5b2   :  { %5074 = vmatpush.bf16.msrb.mxu0 %v7240_v3 }
 0x5b3   :  { %5089 = vmatmul.bf16.vlgmr.msrb.gmra.mxu1 %v11307_v59  ;;  %v8293_v22 = vpop.eup %8292 }
 0x5b4   :  { %v5109_v23 = vadd.f32 1.0, %v8293_v22  ;;  %v4845_v33 = vpop.f32.mrf.mxu2 }
 0x5b6   :  { %5075 = vmatpush.bf16.msrb.mxu0 %v7212_v13  ;;  %v5116_v18 = vmul.f32 0.5, %v5109_v23  ;;  %v4869_v31 = vpop.f32.mrf.mxu0 }
 0x5b7   :  { %v4870_v59 = vadd.f32 %v4869_v31, %v4857_v24  ;;  %v3570_v24 = vperm.slane %v12125_v9, 6 }
 0x5b8   :  { %5123 = vst [vmem:[%s12288_s17 + $0x8] sm:$0xff] %v5116_v18  ;;  %v4884_v28 = vpop.f32.mrf.mxu1 }
 0x5b9   :  { %5076 = vmatmul.bf16.vlgmr.msrb.gmra.mxu0 %v11347_v35  ;;  %v4883_v30 = vadd.f32 %v4882_v36, %v4870_v59 }
 0x5bb   :  { %v5096_v32 = vmul.f32 0.5, %v4883_v30 }
 0x5bd   :  { %8294 = vtanh.f32 %v5096_v32 }
 0x5be   :  { %v4871_v34 = vpop.f32.mrf.mxu0 }
 0x5c3   :  { %v8295_v35 = vpop.eup %8294 }
 0x5c4   :  { %v5110_v39 = vadd.f32 1.0, %v8295_v35 }
 0x5c6   :  { %v4908_v16 = vpop.f32.mrf.mxu3  ;;  %v5117_v40 = vmul.f32 0.5, %v5110_v39 }
 0x5c8   :  { %5124 = vst [vmem:[%s12288_s17 + $0x10] sm:$0xff] %v5117_v40 }
 0x5cc   :  { %v4895_v41 = vpop.f32.mrf.mxu2 }
 0x5cd   :  { %v4896_v46 = vadd.f32 %v4895_v41, %v3567_v42 }
 0x5ce   :  { %v4910_v38 = vpop.f32.mrf.mxu3 }
 0x5cf   :  { %v4909_v43 = vadd.f32 %v4908_v16, %v4896_v46 }
 0x5d0   :  { %v4934_v45 = vpop.f32.mrf.mxu1 }
 0x5d4   :  { %v4897_v44 = vpop.f32.mrf.mxu2 }
 0x5d6   :  { %v4921_v48 = vpop.f32.mrf.mxu0 }
 0x5d7   :  { %v4922_v49 = vadd.f32 %v4921_v48, %v4909_v43 }
 0x5d8   :  { %v4936_v25 = vpop.f32.mrf.mxu1 }
 0x5d9   :  { %v4935_v51 = vadd.f32 %v4934_v45, %v4922_v49 }
 0x5db   :  { %v5097_v52 = vmul.f32 0.5, %v4935_v51 }
 0x5dd   :  { %8296 = vtanh.f32 %v5097_v52 }
 0x5de   :  { %v4923_v27 = vpop.f32.mrf.mxu0 }
 0x5e3   :  { %v8297_v8 = vpop.eup %8296 }
 0x5e4   :  { %v5111_v54 = vadd.f32 1.0, %v8297_v8 }
 0x5e6   :  { %v4960_v53 = vpop.f32.mrf.mxu3  ;;  %v5118_v55 = vmul.f32 0.5, %v5111_v54 }
 0x5e8   :  { %5125 = vst [vmem:[%s12288_s17 + $0x18] sm:$0xff] %v5118_v55 }
 0x5ec   :  { %v4947_v56 = vpop.f32.mrf.mxu2 }
 0x5ed   :  { %v4948_v61 = vadd.f32 %v4947_v56, %v3568_v57 }
 0x5ee   :  { %v4962_v58 = vpop.f32.mrf.mxu3 }
 0x5ef   :  { %v4961_v29 = vadd.f32 %v4960_v53, %v4948_v61 }
 0x5f0   :  { %v4986_v47 = vpop.f32.mrf.mxu1 }
 0x5f4   :  { %v4949_v26 = vpop.f32.mrf.mxu2 }
 0x5f6   :  { %v4973_v50 = vpop.f32.mrf.mxu0 }
 0x5f7   :  { %v4974_v63 = vadd.f32 %v4973_v50, %v4961_v29 }
 0x5f8   :  { %v4988_v0 = vpop.f32.mrf.mxu1 }
 0x5f9   :  { %v4987_v62 = vadd.f32 %v4986_v47, %v4974_v63 }
 0x5fb   :  { %v5098_v1 = vmul.f32 0.5, %v4987_v62 }
 0x5fd   :  { %8298 = vtanh.f32 %v5098_v1 }
 0x5fe   :  { %v4975_v2 = vpop.f32.mrf.mxu0 }
 0x603   :  { %v8299_v3 = vpop.eup %8298 }
 0x604   :  { %v5112_v5 = vadd.f32 1.0, %v8299_v3 }
 0x606   :  { %v5012_v4 = vpop.f32.mrf.mxu3  ;;  %v5119_v6 = vmul.f32 0.5, %v5112_v5 }
 0x608   :  { %5126 = vst [vmem:[%s12288_s17 + $0x20] sm:$0xff] %v5119_v6 }
 0x60c   :  { %v4999_v7 = vpop.f32.mrf.mxu2 }
 0x60d   :  { %v5000_v12 = vadd.f32 %v4999_v7, %v3569_v17 }
 0x60e   :  { %v5014_v10 = vpop.f32.mrf.mxu3 }
 0x60f   :  { %v5013_v14 = vadd.f32 %v5012_v4, %v5000_v12 }
 0x610   :  { %v5038_v11 = vpop.f32.mrf.mxu1 }
 0x614   :  { %v5001_v13 = vpop.f32.mrf.mxu2 }
 0x616   :  { %v5025_v19 = vpop.f32.mrf.mxu0 }
 0x617   :  { %v5026_v60 = vadd.f32 %v5025_v19, %v5013_v14 }
 0x618   :  { %v5040_v15 = vpop.f32.mrf.mxu1 }
 0x619   :  { %v5039_v20 = vadd.f32 %v5038_v11, %v5026_v60 }
 0x61b   :  { %v5099_v21 = vmul.f32 0.5, %v5039_v20 }
 0x61d   :  { %8300 = vtanh.f32 %v5099_v21 }
 0x61e   :  { %v5027_v36 = vpop.f32.mrf.mxu0 }
 0x623   :  { %v8301_v37 = vpop.eup %8300 }
 0x624   :  { %v5113_v23 = vadd.f32 1.0, %v8301_v37 }
 0x626   :  { %v5064_v22 = vpop.f32.mrf.mxu3  ;;  %v5120_v33 = vmul.f32 0.5, %v5113_v23 }
 0x628   :  { %5127 = vst [vmem:[%s12288_s17 + $0x28] sm:$0xff] %v5120_v33 }
 0x62c   :  { %v5051_v18 = vpop.f32.mrf.mxu2 }
 0x62d   :  { %v5052_v59 = vadd.f32 %v5051_v18, %v3570_v24 }
 0x62e   :  { %v5066_v31 = vpop.f32.mrf.mxu3 }
 0x62f   :  { %v5065_v32 = vadd.f32 %v5064_v22, %v5052_v59 }
 0x630   :  { %v5090_v28 = vpop.f32.mrf.mxu1 }
 0x634   :  { %v5053_v30 = vpop.f32.mrf.mxu2 }
 0x636   :  { %v5077_v34 = vpop.f32.mrf.mxu0 }
 0x637   :  { %v5078_v16 = vadd.f32 %v5077_v34, %v5065_v32 }
 0x638   :  { %v5092_v39 = vpop.f32.mrf.mxu1 }
 0x639   :  { %v5091_v35 = vadd.f32 %v5090_v28, %v5078_v16 }
 0x63b   :  { %v5100_v40 = vmul.f32 0.5, %v5091_v35 }
 0x63d   :  { %8302 = vtanh.f32 %v5100_v40 }
 0x63e   :  { %v5079_v41 = vpop.f32.mrf.mxu0 }
 0x643   :  { %v8303_v42 = vpop.eup %8302 }
 0x644   :  { %v5114_v38 = vadd.f32 1.0, %v8303_v42 }
 0x646   :  { %v5121_v45 = vmul.f32 0.5, %v5114_v38 }
 0x648   :  { %5128 = vst [vmem:[%s12288_s17 + $0x30] sm:$0xff] %v5121_v45 }

</bundles_post_ra>
